<compile_context>
chip_gen: v7x
topology: tpu7x:2x2x1
jax: 0.10.0
libtpu: 0.0.40
codegen_flags: <defaults>
</compile_context>

<pallas_src>
import math

import jax
import jax.numpy as jnp
from jax.experimental import pallas as pl
from jax.experimental.pallas import tpu as pltpu

# ---- module hyper-parameters (small-shape version of the PyTorch defaults) ----
EMBED_DIM = 128          # d_model (scaled down from 512)
NUM_HEADS = 8            # nhead
NUM_LAYERS = 5           # num_layers
NUM_CLASSES = 6
FF_DIM = 256             # dim_feedforward (scaled down with d_model)
HEAD_DIM = EMBED_DIM // NUM_HEADS
LN_EPS = 1e-5


def _layer_norm(x, w, b):
    mu = jnp.mean(x, axis=-1, keepdims=True)
    var = jnp.mean(jnp.square(x - mu), axis=-1, keepdims=True)
    return (x - mu) * jax.lax.rsqrt(var + LN_EPS) * w + b


# --------------------------- fused Pallas kernel --------------------------------
def fused_transformer_kernel(x_ref, pos_ref, mask_ref,
                             wqkv_ref, bqkv_ref, wo_ref, bo_ref,
                             ln1w_ref, ln1b_ref,
                             wff1_ref, bff1_ref, wff2_ref, bff2_ref,
                             ln2w_ref, ln2b_ref,
                             fc_w_ref, fc_b_ref,
                             o_ref):
    S, B, E = x_ref.shape
    T = S * B                       # token t = s * B + b (seq-major flattening)
    H, hd = NUM_HEADS, HEAD_DIM

    # positional add (broadcast) + flatten to lane-dense (T, E) residual stream
    x = (x_ref[...].astype(jnp.float32)
         + pos_ref[...].astype(jnp.float32)).reshape(T, E)
    mask = mask_ref[...]            # (T, T) additive block-diagonal bias (0 / -1e30)

    for l in range(NUM_LAYERS):     # unrolled: 5 layers, weights fully VMEM-resident
        # ---- fused QKV projection: ONE (T,128)@(128,384) GEMM -----------------
        qkv = jnp.dot(x.astype(jnp.bfloat16), wqkv_ref[l],
                      preferred_element_type=jnp.float32) + bqkv_ref[l]   # (T, 3E)
        q = qkv[:, 0 * E:1 * E].astype(jnp.bfloat16)   # scale pre-folded into wqkv/bqkv
        k = qkv[:, 1 * E:2 * E].astype(jnp.bfloat16)
        v = qkv[:, 2 * E:3 * E].astype(jnp.bfloat16)

        # head-split views only for the tiny, latency-bound score/ctx einsums
        qh = jnp.stack([q[:, h * hd:(h + 1) * hd] for h in range(H)], axis=0)  # (H,T,hd)
        kh = jnp.stack([k[:, h * hd:(h + 1) * hd] for h in range(H)], axis=0)
        vh = jnp.stack([v[:, h * hd:(h + 1) * hd] for h in range(H)], axis=0)

        s = jnp.einsum('hqd,hkd->hqk', qh, kh,
                       preferred_element_type=jnp.float32)       # (H, T, T)
        s = s + mask                                             # broadcast over heads
        s = s - jnp.max(s, axis=-1, keepdims=True)
        p = jnp.exp(s)
        p = p * pl.reciprocal(jnp.sum(p, axis=-1, keepdims=True), approx=True)

        ctx = jnp.einsum('hqk,hkd->hqd', p.astype(jnp.bfloat16), vh,
                         preferred_element_type=jnp.float32)     # (H, T, hd)

        # concat heads back to lane-dense (T, E) and do ONE output-proj GEMM
        ctx = jnp.concatenate([ctx[h] for h in range(H)], axis=-1)          # (T, E)
        attn = jnp.dot(ctx.astype(jnp.bfloat16), wo_ref[l],
                       preferred_element_type=jnp.float32) + bo_ref[l]

        # ---- residual + LayerNorm 1 (post-norm) -------------------------------
        y = _layer_norm(x + attn, ln1w_ref[l], ln1b_ref[l])

        # ---- feed-forward (Linear -> ReLU -> Linear), bf16 GEMMs, f32 accumulate
        h1 = jnp.dot(y.astype(jnp.bfloat16), wff1_ref[l],
                     preferred_element_type=jnp.float32) + bff1_ref[l]
        h1 = jnp.maximum(h1, 0.0)
        h2 = jnp.dot(h1.astype(jnp.bfloat16), wff2_ref[l],
                     preferred_element_type=jnp.float32) + bff2_ref[l]

        # ---- residual + LayerNorm 2 -------------------------------------------
        x = _layer_norm(y + h2, ln2w_ref[l], ln2b_ref[l])

    # ---- mean over seq + classifier head --------------------------------------
    m = jnp.mean(x.reshape(S, B, E), axis=0)                     # x.mean(dim=0) -> (B, E)
    logits = jnp.dot(m, fc_w_ref[...],
                     preferred_element_type=jnp.float32) + fc_b_ref[...]
    o_ref[...] = logits.astype(o_ref.dtype)


# ------------------------------ wrapper ------------------------------------------
@jax.jit
def transformer_classifier(x, params):
    # x: (S, B, E) seq-first (PyTorch batch_first=False default).
    S, B, E = x.shape
    T = S * B
    C = NUM_CLASSES

    # Layer-invariant block-diagonal additive bias: tokens of different batch
    # elements must not attend to each other (token t -> batch index t % B).
    ti = jax.lax.broadcasted_iota(jnp.int32, (T, T), 0)
    tj = jax.lax.broadcasted_iota(jnp.int32, (T, T), 1)
    mask = jnp.where((ti % B) == (tj % B),
                     jnp.float32(0.0), jnp.float32(-1e30))

    args = (x, params['pos'], mask,
            params['wqkv'], params['bqkv'], params['wo'], params['bo'],
            params['ln1w'], params['ln1b'],
            params['wff1'], params['bff1'], params['wff2'], params['bff2'],
            params['ln2w'], params['ln2b'],
            params['fc_w'], params['fc_b'])

    vmem_spec = pl.BlockSpec(memory_space=pltpu.MemorySpace.VMEM)

    return pl.pallas_call(
        fused_transformer_kernel,
        out_shape=jax.ShapeDtypeStruct((B, C), x.dtype),
        in_specs=[vmem_spec] * len(args),
        out_specs=vmem_spec,
    )(*args)


# --------------------------- deterministic init ------------------------------------
def init_params(key):
    E, F, C = EMBED_DIM, FF_DIM, NUM_CLASSES
    H, hd, L = NUM_HEADS, HEAD_DIM, NUM_LAYERS
    ks = jax.random.split(key, 12)
    w = lambda k, shape: jax.random.normal(k, shape, jnp.float32) * 0.02
    scale = 1.0 / math.sqrt(hd)   # 1/sqrt(head_dim) folded into the Q projection (w + b)

    # merged QKV projection, lane-dense: columns [0:E)=Q, [E:2E)=K, [2E:3E)=V
    wq = w(ks[1], (L, E, E)) * scale
    wk = w(ks[2], (L, E, E))
    wv = w(ks[3], (L, E, E))
    wqkv = jnp.concatenate([wq, wk, wv], axis=-1).astype(jnp.bfloat16)   # (L, E, 3E)
    bqkv = jnp.concatenate([w(ks[4], (L, 1, E)) * scale,
                            w(ks[5], (L, 1, E)),
                            w(ks[6], (L, 1, E))], axis=-1)               # (L, 1, 3E) f32

    return {
        # module uses nn.Parameter(torch.zeros(1,1,E)); small randoms keep the add
        # exercised while staying deterministic.
        'pos':  w(ks[0], (1, 1, E)),
        'wqkv': wqkv,
        'bqkv': bqkv,
        # output projection, concat-heads layout: rows h*hd:(h+1)*hd belong to head h
        'wo':   w(ks[7], (L, E, E)).astype(jnp.bfloat16),
        'bo':   jnp.zeros((L, 1, E), jnp.float32),
        'ln1w': jnp.ones((L, 1, E), jnp.float32),
        'ln1b': jnp.zeros((L, 1, E), jnp.float32),
        'wff1': w(ks[8], (L, E, F)).astype(jnp.bfloat16),
        'bff1': jnp.zeros((L, 1, F), jnp.float32),
        'wff2': w(ks[9], (L, F, E)).astype(jnp.bfloat16),
        'bff2': jnp.zeros((L, 1, E), jnp.float32),
        'ln2w': jnp.ones((L, 1, E), jnp.float32),
        'ln2b': jnp.zeros((L, 1, E), jnp.float32),
        'fc_w': w(ks[10], (E, C)),
        'fc_b': jnp.zeros((1, C), jnp.float32),
    }


if __name__ == "__main__":
    key = jax.random.PRNGKey(0)
    kx, kp = jax.random.split(key)
    SEQ, BATCH = 8, 2
    x = jax.random.normal(kx, (SEQ, BATCH, EMBED_DIM), jnp.float32)   # (S, B, E)
    params = init_params(kp)

    out = transformer_classifier(x, params)
    jax.block_until_ready(out)
    assert out.shape == (BATCH, NUM_CLASSES)
    assert bool(jnp.all(jnp.isfinite(out)))
    print("KERNEL_OK")
</pallas_src>

<mosaic_0001>
module attributes {stable_mosaic.version = 11 : i64} {
  func.func @fused_transformer_kernel(%arg0: memref<8x2x128xf32, #tpu.memory_space<vmem>>, %arg1: memref<1x1x128xf32, #tpu.memory_space<vmem>>, %arg2: memref<16x16xf32, #tpu.memory_space<vmem>>, %arg3: memref<5x128x384xbf16, #tpu.memory_space<vmem>>, %arg4: memref<5x1x384xf32, #tpu.memory_space<vmem>>, %arg5: memref<5x128x128xbf16, #tpu.memory_space<vmem>>, %arg6: memref<5x1x128xf32, #tpu.memory_space<vmem>>, %arg7: memref<5x1x128xf32, #tpu.memory_space<vmem>>, %arg8: memref<5x1x128xf32, #tpu.memory_space<vmem>>, %arg9: memref<5x128x256xbf16, #tpu.memory_space<vmem>>, %arg10: memref<5x1x256xf32, #tpu.memory_space<vmem>>, %arg11: memref<5x256x128xbf16, #tpu.memory_space<vmem>>, %arg12: memref<5x1x128xf32, #tpu.memory_space<vmem>>, %arg13: memref<5x1x128xf32, #tpu.memory_space<vmem>>, %arg14: memref<5x1x128xf32, #tpu.memory_space<vmem>>, %arg15: memref<128x6xf32, #tpu.memory_space<vmem>>, %arg16: memref<1x6xf32, #tpu.memory_space<vmem>>, %arg17: memref<2x6xf32, #tpu.memory_space<vmem>>) attributes {dimension_semantics = [], scalar_prefetch = 0 : i64, scratch_operands = 0 : i64, tpu.core_type = #tpu.core_type<tc>} {
    %c0 = arith.constant 0 : index
    %c0_0 = arith.constant 0 : index
    %c0_1 = arith.constant 0 : index
    %0 = vector.load %arg0[%c0, %c0_0, %c0_1] : memref<8x2x128xf32, #tpu.memory_space<vmem>>, vector<8x2x128xf32>
    %c0_2 = arith.constant 0 : index
    %c0_3 = arith.constant 0 : index
    %c0_4 = arith.constant 0 : index
    %1 = vector.load %arg1[%c0_2, %c0_3, %c0_4] : memref<1x1x128xf32, #tpu.memory_space<vmem>>, vector<1x1x128xf32>
    %2 = vector.broadcast %1 : vector<1x1x128xf32> to vector<8x2x128xf32>
    %3 = arith.addf %0, %2 : vector<8x2x128xf32>
    %4 = vector.shape_cast %3 : vector<8x2x128xf32> to vector<16x128xf32>
    %c0_5 = arith.constant 0 : index
    %c0_6 = arith.constant 0 : index
    %5 = vector.load %arg2[%c0_5, %c0_6] : memref<16x16xf32, #tpu.memory_space<vmem>>, vector<16x16xf32>
    %6 = arith.truncf %4 : vector<16x128xf32> to vector<16x128xbf16>
    %c0_7 = arith.constant 0 : index
    %c0_8 = arith.constant 0 : index
    %c0_9 = arith.constant 0 : index
    %7 = vector.load %arg3[%c0_7, %c0_8, %c0_9] : memref<5x128x384xbf16, #tpu.memory_space<vmem>>, vector<1x128x384xbf16>
    %8 = vector.shape_cast %7 : vector<1x128x384xbf16> to vector<128x384xbf16>
    %cst = arith.constant dense<0.000000e+00> : vector<16x384xf32>
    %9 = tpu.matmul %6, %8, %cst {dimension_numbers = #tpu.dot_dimension_numbers<[1], [0], [0], [1], [0, 0, 1, 1], [], []>} : vector<16x128xbf16>, vector<128x384xbf16>, vector<16x384xf32> -> vector<16x384xf32>
    %c0_10 = arith.constant 0 : index
    %c0_11 = arith.constant 0 : index
    %c0_12 = arith.constant 0 : index
    %10 = vector.load %arg4[%c0_10, %c0_11, %c0_12] : memref<5x1x384xf32, #tpu.memory_space<vmem>>, vector<1x1x384xf32>
    %11 = vector.shape_cast %10 : vector<1x1x384xf32> to vector<1x384xf32>
    %12 = vector.broadcast %11 : vector<1x384xf32> to vector<16x384xf32>
    %13 = arith.addf %9, %12 : vector<16x384xf32>
    %14 = vector.extract_strided_slice %13 {offsets = [0, 0], sizes = [16, 128], strides = [1, 1]} : vector<16x384xf32> to vector<16x128xf32>
    %15 = arith.truncf %14 : vector<16x128xf32> to vector<16x128xbf16>
    %16 = vector.extract_strided_slice %13 {offsets = [0, 128], sizes = [16, 128], strides = [1, 1]} : vector<16x384xf32> to vector<16x128xf32>
    %17 = arith.truncf %16 : vector<16x128xf32> to vector<16x128xbf16>
    %18 = vector.extract_strided_slice %13 {offsets = [0, 256], sizes = [16, 128], strides = [1, 1]} : vector<16x384xf32> to vector<16x128xf32>
    %19 = arith.truncf %18 : vector<16x128xf32> to vector<16x128xbf16>
    %20 = vector.extract_strided_slice %15 {offsets = [0, 0], sizes = [16, 16], strides = [1, 1]} : vector<16x128xbf16> to vector<16x16xbf16>
    %21 = vector.extract_strided_slice %15 {offsets = [0, 16], sizes = [16, 16], strides = [1, 1]} : vector<16x128xbf16> to vector<16x16xbf16>
    %22 = vector.extract_strided_slice %15 {offsets = [0, 32], sizes = [16, 16], strides = [1, 1]} : vector<16x128xbf16> to vector<16x16xbf16>
    %23 = vector.extract_strided_slice %15 {offsets = [0, 48], sizes = [16, 16], strides = [1, 1]} : vector<16x128xbf16> to vector<16x16xbf16>
    %24 = vector.extract_strided_slice %15 {offsets = [0, 64], sizes = [16, 16], strides = [1, 1]} : vector<16x128xbf16> to vector<16x16xbf16>
    %25 = vector.extract_strided_slice %15 {offsets = [0, 80], sizes = [16, 16], strides = [1, 1]} : vector<16x128xbf16> to vector<16x16xbf16>
    %26 = vector.extract_strided_slice %15 {offsets = [0, 96], sizes = [16, 16], strides = [1, 1]} : vector<16x128xbf16> to vector<16x16xbf16>
    %27 = vector.extract_strided_slice %15 {offsets = [0, 112], sizes = [16, 16], strides = [1, 1]} : vector<16x128xbf16> to vector<16x16xbf16>
    %28 = vector.shape_cast %20 : vector<16x16xbf16> to vector<1x16x16xbf16>
    %29 = vector.shape_cast %21 : vector<16x16xbf16> to vector<1x16x16xbf16>
    %30 = vector.shape_cast %22 : vector<16x16xbf16> to vector<1x16x16xbf16>
    %31 = vector.shape_cast %23 : vector<16x16xbf16> to vector<1x16x16xbf16>
    %32 = vector.shape_cast %24 : vector<16x16xbf16> to vector<1x16x16xbf16>
    %33 = vector.shape_cast %25 : vector<16x16xbf16> to vector<1x16x16xbf16>
    %34 = vector.shape_cast %26 : vector<16x16xbf16> to vector<1x16x16xbf16>
    %35 = vector.shape_cast %27 : vector<16x16xbf16> to vector<1x16x16xbf16>
    %36 = tpu.concatenate %28, %29, %30, %31, %32, %33, %34, %35 in 0 : vector<1x16x16xbf16>, vector<1x16x16xbf16>, vector<1x16x16xbf16>, vector<1x16x16xbf16>, vector<1x16x16xbf16>, vector<1x16x16xbf16>, vector<1x16x16xbf16>, vector<1x16x16xbf16> -> vector<8x16x16xbf16>
    %37 = vector.extract_strided_slice %17 {offsets = [0, 0], sizes = [16, 16], strides = [1, 1]} : vector<16x128xbf16> to vector<16x16xbf16>
    %38 = vector.extract_strided_slice %17 {offsets = [0, 16], sizes = [16, 16], strides = [1, 1]} : vector<16x128xbf16> to vector<16x16xbf16>
    %39 = vector.extract_strided_slice %17 {offsets = [0, 32], sizes = [16, 16], strides = [1, 1]} : vector<16x128xbf16> to vector<16x16xbf16>
    %40 = vector.extract_strided_slice %17 {offsets = [0, 48], sizes = [16, 16], strides = [1, 1]} : vector<16x128xbf16> to vector<16x16xbf16>
    %41 = vector.extract_strided_slice %17 {offsets = [0, 64], sizes = [16, 16], strides = [1, 1]} : vector<16x128xbf16> to vector<16x16xbf16>
    %42 = vector.extract_strided_slice %17 {offsets = [0, 80], sizes = [16, 16], strides = [1, 1]} : vector<16x128xbf16> to vector<16x16xbf16>
    %43 = vector.extract_strided_slice %17 {offsets = [0, 96], sizes = [16, 16], strides = [1, 1]} : vector<16x128xbf16> to vector<16x16xbf16>
    %44 = vector.extract_strided_slice %17 {offsets = [0, 112], sizes = [16, 16], strides = [1, 1]} : vector<16x128xbf16> to vector<16x16xbf16>
    %45 = vector.shape_cast %37 : vector<16x16xbf16> to vector<1x16x16xbf16>
    %46 = vector.shape_cast %38 : vector<16x16xbf16> to vector<1x16x16xbf16>
    %47 = vector.shape_cast %39 : vector<16x16xbf16> to vector<1x16x16xbf16>
    %48 = vector.shape_cast %40 : vector<16x16xbf16> to vector<1x16x16xbf16>
    %49 = vector.shape_cast %41 : vector<16x16xbf16> to vector<1x16x16xbf16>
    %50 = vector.shape_cast %42 : vector<16x16xbf16> to vector<1x16x16xbf16>
    %51 = vector.shape_cast %43 : vector<16x16xbf16> to vector<1x16x16xbf16>
    %52 = vector.shape_cast %44 : vector<16x16xbf16> to vector<1x16x16xbf16>
    %53 = tpu.concatenate %45, %46, %47, %48, %49, %50, %51, %52 in 0 : vector<1x16x16xbf16>, vector<1x16x16xbf16>, vector<1x16x16xbf16>, vector<1x16x16xbf16>, vector<1x16x16xbf16>, vector<1x16x16xbf16>, vector<1x16x16xbf16>, vector<1x16x16xbf16> -> vector<8x16x16xbf16>
    %54 = vector.extract_strided_slice %19 {offsets = [0, 0], sizes = [16, 16], strides = [1, 1]} : vector<16x128xbf16> to vector<16x16xbf16>
    %55 = vector.extract_strided_slice %19 {offsets = [0, 16], sizes = [16, 16], strides = [1, 1]} : vector<16x128xbf16> to vector<16x16xbf16>
    %56 = vector.extract_strided_slice %19 {offsets = [0, 32], sizes = [16, 16], strides = [1, 1]} : vector<16x128xbf16> to vector<16x16xbf16>
    %57 = vector.extract_strided_slice %19 {offsets = [0, 48], sizes = [16, 16], strides = [1, 1]} : vector<16x128xbf16> to vector<16x16xbf16>
    %58 = vector.extract_strided_slice %19 {offsets = [0, 64], sizes = [16, 16], strides = [1, 1]} : vector<16x128xbf16> to vector<16x16xbf16>
    %59 = vector.extract_strided_slice %19 {offsets = [0, 80], sizes = [16, 16], strides = [1, 1]} : vector<16x128xbf16> to vector<16x16xbf16>
    %60 = vector.extract_strided_slice %19 {offsets = [0, 96], sizes = [16, 16], strides = [1, 1]} : vector<16x128xbf16> to vector<16x16xbf16>
    %61 = vector.extract_strided_slice %19 {offsets = [0, 112], sizes = [16, 16], strides = [1, 1]} : vector<16x128xbf16> to vector<16x16xbf16>
    %62 = vector.shape_cast %54 : vector<16x16xbf16> to vector<1x16x16xbf16>
    %63 = vector.shape_cast %55 : vector<16x16xbf16> to vector<1x16x16xbf16>
    %64 = vector.shape_cast %56 : vector<16x16xbf16> to vector<1x16x16xbf16>
    %65 = vector.shape_cast %57 : vector<16x16xbf16> to vector<1x16x16xbf16>
    %66 = vector.shape_cast %58 : vector<16x16xbf16> to vector<1x16x16xbf16>
    %67 = vector.shape_cast %59 : vector<16x16xbf16> to vector<1x16x16xbf16>
    %68 = vector.shape_cast %60 : vector<16x16xbf16> to vector<1x16x16xbf16>
    %69 = vector.shape_cast %61 : vector<16x16xbf16> to vector<1x16x16xbf16>
    %70 = tpu.concatenate %62, %63, %64, %65, %66, %67, %68, %69 in 0 : vector<1x16x16xbf16>, vector<1x16x16xbf16>, vector<1x16x16xbf16>, vector<1x16x16xbf16>, vector<1x16x16xbf16>, vector<1x16x16xbf16>, vector<1x16x16xbf16>, vector<1x16x16xbf16> -> vector<8x16x16xbf16>
    "tpu.trace_start"() <{level = 10 : i32, message = "hqd,hkd->hqk"}> : () -> ()
    %cst_13 = arith.constant dense<0.000000e+00> : vector<8x16x16xf32>
    %71 = tpu.matmul %36, %53, %cst_13 {dimension_numbers = #tpu.dot_dimension_numbers<[2], [2], [1], [1], [0, 0, 0, 1, 1, 1], [0], [0]>} : vector<8x16x16xbf16>, vector<8x16x16xbf16>, vector<8x16x16xf32> -> vector<8x16x16xf32>
    "tpu.trace_stop"() : () -> ()
    %72 = vector.shape_cast %5 : vector<16x16xf32> to vector<1x16x16xf32>
    %73 = vector.broadcast %72 : vector<1x16x16xf32> to vector<8x16x16xf32>
    %74 = arith.addf %71, %73 : vector<8x16x16xf32>
    %cst_14 = arith.constant dense<0xFF800000> : vector<8x16xf32>
    %75 = vector.multi_reduction <maximumf>, %74, %cst_14 [2] : vector<8x16x16xf32> to vector<8x16xf32>
    %76 = vector.shape_cast %75 : vector<8x16xf32> to vector<8x16x1xf32>
    %77 = vector.broadcast %76 : vector<8x16x1xf32> to vector<8x16x16xf32>
    %78 = arith.subf %74, %77 : vector<8x16x16xf32>
    %79 = math.exp %78 : vector<8x16x16xf32>
    %cst_15 = arith.constant dense<0.000000e+00> : vector<8x16xf32>
    %80 = vector.multi_reduction <add>, %79, %cst_15 [2] : vector<8x16x16xf32> to vector<8x16xf32>
    %81 = vector.shape_cast %80 : vector<8x16xf32> to vector<8x16x1xf32>
    %82 = tpu.reciprocal %81 {approx = true} : vector<8x16x1xf32> -> vector<8x16x1xf32>
    %83 = vector.broadcast %82 : vector<8x16x1xf32> to vector<8x16x16xf32>
    %84 = arith.mulf %79, %83 : vector<8x16x16xf32>
    %85 = arith.truncf %84 : vector<8x16x16xf32> to vector<8x16x16xbf16>
    "tpu.trace_start"() <{level = 10 : i32, message = "hqk,hkd->hqd"}> : () -> ()
    %cst_16 = arith.constant dense<0.000000e+00> : vector<8x16x16xf32>
    %86 = tpu.matmul %85, %70, %cst_16 {dimension_numbers = #tpu.dot_dimension_numbers<[2], [1], [1], [2], [0, 0, 0, 1, 1, 2], [0], [0]>} : vector<8x16x16xbf16>, vector<8x16x16xbf16>, vector<8x16x16xf32> -> vector<8x16x16xf32>
    "tpu.trace_stop"() : () -> ()
    %87 = vector.extract_strided_slice %86 {offsets = [0, 0, 0], sizes = [1, 16, 16], strides = [1, 1, 1]} : vector<8x16x16xf32> to vector<1x16x16xf32>
    %88 = vector.shape_cast %87 : vector<1x16x16xf32> to vector<16x16xf32>
    %89 = vector.extract_strided_slice %86 {offsets = [1, 0, 0], sizes = [1, 16, 16], strides = [1, 1, 1]} : vector<8x16x16xf32> to vector<1x16x16xf32>
    %90 = vector.shape_cast %89 : vector<1x16x16xf32> to vector<16x16xf32>
    %91 = vector.extract_strided_slice %86 {offsets = [2, 0, 0], sizes = [1, 16, 16], strides = [1, 1, 1]} : vector<8x16x16xf32> to vector<1x16x16xf32>
    %92 = vector.shape_cast %91 : vector<1x16x16xf32> to vector<16x16xf32>
    %93 = vector.extract_strided_slice %86 {offsets = [3, 0, 0], sizes = [1, 16, 16], strides = [1, 1, 1]} : vector<8x16x16xf32> to vector<1x16x16xf32>
    %94 = vector.shape_cast %93 : vector<1x16x16xf32> to vector<16x16xf32>
    %95 = vector.extract_strided_slice %86 {offsets = [4, 0, 0], sizes = [1, 16, 16], strides = [1, 1, 1]} : vector<8x16x16xf32> to vector<1x16x16xf32>
    %96 = vector.shape_cast %95 : vector<1x16x16xf32> to vector<16x16xf32>
    %97 = vector.extract_strided_slice %86 {offsets = [5, 0, 0], sizes = [1, 16, 16], strides = [1, 1, 1]} : vector<8x16x16xf32> to vector<1x16x16xf32>
    %98 = vector.shape_cast %97 : vector<1x16x16xf32> to vector<16x16xf32>
    %99 = vector.extract_strided_slice %86 {offsets = [6, 0, 0], sizes = [1, 16, 16], strides = [1, 1, 1]} : vector<8x16x16xf32> to vector<1x16x16xf32>
    %100 = vector.shape_cast %99 : vector<1x16x16xf32> to vector<16x16xf32>
    %101 = vector.extract_strided_slice %86 {offsets = [7, 0, 0], sizes = [1, 16, 16], strides = [1, 1, 1]} : vector<8x16x16xf32> to vector<1x16x16xf32>
    %102 = vector.shape_cast %101 : vector<1x16x16xf32> to vector<16x16xf32>
    %103 = tpu.concatenate %88, %90, %92, %94, %96, %98, %100, %102 in 1 : vector<16x16xf32>, vector<16x16xf32>, vector<16x16xf32>, vector<16x16xf32>, vector<16x16xf32>, vector<16x16xf32>, vector<16x16xf32>, vector<16x16xf32> -> vector<16x128xf32>
    %104 = arith.truncf %103 : vector<16x128xf32> to vector<16x128xbf16>
    %c0_17 = arith.constant 0 : index
    %c0_18 = arith.constant 0 : index
    %c0_19 = arith.constant 0 : index
    %105 = vector.load %arg5[%c0_17, %c0_18, %c0_19] : memref<5x128x128xbf16, #tpu.memory_space<vmem>>, vector<1x128x128xbf16>
    %106 = vector.shape_cast %105 : vector<1x128x128xbf16> to vector<128x128xbf16>
    %cst_20 = arith.constant dense<0.000000e+00> : vector<16x128xf32>
    %107 = tpu.matmul %104, %106, %cst_20 {dimension_numbers = #tpu.dot_dimension_numbers<[1], [0], [0], [1], [0, 0, 1, 1], [], []>} : vector<16x128xbf16>, vector<128x128xbf16>, vector<16x128xf32> -> vector<16x128xf32>
    %c0_21 = arith.constant 0 : index
    %c0_22 = arith.constant 0 : index
    %c0_23 = arith.constant 0 : index
    %108 = vector.load %arg6[%c0_21, %c0_22, %c0_23] : memref<5x1x128xf32, #tpu.memory_space<vmem>>, vector<1x1x128xf32>
    %109 = vector.shape_cast %108 : vector<1x1x128xf32> to vector<1x128xf32>
    %110 = vector.broadcast %109 : vector<1x128xf32> to vector<16x128xf32>
    %111 = arith.addf %107, %110 : vector<16x128xf32>
    %112 = arith.addf %4, %111 : vector<16x128xf32>
    %c0_24 = arith.constant 0 : index
    %c0_25 = arith.constant 0 : index
    %c0_26 = arith.constant 0 : index
    %113 = vector.load %arg7[%c0_24, %c0_25, %c0_26] : memref<5x1x128xf32, #tpu.memory_space<vmem>>, vector<1x1x128xf32>
    %114 = vector.shape_cast %113 : vector<1x1x128xf32> to vector<1x128xf32>
    %c0_27 = arith.constant 0 : index
    %c0_28 = arith.constant 0 : index
    %c0_29 = arith.constant 0 : index
    %115 = vector.load %arg8[%c0_27, %c0_28, %c0_29] : memref<5x1x128xf32, #tpu.memory_space<vmem>>, vector<1x1x128xf32>
    %116 = vector.shape_cast %115 : vector<1x1x128xf32> to vector<1x128xf32>
    %cst_30 = arith.constant dense<0.000000e+00> : vector<16xf32>
    %117 = vector.multi_reduction <add>, %112, %cst_30 [1] : vector<16x128xf32> to vector<16xf32>
    %118 = vector.shape_cast %117 : vector<16xf32> to vector<16x1xf32>
    %cst_31 = arith.constant 1.280000e+02 : f32
    %119 = vector.broadcast %cst_31 : f32 to vector<16x1xf32>
    %120 = arith.divf %118, %119 : vector<16x1xf32>
    %121 = vector.broadcast %120 : vector<16x1xf32> to vector<16x128xf32>
    %122 = arith.subf %112, %121 : vector<16x128xf32>
    %123 = arith.mulf %122, %122 : vector<16x128xf32>
    %cst_32 = arith.constant dense<0.000000e+00> : vector<16xf32>
    %124 = vector.multi_reduction <add>, %123, %cst_32 [1] : vector<16x128xf32> to vector<16xf32>
    %125 = vector.shape_cast %124 : vector<16xf32> to vector<16x1xf32>
    %cst_33 = arith.constant 1.280000e+02 : f32
    %126 = vector.broadcast %cst_33 : f32 to vector<16x1xf32>
    %127 = arith.divf %125, %126 : vector<16x1xf32>
    %128 = vector.broadcast %120 : vector<16x1xf32> to vector<16x128xf32>
    %129 = arith.subf %112, %128 : vector<16x128xf32>
    %cst_34 = arith.constant 9.99999974E-6 : f32
    %130 = vector.broadcast %cst_34 : f32 to vector<16x1xf32>
    %131 = arith.addf %127, %130 : vector<16x1xf32>
    %132 = math.rsqrt %131 : vector<16x1xf32>
    %133 = vector.broadcast %132 : vector<16x1xf32> to vector<16x128xf32>
    %134 = arith.mulf %129, %133 : vector<16x128xf32>
    %135 = vector.broadcast %114 : vector<1x128xf32> to vector<16x128xf32>
    %136 = arith.mulf %134, %135 : vector<16x128xf32>
    %137 = vector.broadcast %116 : vector<1x128xf32> to vector<16x128xf32>
    %138 = arith.addf %136, %137 : vector<16x128xf32>
    %139 = arith.truncf %138 : vector<16x128xf32> to vector<16x128xbf16>
    %c0_35 = arith.constant 0 : index
    %c0_36 = arith.constant 0 : index
    %c0_37 = arith.constant 0 : index
    %140 = vector.load %arg9[%c0_35, %c0_36, %c0_37] : memref<5x128x256xbf16, #tpu.memory_space<vmem>>, vector<1x128x256xbf16>
    %141 = vector.shape_cast %140 : vector<1x128x256xbf16> to vector<128x256xbf16>
    %cst_38 = arith.constant dense<0.000000e+00> : vector<16x256xf32>
    %142 = tpu.matmul %139, %141, %cst_38 {dimension_numbers = #tpu.dot_dimension_numbers<[1], [0], [0], [1], [0, 0, 1, 1], [], []>} : vector<16x128xbf16>, vector<128x256xbf16>, vector<16x256xf32> -> vector<16x256xf32>
    %c0_39 = arith.constant 0 : index
    %c0_40 = arith.constant 0 : index
    %c0_41 = arith.constant 0 : index
    %143 = vector.load %arg10[%c0_39, %c0_40, %c0_41] : memref<5x1x256xf32, #tpu.memory_space<vmem>>, vector<1x1x256xf32>
    %144 = vector.shape_cast %143 : vector<1x1x256xf32> to vector<1x256xf32>
    %145 = vector.broadcast %144 : vector<1x256xf32> to vector<16x256xf32>
    %146 = arith.addf %142, %145 : vector<16x256xf32>
    %cst_42 = arith.constant 0.000000e+00 : f32
    %147 = vector.broadcast %cst_42 : f32 to vector<16x256xf32>
    %148 = arith.maximumf %146, %147 : vector<16x256xf32>
    %149 = arith.truncf %148 : vector<16x256xf32> to vector<16x256xbf16>
    %c0_43 = arith.constant 0 : index
    %c0_44 = arith.constant 0 : index
    %c0_45 = arith.constant 0 : index
    %150 = vector.load %arg11[%c0_43, %c0_44, %c0_45] : memref<5x256x128xbf16, #tpu.memory_space<vmem>>, vector<1x256x128xbf16>
    %151 = vector.shape_cast %150 : vector<1x256x128xbf16> to vector<256x128xbf16>
    %cst_46 = arith.constant dense<0.000000e+00> : vector<16x128xf32>
    %152 = tpu.matmul %149, %151, %cst_46 {dimension_numbers = #tpu.dot_dimension_numbers<[1], [0], [0], [1], [0, 0, 1, 1], [], []>} : vector<16x256xbf16>, vector<256x128xbf16>, vector<16x128xf32> -> vector<16x128xf32>
    %c0_47 = arith.constant 0 : index
    %c0_48 = arith.constant 0 : index
    %c0_49 = arith.constant 0 : index
    %153 = vector.load %arg12[%c0_47, %c0_48, %c0_49] : memref<5x1x128xf32, #tpu.memory_space<vmem>>, vector<1x1x128xf32>
    %154 = vector.shape_cast %153 : vector<1x1x128xf32> to vector<1x128xf32>
    %155 = vector.broadcast %154 : vector<1x128xf32> to vector<16x128xf32>
    %156 = arith.addf %152, %155 : vector<16x128xf32>
    %157 = arith.addf %138, %156 : vector<16x128xf32>
    %c0_50 = arith.constant 0 : index
    %c0_51 = arith.constant 0 : index
    %c0_52 = arith.constant 0 : index
    %158 = vector.load %arg13[%c0_50, %c0_51, %c0_52] : memref<5x1x128xf32, #tpu.memory_space<vmem>>, vector<1x1x128xf32>
    %159 = vector.shape_cast %158 : vector<1x1x128xf32> to vector<1x128xf32>
    %c0_53 = arith.constant 0 : index
    %c0_54 = arith.constant 0 : index
    %c0_55 = arith.constant 0 : index
    %160 = vector.load %arg14[%c0_53, %c0_54, %c0_55] : memref<5x1x128xf32, #tpu.memory_space<vmem>>, vector<1x1x128xf32>
    %161 = vector.shape_cast %160 : vector<1x1x128xf32> to vector<1x128xf32>
    %cst_56 = arith.constant dense<0.000000e+00> : vector<16xf32>
    %162 = vector.multi_reduction <add>, %157, %cst_56 [1] : vector<16x128xf32> to vector<16xf32>
    %163 = vector.shape_cast %162 : vector<16xf32> to vector<16x1xf32>
    %cst_57 = arith.constant 1.280000e+02 : f32
    %164 = vector.broadcast %cst_57 : f32 to vector<16x1xf32>
    %165 = arith.divf %163, %164 : vector<16x1xf32>
    %166 = vector.broadcast %165 : vector<16x1xf32> to vector<16x128xf32>
    %167 = arith.subf %157, %166 : vector<16x128xf32>
    %168 = arith.mulf %167, %167 : vector<16x128xf32>
    %cst_58 = arith.constant dense<0.000000e+00> : vector<16xf32>
    %169 = vector.multi_reduction <add>, %168, %cst_58 [1] : vector<16x128xf32> to vector<16xf32>
    %170 = vector.shape_cast %169 : vector<16xf32> to vector<16x1xf32>
    %cst_59 = arith.constant 1.280000e+02 : f32
    %171 = vector.broadcast %cst_59 : f32 to vector<16x1xf32>
    %172 = arith.divf %170, %171 : vector<16x1xf32>
    %173 = vector.broadcast %165 : vector<16x1xf32> to vector<16x128xf32>
    %174 = arith.subf %157, %173 : vector<16x128xf32>
    %cst_60 = arith.constant 9.99999974E-6 : f32
    %175 = vector.broadcast %cst_60 : f32 to vector<16x1xf32>
    %176 = arith.addf %172, %175 : vector<16x1xf32>
    %177 = math.rsqrt %176 : vector<16x1xf32>
    %178 = vector.broadcast %177 : vector<16x1xf32> to vector<16x128xf32>
    %179 = arith.mulf %174, %178 : vector<16x128xf32>
    %180 = vector.broadcast %159 : vector<1x128xf32> to vector<16x128xf32>
    %181 = arith.mulf %179, %180 : vector<16x128xf32>
    %182 = vector.broadcast %161 : vector<1x128xf32> to vector<16x128xf32>
    %183 = arith.addf %181, %182 : vector<16x128xf32>
    %184 = arith.truncf %183 : vector<16x128xf32> to vector<16x128xbf16>
    %c1 = arith.constant 1 : index
    %c0_61 = arith.constant 0 : index
    %c0_62 = arith.constant 0 : index
    %185 = vector.load %arg3[%c1, %c0_61, %c0_62] : memref<5x128x384xbf16, #tpu.memory_space<vmem>>, vector<1x128x384xbf16>
    %186 = vector.shape_cast %185 : vector<1x128x384xbf16> to vector<128x384xbf16>
    %cst_63 = arith.constant dense<0.000000e+00> : vector<16x384xf32>
    %187 = tpu.matmul %184, %186, %cst_63 {dimension_numbers = #tpu.dot_dimension_numbers<[1], [0], [0], [1], [0, 0, 1, 1], [], []>} : vector<16x128xbf16>, vector<128x384xbf16>, vector<16x384xf32> -> vector<16x384xf32>
    %c1_64 = arith.constant 1 : index
    %c0_65 = arith.constant 0 : index
    %c0_66 = arith.constant 0 : index
    %188 = vector.load %arg4[%c1_64, %c0_65, %c0_66] : memref<5x1x384xf32, #tpu.memory_space<vmem>>, vector<1x1x384xf32>
    %189 = vector.shape_cast %188 : vector<1x1x384xf32> to vector<1x384xf32>
    %190 = vector.broadcast %189 : vector<1x384xf32> to vector<16x384xf32>
    %191 = arith.addf %187, %190 : vector<16x384xf32>
    %192 = vector.extract_strided_slice %191 {offsets = [0, 0], sizes = [16, 128], strides = [1, 1]} : vector<16x384xf32> to vector<16x128xf32>
    %193 = arith.truncf %192 : vector<16x128xf32> to vector<16x128xbf16>
    %194 = vector.extract_strided_slice %191 {offsets = [0, 128], sizes = [16, 128], strides = [1, 1]} : vector<16x384xf32> to vector<16x128xf32>
    %195 = arith.truncf %194 : vector<16x128xf32> to vector<16x128xbf16>
    %196 = vector.extract_strided_slice %191 {offsets = [0, 256], sizes = [16, 128], strides = [1, 1]} : vector<16x384xf32> to vector<16x128xf32>
    %197 = arith.truncf %196 : vector<16x128xf32> to vector<16x128xbf16>
    %198 = vector.extract_strided_slice %193 {offsets = [0, 0], sizes = [16, 16], strides = [1, 1]} : vector<16x128xbf16> to vector<16x16xbf16>
    %199 = vector.extract_strided_slice %193 {offsets = [0, 16], sizes = [16, 16], strides = [1, 1]} : vector<16x128xbf16> to vector<16x16xbf16>
    %200 = vector.extract_strided_slice %193 {offsets = [0, 32], sizes = [16, 16], strides = [1, 1]} : vector<16x128xbf16> to vector<16x16xbf16>
    %201 = vector.extract_strided_slice %193 {offsets = [0, 48], sizes = [16, 16], strides = [1, 1]} : vector<16x128xbf16> to vector<16x16xbf16>
    %202 = vector.extract_strided_slice %193 {offsets = [0, 64], sizes = [16, 16], strides = [1, 1]} : vector<16x128xbf16> to vector<16x16xbf16>
    %203 = vector.extract_strided_slice %193 {offsets = [0, 80], sizes = [16, 16], strides = [1, 1]} : vector<16x128xbf16> to vector<16x16xbf16>
    %204 = vector.extract_strided_slice %193 {offsets = [0, 96], sizes = [16, 16], strides = [1, 1]} : vector<16x128xbf16> to vector<16x16xbf16>
    %205 = vector.extract_strided_slice %193 {offsets = [0, 112], sizes = [16, 16], strides = [1, 1]} : vector<16x128xbf16> to vector<16x16xbf16>
    %206 = vector.shape_cast %198 : vector<16x16xbf16> to vector<1x16x16xbf16>
    %207 = vector.shape_cast %199 : vector<16x16xbf16> to vector<1x16x16xbf16>
    %208 = vector.shape_cast %200 : vector<16x16xbf16> to vector<1x16x16xbf16>
    %209 = vector.shape_cast %201 : vector<16x16xbf16> to vector<1x16x16xbf16>
    %210 = vector.shape_cast %202 : vector<16x16xbf16> to vector<1x16x16xbf16>
    %211 = vector.shape_cast %203 : vector<16x16xbf16> to vector<1x16x16xbf16>
    %212 = vector.shape_cast %204 : vector<16x16xbf16> to vector<1x16x16xbf16>
    %213 = vector.shape_cast %205 : vector<16x16xbf16> to vector<1x16x16xbf16>
    %214 = tpu.concatenate %206, %207, %208, %209, %210, %211, %212, %213 in 0 : vector<1x16x16xbf16>, vector<1x16x16xbf16>, vector<1x16x16xbf16>, vector<1x16x16xbf16>, vector<1x16x16xbf16>, vector<1x16x16xbf16>, vector<1x16x16xbf16>, vector<1x16x16xbf16> -> vector<8x16x16xbf16>
    %215 = vector.extract_strided_slice %195 {offsets = [0, 0], sizes = [16, 16], strides = [1, 1]} : vector<16x128xbf16> to vector<16x16xbf16>
    %216 = vector.extract_strided_slice %195 {offsets = [0, 16], sizes = [16, 16], strides = [1, 1]} : vector<16x128xbf16> to vector<16x16xbf16>
    %217 = vector.extract_strided_slice %195 {offsets = [0, 32], sizes = [16, 16], strides = [1, 1]} : vector<16x128xbf16> to vector<16x16xbf16>
    %218 = vector.extract_strided_slice %195 {offsets = [0, 48], sizes = [16, 16], strides = [1, 1]} : vector<16x128xbf16> to vector<16x16xbf16>
    %219 = vector.extract_strided_slice %195 {offsets = [0, 64], sizes = [16, 16], strides = [1, 1]} : vector<16x128xbf16> to vector<16x16xbf16>
    %220 = vector.extract_strided_slice %195 {offsets = [0, 80], sizes = [16, 16], strides = [1, 1]} : vector<16x128xbf16> to vector<16x16xbf16>
    %221 = vector.extract_strided_slice %195 {offsets = [0, 96], sizes = [16, 16], strides = [1, 1]} : vector<16x128xbf16> to vector<16x16xbf16>
    %222 = vector.extract_strided_slice %195 {offsets = [0, 112], sizes = [16, 16], strides = [1, 1]} : vector<16x128xbf16> to vector<16x16xbf16>
    %223 = vector.shape_cast %215 : vector<16x16xbf16> to vector<1x16x16xbf16>
    %224 = vector.shape_cast %216 : vector<16x16xbf16> to vector<1x16x16xbf16>
    %225 = vector.shape_cast %217 : vector<16x16xbf16> to vector<1x16x16xbf16>
    %226 = vector.shape_cast %218 : vector<16x16xbf16> to vector<1x16x16xbf16>
    %227 = vector.shape_cast %219 : vector<16x16xbf16> to vector<1x16x16xbf16>
    %228 = vector.shape_cast %220 : vector<16x16xbf16> to vector<1x16x16xbf16>
    %229 = vector.shape_cast %221 : vector<16x16xbf16> to vector<1x16x16xbf16>
    %230 = vector.shape_cast %222 : vector<16x16xbf16> to vector<1x16x16xbf16>
    %231 = tpu.concatenate %223, %224, %225, %226, %227, %228, %229, %230 in 0 : vector<1x16x16xbf16>, vector<1x16x16xbf16>, vector<1x16x16xbf16>, vector<1x16x16xbf16>, vector<1x16x16xbf16>, vector<1x16x16xbf16>, vector<1x16x16xbf16>, vector<1x16x16xbf16> -> vector<8x16x16xbf16>
    %232 = vector.extract_strided_slice %197 {offsets = [0, 0], sizes = [16, 16], strides = [1, 1]} : vector<16x128xbf16> to vector<16x16xbf16>
    %233 = vector.extract_strided_slice %197 {offsets = [0, 16], sizes = [16, 16], strides = [1, 1]} : vector<16x128xbf16> to vector<16x16xbf16>
    %234 = vector.extract_strided_slice %197 {offsets = [0, 32], sizes = [16, 16], strides = [1, 1]} : vector<16x128xbf16> to vector<16x16xbf16>
    %235 = vector.extract_strided_slice %197 {offsets = [0, 48], sizes = [16, 16], strides = [1, 1]} : vector<16x128xbf16> to vector<16x16xbf16>
    %236 = vector.extract_strided_slice %197 {offsets = [0, 64], sizes = [16, 16], strides = [1, 1]} : vector<16x128xbf16> to vector<16x16xbf16>
    %237 = vector.extract_strided_slice %197 {offsets = [0, 80], sizes = [16, 16], strides = [1, 1]} : vector<16x128xbf16> to vector<16x16xbf16>
    %238 = vector.extract_strided_slice %197 {offsets = [0, 96], sizes = [16, 16], strides = [1, 1]} : vector<16x128xbf16> to vector<16x16xbf16>
    %239 = vector.extract_strided_slice %197 {offsets = [0, 112], sizes = [16, 16], strides = [1, 1]} : vector<16x128xbf16> to vector<16x16xbf16>
    %240 = vector.shape_cast %232 : vector<16x16xbf16> to vector<1x16x16xbf16>
    %241 = vector.shape_cast %233 : vector<16x16xbf16> to vector<1x16x16xbf16>
    %242 = vector.shape_cast %234 : vector<16x16xbf16> to vector<1x16x16xbf16>
    %243 = vector.shape_cast %235 : vector<16x16xbf16> to vector<1x16x16xbf16>
    %244 = vector.shape_cast %236 : vector<16x16xbf16> to vector<1x16x16xbf16>
    %245 = vector.shape_cast %237 : vector<16x16xbf16> to vector<1x16x16xbf16>
    %246 = vector.shape_cast %238 : vector<16x16xbf16> to vector<1x16x16xbf16>
    %247 = vector.shape_cast %239 : vector<16x16xbf16> to vector<1x16x16xbf16>
    %248 = tpu.concatenate %240, %241, %242, %243, %244, %245, %246, %247 in 0 : vector<1x16x16xbf16>, vector<1x16x16xbf16>, vector<1x16x16xbf16>, vector<1x16x16xbf16>, vector<1x16x16xbf16>, vector<1x16x16xbf16>, vector<1x16x16xbf16>, vector<1x16x16xbf16> -> vector<8x16x16xbf16>
    "tpu.trace_start"() <{level = 10 : i32, message = "hqd,hkd->hqk"}> : () -> ()
    %cst_67 = arith.constant dense<0.000000e+00> : vector<8x16x16xf32>
    %249 = tpu.matmul %214, %231, %cst_67 {dimension_numbers = #tpu.dot_dimension_numbers<[2], [2], [1], [1], [0, 0, 0, 1, 1, 1], [0], [0]>} : vector<8x16x16xbf16>, vector<8x16x16xbf16>, vector<8x16x16xf32> -> vector<8x16x16xf32>
    "tpu.trace_stop"() : () -> ()
    %250 = vector.shape_cast %5 : vector<16x16xf32> to vector<1x16x16xf32>
    %251 = vector.broadcast %250 : vector<1x16x16xf32> to vector<8x16x16xf32>
    %252 = arith.addf %249, %251 : vector<8x16x16xf32>
    %cst_68 = arith.constant dense<0xFF800000> : vector<8x16xf32>
    %253 = vector.multi_reduction <maximumf>, %252, %cst_68 [2] : vector<8x16x16xf32> to vector<8x16xf32>
    %254 = vector.shape_cast %253 : vector<8x16xf32> to vector<8x16x1xf32>
    %255 = vector.broadcast %254 : vector<8x16x1xf32> to vector<8x16x16xf32>
    %256 = arith.subf %252, %255 : vector<8x16x16xf32>
    %257 = math.exp %256 : vector<8x16x16xf32>
    %cst_69 = arith.constant dense<0.000000e+00> : vector<8x16xf32>
    %258 = vector.multi_reduction <add>, %257, %cst_69 [2] : vector<8x16x16xf32> to vector<8x16xf32>
    %259 = vector.shape_cast %258 : vector<8x16xf32> to vector<8x16x1xf32>
    %260 = tpu.reciprocal %259 {approx = true} : vector<8x16x1xf32> -> vector<8x16x1xf32>
    %261 = vector.broadcast %260 : vector<8x16x1xf32> to vector<8x16x16xf32>
    %262 = arith.mulf %257, %261 : vector<8x16x16xf32>
    %263 = arith.truncf %262 : vector<8x16x16xf32> to vector<8x16x16xbf16>
    "tpu.trace_start"() <{level = 10 : i32, message = "hqk,hkd->hqd"}> : () -> ()
    %cst_70 = arith.constant dense<0.000000e+00> : vector<8x16x16xf32>
    %264 = tpu.matmul %263, %248, %cst_70 {dimension_numbers = #tpu.dot_dimension_numbers<[2], [1], [1], [2], [0, 0, 0, 1, 1, 2], [0], [0]>} : vector<8x16x16xbf16>, vector<8x16x16xbf16>, vector<8x16x16xf32> -> vector<8x16x16xf32>
    "tpu.trace_stop"() : () -> ()
    %265 = vector.extract_strided_slice %264 {offsets = [0, 0, 0], sizes = [1, 16, 16], strides = [1, 1, 1]} : vector<8x16x16xf32> to vector<1x16x16xf32>
    %266 = vector.shape_cast %265 : vector<1x16x16xf32> to vector<16x16xf32>
    %267 = vector.extract_strided_slice %264 {offsets = [1, 0, 0], sizes = [1, 16, 16], strides = [1, 1, 1]} : vector<8x16x16xf32> to vector<1x16x16xf32>
    %268 = vector.shape_cast %267 : vector<1x16x16xf32> to vector<16x16xf32>
    %269 = vector.extract_strided_slice %264 {offsets = [2, 0, 0], sizes = [1, 16, 16], strides = [1, 1, 1]} : vector<8x16x16xf32> to vector<1x16x16xf32>
    %270 = vector.shape_cast %269 : vector<1x16x16xf32> to vector<16x16xf32>
    %271 = vector.extract_strided_slice %264 {offsets = [3, 0, 0], sizes = [1, 16, 16], strides = [1, 1, 1]} : vector<8x16x16xf32> to vector<1x16x16xf32>
    %272 = vector.shape_cast %271 : vector<1x16x16xf32> to vector<16x16xf32>
    %273 = vector.extract_strided_slice %264 {offsets = [4, 0, 0], sizes = [1, 16, 16], strides = [1, 1, 1]} : vector<8x16x16xf32> to vector<1x16x16xf32>
    %274 = vector.shape_cast %273 : vector<1x16x16xf32> to vector<16x16xf32>
    %275 = vector.extract_strided_slice %264 {offsets = [5, 0, 0], sizes = [1, 16, 16], strides = [1, 1, 1]} : vector<8x16x16xf32> to vector<1x16x16xf32>
    %276 = vector.shape_cast %275 : vector<1x16x16xf32> to vector<16x16xf32>
    %277 = vector.extract_strided_slice %264 {offsets = [6, 0, 0], sizes = [1, 16, 16], strides = [1, 1, 1]} : vector<8x16x16xf32> to vector<1x16x16xf32>
    %278 = vector.shape_cast %277 : vector<1x16x16xf32> to vector<16x16xf32>
    %279 = vector.extract_strided_slice %264 {offsets = [7, 0, 0], sizes = [1, 16, 16], strides = [1, 1, 1]} : vector<8x16x16xf32> to vector<1x16x16xf32>
    %280 = vector.shape_cast %279 : vector<1x16x16xf32> to vector<16x16xf32>
    %281 = tpu.concatenate %266, %268, %270, %272, %274, %276, %278, %280 in 1 : vector<16x16xf32>, vector<16x16xf32>, vector<16x16xf32>, vector<16x16xf32>, vector<16x16xf32>, vector<16x16xf32>, vector<16x16xf32>, vector<16x16xf32> -> vector<16x128xf32>
    %282 = arith.truncf %281 : vector<16x128xf32> to vector<16x128xbf16>
    %c1_71 = arith.constant 1 : index
    %c0_72 = arith.constant 0 : index
    %c0_73 = arith.constant 0 : index
    %283 = vector.load %arg5[%c1_71, %c0_72, %c0_73] : memref<5x128x128xbf16, #tpu.memory_space<vmem>>, vector<1x128x128xbf16>
    %284 = vector.shape_cast %283 : vector<1x128x128xbf16> to vector<128x128xbf16>
    %cst_74 = arith.constant dense<0.000000e+00> : vector<16x128xf32>
    %285 = tpu.matmul %282, %284, %cst_74 {dimension_numbers = #tpu.dot_dimension_numbers<[1], [0], [0], [1], [0, 0, 1, 1], [], []>} : vector<16x128xbf16>, vector<128x128xbf16>, vector<16x128xf32> -> vector<16x128xf32>
    %c1_75 = arith.constant 1 : index
    %c0_76 = arith.constant 0 : index
    %c0_77 = arith.constant 0 : index
    %286 = vector.load %arg6[%c1_75, %c0_76, %c0_77] : memref<5x1x128xf32, #tpu.memory_space<vmem>>, vector<1x1x128xf32>
    %287 = vector.shape_cast %286 : vector<1x1x128xf32> to vector<1x128xf32>
    %288 = vector.broadcast %287 : vector<1x128xf32> to vector<16x128xf32>
    %289 = arith.addf %285, %288 : vector<16x128xf32>
    %290 = arith.addf %183, %289 : vector<16x128xf32>
    %c1_78 = arith.constant 1 : index
    %c0_79 = arith.constant 0 : index
    %c0_80 = arith.constant 0 : index
    %291 = vector.load %arg7[%c1_78, %c0_79, %c0_80] : memref<5x1x128xf32, #tpu.memory_space<vmem>>, vector<1x1x128xf32>
    %292 = vector.shape_cast %291 : vector<1x1x128xf32> to vector<1x128xf32>
    %c1_81 = arith.constant 1 : index
    %c0_82 = arith.constant 0 : index
    %c0_83 = arith.constant 0 : index
    %293 = vector.load %arg8[%c1_81, %c0_82, %c0_83] : memref<5x1x128xf32, #tpu.memory_space<vmem>>, vector<1x1x128xf32>
    %294 = vector.shape_cast %293 : vector<1x1x128xf32> to vector<1x128xf32>
    %cst_84 = arith.constant dense<0.000000e+00> : vector<16xf32>
    %295 = vector.multi_reduction <add>, %290, %cst_84 [1] : vector<16x128xf32> to vector<16xf32>
    %296 = vector.shape_cast %295 : vector<16xf32> to vector<16x1xf32>
    %cst_85 = arith.constant 1.280000e+02 : f32
    %297 = vector.broadcast %cst_85 : f32 to vector<16x1xf32>
    %298 = arith.divf %296, %297 : vector<16x1xf32>
    %299 = vector.broadcast %298 : vector<16x1xf32> to vector<16x128xf32>
    %300 = arith.subf %290, %299 : vector<16x128xf32>
    %301 = arith.mulf %300, %300 : vector<16x128xf32>
    %cst_86 = arith.constant dense<0.000000e+00> : vector<16xf32>
    %302 = vector.multi_reduction <add>, %301, %cst_86 [1] : vector<16x128xf32> to vector<16xf32>
    %303 = vector.shape_cast %302 : vector<16xf32> to vector<16x1xf32>
    %cst_87 = arith.constant 1.280000e+02 : f32
    %304 = vector.broadcast %cst_87 : f32 to vector<16x1xf32>
    %305 = arith.divf %303, %304 : vector<16x1xf32>
    %306 = vector.broadcast %298 : vector<16x1xf32> to vector<16x128xf32>
    %307 = arith.subf %290, %306 : vector<16x128xf32>
    %cst_88 = arith.constant 9.99999974E-6 : f32
    %308 = vector.broadcast %cst_88 : f32 to vector<16x1xf32>
    %309 = arith.addf %305, %308 : vector<16x1xf32>
    %310 = math.rsqrt %309 : vector<16x1xf32>
    %311 = vector.broadcast %310 : vector<16x1xf32> to vector<16x128xf32>
    %312 = arith.mulf %307, %311 : vector<16x128xf32>
    %313 = vector.broadcast %292 : vector<1x128xf32> to vector<16x128xf32>
    %314 = arith.mulf %312, %313 : vector<16x128xf32>
    %315 = vector.broadcast %294 : vector<1x128xf32> to vector<16x128xf32>
    %316 = arith.addf %314, %315 : vector<16x128xf32>
    %317 = arith.truncf %316 : vector<16x128xf32> to vector<16x128xbf16>
    %c1_89 = arith.constant 1 : index
    %c0_90 = arith.constant 0 : index
    %c0_91 = arith.constant 0 : index
    %318 = vector.load %arg9[%c1_89, %c0_90, %c0_91] : memref<5x128x256xbf16, #tpu.memory_space<vmem>>, vector<1x128x256xbf16>
    %319 = vector.shape_cast %318 : vector<1x128x256xbf16> to vector<128x256xbf16>
    %cst_92 = arith.constant dense<0.000000e+00> : vector<16x256xf32>
    %320 = tpu.matmul %317, %319, %cst_92 {dimension_numbers = #tpu.dot_dimension_numbers<[1], [0], [0], [1], [0, 0, 1, 1], [], []>} : vector<16x128xbf16>, vector<128x256xbf16>, vector<16x256xf32> -> vector<16x256xf32>
    %c1_93 = arith.constant 1 : index
    %c0_94 = arith.constant 0 : index
    %c0_95 = arith.constant 0 : index
    %321 = vector.load %arg10[%c1_93, %c0_94, %c0_95] : memref<5x1x256xf32, #tpu.memory_space<vmem>>, vector<1x1x256xf32>
    %322 = vector.shape_cast %321 : vector<1x1x256xf32> to vector<1x256xf32>
    %323 = vector.broadcast %322 : vector<1x256xf32> to vector<16x256xf32>
    %324 = arith.addf %320, %323 : vector<16x256xf32>
    %cst_96 = arith.constant 0.000000e+00 : f32
    %325 = vector.broadcast %cst_96 : f32 to vector<16x256xf32>
    %326 = arith.maximumf %324, %325 : vector<16x256xf32>
    %327 = arith.truncf %326 : vector<16x256xf32> to vector<16x256xbf16>
    %c1_97 = arith.constant 1 : index
    %c0_98 = arith.constant 0 : index
    %c0_99 = arith.constant 0 : index
    %328 = vector.load %arg11[%c1_97, %c0_98, %c0_99] : memref<5x256x128xbf16, #tpu.memory_space<vmem>>, vector<1x256x128xbf16>
    %329 = vector.shape_cast %328 : vector<1x256x128xbf16> to vector<256x128xbf16>
    %cst_100 = arith.constant dense<0.000000e+00> : vector<16x128xf32>
    %330 = tpu.matmul %327, %329, %cst_100 {dimension_numbers = #tpu.dot_dimension_numbers<[1], [0], [0], [1], [0, 0, 1, 1], [], []>} : vector<16x256xbf16>, vector<256x128xbf16>, vector<16x128xf32> -> vector<16x128xf32>
    %c1_101 = arith.constant 1 : index
    %c0_102 = arith.constant 0 : index
    %c0_103 = arith.constant 0 : index
    %331 = vector.load %arg12[%c1_101, %c0_102, %c0_103] : memref<5x1x128xf32, #tpu.memory_space<vmem>>, vector<1x1x128xf32>
    %332 = vector.shape_cast %331 : vector<1x1x128xf32> to vector<1x128xf32>
    %333 = vector.broadcast %332 : vector<1x128xf32> to vector<16x128xf32>
    %334 = arith.addf %330, %333 : vector<16x128xf32>
    %335 = arith.addf %316, %334 : vector<16x128xf32>
    %c1_104 = arith.constant 1 : index
    %c0_105 = arith.constant 0 : index
    %c0_106 = arith.constant 0 : index
    %336 = vector.load %arg13[%c1_104, %c0_105, %c0_106] : memref<5x1x128xf32, #tpu.memory_space<vmem>>, vector<1x1x128xf32>
    %337 = vector.shape_cast %336 : vector<1x1x128xf32> to vector<1x128xf32>
    %c1_107 = arith.constant 1 : index
    %c0_108 = arith.constant 0 : index
    %c0_109 = arith.constant 0 : index
    %338 = vector.load %arg14[%c1_107, %c0_108, %c0_109] : memref<5x1x128xf32, #tpu.memory_space<vmem>>, vector<1x1x128xf32>
    %339 = vector.shape_cast %338 : vector<1x1x128xf32> to vector<1x128xf32>
    %cst_110 = arith.constant dense<0.000000e+00> : vector<16xf32>
    %340 = vector.multi_reduction <add>, %335, %cst_110 [1] : vector<16x128xf32> to vector<16xf32>
    %341 = vector.shape_cast %340 : vector<16xf32> to vector<16x1xf32>
    %cst_111 = arith.constant 1.280000e+02 : f32
    %342 = vector.broadcast %cst_111 : f32 to vector<16x1xf32>
    %343 = arith.divf %341, %342 : vector<16x1xf32>
    %344 = vector.broadcast %343 : vector<16x1xf32> to vector<16x128xf32>
    %345 = arith.subf %335, %344 : vector<16x128xf32>
    %346 = arith.mulf %345, %345 : vector<16x128xf32>
    %cst_112 = arith.constant dense<0.000000e+00> : vector<16xf32>
    %347 = vector.multi_reduction <add>, %346, %cst_112 [1] : vector<16x128xf32> to vector<16xf32>
    %348 = vector.shape_cast %347 : vector<16xf32> to vector<16x1xf32>
    %cst_113 = arith.constant 1.280000e+02 : f32
    %349 = vector.broadcast %cst_113 : f32 to vector<16x1xf32>
    %350 = arith.divf %348, %349 : vector<16x1xf32>
    %351 = vector.broadcast %343 : vector<16x1xf32> to vector<16x128xf32>
    %352 = arith.subf %335, %351 : vector<16x128xf32>
    %cst_114 = arith.constant 9.99999974E-6 : f32
    %353 = vector.broadcast %cst_114 : f32 to vector<16x1xf32>
    %354 = arith.addf %350, %353 : vector<16x1xf32>
    %355 = math.rsqrt %354 : vector<16x1xf32>
    %356 = vector.broadcast %355 : vector<16x1xf32> to vector<16x128xf32>
    %357 = arith.mulf %352, %356 : vector<16x128xf32>
    %358 = vector.broadcast %337 : vector<1x128xf32> to vector<16x128xf32>
    %359 = arith.mulf %357, %358 : vector<16x128xf32>
    %360 = vector.broadcast %339 : vector<1x128xf32> to vector<16x128xf32>
    %361 = arith.addf %359, %360 : vector<16x128xf32>
    %362 = arith.truncf %361 : vector<16x128xf32> to vector<16x128xbf16>
    %c2 = arith.constant 2 : index
    %c0_115 = arith.constant 0 : index
    %c0_116 = arith.constant 0 : index
    %363 = vector.load %arg3[%c2, %c0_115, %c0_116] : memref<5x128x384xbf16, #tpu.memory_space<vmem>>, vector<1x128x384xbf16>
    %364 = vector.shape_cast %363 : vector<1x128x384xbf16> to vector<128x384xbf16>
    %cst_117 = arith.constant dense<0.000000e+00> : vector<16x384xf32>
    %365 = tpu.matmul %362, %364, %cst_117 {dimension_numbers = #tpu.dot_dimension_numbers<[1], [0], [0], [1], [0, 0, 1, 1], [], []>} : vector<16x128xbf16>, vector<128x384xbf16>, vector<16x384xf32> -> vector<16x384xf32>
    %c2_118 = arith.constant 2 : index
    %c0_119 = arith.constant 0 : index
    %c0_120 = arith.constant 0 : index
    %366 = vector.load %arg4[%c2_118, %c0_119, %c0_120] : memref<5x1x384xf32, #tpu.memory_space<vmem>>, vector<1x1x384xf32>
    %367 = vector.shape_cast %366 : vector<1x1x384xf32> to vector<1x384xf32>
    %368 = vector.broadcast %367 : vector<1x384xf32> to vector<16x384xf32>
    %369 = arith.addf %365, %368 : vector<16x384xf32>
    %370 = vector.extract_strided_slice %369 {offsets = [0, 0], sizes = [16, 128], strides = [1, 1]} : vector<16x384xf32> to vector<16x128xf32>
    %371 = arith.truncf %370 : vector<16x128xf32> to vector<16x128xbf16>
    %372 = vector.extract_strided_slice %369 {offsets = [0, 128], sizes = [16, 128], strides = [1, 1]} : vector<16x384xf32> to vector<16x128xf32>
    %373 = arith.truncf %372 : vector<16x128xf32> to vector<16x128xbf16>
    %374 = vector.extract_strided_slice %369 {offsets = [0, 256], sizes = [16, 128], strides = [1, 1]} : vector<16x384xf32> to vector<16x128xf32>
    %375 = arith.truncf %374 : vector<16x128xf32> to vector<16x128xbf16>
    %376 = vector.extract_strided_slice %371 {offsets = [0, 0], sizes = [16, 16], strides = [1, 1]} : vector<16x128xbf16> to vector<16x16xbf16>
    %377 = vector.extract_strided_slice %371 {offsets = [0, 16], sizes = [16, 16], strides = [1, 1]} : vector<16x128xbf16> to vector<16x16xbf16>
    %378 = vector.extract_strided_slice %371 {offsets = [0, 32], sizes = [16, 16], strides = [1, 1]} : vector<16x128xbf16> to vector<16x16xbf16>
    %379 = vector.extract_strided_slice %371 {offsets = [0, 48], sizes = [16, 16], strides = [1, 1]} : vector<16x128xbf16> to vector<16x16xbf16>
    %380 = vector.extract_strided_slice %371 {offsets = [0, 64], sizes = [16, 16], strides = [1, 1]} : vector<16x128xbf16> to vector<16x16xbf16>
    %381 = vector.extract_strided_slice %371 {offsets = [0, 80], sizes = [16, 16], strides = [1, 1]} : vector<16x128xbf16> to vector<16x16xbf16>
    %382 = vector.extract_strided_slice %371 {offsets = [0, 96], sizes = [16, 16], strides = [1, 1]} : vector<16x128xbf16> to vector<16x16xbf16>
    %383 = vector.extract_strided_slice %371 {offsets = [0, 112], sizes = [16, 16], strides = [1, 1]} : vector<16x128xbf16> to vector<16x16xbf16>
    %384 = vector.shape_cast %376 : vector<16x16xbf16> to vector<1x16x16xbf16>
    %385 = vector.shape_cast %377 : vector<16x16xbf16> to vector<1x16x16xbf16>
    %386 = vector.shape_cast %378 : vector<16x16xbf16> to vector<1x16x16xbf16>
    %387 = vector.shape_cast %379 : vector<16x16xbf16> to vector<1x16x16xbf16>
    %388 = vector.shape_cast %380 : vector<16x16xbf16> to vector<1x16x16xbf16>
    %389 = vector.shape_cast %381 : vector<16x16xbf16> to vector<1x16x16xbf16>
    %390 = vector.shape_cast %382 : vector<16x16xbf16> to vector<1x16x16xbf16>
    %391 = vector.shape_cast %383 : vector<16x16xbf16> to vector<1x16x16xbf16>
    %392 = tpu.concatenate %384, %385, %386, %387, %388, %389, %390, %391 in 0 : vector<1x16x16xbf16>, vector<1x16x16xbf16>, vector<1x16x16xbf16>, vector<1x16x16xbf16>, vector<1x16x16xbf16>, vector<1x16x16xbf16>, vector<1x16x16xbf16>, vector<1x16x16xbf16> -> vector<8x16x16xbf16>
    %393 = vector.extract_strided_slice %373 {offsets = [0, 0], sizes = [16, 16], strides = [1, 1]} : vector<16x128xbf16> to vector<16x16xbf16>
    %394 = vector.extract_strided_slice %373 {offsets = [0, 16], sizes = [16, 16], strides = [1, 1]} : vector<16x128xbf16> to vector<16x16xbf16>
    %395 = vector.extract_strided_slice %373 {offsets = [0, 32], sizes = [16, 16], strides = [1, 1]} : vector<16x128xbf16> to vector<16x16xbf16>
    %396 = vector.extract_strided_slice %373 {offsets = [0, 48], sizes = [16, 16], strides = [1, 1]} : vector<16x128xbf16> to vector<16x16xbf16>
    %397 = vector.extract_strided_slice %373 {offsets = [0, 64], sizes = [16, 16], strides = [1, 1]} : vector<16x128xbf16> to vector<16x16xbf16>
    %398 = vector.extract_strided_slice %373 {offsets = [0, 80], sizes = [16, 16], strides = [1, 1]} : vector<16x128xbf16> to vector<16x16xbf16>
    %399 = vector.extract_strided_slice %373 {offsets = [0, 96], sizes = [16, 16], strides = [1, 1]} : vector<16x128xbf16> to vector<16x16xbf16>
    %400 = vector.extract_strided_slice %373 {offsets = [0, 112], sizes = [16, 16], strides = [1, 1]} : vector<16x128xbf16> to vector<16x16xbf16>
    %401 = vector.shape_cast %393 : vector<16x16xbf16> to vector<1x16x16xbf16>
    %402 = vector.shape_cast %394 : vector<16x16xbf16> to vector<1x16x16xbf16>
    %403 = vector.shape_cast %395 : vector<16x16xbf16> to vector<1x16x16xbf16>
    %404 = vector.shape_cast %396 : vector<16x16xbf16> to vector<1x16x16xbf16>
    %405 = vector.shape_cast %397 : vector<16x16xbf16> to vector<1x16x16xbf16>
    %406 = vector.shape_cast %398 : vector<16x16xbf16> to vector<1x16x16xbf16>
    %407 = vector.shape_cast %399 : vector<16x16xbf16> to vector<1x16x16xbf16>
    %408 = vector.shape_cast %400 : vector<16x16xbf16> to vector<1x16x16xbf16>
    %409 = tpu.concatenate %401, %402, %403, %404, %405, %406, %407, %408 in 0 : vector<1x16x16xbf16>, vector<1x16x16xbf16>, vector<1x16x16xbf16>, vector<1x16x16xbf16>, vector<1x16x16xbf16>, vector<1x16x16xbf16>, vector<1x16x16xbf16>, vector<1x16x16xbf16> -> vector<8x16x16xbf16>
    %410 = vector.extract_strided_slice %375 {offsets = [0, 0], sizes = [16, 16], strides = [1, 1]} : vector<16x128xbf16> to vector<16x16xbf16>
    %411 = vector.extract_strided_slice %375 {offsets = [0, 16], sizes = [16, 16], strides = [1, 1]} : vector<16x128xbf16> to vector<16x16xbf16>
    %412 = vector.extract_strided_slice %375 {offsets = [0, 32], sizes = [16, 16], strides = [1, 1]} : vector<16x128xbf16> to vector<16x16xbf16>
    %413 = vector.extract_strided_slice %375 {offsets = [0, 48], sizes = [16, 16], strides = [1, 1]} : vector<16x128xbf16> to vector<16x16xbf16>
    %414 = vector.extract_strided_slice %375 {offsets = [0, 64], sizes = [16, 16], strides = [1, 1]} : vector<16x128xbf16> to vector<16x16xbf16>
    %415 = vector.extract_strided_slice %375 {offsets = [0, 80], sizes = [16, 16], strides = [1, 1]} : vector<16x128xbf16> to vector<16x16xbf16>
    %416 = vector.extract_strided_slice %375 {offsets = [0, 96], sizes = [16, 16], strides = [1, 1]} : vector<16x128xbf16> to vector<16x16xbf16>
    %417 = vector.extract_strided_slice %375 {offsets = [0, 112], sizes = [16, 16], strides = [1, 1]} : vector<16x128xbf16> to vector<16x16xbf16>
    %418 = vector.shape_cast %410 : vector<16x16xbf16> to vector<1x16x16xbf16>
    %419 = vector.shape_cast %411 : vector<16x16xbf16> to vector<1x16x16xbf16>
    %420 = vector.shape_cast %412 : vector<16x16xbf16> to vector<1x16x16xbf16>
    %421 = vector.shape_cast %413 : vector<16x16xbf16> to vector<1x16x16xbf16>
    %422 = vector.shape_cast %414 : vector<16x16xbf16> to vector<1x16x16xbf16>
    %423 = vector.shape_cast %415 : vector<16x16xbf16> to vector<1x16x16xbf16>
    %424 = vector.shape_cast %416 : vector<16x16xbf16> to vector<1x16x16xbf16>
    %425 = vector.shape_cast %417 : vector<16x16xbf16> to vector<1x16x16xbf16>
    %426 = tpu.concatenate %418, %419, %420, %421, %422, %423, %424, %425 in 0 : vector<1x16x16xbf16>, vector<1x16x16xbf16>, vector<1x16x16xbf16>, vector<1x16x16xbf16>, vector<1x16x16xbf16>, vector<1x16x16xbf16>, vector<1x16x16xbf16>, vector<1x16x16xbf16> -> vector<8x16x16xbf16>
    "tpu.trace_start"() <{level = 10 : i32, message = "hqd,hkd->hqk"}> : () -> ()
    %cst_121 = arith.constant dense<0.000000e+00> : vector<8x16x16xf32>
    %427 = tpu.matmul %392, %409, %cst_121 {dimension_numbers = #tpu.dot_dimension_numbers<[2], [2], [1], [1], [0, 0, 0, 1, 1, 1], [0], [0]>} : vector<8x16x16xbf16>, vector<8x16x16xbf16>, vector<8x16x16xf32> -> vector<8x16x16xf32>
    "tpu.trace_stop"() : () -> ()
    %428 = vector.shape_cast %5 : vector<16x16xf32> to vector<1x16x16xf32>
    %429 = vector.broadcast %428 : vector<1x16x16xf32> to vector<8x16x16xf32>
    %430 = arith.addf %427, %429 : vector<8x16x16xf32>
    %cst_122 = arith.constant dense<0xFF800000> : vector<8x16xf32>
    %431 = vector.multi_reduction <maximumf>, %430, %cst_122 [2] : vector<8x16x16xf32> to vector<8x16xf32>
    %432 = vector.shape_cast %431 : vector<8x16xf32> to vector<8x16x1xf32>
    %433 = vector.broadcast %432 : vector<8x16x1xf32> to vector<8x16x16xf32>
    %434 = arith.subf %430, %433 : vector<8x16x16xf32>
    %435 = math.exp %434 : vector<8x16x16xf32>
    %cst_123 = arith.constant dense<0.000000e+00> : vector<8x16xf32>
    %436 = vector.multi_reduction <add>, %435, %cst_123 [2] : vector<8x16x16xf32> to vector<8x16xf32>
    %437 = vector.shape_cast %436 : vector<8x16xf32> to vector<8x16x1xf32>
    %438 = tpu.reciprocal %437 {approx = true} : vector<8x16x1xf32> -> vector<8x16x1xf32>
    %439 = vector.broadcast %438 : vector<8x16x1xf32> to vector<8x16x16xf32>
    %440 = arith.mulf %435, %439 : vector<8x16x16xf32>
    %441 = arith.truncf %440 : vector<8x16x16xf32> to vector<8x16x16xbf16>
    "tpu.trace_start"() <{level = 10 : i32, message = "hqk,hkd->hqd"}> : () -> ()
    %cst_124 = arith.constant dense<0.000000e+00> : vector<8x16x16xf32>
    %442 = tpu.matmul %441, %426, %cst_124 {dimension_numbers = #tpu.dot_dimension_numbers<[2], [1], [1], [2], [0, 0, 0, 1, 1, 2], [0], [0]>} : vector<8x16x16xbf16>, vector<8x16x16xbf16>, vector<8x16x16xf32> -> vector<8x16x16xf32>
    "tpu.trace_stop"() : () -> ()
    %443 = vector.extract_strided_slice %442 {offsets = [0, 0, 0], sizes = [1, 16, 16], strides = [1, 1, 1]} : vector<8x16x16xf32> to vector<1x16x16xf32>
    %444 = vector.shape_cast %443 : vector<1x16x16xf32> to vector<16x16xf32>
    %445 = vector.extract_strided_slice %442 {offsets = [1, 0, 0], sizes = [1, 16, 16], strides = [1, 1, 1]} : vector<8x16x16xf32> to vector<1x16x16xf32>
    %446 = vector.shape_cast %445 : vector<1x16x16xf32> to vector<16x16xf32>
    %447 = vector.extract_strided_slice %442 {offsets = [2, 0, 0], sizes = [1, 16, 16], strides = [1, 1, 1]} : vector<8x16x16xf32> to vector<1x16x16xf32>
    %448 = vector.shape_cast %447 : vector<1x16x16xf32> to vector<16x16xf32>
    %449 = vector.extract_strided_slice %442 {offsets = [3, 0, 0], sizes = [1, 16, 16], strides = [1, 1, 1]} : vector<8x16x16xf32> to vector<1x16x16xf32>
    %450 = vector.shape_cast %449 : vector<1x16x16xf32> to vector<16x16xf32>
    %451 = vector.extract_strided_slice %442 {offsets = [4, 0, 0], sizes = [1, 16, 16], strides = [1, 1, 1]} : vector<8x16x16xf32> to vector<1x16x16xf32>
    %452 = vector.shape_cast %451 : vector<1x16x16xf32> to vector<16x16xf32>
    %453 = vector.extract_strided_slice %442 {offsets = [5, 0, 0], sizes = [1, 16, 16], strides = [1, 1, 1]} : vector<8x16x16xf32> to vector<1x16x16xf32>
    %454 = vector.shape_cast %453 : vector<1x16x16xf32> to vector<16x16xf32>
    %455 = vector.extract_strided_slice %442 {offsets = [6, 0, 0], sizes = [1, 16, 16], strides = [1, 1, 1]} : vector<8x16x16xf32> to vector<1x16x16xf32>
    %456 = vector.shape_cast %455 : vector<1x16x16xf32> to vector<16x16xf32>
    %457 = vector.extract_strided_slice %442 {offsets = [7, 0, 0], sizes = [1, 16, 16], strides = [1, 1, 1]} : vector<8x16x16xf32> to vector<1x16x16xf32>
    %458 = vector.shape_cast %457 : vector<1x16x16xf32> to vector<16x16xf32>
    %459 = tpu.concatenate %444, %446, %448, %450, %452, %454, %456, %458 in 1 : vector<16x16xf32>, vector<16x16xf32>, vector<16x16xf32>, vector<16x16xf32>, vector<16x16xf32>, vector<16x16xf32>, vector<16x16xf32>, vector<16x16xf32> -> vector<16x128xf32>
    %460 = arith.truncf %459 : vector<16x128xf32> to vector<16x128xbf16>
    %c2_125 = arith.constant 2 : index
    %c0_126 = arith.constant 0 : index
    %c0_127 = arith.constant 0 : index
    %461 = vector.load %arg5[%c2_125, %c0_126, %c0_127] : memref<5x128x128xbf16, #tpu.memory_space<vmem>>, vector<1x128x128xbf16>
    %462 = vector.shape_cast %461 : vector<1x128x128xbf16> to vector<128x128xbf16>
    %cst_128 = arith.constant dense<0.000000e+00> : vector<16x128xf32>
    %463 = tpu.matmul %460, %462, %cst_128 {dimension_numbers = #tpu.dot_dimension_numbers<[1], [0], [0], [1], [0, 0, 1, 1], [], []>} : vector<16x128xbf16>, vector<128x128xbf16>, vector<16x128xf32> -> vector<16x128xf32>
    %c2_129 = arith.constant 2 : index
    %c0_130 = arith.constant 0 : index
    %c0_131 = arith.constant 0 : index
    %464 = vector.load %arg6[%c2_129, %c0_130, %c0_131] : memref<5x1x128xf32, #tpu.memory_space<vmem>>, vector<1x1x128xf32>
    %465 = vector.shape_cast %464 : vector<1x1x128xf32> to vector<1x128xf32>
    %466 = vector.broadcast %465 : vector<1x128xf32> to vector<16x128xf32>
    %467 = arith.addf %463, %466 : vector<16x128xf32>
    %468 = arith.addf %361, %467 : vector<16x128xf32>
    %c2_132 = arith.constant 2 : index
    %c0_133 = arith.constant 0 : index
    %c0_134 = arith.constant 0 : index
    %469 = vector.load %arg7[%c2_132, %c0_133, %c0_134] : memref<5x1x128xf32, #tpu.memory_space<vmem>>, vector<1x1x128xf32>
    %470 = vector.shape_cast %469 : vector<1x1x128xf32> to vector<1x128xf32>
    %c2_135 = arith.constant 2 : index
    %c0_136 = arith.constant 0 : index
    %c0_137 = arith.constant 0 : index
    %471 = vector.load %arg8[%c2_135, %c0_136, %c0_137] : memref<5x1x128xf32, #tpu.memory_space<vmem>>, vector<1x1x128xf32>
    %472 = vector.shape_cast %471 : vector<1x1x128xf32> to vector<1x128xf32>
    %cst_138 = arith.constant dense<0.000000e+00> : vector<16xf32>
    %473 = vector.multi_reduction <add>, %468, %cst_138 [1] : vector<16x128xf32> to vector<16xf32>
    %474 = vector.shape_cast %473 : vector<16xf32> to vector<16x1xf32>
    %cst_139 = arith.constant 1.280000e+02 : f32
    %475 = vector.broadcast %cst_139 : f32 to vector<16x1xf32>
    %476 = arith.divf %474, %475 : vector<16x1xf32>
    %477 = vector.broadcast %476 : vector<16x1xf32> to vector<16x128xf32>
    %478 = arith.subf %468, %477 : vector<16x128xf32>
    %479 = arith.mulf %478, %478 : vector<16x128xf32>
    %cst_140 = arith.constant dense<0.000000e+00> : vector<16xf32>
    %480 = vector.multi_reduction <add>, %479, %cst_140 [1] : vector<16x128xf32> to vector<16xf32>
    %481 = vector.shape_cast %480 : vector<16xf32> to vector<16x1xf32>
    %cst_141 = arith.constant 1.280000e+02 : f32
    %482 = vector.broadcast %cst_141 : f32 to vector<16x1xf32>
    %483 = arith.divf %481, %482 : vector<16x1xf32>
    %484 = vector.broadcast %476 : vector<16x1xf32> to vector<16x128xf32>
    %485 = arith.subf %468, %484 : vector<16x128xf32>
    %cst_142 = arith.constant 9.99999974E-6 : f32
    %486 = vector.broadcast %cst_142 : f32 to vector<16x1xf32>
    %487 = arith.addf %483, %486 : vector<16x1xf32>
    %488 = math.rsqrt %487 : vector<16x1xf32>
    %489 = vector.broadcast %488 : vector<16x1xf32> to vector<16x128xf32>
    %490 = arith.mulf %485, %489 : vector<16x128xf32>
    %491 = vector.broadcast %470 : vector<1x128xf32> to vector<16x128xf32>
    %492 = arith.mulf %490, %491 : vector<16x128xf32>
    %493 = vector.broadcast %472 : vector<1x128xf32> to vector<16x128xf32>
    %494 = arith.addf %492, %493 : vector<16x128xf32>
    %495 = arith.truncf %494 : vector<16x128xf32> to vector<16x128xbf16>
    %c2_143 = arith.constant 2 : index
    %c0_144 = arith.constant 0 : index
    %c0_145 = arith.constant 0 : index
    %496 = vector.load %arg9[%c2_143, %c0_144, %c0_145] : memref<5x128x256xbf16, #tpu.memory_space<vmem>>, vector<1x128x256xbf16>
    %497 = vector.shape_cast %496 : vector<1x128x256xbf16> to vector<128x256xbf16>
    %cst_146 = arith.constant dense<0.000000e+00> : vector<16x256xf32>
    %498 = tpu.matmul %495, %497, %cst_146 {dimension_numbers = #tpu.dot_dimension_numbers<[1], [0], [0], [1], [0, 0, 1, 1], [], []>} : vector<16x128xbf16>, vector<128x256xbf16>, vector<16x256xf32> -> vector<16x256xf32>
    %c2_147 = arith.constant 2 : index
    %c0_148 = arith.constant 0 : index
    %c0_149 = arith.constant 0 : index
    %499 = vector.load %arg10[%c2_147, %c0_148, %c0_149] : memref<5x1x256xf32, #tpu.memory_space<vmem>>, vector<1x1x256xf32>
    %500 = vector.shape_cast %499 : vector<1x1x256xf32> to vector<1x256xf32>
    %501 = vector.broadcast %500 : vector<1x256xf32> to vector<16x256xf32>
    %502 = arith.addf %498, %501 : vector<16x256xf32>
    %cst_150 = arith.constant 0.000000e+00 : f32
    %503 = vector.broadcast %cst_150 : f32 to vector<16x256xf32>
    %504 = arith.maximumf %502, %503 : vector<16x256xf32>
    %505 = arith.truncf %504 : vector<16x256xf32> to vector<16x256xbf16>
    %c2_151 = arith.constant 2 : index
    %c0_152 = arith.constant 0 : index
    %c0_153 = arith.constant 0 : index
    %506 = vector.load %arg11[%c2_151, %c0_152, %c0_153] : memref<5x256x128xbf16, #tpu.memory_space<vmem>>, vector<1x256x128xbf16>
    %507 = vector.shape_cast %506 : vector<1x256x128xbf16> to vector<256x128xbf16>
    %cst_154 = arith.constant dense<0.000000e+00> : vector<16x128xf32>
    %508 = tpu.matmul %505, %507, %cst_154 {dimension_numbers = #tpu.dot_dimension_numbers<[1], [0], [0], [1], [0, 0, 1, 1], [], []>} : vector<16x256xbf16>, vector<256x128xbf16>, vector<16x128xf32> -> vector<16x128xf32>
    %c2_155 = arith.constant 2 : index
    %c0_156 = arith.constant 0 : index
    %c0_157 = arith.constant 0 : index
    %509 = vector.load %arg12[%c2_155, %c0_156, %c0_157] : memref<5x1x128xf32, #tpu.memory_space<vmem>>, vector<1x1x128xf32>
    %510 = vector.shape_cast %509 : vector<1x1x128xf32> to vector<1x128xf32>
    %511 = vector.broadcast %510 : vector<1x128xf32> to vector<16x128xf32>
    %512 = arith.addf %508, %511 : vector<16x128xf32>
    %513 = arith.addf %494, %512 : vector<16x128xf32>
    %c2_158 = arith.constant 2 : index
    %c0_159 = arith.constant 0 : index
    %c0_160 = arith.constant 0 : index
    %514 = vector.load %arg13[%c2_158, %c0_159, %c0_160] : memref<5x1x128xf32, #tpu.memory_space<vmem>>, vector<1x1x128xf32>
    %515 = vector.shape_cast %514 : vector<1x1x128xf32> to vector<1x128xf32>
    %c2_161 = arith.constant 2 : index
    %c0_162 = arith.constant 0 : index
    %c0_163 = arith.constant 0 : index
    %516 = vector.load %arg14[%c2_161, %c0_162, %c0_163] : memref<5x1x128xf32, #tpu.memory_space<vmem>>, vector<1x1x128xf32>
    %517 = vector.shape_cast %516 : vector<1x1x128xf32> to vector<1x128xf32>
    %cst_164 = arith.constant dense<0.000000e+00> : vector<16xf32>
    %518 = vector.multi_reduction <add>, %513, %cst_164 [1] : vector<16x128xf32> to vector<16xf32>
    %519 = vector.shape_cast %518 : vector<16xf32> to vector<16x1xf32>
    %cst_165 = arith.constant 1.280000e+02 : f32
    %520 = vector.broadcast %cst_165 : f32 to vector<16x1xf32>
    %521 = arith.divf %519, %520 : vector<16x1xf32>
    %522 = vector.broadcast %521 : vector<16x1xf32> to vector<16x128xf32>
    %523 = arith.subf %513, %522 : vector<16x128xf32>
    %524 = arith.mulf %523, %523 : vector<16x128xf32>
    %cst_166 = arith.constant dense<0.000000e+00> : vector<16xf32>
    %525 = vector.multi_reduction <add>, %524, %cst_166 [1] : vector<16x128xf32> to vector<16xf32>
    %526 = vector.shape_cast %525 : vector<16xf32> to vector<16x1xf32>
    %cst_167 = arith.constant 1.280000e+02 : f32
    %527 = vector.broadcast %cst_167 : f32 to vector<16x1xf32>
    %528 = arith.divf %526, %527 : vector<16x1xf32>
    %529 = vector.broadcast %521 : vector<16x1xf32> to vector<16x128xf32>
    %530 = arith.subf %513, %529 : vector<16x128xf32>
    %cst_168 = arith.constant 9.99999974E-6 : f32
    %531 = vector.broadcast %cst_168 : f32 to vector<16x1xf32>
    %532 = arith.addf %528, %531 : vector<16x1xf32>
    %533 = math.rsqrt %532 : vector<16x1xf32>
    %534 = vector.broadcast %533 : vector<16x1xf32> to vector<16x128xf32>
    %535 = arith.mulf %530, %534 : vector<16x128xf32>
    %536 = vector.broadcast %515 : vector<1x128xf32> to vector<16x128xf32>
    %537 = arith.mulf %535, %536 : vector<16x128xf32>
    %538 = vector.broadcast %517 : vector<1x128xf32> to vector<16x128xf32>
    %539 = arith.addf %537, %538 : vector<16x128xf32>
    %540 = arith.truncf %539 : vector<16x128xf32> to vector<16x128xbf16>
    %c3 = arith.constant 3 : index
    %c0_169 = arith.constant 0 : index
    %c0_170 = arith.constant 0 : index
    %541 = vector.load %arg3[%c3, %c0_169, %c0_170] : memref<5x128x384xbf16, #tpu.memory_space<vmem>>, vector<1x128x384xbf16>
    %542 = vector.shape_cast %541 : vector<1x128x384xbf16> to vector<128x384xbf16>
    %cst_171 = arith.constant dense<0.000000e+00> : vector<16x384xf32>
    %543 = tpu.matmul %540, %542, %cst_171 {dimension_numbers = #tpu.dot_dimension_numbers<[1], [0], [0], [1], [0, 0, 1, 1], [], []>} : vector<16x128xbf16>, vector<128x384xbf16>, vector<16x384xf32> -> vector<16x384xf32>
    %c3_172 = arith.constant 3 : index
    %c0_173 = arith.constant 0 : index
    %c0_174 = arith.constant 0 : index
    %544 = vector.load %arg4[%c3_172, %c0_173, %c0_174] : memref<5x1x384xf32, #tpu.memory_space<vmem>>, vector<1x1x384xf32>
    %545 = vector.shape_cast %544 : vector<1x1x384xf32> to vector<1x384xf32>
    %546 = vector.broadcast %545 : vector<1x384xf32> to vector<16x384xf32>
    %547 = arith.addf %543, %546 : vector<16x384xf32>
    %548 = vector.extract_strided_slice %547 {offsets = [0, 0], sizes = [16, 128], strides = [1, 1]} : vector<16x384xf32> to vector<16x128xf32>
    %549 = arith.truncf %548 : vector<16x128xf32> to vector<16x128xbf16>
    %550 = vector.extract_strided_slice %547 {offsets = [0, 128], sizes = [16, 128], strides = [1, 1]} : vector<16x384xf32> to vector<16x128xf32>
    %551 = arith.truncf %550 : vector<16x128xf32> to vector<16x128xbf16>
    %552 = vector.extract_strided_slice %547 {offsets = [0, 256], sizes = [16, 128], strides = [1, 1]} : vector<16x384xf32> to vector<16x128xf32>
    %553 = arith.truncf %552 : vector<16x128xf32> to vector<16x128xbf16>
    %554 = vector.extract_strided_slice %549 {offsets = [0, 0], sizes = [16, 16], strides = [1, 1]} : vector<16x128xbf16> to vector<16x16xbf16>
    %555 = vector.extract_strided_slice %549 {offsets = [0, 16], sizes = [16, 16], strides = [1, 1]} : vector<16x128xbf16> to vector<16x16xbf16>
    %556 = vector.extract_strided_slice %549 {offsets = [0, 32], sizes = [16, 16], strides = [1, 1]} : vector<16x128xbf16> to vector<16x16xbf16>
    %557 = vector.extract_strided_slice %549 {offsets = [0, 48], sizes = [16, 16], strides = [1, 1]} : vector<16x128xbf16> to vector<16x16xbf16>
    %558 = vector.extract_strided_slice %549 {offsets = [0, 64], sizes = [16, 16], strides = [1, 1]} : vector<16x128xbf16> to vector<16x16xbf16>
    %559 = vector.extract_strided_slice %549 {offsets = [0, 80], sizes = [16, 16], strides = [1, 1]} : vector<16x128xbf16> to vector<16x16xbf16>
    %560 = vector.extract_strided_slice %549 {offsets = [0, 96], sizes = [16, 16], strides = [1, 1]} : vector<16x128xbf16> to vector<16x16xbf16>
    %561 = vector.extract_strided_slice %549 {offsets = [0, 112], sizes = [16, 16], strides = [1, 1]} : vector<16x128xbf16> to vector<16x16xbf16>
    %562 = vector.shape_cast %554 : vector<16x16xbf16> to vector<1x16x16xbf16>
    %563 = vector.shape_cast %555 : vector<16x16xbf16> to vector<1x16x16xbf16>
    %564 = vector.shape_cast %556 : vector<16x16xbf16> to vector<1x16x16xbf16>
    %565 = vector.shape_cast %557 : vector<16x16xbf16> to vector<1x16x16xbf16>
    %566 = vector.shape_cast %558 : vector<16x16xbf16> to vector<1x16x16xbf16>
    %567 = vector.shape_cast %559 : vector<16x16xbf16> to vector<1x16x16xbf16>
    %568 = vector.shape_cast %560 : vector<16x16xbf16> to vector<1x16x16xbf16>
    %569 = vector.shape_cast %561 : vector<16x16xbf16> to vector<1x16x16xbf16>
    %570 = tpu.concatenate %562, %563, %564, %565, %566, %567, %568, %569 in 0 : vector<1x16x16xbf16>, vector<1x16x16xbf16>, vector<1x16x16xbf16>, vector<1x16x16xbf16>, vector<1x16x16xbf16>, vector<1x16x16xbf16>, vector<1x16x16xbf16>, vector<1x16x16xbf16> -> vector<8x16x16xbf16>
    %571 = vector.extract_strided_slice %551 {offsets = [0, 0], sizes = [16, 16], strides = [1, 1]} : vector<16x128xbf16> to vector<16x16xbf16>
    %572 = vector.extract_strided_slice %551 {offsets = [0, 16], sizes = [16, 16], strides = [1, 1]} : vector<16x128xbf16> to vector<16x16xbf16>
    %573 = vector.extract_strided_slice %551 {offsets = [0, 32], sizes = [16, 16], strides = [1, 1]} : vector<16x128xbf16> to vector<16x16xbf16>
    %574 = vector.extract_strided_slice %551 {offsets = [0, 48], sizes = [16, 16], strides = [1, 1]} : vector<16x128xbf16> to vector<16x16xbf16>
    %575 = vector.extract_strided_slice %551 {offsets = [0, 64], sizes = [16, 16], strides = [1, 1]} : vector<16x128xbf16> to vector<16x16xbf16>
    %576 = vector.extract_strided_slice %551 {offsets = [0, 80], sizes = [16, 16], strides = [1, 1]} : vector<16x128xbf16> to vector<16x16xbf16>
    %577 = vector.extract_strided_slice %551 {offsets = [0, 96], sizes = [16, 16], strides = [1, 1]} : vector<16x128xbf16> to vector<16x16xbf16>
    %578 = vector.extract_strided_slice %551 {offsets = [0, 112], sizes = [16, 16], strides = [1, 1]} : vector<16x128xbf16> to vector<16x16xbf16>
    %579 = vector.shape_cast %571 : vector<16x16xbf16> to vector<1x16x16xbf16>
    %580 = vector.shape_cast %572 : vector<16x16xbf16> to vector<1x16x16xbf16>
    %581 = vector.shape_cast %573 : vector<16x16xbf16> to vector<1x16x16xbf16>
    %582 = vector.shape_cast %574 : vector<16x16xbf16> to vector<1x16x16xbf16>
    %583 = vector.shape_cast %575 : vector<16x16xbf16> to vector<1x16x16xbf16>
    %584 = vector.shape_cast %576 : vector<16x16xbf16> to vector<1x16x16xbf16>
    %585 = vector.shape_cast %577 : vector<16x16xbf16> to vector<1x16x16xbf16>
    %586 = vector.shape_cast %578 : vector<16x16xbf16> to vector<1x16x16xbf16>
    %587 = tpu.concatenate %579, %580, %581, %582, %583, %584, %585, %586 in 0 : vector<1x16x16xbf16>, vector<1x16x16xbf16>, vector<1x16x16xbf16>, vector<1x16x16xbf16>, vector<1x16x16xbf16>, vector<1x16x16xbf16>, vector<1x16x16xbf16>, vector<1x16x16xbf16> -> vector<8x16x16xbf16>
    %588 = vector.extract_strided_slice %553 {offsets = [0, 0], sizes = [16, 16], strides = [1, 1]} : vector<16x128xbf16> to vector<16x16xbf16>
    %589 = vector.extract_strided_slice %553 {offsets = [0, 16], sizes = [16, 16], strides = [1, 1]} : vector<16x128xbf16> to vector<16x16xbf16>
    %590 = vector.extract_strided_slice %553 {offsets = [0, 32], sizes = [16, 16], strides = [1, 1]} : vector<16x128xbf16> to vector<16x16xbf16>
    %591 = vector.extract_strided_slice %553 {offsets = [0, 48], sizes = [16, 16], strides = [1, 1]} : vector<16x128xbf16> to vector<16x16xbf16>
    %592 = vector.extract_strided_slice %553 {offsets = [0, 64], sizes = [16, 16], strides = [1, 1]} : vector<16x128xbf16> to vector<16x16xbf16>
    %593 = vector.extract_strided_slice %553 {offsets = [0, 80], sizes = [16, 16], strides = [1, 1]} : vector<16x128xbf16> to vector<16x16xbf16>
    %594 = vector.extract_strided_slice %553 {offsets = [0, 96], sizes = [16, 16], strides = [1, 1]} : vector<16x128xbf16> to vector<16x16xbf16>
    %595 = vector.extract_strided_slice %553 {offsets = [0, 112], sizes = [16, 16], strides = [1, 1]} : vector<16x128xbf16> to vector<16x16xbf16>
    %596 = vector.shape_cast %588 : vector<16x16xbf16> to vector<1x16x16xbf16>
    %597 = vector.shape_cast %589 : vector<16x16xbf16> to vector<1x16x16xbf16>
    %598 = vector.shape_cast %590 : vector<16x16xbf16> to vector<1x16x16xbf16>
    %599 = vector.shape_cast %591 : vector<16x16xbf16> to vector<1x16x16xbf16>
    %600 = vector.shape_cast %592 : vector<16x16xbf16> to vector<1x16x16xbf16>
    %601 = vector.shape_cast %593 : vector<16x16xbf16> to vector<1x16x16xbf16>
    %602 = vector.shape_cast %594 : vector<16x16xbf16> to vector<1x16x16xbf16>
    %603 = vector.shape_cast %595 : vector<16x16xbf16> to vector<1x16x16xbf16>
    %604 = tpu.concatenate %596, %597, %598, %599, %600, %601, %602, %603 in 0 : vector<1x16x16xbf16>, vector<1x16x16xbf16>, vector<1x16x16xbf16>, vector<1x16x16xbf16>, vector<1x16x16xbf16>, vector<1x16x16xbf16>, vector<1x16x16xbf16>, vector<1x16x16xbf16> -> vector<8x16x16xbf16>
    "tpu.trace_start"() <{level = 10 : i32, message = "hqd,hkd->hqk"}> : () -> ()
    %cst_175 = arith.constant dense<0.000000e+00> : vector<8x16x16xf32>
    %605 = tpu.matmul %570, %587, %cst_175 {dimension_numbers = #tpu.dot_dimension_numbers<[2], [2], [1], [1], [0, 0, 0, 1, 1, 1], [0], [0]>} : vector<8x16x16xbf16>, vector<8x16x16xbf16>, vector<8x16x16xf32> -> vector<8x16x16xf32>
    "tpu.trace_stop"() : () -> ()
    %606 = vector.shape_cast %5 : vector<16x16xf32> to vector<1x16x16xf32>
    %607 = vector.broadcast %606 : vector<1x16x16xf32> to vector<8x16x16xf32>
    %608 = arith.addf %605, %607 : vector<8x16x16xf32>
    %cst_176 = arith.constant dense<0xFF800000> : vector<8x16xf32>
    %609 = vector.multi_reduction <maximumf>, %608, %cst_176 [2] : vector<8x16x16xf32> to vector<8x16xf32>
    %610 = vector.shape_cast %609 : vector<8x16xf32> to vector<8x16x1xf32>
    %611 = vector.broadcast %610 : vector<8x16x1xf32> to vector<8x16x16xf32>
    %612 = arith.subf %608, %611 : vector<8x16x16xf32>
    %613 = math.exp %612 : vector<8x16x16xf32>
    %cst_177 = arith.constant dense<0.000000e+00> : vector<8x16xf32>
    %614 = vector.multi_reduction <add>, %613, %cst_177 [2] : vector<8x16x16xf32> to vector<8x16xf32>
    %615 = vector.shape_cast %614 : vector<8x16xf32> to vector<8x16x1xf32>
    %616 = tpu.reciprocal %615 {approx = true} : vector<8x16x1xf32> -> vector<8x16x1xf32>
    %617 = vector.broadcast %616 : vector<8x16x1xf32> to vector<8x16x16xf32>
    %618 = arith.mulf %613, %617 : vector<8x16x16xf32>
    %619 = arith.truncf %618 : vector<8x16x16xf32> to vector<8x16x16xbf16>
    "tpu.trace_start"() <{level = 10 : i32, message = "hqk,hkd->hqd"}> : () -> ()
    %cst_178 = arith.constant dense<0.000000e+00> : vector<8x16x16xf32>
    %620 = tpu.matmul %619, %604, %cst_178 {dimension_numbers = #tpu.dot_dimension_numbers<[2], [1], [1], [2], [0, 0, 0, 1, 1, 2], [0], [0]>} : vector<8x16x16xbf16>, vector<8x16x16xbf16>, vector<8x16x16xf32> -> vector<8x16x16xf32>
    "tpu.trace_stop"() : () -> ()
    %621 = vector.extract_strided_slice %620 {offsets = [0, 0, 0], sizes = [1, 16, 16], strides = [1, 1, 1]} : vector<8x16x16xf32> to vector<1x16x16xf32>
    %622 = vector.shape_cast %621 : vector<1x16x16xf32> to vector<16x16xf32>
    %623 = vector.extract_strided_slice %620 {offsets = [1, 0, 0], sizes = [1, 16, 16], strides = [1, 1, 1]} : vector<8x16x16xf32> to vector<1x16x16xf32>
    %624 = vector.shape_cast %623 : vector<1x16x16xf32> to vector<16x16xf32>
    %625 = vector.extract_strided_slice %620 {offsets = [2, 0, 0], sizes = [1, 16, 16], strides = [1, 1, 1]} : vector<8x16x16xf32> to vector<1x16x16xf32>
    %626 = vector.shape_cast %625 : vector<1x16x16xf32> to vector<16x16xf32>
    %627 = vector.extract_strided_slice %620 {offsets = [3, 0, 0], sizes = [1, 16, 16], strides = [1, 1, 1]} : vector<8x16x16xf32> to vector<1x16x16xf32>
    %628 = vector.shape_cast %627 : vector<1x16x16xf32> to vector<16x16xf32>
    %629 = vector.extract_strided_slice %620 {offsets = [4, 0, 0], sizes = [1, 16, 16], strides = [1, 1, 1]} : vector<8x16x16xf32> to vector<1x16x16xf32>
    %630 = vector.shape_cast %629 : vector<1x16x16xf32> to vector<16x16xf32>
    %631 = vector.extract_strided_slice %620 {offsets = [5, 0, 0], sizes = [1, 16, 16], strides = [1, 1, 1]} : vector<8x16x16xf32> to vector<1x16x16xf32>
    %632 = vector.shape_cast %631 : vector<1x16x16xf32> to vector<16x16xf32>
    %633 = vector.extract_strided_slice %620 {offsets = [6, 0, 0], sizes = [1, 16, 16], strides = [1, 1, 1]} : vector<8x16x16xf32> to vector<1x16x16xf32>
    %634 = vector.shape_cast %633 : vector<1x16x16xf32> to vector<16x16xf32>
    %635 = vector.extract_strided_slice %620 {offsets = [7, 0, 0], sizes = [1, 16, 16], strides = [1, 1, 1]} : vector<8x16x16xf32> to vector<1x16x16xf32>
    %636 = vector.shape_cast %635 : vector<1x16x16xf32> to vector<16x16xf32>
    %637 = tpu.concatenate %622, %624, %626, %628, %630, %632, %634, %636 in 1 : vector<16x16xf32>, vector<16x16xf32>, vector<16x16xf32>, vector<16x16xf32>, vector<16x16xf32>, vector<16x16xf32>, vector<16x16xf32>, vector<16x16xf32> -> vector<16x128xf32>
    %638 = arith.truncf %637 : vector<16x128xf32> to vector<16x128xbf16>
    %c3_179 = arith.constant 3 : index
    %c0_180 = arith.constant 0 : index
    %c0_181 = arith.constant 0 : index
    %639 = vector.load %arg5[%c3_179, %c0_180, %c0_181] : memref<5x128x128xbf16, #tpu.memory_space<vmem>>, vector<1x128x128xbf16>
    %640 = vector.shape_cast %639 : vector<1x128x128xbf16> to vector<128x128xbf16>
    %cst_182 = arith.constant dense<0.000000e+00> : vector<16x128xf32>
    %641 = tpu.matmul %638, %640, %cst_182 {dimension_numbers = #tpu.dot_dimension_numbers<[1], [0], [0], [1], [0, 0, 1, 1], [], []>} : vector<16x128xbf16>, vector<128x128xbf16>, vector<16x128xf32> -> vector<16x128xf32>
    %c3_183 = arith.constant 3 : index
    %c0_184 = arith.constant 0 : index
    %c0_185 = arith.constant 0 : index
    %642 = vector.load %arg6[%c3_183, %c0_184, %c0_185] : memref<5x1x128xf32, #tpu.memory_space<vmem>>, vector<1x1x128xf32>
    %643 = vector.shape_cast %642 : vector<1x1x128xf32> to vector<1x128xf32>
    %644 = vector.broadcast %643 : vector<1x128xf32> to vector<16x128xf32>
    %645 = arith.addf %641, %644 : vector<16x128xf32>
    %646 = arith.addf %539, %645 : vector<16x128xf32>
    %c3_186 = arith.constant 3 : index
    %c0_187 = arith.constant 0 : index
    %c0_188 = arith.constant 0 : index
    %647 = vector.load %arg7[%c3_186, %c0_187, %c0_188] : memref<5x1x128xf32, #tpu.memory_space<vmem>>, vector<1x1x128xf32>
    %648 = vector.shape_cast %647 : vector<1x1x128xf32> to vector<1x128xf32>
    %c3_189 = arith.constant 3 : index
    %c0_190 = arith.constant 0 : index
    %c0_191 = arith.constant 0 : index
    %649 = vector.load %arg8[%c3_189, %c0_190, %c0_191] : memref<5x1x128xf32, #tpu.memory_space<vmem>>, vector<1x1x128xf32>
    %650 = vector.shape_cast %649 : vector<1x1x128xf32> to vector<1x128xf32>
    %cst_192 = arith.constant dense<0.000000e+00> : vector<16xf32>
    %651 = vector.multi_reduction <add>, %646, %cst_192 [1] : vector<16x128xf32> to vector<16xf32>
    %652 = vector.shape_cast %651 : vector<16xf32> to vector<16x1xf32>
    %cst_193 = arith.constant 1.280000e+02 : f32
    %653 = vector.broadcast %cst_193 : f32 to vector<16x1xf32>
    %654 = arith.divf %652, %653 : vector<16x1xf32>
    %655 = vector.broadcast %654 : vector<16x1xf32> to vector<16x128xf32>
    %656 = arith.subf %646, %655 : vector<16x128xf32>
    %657 = arith.mulf %656, %656 : vector<16x128xf32>
    %cst_194 = arith.constant dense<0.000000e+00> : vector<16xf32>
    %658 = vector.multi_reduction <add>, %657, %cst_194 [1] : vector<16x128xf32> to vector<16xf32>
    %659 = vector.shape_cast %658 : vector<16xf32> to vector<16x1xf32>
    %cst_195 = arith.constant 1.280000e+02 : f32
    %660 = vector.broadcast %cst_195 : f32 to vector<16x1xf32>
    %661 = arith.divf %659, %660 : vector<16x1xf32>
    %662 = vector.broadcast %654 : vector<16x1xf32> to vector<16x128xf32>
    %663 = arith.subf %646, %662 : vector<16x128xf32>
    %cst_196 = arith.constant 9.99999974E-6 : f32
    %664 = vector.broadcast %cst_196 : f32 to vector<16x1xf32>
    %665 = arith.addf %661, %664 : vector<16x1xf32>
    %666 = math.rsqrt %665 : vector<16x1xf32>
    %667 = vector.broadcast %666 : vector<16x1xf32> to vector<16x128xf32>
    %668 = arith.mulf %663, %667 : vector<16x128xf32>
    %669 = vector.broadcast %648 : vector<1x128xf32> to vector<16x128xf32>
    %670 = arith.mulf %668, %669 : vector<16x128xf32>
    %671 = vector.broadcast %650 : vector<1x128xf32> to vector<16x128xf32>
    %672 = arith.addf %670, %671 : vector<16x128xf32>
    %673 = arith.truncf %672 : vector<16x128xf32> to vector<16x128xbf16>
    %c3_197 = arith.constant 3 : index
    %c0_198 = arith.constant 0 : index
    %c0_199 = arith.constant 0 : index
    %674 = vector.load %arg9[%c3_197, %c0_198, %c0_199] : memref<5x128x256xbf16, #tpu.memory_space<vmem>>, vector<1x128x256xbf16>
    %675 = vector.shape_cast %674 : vector<1x128x256xbf16> to vector<128x256xbf16>
    %cst_200 = arith.constant dense<0.000000e+00> : vector<16x256xf32>
    %676 = tpu.matmul %673, %675, %cst_200 {dimension_numbers = #tpu.dot_dimension_numbers<[1], [0], [0], [1], [0, 0, 1, 1], [], []>} : vector<16x128xbf16>, vector<128x256xbf16>, vector<16x256xf32> -> vector<16x256xf32>
    %c3_201 = arith.constant 3 : index
    %c0_202 = arith.constant 0 : index
    %c0_203 = arith.constant 0 : index
    %677 = vector.load %arg10[%c3_201, %c0_202, %c0_203] : memref<5x1x256xf32, #tpu.memory_space<vmem>>, vector<1x1x256xf32>
    %678 = vector.shape_cast %677 : vector<1x1x256xf32> to vector<1x256xf32>
    %679 = vector.broadcast %678 : vector<1x256xf32> to vector<16x256xf32>
    %680 = arith.addf %676, %679 : vector<16x256xf32>
    %cst_204 = arith.constant 0.000000e+00 : f32
    %681 = vector.broadcast %cst_204 : f32 to vector<16x256xf32>
    %682 = arith.maximumf %680, %681 : vector<16x256xf32>
    %683 = arith.truncf %682 : vector<16x256xf32> to vector<16x256xbf16>
    %c3_205 = arith.constant 3 : index
    %c0_206 = arith.constant 0 : index
    %c0_207 = arith.constant 0 : index
    %684 = vector.load %arg11[%c3_205, %c0_206, %c0_207] : memref<5x256x128xbf16, #tpu.memory_space<vmem>>, vector<1x256x128xbf16>
    %685 = vector.shape_cast %684 : vector<1x256x128xbf16> to vector<256x128xbf16>
    %cst_208 = arith.constant dense<0.000000e+00> : vector<16x128xf32>
    %686 = tpu.matmul %683, %685, %cst_208 {dimension_numbers = #tpu.dot_dimension_numbers<[1], [0], [0], [1], [0, 0, 1, 1], [], []>} : vector<16x256xbf16>, vector<256x128xbf16>, vector<16x128xf32> -> vector<16x128xf32>
    %c3_209 = arith.constant 3 : index
    %c0_210 = arith.constant 0 : index
    %c0_211 = arith.constant 0 : index
    %687 = vector.load %arg12[%c3_209, %c0_210, %c0_211] : memref<5x1x128xf32, #tpu.memory_space<vmem>>, vector<1x1x128xf32>
    %688 = vector.shape_cast %687 : vector<1x1x128xf32> to vector<1x128xf32>
    %689 = vector.broadcast %688 : vector<1x128xf32> to vector<16x128xf32>
    %690 = arith.addf %686, %689 : vector<16x128xf32>
    %691 = arith.addf %672, %690 : vector<16x128xf32>
    %c3_212 = arith.constant 3 : index
    %c0_213 = arith.constant 0 : index
    %c0_214 = arith.constant 0 : index
    %692 = vector.load %arg13[%c3_212, %c0_213, %c0_214] : memref<5x1x128xf32, #tpu.memory_space<vmem>>, vector<1x1x128xf32>
    %693 = vector.shape_cast %692 : vector<1x1x128xf32> to vector<1x128xf32>
    %c3_215 = arith.constant 3 : index
    %c0_216 = arith.constant 0 : index
    %c0_217 = arith.constant 0 : index
    %694 = vector.load %arg14[%c3_215, %c0_216, %c0_217] : memref<5x1x128xf32, #tpu.memory_space<vmem>>, vector<1x1x128xf32>
    %695 = vector.shape_cast %694 : vector<1x1x128xf32> to vector<1x128xf32>
    %cst_218 = arith.constant dense<0.000000e+00> : vector<16xf32>
    %696 = vector.multi_reduction <add>, %691, %cst_218 [1] : vector<16x128xf32> to vector<16xf32>
    %697 = vector.shape_cast %696 : vector<16xf32> to vector<16x1xf32>
    %cst_219 = arith.constant 1.280000e+02 : f32
    %698 = vector.broadcast %cst_219 : f32 to vector<16x1xf32>
    %699 = arith.divf %697, %698 : vector<16x1xf32>
    %700 = vector.broadcast %699 : vector<16x1xf32> to vector<16x128xf32>
    %701 = arith.subf %691, %700 : vector<16x128xf32>
    %702 = arith.mulf %701, %701 : vector<16x128xf32>
    %cst_220 = arith.constant dense<0.000000e+00> : vector<16xf32>
    %703 = vector.multi_reduction <add>, %702, %cst_220 [1] : vector<16x128xf32> to vector<16xf32>
    %704 = vector.shape_cast %703 : vector<16xf32> to vector<16x1xf32>
    %cst_221 = arith.constant 1.280000e+02 : f32
    %705 = vector.broadcast %cst_221 : f32 to vector<16x1xf32>
    %706 = arith.divf %704, %705 : vector<16x1xf32>
    %707 = vector.broadcast %699 : vector<16x1xf32> to vector<16x128xf32>
    %708 = arith.subf %691, %707 : vector<16x128xf32>
    %cst_222 = arith.constant 9.99999974E-6 : f32
    %709 = vector.broadcast %cst_222 : f32 to vector<16x1xf32>
    %710 = arith.addf %706, %709 : vector<16x1xf32>
    %711 = math.rsqrt %710 : vector<16x1xf32>
    %712 = vector.broadcast %711 : vector<16x1xf32> to vector<16x128xf32>
    %713 = arith.mulf %708, %712 : vector<16x128xf32>
    %714 = vector.broadcast %693 : vector<1x128xf32> to vector<16x128xf32>
    %715 = arith.mulf %713, %714 : vector<16x128xf32>
    %716 = vector.broadcast %695 : vector<1x128xf32> to vector<16x128xf32>
    %717 = arith.addf %715, %716 : vector<16x128xf32>
    %718 = arith.truncf %717 : vector<16x128xf32> to vector<16x128xbf16>
    %c4 = arith.constant 4 : index
    %c0_223 = arith.constant 0 : index
    %c0_224 = arith.constant 0 : index
    %719 = vector.load %arg3[%c4, %c0_223, %c0_224] : memref<5x128x384xbf16, #tpu.memory_space<vmem>>, vector<1x128x384xbf16>
    %720 = vector.shape_cast %719 : vector<1x128x384xbf16> to vector<128x384xbf16>
    %cst_225 = arith.constant dense<0.000000e+00> : vector<16x384xf32>
    %721 = tpu.matmul %718, %720, %cst_225 {dimension_numbers = #tpu.dot_dimension_numbers<[1], [0], [0], [1], [0, 0, 1, 1], [], []>} : vector<16x128xbf16>, vector<128x384xbf16>, vector<16x384xf32> -> vector<16x384xf32>
    %c4_226 = arith.constant 4 : index
    %c0_227 = arith.constant 0 : index
    %c0_228 = arith.constant 0 : index
    %722 = vector.load %arg4[%c4_226, %c0_227, %c0_228] : memref<5x1x384xf32, #tpu.memory_space<vmem>>, vector<1x1x384xf32>
    %723 = vector.shape_cast %722 : vector<1x1x384xf32> to vector<1x384xf32>
    %724 = vector.broadcast %723 : vector<1x384xf32> to vector<16x384xf32>
    %725 = arith.addf %721, %724 : vector<16x384xf32>
    %726 = vector.extract_strided_slice %725 {offsets = [0, 0], sizes = [16, 128], strides = [1, 1]} : vector<16x384xf32> to vector<16x128xf32>
    %727 = arith.truncf %726 : vector<16x128xf32> to vector<16x128xbf16>
    %728 = vector.extract_strided_slice %725 {offsets = [0, 128], sizes = [16, 128], strides = [1, 1]} : vector<16x384xf32> to vector<16x128xf32>
    %729 = arith.truncf %728 : vector<16x128xf32> to vector<16x128xbf16>
    %730 = vector.extract_strided_slice %725 {offsets = [0, 256], sizes = [16, 128], strides = [1, 1]} : vector<16x384xf32> to vector<16x128xf32>
    %731 = arith.truncf %730 : vector<16x128xf32> to vector<16x128xbf16>
    %732 = vector.extract_strided_slice %727 {offsets = [0, 0], sizes = [16, 16], strides = [1, 1]} : vector<16x128xbf16> to vector<16x16xbf16>
    %733 = vector.extract_strided_slice %727 {offsets = [0, 16], sizes = [16, 16], strides = [1, 1]} : vector<16x128xbf16> to vector<16x16xbf16>
    %734 = vector.extract_strided_slice %727 {offsets = [0, 32], sizes = [16, 16], strides = [1, 1]} : vector<16x128xbf16> to vector<16x16xbf16>
    %735 = vector.extract_strided_slice %727 {offsets = [0, 48], sizes = [16, 16], strides = [1, 1]} : vector<16x128xbf16> to vector<16x16xbf16>
    %736 = vector.extract_strided_slice %727 {offsets = [0, 64], sizes = [16, 16], strides = [1, 1]} : vector<16x128xbf16> to vector<16x16xbf16>
    %737 = vector.extract_strided_slice %727 {offsets = [0, 80], sizes = [16, 16], strides = [1, 1]} : vector<16x128xbf16> to vector<16x16xbf16>
    %738 = vector.extract_strided_slice %727 {offsets = [0, 96], sizes = [16, 16], strides = [1, 1]} : vector<16x128xbf16> to vector<16x16xbf16>
    %739 = vector.extract_strided_slice %727 {offsets = [0, 112], sizes = [16, 16], strides = [1, 1]} : vector<16x128xbf16> to vector<16x16xbf16>
    %740 = vector.shape_cast %732 : vector<16x16xbf16> to vector<1x16x16xbf16>
    %741 = vector.shape_cast %733 : vector<16x16xbf16> to vector<1x16x16xbf16>
    %742 = vector.shape_cast %734 : vector<16x16xbf16> to vector<1x16x16xbf16>
    %743 = vector.shape_cast %735 : vector<16x16xbf16> to vector<1x16x16xbf16>
    %744 = vector.shape_cast %736 : vector<16x16xbf16> to vector<1x16x16xbf16>
    %745 = vector.shape_cast %737 : vector<16x16xbf16> to vector<1x16x16xbf16>
    %746 = vector.shape_cast %738 : vector<16x16xbf16> to vector<1x16x16xbf16>
    %747 = vector.shape_cast %739 : vector<16x16xbf16> to vector<1x16x16xbf16>
    %748 = tpu.concatenate %740, %741, %742, %743, %744, %745, %746, %747 in 0 : vector<1x16x16xbf16>, vector<1x16x16xbf16>, vector<1x16x16xbf16>, vector<1x16x16xbf16>, vector<1x16x16xbf16>, vector<1x16x16xbf16>, vector<1x16x16xbf16>, vector<1x16x16xbf16> -> vector<8x16x16xbf16>
    %749 = vector.extract_strided_slice %729 {offsets = [0, 0], sizes = [16, 16], strides = [1, 1]} : vector<16x128xbf16> to vector<16x16xbf16>
    %750 = vector.extract_strided_slice %729 {offsets = [0, 16], sizes = [16, 16], strides = [1, 1]} : vector<16x128xbf16> to vector<16x16xbf16>
    %751 = vector.extract_strided_slice %729 {offsets = [0, 32], sizes = [16, 16], strides = [1, 1]} : vector<16x128xbf16> to vector<16x16xbf16>
    %752 = vector.extract_strided_slice %729 {offsets = [0, 48], sizes = [16, 16], strides = [1, 1]} : vector<16x128xbf16> to vector<16x16xbf16>
    %753 = vector.extract_strided_slice %729 {offsets = [0, 64], sizes = [16, 16], strides = [1, 1]} : vector<16x128xbf16> to vector<16x16xbf16>
    %754 = vector.extract_strided_slice %729 {offsets = [0, 80], sizes = [16, 16], strides = [1, 1]} : vector<16x128xbf16> to vector<16x16xbf16>
    %755 = vector.extract_strided_slice %729 {offsets = [0, 96], sizes = [16, 16], strides = [1, 1]} : vector<16x128xbf16> to vector<16x16xbf16>
    %756 = vector.extract_strided_slice %729 {offsets = [0, 112], sizes = [16, 16], strides = [1, 1]} : vector<16x128xbf16> to vector<16x16xbf16>
    %757 = vector.shape_cast %749 : vector<16x16xbf16> to vector<1x16x16xbf16>
    %758 = vector.shape_cast %750 : vector<16x16xbf16> to vector<1x16x16xbf16>
    %759 = vector.shape_cast %751 : vector<16x16xbf16> to vector<1x16x16xbf16>
    %760 = vector.shape_cast %752 : vector<16x16xbf16> to vector<1x16x16xbf16>
    %761 = vector.shape_cast %753 : vector<16x16xbf16> to vector<1x16x16xbf16>
    %762 = vector.shape_cast %754 : vector<16x16xbf16> to vector<1x16x16xbf16>
    %763 = vector.shape_cast %755 : vector<16x16xbf16> to vector<1x16x16xbf16>
    %764 = vector.shape_cast %756 : vector<16x16xbf16> to vector<1x16x16xbf16>
    %765 = tpu.concatenate %757, %758, %759, %760, %761, %762, %763, %764 in 0 : vector<1x16x16xbf16>, vector<1x16x16xbf16>, vector<1x16x16xbf16>, vector<1x16x16xbf16>, vector<1x16x16xbf16>, vector<1x16x16xbf16>, vector<1x16x16xbf16>, vector<1x16x16xbf16> -> vector<8x16x16xbf16>
    %766 = vector.extract_strided_slice %731 {offsets = [0, 0], sizes = [16, 16], strides = [1, 1]} : vector<16x128xbf16> to vector<16x16xbf16>
    %767 = vector.extract_strided_slice %731 {offsets = [0, 16], sizes = [16, 16], strides = [1, 1]} : vector<16x128xbf16> to vector<16x16xbf16>
    %768 = vector.extract_strided_slice %731 {offsets = [0, 32], sizes = [16, 16], strides = [1, 1]} : vector<16x128xbf16> to vector<16x16xbf16>
    %769 = vector.extract_strided_slice %731 {offsets = [0, 48], sizes = [16, 16], strides = [1, 1]} : vector<16x128xbf16> to vector<16x16xbf16>
    %770 = vector.extract_strided_slice %731 {offsets = [0, 64], sizes = [16, 16], strides = [1, 1]} : vector<16x128xbf16> to vector<16x16xbf16>
    %771 = vector.extract_strided_slice %731 {offsets = [0, 80], sizes = [16, 16], strides = [1, 1]} : vector<16x128xbf16> to vector<16x16xbf16>
    %772 = vector.extract_strided_slice %731 {offsets = [0, 96], sizes = [16, 16], strides = [1, 1]} : vector<16x128xbf16> to vector<16x16xbf16>
    %773 = vector.extract_strided_slice %731 {offsets = [0, 112], sizes = [16, 16], strides = [1, 1]} : vector<16x128xbf16> to vector<16x16xbf16>
    %774 = vector.shape_cast %766 : vector<16x16xbf16> to vector<1x16x16xbf16>
    %775 = vector.shape_cast %767 : vector<16x16xbf16> to vector<1x16x16xbf16>
    %776 = vector.shape_cast %768 : vector<16x16xbf16> to vector<1x16x16xbf16>
    %777 = vector.shape_cast %769 : vector<16x16xbf16> to vector<1x16x16xbf16>
    %778 = vector.shape_cast %770 : vector<16x16xbf16> to vector<1x16x16xbf16>
    %779 = vector.shape_cast %771 : vector<16x16xbf16> to vector<1x16x16xbf16>
    %780 = vector.shape_cast %772 : vector<16x16xbf16> to vector<1x16x16xbf16>
    %781 = vector.shape_cast %773 : vector<16x16xbf16> to vector<1x16x16xbf16>
    %782 = tpu.concatenate %774, %775, %776, %777, %778, %779, %780, %781 in 0 : vector<1x16x16xbf16>, vector<1x16x16xbf16>, vector<1x16x16xbf16>, vector<1x16x16xbf16>, vector<1x16x16xbf16>, vector<1x16x16xbf16>, vector<1x16x16xbf16>, vector<1x16x16xbf16> -> vector<8x16x16xbf16>
    "tpu.trace_start"() <{level = 10 : i32, message = "hqd,hkd->hqk"}> : () -> ()
    %cst_229 = arith.constant dense<0.000000e+00> : vector<8x16x16xf32>
    %783 = tpu.matmul %748, %765, %cst_229 {dimension_numbers = #tpu.dot_dimension_numbers<[2], [2], [1], [1], [0, 0, 0, 1, 1, 1], [0], [0]>} : vector<8x16x16xbf16>, vector<8x16x16xbf16>, vector<8x16x16xf32> -> vector<8x16x16xf32>
    "tpu.trace_stop"() : () -> ()
    %784 = vector.shape_cast %5 : vector<16x16xf32> to vector<1x16x16xf32>
    %785 = vector.broadcast %784 : vector<1x16x16xf32> to vector<8x16x16xf32>
    %786 = arith.addf %783, %785 : vector<8x16x16xf32>
    %cst_230 = arith.constant dense<0xFF800000> : vector<8x16xf32>
    %787 = vector.multi_reduction <maximumf>, %786, %cst_230 [2] : vector<8x16x16xf32> to vector<8x16xf32>
    %788 = vector.shape_cast %787 : vector<8x16xf32> to vector<8x16x1xf32>
    %789 = vector.broadcast %788 : vector<8x16x1xf32> to vector<8x16x16xf32>
    %790 = arith.subf %786, %789 : vector<8x16x16xf32>
    %791 = math.exp %790 : vector<8x16x16xf32>
    %cst_231 = arith.constant dense<0.000000e+00> : vector<8x16xf32>
    %792 = vector.multi_reduction <add>, %791, %cst_231 [2] : vector<8x16x16xf32> to vector<8x16xf32>
    %793 = vector.shape_cast %792 : vector<8x16xf32> to vector<8x16x1xf32>
    %794 = tpu.reciprocal %793 {approx = true} : vector<8x16x1xf32> -> vector<8x16x1xf32>
    %795 = vector.broadcast %794 : vector<8x16x1xf32> to vector<8x16x16xf32>
    %796 = arith.mulf %791, %795 : vector<8x16x16xf32>
    %797 = arith.truncf %796 : vector<8x16x16xf32> to vector<8x16x16xbf16>
    "tpu.trace_start"() <{level = 10 : i32, message = "hqk,hkd->hqd"}> : () -> ()
    %cst_232 = arith.constant dense<0.000000e+00> : vector<8x16x16xf32>
    %798 = tpu.matmul %797, %782, %cst_232 {dimension_numbers = #tpu.dot_dimension_numbers<[2], [1], [1], [2], [0, 0, 0, 1, 1, 2], [0], [0]>} : vector<8x16x16xbf16>, vector<8x16x16xbf16>, vector<8x16x16xf32> -> vector<8x16x16xf32>
    "tpu.trace_stop"() : () -> ()
    %799 = vector.extract_strided_slice %798 {offsets = [0, 0, 0], sizes = [1, 16, 16], strides = [1, 1, 1]} : vector<8x16x16xf32> to vector<1x16x16xf32>
    %800 = vector.shape_cast %799 : vector<1x16x16xf32> to vector<16x16xf32>
    %801 = vector.extract_strided_slice %798 {offsets = [1, 0, 0], sizes = [1, 16, 16], strides = [1, 1, 1]} : vector<8x16x16xf32> to vector<1x16x16xf32>
    %802 = vector.shape_cast %801 : vector<1x16x16xf32> to vector<16x16xf32>
    %803 = vector.extract_strided_slice %798 {offsets = [2, 0, 0], sizes = [1, 16, 16], strides = [1, 1, 1]} : vector<8x16x16xf32> to vector<1x16x16xf32>
    %804 = vector.shape_cast %803 : vector<1x16x16xf32> to vector<16x16xf32>
    %805 = vector.extract_strided_slice %798 {offsets = [3, 0, 0], sizes = [1, 16, 16], strides = [1, 1, 1]} : vector<8x16x16xf32> to vector<1x16x16xf32>
    %806 = vector.shape_cast %805 : vector<1x16x16xf32> to vector<16x16xf32>
    %807 = vector.extract_strided_slice %798 {offsets = [4, 0, 0], sizes = [1, 16, 16], strides = [1, 1, 1]} : vector<8x16x16xf32> to vector<1x16x16xf32>
    %808 = vector.shape_cast %807 : vector<1x16x16xf32> to vector<16x16xf32>
    %809 = vector.extract_strided_slice %798 {offsets = [5, 0, 0], sizes = [1, 16, 16], strides = [1, 1, 1]} : vector<8x16x16xf32> to vector<1x16x16xf32>
    %810 = vector.shape_cast %809 : vector<1x16x16xf32> to vector<16x16xf32>
    %811 = vector.extract_strided_slice %798 {offsets = [6, 0, 0], sizes = [1, 16, 16], strides = [1, 1, 1]} : vector<8x16x16xf32> to vector<1x16x16xf32>
    %812 = vector.shape_cast %811 : vector<1x16x16xf32> to vector<16x16xf32>
    %813 = vector.extract_strided_slice %798 {offsets = [7, 0, 0], sizes = [1, 16, 16], strides = [1, 1, 1]} : vector<8x16x16xf32> to vector<1x16x16xf32>
    %814 = vector.shape_cast %813 : vector<1x16x16xf32> to vector<16x16xf32>
    %815 = tpu.concatenate %800, %802, %804, %806, %808, %810, %812, %814 in 1 : vector<16x16xf32>, vector<16x16xf32>, vector<16x16xf32>, vector<16x16xf32>, vector<16x16xf32>, vector<16x16xf32>, vector<16x16xf32>, vector<16x16xf32> -> vector<16x128xf32>
    %816 = arith.truncf %815 : vector<16x128xf32> to vector<16x128xbf16>
    %c4_233 = arith.constant 4 : index
    %c0_234 = arith.constant 0 : index
    %c0_235 = arith.constant 0 : index
    %817 = vector.load %arg5[%c4_233, %c0_234, %c0_235] : memref<5x128x128xbf16, #tpu.memory_space<vmem>>, vector<1x128x128xbf16>
    %818 = vector.shape_cast %817 : vector<1x128x128xbf16> to vector<128x128xbf16>
    %cst_236 = arith.constant dense<0.000000e+00> : vector<16x128xf32>
    %819 = tpu.matmul %816, %818, %cst_236 {dimension_numbers = #tpu.dot_dimension_numbers<[1], [0], [0], [1], [0, 0, 1, 1], [], []>} : vector<16x128xbf16>, vector<128x128xbf16>, vector<16x128xf32> -> vector<16x128xf32>
    %c4_237 = arith.constant 4 : index
    %c0_238 = arith.constant 0 : index
    %c0_239 = arith.constant 0 : index
    %820 = vector.load %arg6[%c4_237, %c0_238, %c0_239] : memref<5x1x128xf32, #tpu.memory_space<vmem>>, vector<1x1x128xf32>
    %821 = vector.shape_cast %820 : vector<1x1x128xf32> to vector<1x128xf32>
    %822 = vector.broadcast %821 : vector<1x128xf32> to vector<16x128xf32>
    %823 = arith.addf %819, %822 : vector<16x128xf32>
    %824 = arith.addf %717, %823 : vector<16x128xf32>
    %c4_240 = arith.constant 4 : index
    %c0_241 = arith.constant 0 : index
    %c0_242 = arith.constant 0 : index
    %825 = vector.load %arg7[%c4_240, %c0_241, %c0_242] : memref<5x1x128xf32, #tpu.memory_space<vmem>>, vector<1x1x128xf32>
    %826 = vector.shape_cast %825 : vector<1x1x128xf32> to vector<1x128xf32>
    %c4_243 = arith.constant 4 : index
    %c0_244 = arith.constant 0 : index
    %c0_245 = arith.constant 0 : index
    %827 = vector.load %arg8[%c4_243, %c0_244, %c0_245] : memref<5x1x128xf32, #tpu.memory_space<vmem>>, vector<1x1x128xf32>
    %828 = vector.shape_cast %827 : vector<1x1x128xf32> to vector<1x128xf32>
    %cst_246 = arith.constant dense<0.000000e+00> : vector<16xf32>
    %829 = vector.multi_reduction <add>, %824, %cst_246 [1] : vector<16x128xf32> to vector<16xf32>
    %830 = vector.shape_cast %829 : vector<16xf32> to vector<16x1xf32>
    %cst_247 = arith.constant 1.280000e+02 : f32
    %831 = vector.broadcast %cst_247 : f32 to vector<16x1xf32>
    %832 = arith.divf %830, %831 : vector<16x1xf32>
    %833 = vector.broadcast %832 : vector<16x1xf32> to vector<16x128xf32>
    %834 = arith.subf %824, %833 : vector<16x128xf32>
    %835 = arith.mulf %834, %834 : vector<16x128xf32>
    %cst_248 = arith.constant dense<0.000000e+00> : vector<16xf32>
    %836 = vector.multi_reduction <add>, %835, %cst_248 [1] : vector<16x128xf32> to vector<16xf32>
    %837 = vector.shape_cast %836 : vector<16xf32> to vector<16x1xf32>
    %cst_249 = arith.constant 1.280000e+02 : f32
    %838 = vector.broadcast %cst_249 : f32 to vector<16x1xf32>
    %839 = arith.divf %837, %838 : vector<16x1xf32>
    %840 = vector.broadcast %832 : vector<16x1xf32> to vector<16x128xf32>
    %841 = arith.subf %824, %840 : vector<16x128xf32>
    %cst_250 = arith.constant 9.99999974E-6 : f32
    %842 = vector.broadcast %cst_250 : f32 to vector<16x1xf32>
    %843 = arith.addf %839, %842 : vector<16x1xf32>
    %844 = math.rsqrt %843 : vector<16x1xf32>
    %845 = vector.broadcast %844 : vector<16x1xf32> to vector<16x128xf32>
    %846 = arith.mulf %841, %845 : vector<16x128xf32>
    %847 = vector.broadcast %826 : vector<1x128xf32> to vector<16x128xf32>
    %848 = arith.mulf %846, %847 : vector<16x128xf32>
    %849 = vector.broadcast %828 : vector<1x128xf32> to vector<16x128xf32>
    %850 = arith.addf %848, %849 : vector<16x128xf32>
    %851 = arith.truncf %850 : vector<16x128xf32> to vector<16x128xbf16>
    %c4_251 = arith.constant 4 : index
    %c0_252 = arith.constant 0 : index
    %c0_253 = arith.constant 0 : index
    %852 = vector.load %arg9[%c4_251, %c0_252, %c0_253] : memref<5x128x256xbf16, #tpu.memory_space<vmem>>, vector<1x128x256xbf16>
    %853 = vector.shape_cast %852 : vector<1x128x256xbf16> to vector<128x256xbf16>
    %cst_254 = arith.constant dense<0.000000e+00> : vector<16x256xf32>
    %854 = tpu.matmul %851, %853, %cst_254 {dimension_numbers = #tpu.dot_dimension_numbers<[1], [0], [0], [1], [0, 0, 1, 1], [], []>} : vector<16x128xbf16>, vector<128x256xbf16>, vector<16x256xf32> -> vector<16x256xf32>
    %c4_255 = arith.constant 4 : index
    %c0_256 = arith.constant 0 : index
    %c0_257 = arith.constant 0 : index
    %855 = vector.load %arg10[%c4_255, %c0_256, %c0_257] : memref<5x1x256xf32, #tpu.memory_space<vmem>>, vector<1x1x256xf32>
    %856 = vector.shape_cast %855 : vector<1x1x256xf32> to vector<1x256xf32>
    %857 = vector.broadcast %856 : vector<1x256xf32> to vector<16x256xf32>
    %858 = arith.addf %854, %857 : vector<16x256xf32>
    %cst_258 = arith.constant 0.000000e+00 : f32
    %859 = vector.broadcast %cst_258 : f32 to vector<16x256xf32>
    %860 = arith.maximumf %858, %859 : vector<16x256xf32>
    %861 = arith.truncf %860 : vector<16x256xf32> to vector<16x256xbf16>
    %c4_259 = arith.constant 4 : index
    %c0_260 = arith.constant 0 : index
    %c0_261 = arith.constant 0 : index
    %862 = vector.load %arg11[%c4_259, %c0_260, %c0_261] : memref<5x256x128xbf16, #tpu.memory_space<vmem>>, vector<1x256x128xbf16>
    %863 = vector.shape_cast %862 : vector<1x256x128xbf16> to vector<256x128xbf16>
    %cst_262 = arith.constant dense<0.000000e+00> : vector<16x128xf32>
    %864 = tpu.matmul %861, %863, %cst_262 {dimension_numbers = #tpu.dot_dimension_numbers<[1], [0], [0], [1], [0, 0, 1, 1], [], []>} : vector<16x256xbf16>, vector<256x128xbf16>, vector<16x128xf32> -> vector<16x128xf32>
    %c4_263 = arith.constant 4 : index
    %c0_264 = arith.constant 0 : index
    %c0_265 = arith.constant 0 : index
    %865 = vector.load %arg12[%c4_263, %c0_264, %c0_265] : memref<5x1x128xf32, #tpu.memory_space<vmem>>, vector<1x1x128xf32>
    %866 = vector.shape_cast %865 : vector<1x1x128xf32> to vector<1x128xf32>
    %867 = vector.broadcast %866 : vector<1x128xf32> to vector<16x128xf32>
    %868 = arith.addf %864, %867 : vector<16x128xf32>
    %869 = arith.addf %850, %868 : vector<16x128xf32>
    %c4_266 = arith.constant 4 : index
    %c0_267 = arith.constant 0 : index
    %c0_268 = arith.constant 0 : index
    %870 = vector.load %arg13[%c4_266, %c0_267, %c0_268] : memref<5x1x128xf32, #tpu.memory_space<vmem>>, vector<1x1x128xf32>
    %871 = vector.shape_cast %870 : vector<1x1x128xf32> to vector<1x128xf32>
    %c4_269 = arith.constant 4 : index
    %c0_270 = arith.constant 0 : index
    %c0_271 = arith.constant 0 : index
    %872 = vector.load %arg14[%c4_269, %c0_270, %c0_271] : memref<5x1x128xf32, #tpu.memory_space<vmem>>, vector<1x1x128xf32>
    %873 = vector.shape_cast %872 : vector<1x1x128xf32> to vector<1x128xf32>
    %cst_272 = arith.constant dense<0.000000e+00> : vector<16xf32>
    %874 = vector.multi_reduction <add>, %869, %cst_272 [1] : vector<16x128xf32> to vector<16xf32>
    %875 = vector.shape_cast %874 : vector<16xf32> to vector<16x1xf32>
    %cst_273 = arith.constant 1.280000e+02 : f32
    %876 = vector.broadcast %cst_273 : f32 to vector<16x1xf32>
    %877 = arith.divf %875, %876 : vector<16x1xf32>
    %878 = vector.broadcast %877 : vector<16x1xf32> to vector<16x128xf32>
    %879 = arith.subf %869, %878 : vector<16x128xf32>
    %880 = arith.mulf %879, %879 : vector<16x128xf32>
    %cst_274 = arith.constant dense<0.000000e+00> : vector<16xf32>
    %881 = vector.multi_reduction <add>, %880, %cst_274 [1] : vector<16x128xf32> to vector<16xf32>
    %882 = vector.shape_cast %881 : vector<16xf32> to vector<16x1xf32>
    %cst_275 = arith.constant 1.280000e+02 : f32
    %883 = vector.broadcast %cst_275 : f32 to vector<16x1xf32>
    %884 = arith.divf %882, %883 : vector<16x1xf32>
    %885 = vector.broadcast %877 : vector<16x1xf32> to vector<16x128xf32>
    %886 = arith.subf %869, %885 : vector<16x128xf32>
    %cst_276 = arith.constant 9.99999974E-6 : f32
    %887 = vector.broadcast %cst_276 : f32 to vector<16x1xf32>
    %888 = arith.addf %884, %887 : vector<16x1xf32>
    %889 = math.rsqrt %888 : vector<16x1xf32>
    %890 = vector.broadcast %889 : vector<16x1xf32> to vector<16x128xf32>
    %891 = arith.mulf %886, %890 : vector<16x128xf32>
    %892 = vector.broadcast %871 : vector<1x128xf32> to vector<16x128xf32>
    %893 = arith.mulf %891, %892 : vector<16x128xf32>
    %894 = vector.broadcast %873 : vector<1x128xf32> to vector<16x128xf32>
    %895 = arith.addf %893, %894 : vector<16x128xf32>
    %896 = vector.shape_cast %895 : vector<16x128xf32> to vector<8x2x128xf32>
    %cst_277 = arith.constant dense<0.000000e+00> : vector<2x128xf32>
    %897 = vector.multi_reduction <add>, %896, %cst_277 [0] : vector<8x2x128xf32> to vector<2x128xf32>
    %cst_278 = arith.constant 8.000000e+00 : f32
    %898 = vector.broadcast %cst_278 : f32 to vector<2x128xf32>
    %899 = arith.divf %897, %898 : vector<2x128xf32>
    %c0_279 = arith.constant 0 : index
    %c0_280 = arith.constant 0 : index
    %900 = vector.load %arg15[%c0_279, %c0_280] : memref<128x6xf32, #tpu.memory_space<vmem>>, vector<128x6xf32>
    %cst_281 = arith.constant dense<0.000000e+00> : vector<2x6xf32>
    %901 = tpu.matmul %899, %900, %cst_281 {dimension_numbers = #tpu.dot_dimension_numbers<[1], [0], [0], [1], [0, 0, 1, 1], [], []>} : vector<2x128xf32>, vector<128x6xf32>, vector<2x6xf32> -> vector<2x6xf32>
    %c0_282 = arith.constant 0 : index
    %c0_283 = arith.constant 0 : index
    %902 = vector.load %arg16[%c0_282, %c0_283] : memref<1x6xf32, #tpu.memory_space<vmem>>, vector<1x6xf32>
    %903 = vector.broadcast %902 : vector<1x6xf32> to vector<2x6xf32>
    %904 = arith.addf %901, %903 : vector<2x6xf32>
    %c0_284 = arith.constant 0 : index
    %c0_285 = arith.constant 0 : index
    %905 = vector.load %arg17[%c0_284, %c0_285] : memref<2x6xf32, #tpu.memory_space<vmem>>, vector<2x6xf32>
    tpu.vector_store %arg17[%c0_284, %c0_285], %904 {strides = array<i32>} : memref<2x6xf32, #tpu.memory_space<vmem>>, vector<2x6xf32>,
    return
  }
}

</mosaic_0001>

<bundles_post_ra>
// kernel: transformer_classifier.1
= control target key start
LH: loop header
LB: loop body
LE: loop exit
PB: predicated region body
PF: predicated region fallthrough
CT: control target
= control target key end

     0   :  { %s19195_s0 = inlined_call_operand.vmem [shape: f32[8,2,128], index: 0, kind: input, shape index: {}]   ;;  %s19196_s1 = inlined_call_operand.vmem [shape: f32[1,1,128], index: 1, kind: input, shape index: {}]   ;;  %s19197_s2 = inlined_call_operand.vmem [shape: f32[16,16], index: 2, kind: input, shape index: {}]   ;;  %s19198_s3 = inlined_call_operand.hbm [shape: bf16[5,128,384], index: 3, kind: input, shape index: {}]   ;;  %s19199_s4 = inlined_call_operand.vmem [shape: f32[5,1,384], index: 4, kind: input, shape index: {}]   ;;  %s19200_s5 = inlined_call_operand.hbm [shape: bf16[5,128,128], index: 5, kind: input, shape index: {}]   ;;  %s19201_s6 = inlined_call_operand.vmem [shape: f32[5,1,128], index: 6, kind: input, shape index: {}]   ;;  %s19202_s7 = inlined_call_operand.vmem [shape: f32[5,1,128], index: 7, kind: input, shape index: {}]   ;;  %s19203_s8 = inlined_call_operand.vmem [shape: f32[5,1,128], index: 8, kind: input, shape index: {}]   ;;  %s19204_s9 = inlined_call_operand.hbm [shape: bf16[5,128,256], index: 9, kind: input, shape index: {}]   ;;  %s19205_s10 = inlined_call_operand.vmem [shape: f32[5,1,256], index: 10, kind: input, shape index: {}]   ;;  %s19206_s11 = inlined_call_operand.hbm [shape: bf16[5,256,128], index: 11, kind: input, shape index: {}]   ;;  %s19207_s12 = inlined_call_operand.vmem [shape: f32[5,1,128], index: 12, kind: input, shape index: {}]   ;;  %s19208_s13 = inlined_call_operand.vmem [shape: f32[5,1,128], index: 13, kind: input, shape index: {}]   ;;  %s19209_s14 = inlined_call_operand.vmem [shape: f32[5,1,128], index: 14, kind: input, shape index: {}]   ;;  %s19210_s15 = inlined_call_operand.vmem [shape: f32[128,6], index: 15, kind: input, shape index: {}]   ;;  %s19211_s16 = inlined_call_operand.vmem [shape: f32[1,6], index: 16, kind: input, shape index: {}]   ;;  %s19212_s17 = inlined_call_operand.hbm [shape: f32[2,6], index: 17, kind: output, shape index: {}]  }
   0x1   :  { %19216 = sst [smem:[#allocation15_spill]] %s19195_s0 }
   0x2   :  { %19217 = sst [smem:[#allocation16_spill]] %s19196_s1 }
   0x3   :  { %22 = vsyncpa [#allocation3], 0 }
   0x4   :  { %23 = vsyncpa [#allocation6], 0 }
   0x5   :  { %24 = vsyncpa [#allocation9], 0 }
   0x6   :  { %25 = vsyncpa [#allocation4], 0  ;;  %s15981_s24 = smov [#allocation5]   ;;  %s15863_s28 = scalar_lea.hbm %s19200_s5, 5120 }
   0x7   :  { %s51_s25 = sshll.u32 %s15981_s24, 4  ;;  %p15864_p0 = scmp.ne.s32.totalorder %s19200_s5, %s15863_s28  ;;  %s52_s25 = int_to_ptr.vmem [resolvable:$true] %s51_s25 }
   0x8   :  { %p15867_p1 = scmp.lt.u32.totalorder %s15863_s28, %s19200_s5 }
   0xa   :  { %p15869_p2 = pnand %p15867_p1, %p15864_p0 }
   0xc   :  { %15872 = shalt.err (!%p15869_p2)
}
   0xd   :  { %s15873_s19 = scalar_lea.vmem %s52_s25, 5120  ;;  %p15878_p4 = scmp.lt.s32.totalorder %s52_s25, %s52_s25 }
   0xe   :  { %p15874_p3 = scmp.ne.s32.totalorder %s52_s25, %s15873_s19  ;;  %p15879_p5 = scmp.lt.s32.totalorder %s15873_s19, %s15873_s19 }
  0x10   :  { %p15880_p6 = por %p15879_p5, %p15878_p4 }
  0x12   :  { %p15881_p7 = pnand %p15880_p6, %p15874_p3 }
  0x14   :  { %15884 = shalt.err (!%p15881_p7)
}
  0x15   :  { %s19214_s1 = smov 64   ;;  %s15983_s20 = smov 4  }
  0x16   :  { %57 = dma.hbm_to_vmem [thread:$0]  %s19200_s5, 5120, %s52_s25, [#allocation6], %s19214_s1, %s19214_s1, %s15983_s20  }
  0x17   :  { %s15984_s23 = smov [#allocation2]   ;;  %s15885_s28 = scalar_lea.hbm %s19198_s3, 15360 }
  0x18   :  { %s37_s24 = sshll.u32 %s15984_s23, 4  ;;  %p15886_p8 = scmp.ne.s32.totalorder %s19198_s3, %s15885_s28  ;;  %s38_s24 = int_to_ptr.vmem [resolvable:$true] %s37_s24 }
  0x19   :  { %p15889_p9 = scmp.lt.u32.totalorder %s15885_s28, %s19198_s3 }
  0x1b   :  { %p15891_p10 = pnand %p15889_p9, %p15886_p8 }
  0x1d   :  { %15894 = shalt.err (!%p15891_p10)
}
  0x1e   :  { %s15895_s19 = scalar_lea.vmem %s38_s24, 15360  ;;  %p15900_p12 = scmp.lt.s32.totalorder %s38_s24, %s38_s24 }
  0x1f   :  { %p15896_p11 = scmp.ne.s32.totalorder %s38_s24, %s15895_s19  ;;  %p15901_p13 = scmp.lt.s32.totalorder %s15895_s19, %s15895_s19 }
  0x21   :  { %p15902_p0 = por %p15901_p13, %p15900_p12 }
  0x23   :  { %p15903_p1 = pnand %p15902_p0, %p15896_p11 }
  0x25   :  { %15906 = shalt.err (!%p15903_p1)
}
  0x26   :  { %s15985_s5 = smov 192   ;;  %s15986_s25 = smov 12  }
  0x27   :  { %43 = dma.hbm_to_vmem [thread:$0]  %s19198_s3, 15360, %s38_s24, [#allocation3], %s15985_s5, %s15985_s5, %s15986_s25  }
  0x28   :  { %s15987_s23 = smov [#allocation7]   ;;  %s15907_s29 = scalar_lea.hbm %s19204_s9, 10240 }
  0x29   :  { %s69_s26 = sshll.u32 %s15987_s23, 4  ;;  %p15908_p2 = scmp.ne.s32.totalorder %s19204_s9, %s15907_s29  ;;  %s70_s26 = int_to_ptr.vmem [resolvable:$true] %s69_s26 }
  0x2a   :  { %p15911_p3 = scmp.lt.u32.totalorder %s15907_s29, %s19204_s9 }
  0x2c   :  { %p15913_p4 = pnand %p15911_p3, %p15908_p2 }
  0x2e   :  { %15916 = shalt.err (!%p15913_p4)
}
  0x2f   :  { %s15917_s1 = scalar_lea.vmem %s70_s26, 10240  ;;  %p15922_p6 = scmp.lt.s32.totalorder %s70_s26, %s70_s26 }
  0x30   :  { %p15918_p5 = scmp.ne.s32.totalorder %s70_s26, %s15917_s1  ;;  %p15923_p7 = scmp.lt.s32.totalorder %s15917_s1, %s15917_s1 }
  0x32   :  { %p15924_p8 = por %p15923_p7, %p15922_p6 }
  0x34   :  { %p15925_p9 = pnand %p15924_p8, %p15918_p5 }
  0x36   :  { %15928 = shalt.err (!%p15925_p9)
}
  0x37   :  { %s15988_s3 = smov 128   ;;  %s15989_s24 = smov 8  }
  0x38   :  { %75 = dma.hbm_to_vmem [thread:$0]  %s19204_s9, 10240, %s70_s26, [#allocation6], %s15988_s3, %s15988_s3, %s15989_s24  }
  0x39   :  { %s15990_s21 = smov [#allocation8]   ;;  %s15929_s28 = scalar_lea.hbm %s19206_s11, 10240 }
  0x3a   :  { %s83_s22 = sshll.u32 %s15990_s21, 4  ;;  %p15930_p10 = scmp.ne.s32.totalorder %s19206_s11, %s15929_s28  ;;  %s84_s22 = int_to_ptr.vmem [resolvable:$true] %s83_s22 }
  0x3b   :  { %p15933_p11 = scmp.lt.u32.totalorder %s15929_s28, %s19206_s11 }
  0x3d   :  { %p15935_p12 = pnand %p15933_p11, %p15930_p10 }
  0x3f   :  { %15938 = shalt.err (!%p15935_p12)
}
  0x40   :  { %s15939_s18 = scalar_lea.vmem %s84_s22, 10240  ;;  %p15944_p0 = scmp.lt.s32.totalorder %s84_s22, %s84_s22 }
  0x41   :  { %p15940_p13 = scmp.ne.s32.totalorder %s84_s22, %s15939_s18  ;;  %p15945_p1 = scmp.lt.s32.totalorder %s15939_s18, %s15939_s18 }
  0x43   :  { %p15946_p2 = por %p15945_p1, %p15944_p0 }
  0x45   :  { %p15947_p3 = pnand %p15946_p2, %p15940_p13 }
  0x47   :  { %15950 = shalt.err (!%p15947_p3)
}
  0x48   :  { %s19218_s9 = smov 64  }
  0x49   :  { %89 = dma.hbm_to_vmem [thread:$0]  %s19206_s11, 10240, %s84_s22, [#allocation9], %s19218_s9, %s19218_s9, %s15983_s20  }
  0x4a   :  { %15973 = dma.done.wait [#allocation3], 15360  }
  0x4b   :  { %15974 = vsyncadd [#allocation3], 4294951936 }
  0x4c   :  { %15975 = dma.done.wait [#allocation6], 15360  }
  0x4d   :  { %15976 = vsyncadd [#allocation6], 4294951936 }
  0x4e   :  { %15977 = dma.done.wait [#allocation9], 10240  }
  0x4f   :  { %15978 = vsyncadd [#allocation9], 4294957056  ;;  %v15991_v0 = vmov 0   ;;  %v15992_v1 = vmov 0.0   ;;  %vm15993_vm0 = vmmov 0   ;;  %v151_v7 = vlaneseq  ;;  %s19219_s3 = sld [smem:[#allocation15_spill]] }
  0x50   :  { %392 = vmatprep.mubr.bf16.mxu0 %v15991_v0  ;;  %14155 = vmatprep.subr.bf16.mxu1 %v15992_v1  ;;  %v15095_v2 = vld [vmem:[#allocation2 + $0x4] ss:$12 sps:$4 sm:$0xff]   ;;  %v15097_v3 = vld [vmem:[#allocation2] ss:$12 sps:$4 sm:$0xff]   ;;  %v15098_v4 = vld [vmem:[#allocation2 + $0x1c] ss:$12 sps:$4 sm:$0xff]  }
  0x51   :  { %14171 = vmatprep.mubr.msk.bf16.mxu1 %vm15993_vm0, %v15992_v1  ;;  %360 = vmatprep.subr.bf16.mxu0 %v15095_v2  ;;  %v15100_v5 = vld [vmem:[#allocation2 + $0x18] ss:$12 sps:$4 sm:$0xff]   ;;  %v15101_v6 = vld [vmem:[#allocation2 + $0x34] ss:$12 sps:$4 sm:$0xff]   ;;  %v15103_v8 = vld [vmem:[#allocation2 + $0x30] ss:$12 sps:$4 sm:$0xff]  }
  0x52   :  { %361 = vmatpush1.bf16.msra.mxu0 %v15097_v3  ;;  %v15104_v9 = vld [vmem:[#allocation2 + $0x4c] ss:$12 sps:$4 sm:$0xff]   ;;  %v15994_v10 = vmov 1983009808   ;;  %v16155_v12 = vshrl.u32 %v151_v7, 7  ;;  %s19220_s20 = sld [smem:[#allocation16_spill]] }
  0x53   :  { %362 = vmatprep.subr.bf16.mxu0 %v15098_v4  ;;  %v149_v11 = vunpack.c.l.s4 %v15994_v10  ;;  %v15106_v13 = vld [vmem:[#allocation2 + $0x48] ss:$12 sps:$4 sm:$0xff]   ;;  %v15107_v14 = vld [vmem:[#allocation2 + $0x64] ss:$12 sps:$4 sm:$0xff]   ;;  %v15109_v22 = vld [vmem:[#allocation2 + $0x60] ss:$12 sps:$4 sm:$0xff]  }
  0x54   :  { %v15119_v30 = vld [vmem:[#allocation2 + $0x8] ss:$12 sps:$4 sm:$0xff]   ;;  %v15120_v36 = vld [vmem:[#allocation2 + $0x20] ss:$12 sps:$4 sm:$0xff]   ;;  %v15112_v38 = vld [vmem:[#allocation2 + $0x78] ss:$12 sps:$4 sm:$0xff]  }
  0x55   :  { %v113_v15 = vld [vmem:[%s19219_s3] sm:$0x3]  ;;  %v114_v16 = vld [vmem:[%s19219_s3 + $0x2] sm:$0x3]  ;;  %v115_v17 = vld [vmem:[%s19219_s3 + $0x4] sm:$0x3]  ;;  %v150_v25 = vunpack.c.0.s8 %v149_v11  ;;  %14156 = vmatpush3.bf16.msra.mxu1 %v15119_v30 }
  0x56   :  { %363 = vmatpush1.bf16.msra.mxu0 %v15100_v5  ;;  %v116_v18 = vld [vmem:[%s19219_s3 + $0x6] sm:$0x3]  ;;  %v117_v19 = vld [vmem:[%s19219_s3 + $0x8] sm:$0x3]  ;;  %v118_v20 = vld [vmem:[%s19219_s3 + $0xa] sm:$0x3]  ;;  %14157 = vmatprep.subr.bf16.mxu1 %v15992_v1 }
  0x57   :  { %364 = vmatprep.subr.bf16.mxu0 %v15101_v6  ;;  %v119_v21 = vld [vmem:[%s19219_s3 + $0xc] sm:$0x3]  ;;  %v120_v23 = vld [vmem:[%s19219_s3 + $0xe] sm:$0x3]  ;;  %v15110_v31 = vld [vmem:[#allocation2 + $0x7c] ss:$12 sps:$4 sm:$0xff]   ;;  %v16201_v37 = vsub.s32 %v150_v25, %v16155_v12 }
  0x58   :  { %v13314_v24 = vld [vmem:[%s19220_s20] ss:$0 sm:$0xff]  ;;  %v15121_v44 = vld [vmem:[#allocation2 + $0x38] ss:$12 sps:$4 sm:$0xff]   ;;  %v15115_v45 = vld [vmem:[#allocation2 + $0x90] ss:$12 sps:$4 sm:$0xff]  }
  0x59   :  { %v16184_v26 = vadd.f32 %v13314_v24, %v113_v15  ;;  %v16186_v27 = vadd.f32 %v13314_v24, %v114_v16  ;;  %v16188_v28 = vadd.f32 %v13314_v24, %v115_v17  ;;  %v16190_v29 = vadd.f32 %v13314_v24, %v116_v18  ;;  %v15113_v43 = vld [vmem:[#allocation2 + $0x94] ss:$12 sps:$4 sm:$0xff]   ;;  %14158 = vmatpush3.bf16.msra.mxu1 %v15120_v36  ;;  %v15116_v46 = vld [vmem:[#allocation2 + $0xac] ss:$12 sps:$4 sm:$0xff]   ;;  %v15122_v51 = vld [vmem:[#allocation2 + $0x50] ss:$12 sps:$4 sm:$0xff]  }
  0x5a   :  { %365 = vmatpush1.bf16.msra.mxu0 %v15103_v8  ;;  %v16192_v32 = vadd.f32 %v13314_v24, %v117_v19  ;;  %v16194_v33 = vadd.f32 %v13314_v24, %v118_v20  ;;  %v16196_v34 = vadd.f32 %v13314_v24, %v119_v21  ;;  %v16198_v35 = vadd.f32 %v13314_v24, %v120_v23  ;;  %v15118_v52 = vld [vmem:[#allocation2 + $0xa8] ss:$12 sps:$4 sm:$0xff]   ;;  %v15124_v57 = vld [vmem:[#allocation2 + $0x80] ss:$12 sps:$4 sm:$0xff]   ;;  %v15125_v58 = vld [vmem:[#allocation2 + $0x98] ss:$12 sps:$4 sm:$0xff]  }
  0x5b   :  { %366 = vmatprep.subr.bf16.mxu0 %v15104_v9  ;;  %v146_v39 = vcombine.low %v16184_v26, %v16186_v27  ;;  %v147_v40 = vcombine.low %v16188_v28, %v16190_v29  ;;  %14159 = vmatprep.subr.bf16.mxu1 %v15992_v1  ;;  %v15123_v55 = vld [vmem:[#allocation2 + $0x68] ss:$12 sps:$4 sm:$0xff]   ;;  %v15126_v59 = vld [vmem:[#allocation2 + $0xb0] ss:$12 sps:$4 sm:$0xff]   ;;  %v16229_v60 = vsub.s32 0, %v16155_v12  ;;  %v16235_v62 = vsub.s32 1, %v16155_v12 }
  0x5c   :  { %v163_v41 = vcombine.low %v16192_v32, %v16194_v33  ;;  %v164_v42 = vcombine.low %v16196_v34, %v16198_v35  ;;  %v215_v61 = vld [vmem:[%s19199_s4] sm:$0x7]  ;;  %vm499_vm1 = vcmask 130048   ;;  %s15995_s5 = smov 112   ;;  %s15996_s25 = smov 80   ;;  %v16256_v15 = vsub.s32 2, %v16155_v12 }
  0x5d   :  { %v154_v47 = vrot.slane %v146_v39, %v16201_v37  ;;  %v161_v48 = vrot.slane %v147_v40, %v16201_v37  ;;  %14160 = vmatpush3.bf16.msra.mxu1 %v15121_v44  ;;  %v220_v63 = vrot.slane %v215_v61, %v16229_v60  ;;  %v224_v3 = vrot.slane %v215_v61, %v16235_v62  ;;  %s15997_s21 = smov 96   ;;  %s15998_s22 = smov 48  }
  0x5e   :  { %367 = vmatpush1.bf16.msra.mxu0 %v15106_v13  ;;  %v171_v49 = vrot.slane %v163_v41, %v16201_v37  ;;  %v178_v50 = vrot.slane %v164_v42, %v16201_v37  ;;  %14161 = vmatprep.subr.bf16.mxu1 %v15992_v1  ;;  %s15999_s23 = smov 32   ;;  %s16000_s27 = smov 16   ;;  %v228_v18 = vrot.slane %v215_v61, %v16256_v15  ;;  %vm1470_vm2 = vcmask 261120  }
  0x5f   :  { %368 = vmatprep.subr.bf16.mxu0 %v15107_v14  ;;  %v162_v53 = vcombine.low %v154_v47, %v161_v48  ;;  %vm1473_vm3 = vcmask 392192   ;;  %vm1476_vm4 = vcmask 523264   ;;  %vm1479_vm5 = vcmask 654336  }
  0x60   :  { %v179_v54 = vcombine.low %v171_v49, %v178_v50  ;;  %vm1482_vm6 = vcmask 785408   ;;  %vm1485_vm7 = vcmask 916480   ;;  %vm13184_vm8 = vcmask 1041408  }
  0x61   :  { %14162 = vmatpush3.bf16.msra.mxu1 %v15122_v51  ;;  %vm13295_vm9 = vcmask 41984  }
  0x62   :  { %369 = vmatpush1.bf16.msra.mxu0 %v15109_v22  ;;  %14163 = vmatprep.subr.bf16.mxu1 %v15992_v1  ;;  %v182_v56 = vpack.c.bf16 %v179_v54, %v162_v53  ;;  %v16306_v54 = vld [vmem:[%s19197_s2] sm:$0xff] }
  0x63   :  { %370 = vmatprep.subr.bf16.mxu0 %v15110_v31 }
  0x65   :  { %14164 = vmatpush3.bf16.msra.mxu1 %v15123_v55 }
  0x66   :  { %371 = vmatpush1.bf16.msra.mxu0 %v15112_v38  ;;  %14165 = vmatprep.subr.bf16.mxu1 %v15992_v1 }
  0x67   :  { %372 = vmatprep.subr.bf16.mxu0 %v15113_v43 }
  0x69   :  { %14166 = vmatpush3.bf16.msra.mxu1 %v15124_v57 }
  0x6a   :  { %373 = vmatpush1.bf16.msra.mxu0 %v15115_v45  ;;  %14167 = vmatprep.subr.bf16.mxu1 %v15992_v1 }
  0x6b   :  { %374 = vmatprep.subr.bf16.mxu0 %v15116_v46 }
  0x6d   :  { %14168 = vmatpush3.bf16.msra.mxu1 %v15125_v58 }
  0x6e   :  { %375 = vmatpush1.bf16.msra.mxu0 %v15118_v52  ;;  %14169 = vmatprep.subr.bf16.mxu1 %v15992_v1 }
  0x6f   :  { %14175 = vmatprep.subr.bf16.mxu0 %v15992_v1 }
  0x71   :  { %393 = vmatmul.mubr.bf16.vlgmr.msra.gmra.mrb[0].mxu0 %v182_v56  ;;  %14170 = vmatpush3.bf16.msra.mxu1 %v15126_v59 }
  0x72   :  { %14177 = vmatprep.mubr.msk.bf16.mxu0 %vm15993_vm0, %v15992_v1  ;;  %14181 = vmatprep.subr.bf16.mxu1 %v15992_v1 }
  0x74   :  { %14172 = vmatmul.mubr.bf16.vlgmr.msra.gmra.mrb[0].mxu1 %v182_v56  ;;  %v16311_v56 = vld [vmem:[%s19197_s2 + $0x8] sm:$0xff] }
  0x75   :  { %14183 = vmatprep.mubr.msk.bf16.mxu1 %vm15993_vm0, %v15992_v1 }
 0x144   :  { %v394_v2 = vpop.f32.mrb[0].mxu0 }
 0x145   :  { %v396_v4 = vpop.f32.mrb[1].mxu0  ;;  %v395_v6 = vadd.f32 %v394_v2, %v220_v63 }
 0x146   :  { %v398_v5 = vpop.f32.mrb[2].mxu0  ;;  %v397_v9 = vadd.f32 %v396_v4, %v224_v3 }
 0x147   :  { %v399_v7 = vadd.f32 %v398_v5, %v220_v63  ;;  %v400_v8 = vpop.f32.mrb[3].mxu0  ;;  %v437_v16 = vpop.f32.mrb[0].mxu1 }
 0x148   :  { %v401_v10 = vadd.f32 %v400_v8, %v224_v3  ;;  %v14173_v17 = vpop.f32.mrb[1].mxu1  ;;  %v438_v21 = vadd.f32 %v437_v16, %v228_v18 }
 0x149   :  { %v444_v11 = vpack.c.bf16 %v399_v7, %v395_v6  ;;  %v440_v19 = vpop.f32.mrb[2].mxu1 }
 0x14a   :  { %v445_v13 = vpack.c.bf16 %v401_v10, %v397_v9  ;;  %v14174_v20 = vpop.f32.mrb[3].mxu1  ;;  %v441_v22 = vadd.f32 %v440_v19, %v228_v18 }
 0x14b   :  { %448 = vrot.lane.b32.xlu1 %v444_v11, %s15995_s5 }
 0x14c   :  { %463 = vrot.lane.b32.xlu0 %v445_v13, %s15995_s5  ;;  %v504_v14 = vsel %vm499_vm1, %v445_v13, 0  ;;  %v16262_v23 = vpack.c.bf16 %v441_v22, %v438_v21 }
 0x14d   :  { %14176 = vmatpush3.bf16.xpose.msra.mxu0 %v504_v14 }
 0x14e   :  { %14187 = vmatprep.subr.bf16.mxu0 %v15992_v1 }
 0x14f   :  { %467 = vrot.lane.b32.xlu1 %v445_v13, %s15996_s25 }
 0x150   :  { %465 = vrot.lane.b32.xlu0 %v445_v13, %s15997_s21 }
 0x153   :  { %469 = vrot.lane.b32.xlu1 %v445_v13, %s19218_s9 }
 0x154   :  { %450 = vrot.lane.b32.xlu0 %v444_v11, %s15997_s21  ;;  %14178 = vmatmul.mubr.msk.bf16.vlgmr.msra.gmra.mrb[4].mxu0 %vm499_vm1, %v444_v11 }
 0x155   :  { %14189 = vmatprep.mubr.msk.bf16.mxu0 %vm15993_vm0, %v15992_v1 }
 0x157   :  { %471 = vrot.lane.b32.xlu1 %v445_v13, %s15998_s22 }
 0x158   :  { %452 = vrot.lane.b32.xlu0 %v444_v11, %s15996_s25 }
 0x15b   :  { %473 = vrot.lane.b32.xlu1 %v445_v13, %s15999_s23 }
 0x15c   :  { %454 = vrot.lane.b32.xlu0 %v444_v11, %s19218_s9 }
 0x15f   :  { %475 = vrot.lane.b32.xlu1 %v445_v13, %s16000_s27 }
 0x160   :  { %456 = vrot.lane.b32.xlu0 %v444_v11, %s15998_s22 }
 0x163   :  { %460 = vrot.lane.b32.xlu1 %v444_v11, %s16000_s27 }
 0x164   :  { %458 = vrot.lane.b32.xlu0 %v444_v11, %s15999_s23 }
 0x167   :  { %478 = vrot.lane.b32.xlu1 %v16262_v23, %s15995_s5 }
 0x1bd   :  { %v449_v24 = vpop.permute.xlu1 %448 }
 0x1be   :  { %v464_v25 = vpop.permute.xlu0 %463 }
 0x1bf   :  { %v551_v30 = vsel %vm499_vm1, %v464_v25, 0 }
 0x1c0   :  { %14182 = vmatpush3.bf16.xpose.msra.mxu1 %v551_v30 }
 0x1c1   :  { %v468_v31 = vpop.permute.xlu1 %467  ;;  %14193 = vmatprep.subr.bf16.mxu1 %v15992_v1 }
 0x1c2   :  { %v466_v36 = vpop.permute.xlu0 %465  ;;  %v645_v41 = vsel %vm499_vm1, %v468_v31, 0 }
 0x1c3   :  { %v598_v38 = vsel %vm499_vm1, %v466_v36, 0 }
 0x1c4   :  { %14188 = vmatpush3.bf16.xpose.msra.mxu0 %v598_v38 }
 0x1c5   :  { %v470_v39 = vpop.permute.xlu1 %469  ;;  %14199 = vmatprep.subr.bf16.mxu0 %v15992_v1 }
 0x1c6   :  { %v451_v40 = vpop.permute.xlu0 %450  ;;  %v692_v44 = vsel %vm499_vm1, %v470_v39, 0 }
 0x1c7   :  { %14184 = vmatmul.mubr.msk.bf16.vlgmr.msra.gmra.mrb[4].mxu1 %vm499_vm1, %v449_v24 }
 0x1c8   :  { %14194 = vmatpush3.bf16.xpose.msra.mxu1 %v645_v41  ;;  %14195 = vmatprep.mubr.msk.bf16.mxu1 %vm15993_vm0, %v15992_v1 }
 0x1c9   :  { %v472_v42 = vpop.permute.xlu1 %471  ;;  %14205 = vmatprep.subr.bf16.mxu1 %v15992_v1 }
 0x1ca   :  { %v453_v43 = vpop.permute.xlu0 %452  ;;  %v739_v47 = vsel %vm499_vm1, %v472_v42, 0 }
 0x1cb   :  { %14190 = vmatmul.mubr.msk.bf16.vlgmr.msra.gmra.mrb[8].mxu0 %vm499_vm1, %v451_v40 }
 0x1cc   :  { %14200 = vmatpush3.bf16.xpose.msra.mxu0 %v692_v44  ;;  %14201 = vmatprep.mubr.msk.bf16.mxu0 %vm15993_vm0, %v15992_v1 }
 0x1cd   :  { %14211 = vmatprep.subr.bf16.mxu0 %v15992_v1  ;;  %v474_v45 = vpop.permute.xlu1 %473 }
 0x1ce   :  { %v455_v46 = vpop.permute.xlu0 %454  ;;  %v786_v48 = vsel %vm499_vm1, %v474_v45, 0 }
 0x1cf   :  { %14196 = vmatmul.mubr.msk.bf16.vlgmr.msra.gmra.mrb[8].mxu1 %vm499_vm1, %v453_v43 }
 0x1d0   :  { %14206 = vmatpush3.bf16.xpose.msra.mxu1 %v739_v47  ;;  %14207 = vmatprep.mubr.msk.bf16.mxu1 %vm15993_vm0, %v15992_v1 }
 0x1d1   :  { %14217 = vmatprep.subr.bf16.mxu1 %v15992_v1  ;;  %v476_v49 = vpop.permute.xlu1 %475 }
 0x1d2   :  { %v457_v50 = vpop.permute.xlu0 %456  ;;  %v833_v51 = vsel %vm499_vm1, %v476_v49, 0 }
 0x1d3   :  { %14202 = vmatmul.mubr.msk.bf16.vlgmr.msra.gmra.mrb[12].mxu0 %vm499_vm1, %v455_v46 }
 0x1d4   :  { %14212 = vmatpush3.bf16.xpose.msra.mxu0 %v786_v48  ;;  %14213 = vmatprep.mubr.msk.bf16.mxu0 %vm15993_vm0, %v15992_v1 }
 0x1d5   :  { %14223 = vmatprep.subr.bf16.mxu0 %v15992_v1  ;;  %v461_v53 = vpop.permute.xlu1 %460 }
 0x1d6   :  { %v459_v52 = vpop.permute.xlu0 %458 }
 0x1d7   :  { %14208 = vmatmul.mubr.msk.bf16.vlgmr.msra.gmra.mrb[12].mxu1 %vm499_vm1, %v457_v50 }
 0x1d8   :  { %14218 = vmatpush3.bf16.xpose.msra.mxu1 %v833_v51  ;;  %14219 = vmatprep.mubr.msk.bf16.mxu1 %vm15993_vm0, %v15992_v1 }
 0x1d9   :  { %14229 = vmatprep.subr.bf16.mxu1 %v15992_v1  ;;  %v479_v4 = vpop.permute.xlu1 %478 }
 0x1db   :  { %14214 = vmatmul.mubr.msk.bf16.vlgmr.msra.gmra.mrb[16].mxu0 %vm499_vm1, %v459_v52 }
 0x1dc   :  { %14224 = vmatpush3.bf16.msra.mxu0 %v16262_v23  ;;  %14225 = vmatprep.mubr.msk.bf16.mxu0 %vm15993_vm0, %v15992_v1 }
 0x1dd   :  { %14235 = vmatprep.subr.bf16.mxu0 %v15992_v1 }
 0x1df   :  { %14220 = vmatmul.mubr.msk.bf16.vlgmr.msra.gmra.mrb[16].mxu1 %vm499_vm1, %v461_v53 }
 0x1e0   :  { %14231 = vmatprep.mubr.msk.bf16.mxu1 %vm15993_vm0, %v15992_v1  ;;  %14230 = vmatpush3.bf16.msra.mxu1 %v479_v4 }
 0x1e1   :  { %14241 = vmatprep.subr.bf16.mxu1 %v15992_v1 }
 0x227   :  { %v540_v55 = vpop.f32.mrb[4].mxu0 }
 0x228   :  { %v16314_v57 = vadd.f32 %v540_v55, %v16306_v54  ;;  %v14179_v58 = vpop.f32.mrb[5].mxu0 }
 0x229   :  { %v543_v59 = vpop.f32.mrb[6].mxu0 }
 0x22a   :  { %v16317_v61 = vadd.f32 %v543_v59, %v16311_v56  ;;  %v14180_v63 = vpop.f32.mrb[7].mxu0  ;;  %v876_v2 = vsel %vm499_vm1, %v16314_v57, -inf }
 0x22b   :  { %877 = vmax.xlane.f32.xlu0 %v876_v2 }
 0x22c   :  { %v879_v3 = vsel %vm499_vm1, %v16317_v61, -inf }
 0x22d   :  { %880 = vmax.xlane.f32.xlu1 %v879_v3 }
 0x29a   :  { %v587_v5 = vpop.f32.mrb[4].mxu1 }
 0x29b   :  { %v16325_v6 = vadd.f32 %v587_v5, %v16306_v54  ;;  %v14185_v7 = vpop.f32.mrb[5].mxu1 }
 0x29c   :  { %v590_v8 = vpop.f32.mrb[6].mxu1 }
 0x29d   :  { %v16328_v9 = vadd.f32 %v590_v8, %v16311_v56  ;;  %v14186_v10 = vpop.f32.mrb[7].mxu1  ;;  %v882_v11 = vsel %vm499_vm1, %v16325_v6, -inf }
 0x29e   :  { %883 = vmax.xlane.f32.xlu0 %v882_v11  ;;  %v634_v13 = vpop.f32.mrb[8].mxu0 }
 0x29f   :  { %v16333_v14 = vadd.f32 %v634_v13, %v16306_v54  ;;  %v14191_v16 = vpop.f32.mrb[9].mxu0  ;;  %v885_v20 = vsel %vm499_vm1, %v16328_v9, -inf }
 0x2a0   :  { %v637_v17 = vpop.f32.mrb[10].mxu0 }
 0x2a1   :  { %v16336_v18 = vadd.f32 %v637_v17, %v16311_v56  ;;  %v14192_v19 = vpop.f32.mrb[11].mxu0  ;;  %v888_v21 = vsel %vm499_vm1, %v16333_v14, -inf }
 0x2a2   :  { %v681_v22 = vpop.f32.mrb[8].mxu1  ;;  %886 = vmax.xlane.f32.xlu0 %v885_v20  ;;  %889 = vmax.xlane.f32.xlu1 %v888_v21 }
 0x2a3   :  { %v16343_v24 = vadd.f32 %v681_v22, %v16306_v54  ;;  %v14197_v25 = vpop.f32.mrb[9].mxu1  ;;  %v891_v39 = vsel %vm499_vm1, %v16336_v18, -inf }
 0x2a4   :  { %v684_v30 = vpop.f32.mrb[10].mxu1 }
 0x2a5   :  { %v16346_v31 = vadd.f32 %v684_v30, %v16311_v56  ;;  %v14198_v36 = vpop.f32.mrb[11].mxu1  ;;  %v894_v38 = vsel %vm499_vm1, %v16343_v24, -inf }
 0x2a6   :  { %895 = vmax.xlane.f32.xlu1 %v894_v38  ;;  %892 = vmax.xlane.f32.xlu0 %v891_v39  ;;  %v728_v40 = vpop.f32.mrb[12].mxu0 }
 0x2a7   :  { %v16353_v41 = vadd.f32 %v728_v40, %v16306_v54  ;;  %v14203_v42 = vpop.f32.mrb[13].mxu0  ;;  %v897_v46 = vsel %vm499_vm1, %v16346_v31, -inf }
 0x2a8   :  { %v731_v43 = vpop.f32.mrb[14].mxu0 }
 0x2a9   :  { %v16356_v44 = vadd.f32 %v731_v43, %v16311_v56  ;;  %v14204_v45 = vpop.f32.mrb[15].mxu0  ;;  %v900_v47 = vsel %vm499_vm1, %v16353_v41, -inf }
 0x2aa   :  { %v775_v48 = vpop.f32.mrb[12].mxu1  ;;  %898 = vmax.xlane.f32.xlu0 %v897_v46  ;;  %901 = vmax.xlane.f32.xlu1 %v900_v47 }
 0x2ab   :  { %v16363_v49 = vadd.f32 %v775_v48, %v16306_v54  ;;  %v14209_v50 = vpop.f32.mrb[13].mxu1  ;;  %v903_v58 = vsel %vm499_vm1, %v16356_v44, -inf }
 0x2ac   :  { %v778_v51 = vpop.f32.mrb[14].mxu1 }
 0x2ad   :  { %v16366_v52 = vadd.f32 %v778_v51, %v16311_v56  ;;  %v14210_v53 = vpop.f32.mrb[15].mxu1  ;;  %v906_v55 = vsel %vm499_vm1, %v16363_v49, -inf }
 0x2ae   :  { %907 = vmax.xlane.f32.xlu1 %v906_v55  ;;  %904 = vmax.xlane.f32.xlu0 %v903_v58  ;;  %v822_v59 = vpop.f32.mrb[16].mxu0 }
 0x2af   :  { %v16373_v63 = vadd.f32 %v822_v59, %v16306_v54  ;;  %v14215_v2 = vpop.f32.mrb[17].mxu0  ;;  %v909_v7 = vsel %vm499_vm1, %v16366_v52, -inf }
 0x2b0   :  { %v825_v3 = vpop.f32.mrb[18].mxu0 }
 0x2b1   :  { %v16376_v4 = vadd.f32 %v825_v3, %v16311_v56  ;;  %v14216_v5 = vpop.f32.mrb[19].mxu0  ;;  %v912_v8 = vsel %vm499_vm1, %v16373_v63, -inf }
 0x2b2   :  { %v869_v10 = vpop.f32.mrb[16].mxu1  ;;  %910 = vmax.xlane.f32.xlu0 %v909_v7  ;;  %913 = vmax.xlane.f32.xlu1 %v912_v8 }
 0x2b3   :  { %v16383_v11 = vadd.f32 %v869_v10, %v16306_v54  ;;  %v14221_v13 = vpop.f32.mrb[17].mxu1  ;;  %v915_v21 = vsel %vm499_vm1, %v16376_v4, -inf }
 0x2b4   :  { %v872_v16 = vpop.f32.mrb[18].mxu1 }
 0x2b5   :  { %v16386_v17 = vadd.f32 %v872_v16, %v16311_v56  ;;  %v14222_v19 = vpop.f32.mrb[19].mxu1  ;;  %v918_v20 = vsel %vm499_vm1, %v16383_v11, -inf }
 0x2b6   :  { %919 = vmax.xlane.f32.xlu1 %v918_v20  ;;  %916 = vmax.xlane.f32.xlu0 %v915_v21 }
 0x2b7   :  { %v921_v22 = vsel %vm499_vm1, %v16386_v17, -inf }
 0x2b8   :  { %v878_v54 = vpop.xlane.xlu0 %877 }
 0x2b9   :  { %v924_v56 = vsub.f32 %v16314_v57, %v878_v54 }
 0x2ba   :  { %922 = vmax.xlane.f32.xlu0 %v921_v22  ;;  %v881_v25 = vpop.xlane.xlu1 %880 }
 0x2bb   :  { %v940_v30 = vmul.f32 1.442695, %v924_v56  ;;  %v925_v36 = vsub.f32 %v16317_v61, %v881_v25 }
 0x2bd   :  { %15495 = vpow2.f32 %v940_v30  ;;  %v942_v38 = vmul.f32 1.442695, %v925_v36 }
 0x2bf   :  { %15497 = vpow2.f32 %v942_v38 }
 0x2c7   :  { %484 = vrot.lane.b32.xlu1 %v16262_v23, %s15996_s25  ;;  %v16404_v39 = vpop.eup %15495 }
 0x2c8   :  { %v972_v40 = vsel %vm499_vm1, %v16404_v39, 0.0 }
 0x2c9   :  { %v16408_v42 = vpop.eup %15497 }
 0x2ca   :  { %v975_v43 = vsel %vm499_vm1, %v16408_v42, 0.0 }
 0x2cb   :  { %487 = vrot.lane.b32.xlu1 %v16262_v23, %s19218_s9 }
 0x2d0   :  { %481 = vrot.lane.b32.xlu0 %v16262_v23, %s15997_s21 }
 0x2d4   :  { %490 = vrot.lane.b32.xlu0 %v16262_v23, %s15998_s22 }
 0x2ef   :  { %973 = vadd.xlane.f32.xlu1 %v972_v40 }
 0x2f3   :  { %976 = vadd.xlane.f32.xlu0 %v975_v43 }
 0x32b   :  { %v884_v57 = vpop.xlane.xlu0 %883 }
 0x32c   :  { %v926_v45 = vsub.f32 %v16325_v6, %v884_v57 }
 0x32e   :  { %v944_v46 = vmul.f32 1.442695, %v926_v45 }
 0x32f   :  { %v887_v61 = vpop.xlane.xlu0 %886  ;;  %v890_v47 = vpop.xlane.xlu1 %889 }
 0x330   :  { %15499 = vpow2.f32 %v944_v46  ;;  %v927_v48 = vsub.f32 %v16328_v9, %v887_v61  ;;  %v928_v50 = vsub.f32 %v16333_v14, %v890_v47 }
 0x332   :  { %v946_v51 = vmul.f32 1.442695, %v927_v48  ;;  %v948_v53 = vmul.f32 1.442695, %v928_v50 }
 0x333   :  { %v896_v55 = vpop.xlane.xlu1 %895  ;;  %v893_v58 = vpop.xlane.xlu0 %892 }
 0x334   :  { %15501 = vpow2.f32 %v946_v51  ;;  %v930_v59 = vsub.f32 %v16343_v24, %v896_v55  ;;  %v929_v2 = vsub.f32 %v16336_v18, %v893_v58 }
 0x335   :  { %15503 = vpow2.f32 %v948_v53 }
 0x336   :  { %v952_v3 = vmul.f32 1.442695, %v930_v59  ;;  %v950_v6 = vmul.f32 1.442695, %v929_v2 }
 0x337   :  { %v899_v5 = vpop.xlane.xlu0 %898  ;;  %v902_v7 = vpop.xlane.xlu1 %901 }
 0x338   :  { %15505 = vpow2.f32 %v952_v3  ;;  %v931_v8 = vsub.f32 %v16346_v31, %v899_v5  ;;  %v932_v9 = vsub.f32 %v16353_v41, %v902_v7 }
 0x339   :  { %15507 = vpow2.f32 %v950_v6 }
 0x33a   :  { %v16419_v14 = vpop.eup %15499  ;;  %v954_v10 = vmul.f32 1.442695, %v931_v8  ;;  %v956_v13 = vmul.f32 1.442695, %v932_v9 }
 0x33b   :  { %v908_v16 = vpop.xlane.xlu1 %907  ;;  %v905_v19 = vpop.xlane.xlu0 %904  ;;  %v978_v18 = vsel %vm499_vm1, %v16419_v14, 0.0 }
 0x33c   :  { %15509 = vpow2.f32 %v954_v10  ;;  %v934_v24 = vsub.f32 %v16363_v49, %v908_v16  ;;  %v933_v20 = vsub.f32 %v16356_v44, %v905_v19  ;;  %979 = vadd.xlane.f32.xlu1 %v978_v18 }
 0x33d   :  { %15511 = vpow2.f32 %v956_v13 }
 0x33e   :  { %v16425_v31 = vpop.eup %15501  ;;  %v960_v41 = vmul.f32 1.442695, %v934_v24  ;;  %v958_v21 = vmul.f32 1.442695, %v933_v20 }
 0x33f   :  { %v16427_v22 = vpop.eup %15503  ;;  %v911_v54 = vpop.xlane.xlu0 %910  ;;  %v981_v25 = vsel %vm499_vm1, %v16425_v31, 0.0 }
 0x340   :  { %v914_v56 = vpop.xlane.xlu1 %913  ;;  %15513 = vpow2.f32 %v960_v41  ;;  %v935_v30 = vsub.f32 %v16366_v52, %v911_v54  ;;  %v984_v44 = vsel %vm499_vm1, %v16427_v22, 0.0  ;;  %982 = vadd.xlane.f32.xlu0 %v981_v25 }
 0x341   :  { %v936_v49 = vsub.f32 %v16373_v63, %v914_v56  ;;  %15515 = vpow2.f32 %v958_v21  ;;  %985 = vadd.xlane.f32.xlu1 %v984_v44 }
 0x342   :  { %v16435_v36 = vpop.eup %15505  ;;  %v962_v38 = vmul.f32 1.442695, %v935_v30 }
 0x343   :  { %v964_v40 = vmul.f32 1.442695, %v936_v49  ;;  %v16437_v43 = vpop.eup %15507  ;;  %v917_v45 = vpop.xlane.xlu0 %916  ;;  %v990_v46 = vsel %vm499_vm1, %v16435_v36, 0.0 }
 0x344   :  { %v920_v57 = vpop.xlane.xlu1 %919  ;;  %15517 = vpow2.f32 %v962_v38  ;;  %v937_v63 = vsub.f32 %v16376_v4, %v917_v45  ;;  %v987_v61 = vsel %vm499_vm1, %v16437_v43, 0.0 }
 0x345   :  { %v938_v52 = vsub.f32 %v16383_v11, %v920_v57  ;;  %15519 = vpow2.f32 %v964_v40  ;;  %991 = vadd.xlane.f32.xlu1 %v990_v46  ;;  %988 = vadd.xlane.f32.xlu0 %v987_v61 }
 0x346   :  { %v16445_v47 = vpop.eup %15509  ;;  %v966_v50 = vmul.f32 1.442695, %v937_v63 }
 0x347   :  { %v968_v48 = vmul.f32 1.442695, %v938_v52  ;;  %v16447_v51 = vpop.eup %15511  ;;  %v923_v53 = vpop.xlane.xlu0 %922  ;;  %v993_v55 = vsel %vm499_vm1, %v16445_v47, 0.0 }
 0x348   :  { %v939_v11 = vsub.f32 %v16386_v17, %v923_v53  ;;  %v996_v4 = vsel %vm499_vm1, %v16447_v51, 0.0  ;;  %v485_v24 = vpop.permute.xlu1 %484 }
 0x349   :  { %15521 = vpow2.f32 %v968_v48  ;;  %997 = vadd.xlane.f32.xlu1 %v996_v4  ;;  %994 = vadd.xlane.f32.xlu0 %v993_v55 }
 0x34a   :  { %15523 = vpow2.f32 %v966_v50  ;;  %v16454_v58 = vpop.eup %15513  ;;  %v970_v59 = vmul.f32 1.442695, %v939_v11 }
 0x34b   :  { %v16456_v2 = vpop.eup %15515  ;;  %v1002_v3 = vsel %vm499_vm1, %v16454_v58, 0.0  ;;  %v482_v20 = vpop.permute.xlu0 %481 }
 0x34c   :  { %15525 = vpow2.f32 %v970_v59  ;;  %v999_v6 = vsel %vm499_vm1, %v16456_v2, 0.0  ;;  %v488_v41 = vpop.permute.xlu1 %487 }
 0x34d   :  { %1003 = vadd.xlane.f32.xlu1 %v1002_v3  ;;  %1000 = vadd.xlane.f32.xlu0 %v999_v6 }
 0x34e   :  { %v16462_v17 = vpop.eup %15517 }
 0x34f   :  { %v16464_v5 = vpop.eup %15519  ;;  %v1005_v7 = vsel %vm499_vm1, %v16462_v17, 0.0  ;;  %v16486_v21 = vpop.permute.xlu0 %490 }
 0x350   :  { %v1008_v8 = vsel %vm499_vm1, %v16464_v5, 0.0 }
 0x351   :  { %1009 = vadd.xlane.f32.xlu1 %v1008_v8  ;;  %1006 = vadd.xlane.f32.xlu0 %v1005_v7 }
 0x353   :  { %v16470_v9 = vpop.eup %15521 }
 0x354   :  { %v16472_v10 = vpop.eup %15523  ;;  %v1014_v13 = vsel %vm499_vm1, %v16470_v9, 0.0 }
 0x355   :  { %v1011_v16 = vsel %vm499_vm1, %v16472_v10, 0.0  ;;  %1015 = vadd.xlane.f32.xlu1 %v1014_v13 }
 0x356   :  { %1012 = vadd.xlane.f32.xlu0 %v1011_v16  ;;  %v16478_v19 = vpop.eup %15525 }
 0x357   :  { %v1017_v18 = vsel %vm499_vm1, %v16478_v19, 0.0 }
 0x35a   :  { %1018 = vadd.xlane.f32.xlu0 %v1017_v18 }
 0x366   :  { %493 = vrot.lane.b32.xlu1 %v16262_v23, %s15999_s23 }
 0x370   :  { %496 = vrot.lane.b32.xlu0 %v16262_v23, %s16000_s27 }
 0x37c   :  { %v974_v54 = vpop.xlane.xlu1 %973 }
 0x37d   :  { %15527 = vrcp.f32 %v974_v54 }
 0x380   :  { %v977_v56 = vpop.xlane.xlu0 %976 }
 0x381   :  { %15529 = vrcp.f32 %v977_v56 }
 0x387   :  { %v15528_v25 = vpop.eup %15527 }
 0x388   :  { %v1036_v49 = vmul.f32 %v15528_v25, %v16404_v39 }
 0x38b   :  { %v15530_v30 = vpop.eup %15529 }
 0x38c   :  { %v1037_v44 = vmul.f32 %v15530_v30, %v16408_v42 }
 0x38e   :  { %v1052_v38 = vpack.c.bf16 %v1037_v44, %v1036_v49 }
 0x390   :  { %14226 = vmatmul.mubr.msk.bf16.vlgmr.msra.gmra.mrb[20].mxu0 %vm499_vm1, %v1052_v38 }
 0x391   :  { %14236 = vmatpush3.bf16.msra.mxu0 %v482_v20  ;;  %14237 = vmatprep.mubr.msk.bf16.mxu0 %vm15993_vm0, %v15992_v1 }
 0x392   :  { %14247 = vmatprep.subr.bf16.mxu0 %v15992_v1 }
 0x3c9   :  { %v980_v23 = vpop.xlane.xlu1 %979 }
 0x3ca   :  { %15531 = vrcp.f32 %v980_v23 }
 0x3cd   :  { %v983_v40 = vpop.xlane.xlu0 %982 }
 0x3ce   :  { %v986_v57 = vpop.xlane.xlu1 %985  ;;  %15533 = vrcp.f32 %v983_v40 }
 0x3cf   :  { %15535 = vrcp.f32 %v986_v57 }
 0x3d2   :  { %v992_v45 = vpop.xlane.xlu1 %991  ;;  %v989_v46 = vpop.xlane.xlu0 %988 }
 0x3d3   :  { %15537 = vrcp.f32 %v989_v46 }
 0x3d4   :  { %v15532_v39 = vpop.eup %15531  ;;  %15539 = vrcp.f32 %v992_v45 }
 0x3d5   :  { %v1038_v61 = vmul.f32 %v15532_v39, %v16419_v14 }
 0x3d6   :  { %v998_v42 = vpop.xlane.xlu1 %997  ;;  %v995_v52 = vpop.xlane.xlu0 %994 }
 0x3d7   :  { %15541 = vrcp.f32 %v995_v52  ;;  %v15128_v52 = vld [vmem:[#allocation5 + $0x8] sm:$0xff]  }
 0x3d8   :  { %v15534_v63 = vpop.eup %15533  ;;  %15543 = vrcp.f32 %v998_v42 }
 0x3d9   :  { %v1039_v48 = vmul.f32 %v15534_v63, %v16425_v31  ;;  %v15536_v11 = vpop.eup %15535  ;;  %v15129_v63 = vld [vmem:[#allocation5 + $0x10] sm:$0xff]  }
 0x3da   :  { %v1004_v50 = vpop.xlane.xlu1 %1003  ;;  %v1001_v53 = vpop.xlane.xlu0 %1000  ;;  %v1040_v14 = vmul.f32 %v15536_v11, %v16427_v22  ;;  %v15130_v11 = vld [vmem:[#allocation5 + $0x18] sm:$0xff]  }
 0x3db   :  { %v1053_v55 = vpack.c.bf16 %v1039_v48, %v1038_v61  ;;  %15545 = vrcp.f32 %v1001_v53 }
 0x3dc   :  { %15547 = vrcp.f32 %v1004_v50 }
 0x3dd   :  { %14232 = vmatmul.mubr.msk.bf16.vlgmr.msra.gmra.mrb[20].mxu1 %vm499_vm1, %v1053_v55  ;;  %v15538_v4 = vpop.eup %15537 }
 0x3de   :  { %v1010_v59 = vpop.xlane.xlu1 %1009  ;;  %14242 = vmatpush3.bf16.msra.mxu1 %v485_v24  ;;  %v1007_v3 = vpop.xlane.xlu0 %1006  ;;  %14243 = vmatprep.mubr.msk.bf16.mxu1 %vm15993_vm0, %v15992_v1  ;;  %v1041_v31 = vmul.f32 %v15538_v4, %v16437_v43 }
 0x3df   :  { %14253 = vmatprep.subr.bf16.mxu1 %v15992_v1  ;;  %v15540_v6 = vpop.eup %15539  ;;  %15549 = vrcp.f32 %v1007_v3  ;;  %v15131_v3 = vld [vmem:[#allocation5 + $0x20] sm:$0xff]  }
 0x3e0   :  { %v1054_v7 = vpack.c.bf16 %v1041_v31, %v1040_v14  ;;  %15551 = vrcp.f32 %v1010_v59  ;;  %v1042_v18 = vmul.f32 %v15540_v6, %v16435_v36 }
 0x3e1   :  { %v15542_v8 = vpop.eup %15541 }
 0x3e2   :  { %v1016_v13 = vpop.xlane.xlu1 %1015  ;;  %v1043_v24 = vmul.f32 %v15542_v8, %v16445_v47  ;;  %14238 = vmatmul.mubr.msk.bf16.vlgmr.msra.gmra.mrb[24].mxu0 %vm499_vm1, %v1054_v7  ;;  %v15544_v20 = vpop.eup %15543 }
 0x3e3   :  { %v1013_v16 = vpop.xlane.xlu0 %1012  ;;  %14248 = vmatpush3.bf16.msra.mxu0 %v488_v41  ;;  %14249 = vmatprep.mubr.msk.bf16.mxu0 %vm15993_vm0, %v15992_v1  ;;  %v1044_v56 = vmul.f32 %v15544_v20, %v16447_v51 }
 0x3e4   :  { %15553 = vrcp.f32 %v1013_v16  ;;  %v1055_v22 = vpack.c.bf16 %v1043_v24, %v1042_v18  ;;  %14259 = vmatprep.subr.bf16.mxu0 %v15992_v1 }
 0x3e5   :  { %15555 = vrcp.f32 %v1016_v13  ;;  %v15546_v43 = vpop.eup %15545  ;;  %v15132_v13 = vld [vmem:[#allocation5 + $0x28] sm:$0xff]  }
 0x3e6   :  { %v1045_v36 = vmul.f32 %v15546_v43, %v16456_v2  ;;  %14244 = vmatmul.mubr.msk.bf16.vlgmr.msra.gmra.mrb[24].mxu1 %vm499_vm1, %v1055_v22  ;;  %v15548_v47 = vpop.eup %15547  ;;  %v494_v51 = vpop.permute.xlu1 %493  ;;  %v15133_v43 = vld [vmem:[#allocation5 + $0x30] sm:$0xff]  }
 0x3e7   :  { %v1019_v54 = vpop.xlane.xlu0 %1018  ;;  %14254 = vmatpush3.bf16.msra.mxu1 %v16486_v21  ;;  %14255 = vmatprep.mubr.msk.bf16.mxu1 %vm15993_vm0, %v15992_v1  ;;  %v1046_v30 = vmul.f32 %v15548_v47, %v16454_v58 }
 0x3e8   :  { %15557 = vrcp.f32 %v1019_v54  ;;  %v1056_v41 = vpack.c.bf16 %v1045_v36, %v1044_v56  ;;  %14265 = vmatprep.subr.bf16.mxu1 %v15992_v1 }
 0x3e9   :  { %v15550_v25 = vpop.eup %15549 }
 0x3ea   :  { %v1047_v49 = vmul.f32 %v15550_v25, %v16462_v17  ;;  %14250 = vmatmul.mubr.msk.bf16.vlgmr.msra.gmra.mrb[28].mxu0 %vm499_vm1, %v1056_v41  ;;  %v15552_v2 = vpop.eup %15551  ;;  %v15134_v25 = vld [vmem:[#allocation5 + $0x38] sm:$0xff]  }
 0x3eb   :  { %14260 = vmatpush3.bf16.msra.mxu0 %v494_v51  ;;  %14261 = vmatprep.mubr.msk.bf16.mxu0 %vm15993_vm0, %v15992_v1  ;;  %v1048_v23 = vmul.f32 %v15552_v2, %v16464_v5  ;;  %v497_v58 = vpop.permute.xlu0 %496  ;;  %v15127_v5 = vld [vmem:[#allocation5] sm:$0xff]  }
 0x3ec   :  { %v1057_v21 = vpack.c.bf16 %v1047_v49, %v1046_v30  ;;  %14271 = vmatprep.subr.bf16.mxu0 %v15992_v1 }
 0x3ee   :  { %v15554_v44 = vpop.eup %15553  ;;  %14256 = vmatmul.mubr.msk.bf16.vlgmr.msra.gmra.mrb[28].mxu1 %vm499_vm1, %v1057_v21 }
 0x3ef   :  { %v15556_v38 = vpop.eup %15555  ;;  %v1049_v40 = vmul.f32 %v15554_v44, %v16472_v10  ;;  %14266 = vmatpush3.bf16.msra.mxu1 %v497_v58  ;;  %14267 = vmatprep.mubr.msk.bf16.mxu1 %vm15993_vm0, %v15992_v1 }
 0x3f0   :  { %v1050_v45 = vmul.f32 %v15556_v38, %v16470_v9 }
 0x3f1   :  { %v1058_v57 = vpack.c.bf16 %v1049_v40, %v1048_v23 }
 0x3f2   :  { %v15558_v17 = vpop.eup %15557 }
 0x3f3   :  { %v1051_v46 = vmul.f32 %v15558_v17, %v16478_v19  ;;  %14262 = vmatmul.mubr.msk.bf16.vlgmr.msra.gmra.mrb[32].mxu0 %vm499_vm1, %v1058_v57 }
 0x3f4   :  { %14287 = vmatprep.mubr.msk.bf16.mxu0 %vm15993_vm0, %v15992_v1  ;;  %14272 = vmatpush3.bf16.msra.mxu0 %v15127_v5 }
 0x3f5   :  { %v1059_v39 = vpack.c.bf16 %v1051_v46, %v1050_v45  ;;  %14273 = vmatprep.subr.bf16.mxu0 %v15992_v1 }
 0x3f7   :  { %14268 = vmatmul.mubr.msk.bf16.vlgmr.msra.gmra.mrb[32].mxu1 %vm499_vm1, %v1059_v39 }
 0x3f8   :  { %2169 = vmatprep.mubr.bf16.mxu1 %v15991_v0  ;;  %14274 = vmatpush3.bf16.msra.mxu0 %v15128_v52 }
 0x3f9   :  { %14275 = vmatprep.subr.bf16.mxu0 %v15992_v1 }
 0x3fc   :  { %14276 = vmatpush3.bf16.msra.mxu0 %v15129_v63 }
 0x3fd   :  { %14277 = vmatprep.subr.bf16.mxu0 %v15992_v1 }
 0x400   :  { %14278 = vmatpush3.bf16.msra.mxu0 %v15130_v11 }
 0x401   :  { %14279 = vmatprep.subr.bf16.mxu0 %v15992_v1 }
 0x404   :  { %14280 = vmatpush3.bf16.msra.mxu0 %v15131_v3 }
 0x405   :  { %14281 = vmatprep.subr.bf16.mxu0 %v15992_v1 }
 0x408   :  { %14282 = vmatpush3.bf16.msra.mxu0 %v15132_v13 }
 0x409   :  { %14283 = vmatprep.subr.bf16.mxu0 %v15992_v1 }
 0x40c   :  { %14284 = vmatpush3.bf16.msra.mxu0 %v15133_v43 }
 0x40d   :  { %14285 = vmatprep.subr.bf16.mxu0 %v15992_v1 }
 0x410   :  { %14286 = vmatpush3.bf16.msra.mxu0 %v15134_v25 }
 0x463   :  { %v16534_v10 = vpop.f32.mrb[20].mxu0 }
 0x464   :  { %v14227_v42 = vpop.f32.mrb[21].mxu0 }
 0x465   :  { %v16536_v9 = vpop.f32.mrb[22].mxu0 }
 0x466   :  { %v14228_v19 = vpop.f32.mrb[23].mxu0 }
 0x4b0   :  { %v1141_v61 = vpop.f32.mrb[20].mxu1 }
 0x4b1   :  { %v14233_v48 = vpop.f32.mrb[21].mxu1 }
 0x4b2   :  { %v1144_v50 = vpop.f32.mrb[22].mxu1 }
 0x4b3   :  { %v14920_v53 = vpack.i.bf16 %v1144_v50, %v1141_v61  ;;  %v14234_v55 = vpop.f32.mrb[23].mxu1 }
 0x4b5   :  { %14921 = vrot.lane.b32.xlu1 %v14920_v53, %s16000_s27  ;;  %v1185_v4 = vpop.f32.mrb[24].mxu0 }
 0x4b6   :  { %v14239_v59 = vpop.f32.mrb[25].mxu0 }
 0x4b7   :  { %v1188_v14 = vpop.f32.mrb[26].mxu0 }
 0x4b8   :  { %v14925_v31 = vpack.i.bf16 %v1188_v14, %v1185_v4  ;;  %v14240_v6 = vpop.f32.mrb[27].mxu0 }
 0x4b9   :  { %v1229_v7 = vpop.f32.mrb[24].mxu1 }
 0x4ba   :  { %v14245_v8 = vpop.f32.mrb[25].mxu1  ;;  %14926 = vrot.lane.b32.xlu0 %v14925_v31, %s15999_s23 }
 0x4bb   :  { %v1232_v16 = vpop.f32.mrb[26].mxu1 }
 0x4bc   :  { %v14930_v18 = vpack.i.bf16 %v1232_v16, %v1229_v7  ;;  %v14246_v24 = vpop.f32.mrb[27].mxu1 }
 0x4bd   :  { %v1273_v20 = vpop.f32.mrb[28].mxu0 }
 0x4be   :  { %14931 = vrot.lane.b32.xlu1 %v14930_v18, %s15998_s22  ;;  %v14251_v22 = vpop.f32.mrb[29].mxu0 }
 0x4bf   :  { %v1276_v54 = vpop.f32.mrb[30].mxu0 }
 0x4c0   :  { %v14935_v56 = vpack.i.bf16 %v1276_v54, %v1273_v20  ;;  %v14252_v36 = vpop.f32.mrb[31].mxu0 }
 0x4c1   :  { %v1317_v47 = vpop.f32.mrb[28].mxu1 }
 0x4c2   :  { %v14257_v41 = vpop.f32.mrb[29].mxu1  ;;  %14936 = vrot.lane.b32.xlu0 %v14935_v56, %s19218_s9 }
 0x4c3   :  { %v1320_v30 = vpop.f32.mrb[30].mxu1 }
 0x4c4   :  { %v14940_v49 = vpack.i.bf16 %v1320_v30, %v1317_v47  ;;  %v14258_v51 = vpop.f32.mrb[31].mxu1  ;;  %v13355_v30 = vld [vmem:[%s19201_s6] ss:$0 sm:$0xff] }
 0x4c6   :  { %v1361_v2 = vpop.f32.mrb[32].mxu0  ;;  %14941 = vrot.lane.b32.xlu1 %v14940_v49, %s15996_s25 }
 0x4c7   :  { %v14263_v21 = vpop.f32.mrb[33].mxu0 }
 0x4c8   :  { %v1364_v44 = vpop.f32.mrb[34].mxu0 }
 0x4c9   :  { %v14945_v38 = vpack.i.bf16 %v1364_v44, %v1361_v2  ;;  %v14264_v23 = vpop.f32.mrb[35].mxu0 }
 0x4ca   :  { %v1405_v40 = vpop.f32.mrb[32].mxu1 }
 0x4cb   :  { %v14269_v58 = vpop.f32.mrb[33].mxu1  ;;  %14946 = vrot.lane.b32.xlu0 %v14945_v38, %s15997_s21 }
 0x4cc   :  { %v1408_v17 = vpop.f32.mrb[34].mxu1 }
 0x4cd   :  { %v14950_v57 = vpack.i.bf16 %v1408_v17, %v1405_v40  ;;  %v14270_v45 = vpop.f32.mrb[35].mxu1 }
 0x4cf   :  { %14951 = vrot.lane.b32.xlu1 %v14950_v57, %s15995_s5 }
 0x527   :  { %v14922_v46 = vpop.permute.xlu1 %14921 }
 0x528   :  { %v14924_v19 = vunpack.i.h.bf16 %v14922_v46  ;;  %v14923_v52 = vunpack.i.l.bf16 %v14922_v46 }
 0x52a   :  { %v1468_v59 = vsel %vm499_vm1, %v16534_v10, %v14923_v52  ;;  %v1469_v3 = vsel %vm499_vm1, %v16536_v9, %v14924_v19 }
 0x52c   :  { %v14927_v39 = vpop.permute.xlu0 %14926 }
 0x52d   :  { %v14929_v63 = vunpack.i.h.bf16 %v14927_v39  ;;  %v14928_v61 = vunpack.i.l.bf16 %v14927_v39 }
 0x52f   :  { %v1472_v6 = vsel %vm1470_vm2, %v1469_v3, %v14929_v63  ;;  %v1471_v7 = vsel %vm1470_vm2, %v1468_v59, %v14928_v61 }
 0x530   :  { %v14932_v5 = vpop.permute.xlu1 %14931 }
 0x531   :  { %v14934_v50 = vunpack.i.h.bf16 %v14932_v5  ;;  %v14933_v53 = vunpack.i.l.bf16 %v14932_v5 }
 0x533   :  { %v1474_v16 = vsel %vm1473_vm3, %v1471_v7, %v14933_v53  ;;  %v1475_v18 = vsel %vm1473_vm3, %v1472_v6, %v14934_v50  ;;  %v16003_v7 = vmov 1414812756  }
 0x534   :  { %v14937_v42 = vpop.permute.xlu0 %14936 }
 0x535   :  { %v14939_v55 = vunpack.i.h.bf16 %v14937_v42  ;;  %v14938_v11 = vunpack.i.l.bf16 %v14937_v42 }
 0x537   :  { %v1478_v24 = vsel %vm1476_vm4, %v1475_v18, %v14939_v55  ;;  %v1477_v10 = vsel %vm1476_vm4, %v1474_v16, %v14938_v11 }
 0x538   :  { %v14942_v48 = vpop.permute.xlu1 %14941 }
 0x539   :  { %v14944_v14 = vunpack.i.h.bf16 %v14942_v48  ;;  %v14943_v31 = vunpack.i.l.bf16 %v14942_v48 }
 0x53b   :  { %v1480_v9 = vsel %vm1479_vm5, %v1477_v10, %v14943_v31  ;;  %v1481_v22 = vsel %vm1479_vm5, %v1478_v24, %v14944_v14 }
 0x53d   :  { %v14947_v4 = vpop.permute.xlu0 %14946 }
 0x53e   :  { %v14949_v8 = vunpack.i.h.bf16 %v14947_v4  ;;  %v14948_v13 = vunpack.i.l.bf16 %v14947_v4 }
 0x540   :  { %v1484_v56 = vsel %vm1482_vm6, %v1481_v22, %v14949_v8  ;;  %v1483_v36 = vsel %vm1482_vm6, %v1480_v9, %v14948_v13  ;;  %v16004_v8 = vmov 1987475062  }
 0x541   :  { %v14952_v20 = vpop.permute.xlu1 %14951  ;;  %v1730_v13 = vunpack.c.l.s4 %v16004_v8  ;;  %v15152_v8 = vld [vmem:[#allocation7 + $0x54] ss:$8 sps:$4 sm:$0xff]  }
 0x542   :  { %v14954_v43 = vunpack.i.h.bf16 %v14952_v20  ;;  %v14953_v54 = vunpack.i.l.bf16 %v14952_v20 }
 0x543   :  { %v1731_v10 = vunpack.c.0.s8 %v1730_v13  ;;  %v15150_v13 = vld [vmem:[#allocation7 + $0x50] ss:$8 sps:$4 sm:$0xff]  }
 0x544   :  { %v1486_v47 = vsel %vm1485_vm7, %v1483_v36, %v14953_v54  ;;  %v1487_v41 = vsel %vm1485_vm7, %v1484_v56, %v14954_v43 }
 0x545   :  { %v1488_v25 = vpack.c.bf16 %v1487_v41, %v1486_v47  ;;  %v16596_v43 = vsub.s32 %v1731_v10, %v16155_v12  ;;  %v15156_v10 = vld [vmem:[#allocation7 + $0x70] ss:$8 sps:$4 sm:$0xff]  }
 0x547   :  { %14288 = vmatmul.mubr.bf16.vlgmr.msra.gmra.mrb[36].mxu0 %v1488_v25 }
 0x61a   :  { %v1594_v49 = vpop.f32.mrb[36].mxu0 }
 0x61b   :  { %v1595_v51 = vadd.f32 %v13355_v30, %v1594_v49  ;;  %v14289_v2 = vpop.f32.mrb[37].mxu0 }
 0x61c   :  { %v1597_v21 = vpop.f32.mrb[38].mxu0 }
 0x61d   :  { %v1603_v44 = vcombine.high %v1595_v51, %v1595_v51  ;;  %v1610_v38 = vrot.slane %v1595_v51, %v16201_v37  ;;  %v1598_v23 = vadd.f32 %v13355_v30, %v1597_v21  ;;  %v14290_v40 = vpop.f32.mrb[39].mxu0 }
 0x61f   :  { %v1617_v58 = vrot.slane %v1603_v44, %v16201_v37  ;;  %v1618_v17 = vcombine.high %v1610_v38, %v1610_v38  ;;  %v1620_v57 = vcombine.high %v1598_v23, %v1598_v23  ;;  %v1627_v45 = vrot.slane %v1598_v23, %v16201_v37 }
 0x620   :  { %v1645_v39 = vadd.f32 %v1610_v38, %v16184_v26 }
 0x621   :  { %v1619_v46 = vcombine.high %v1617_v58, %v1617_v58  ;;  %v1646_v5 = vadd.f32 %v1618_v17, %v16186_v27  ;;  %v1634_v42 = vrot.slane %v1620_v57, %v16201_v37  ;;  %v1635_v19 = vcombine.high %v1627_v45, %v1627_v45 }
 0x622   :  { %v1647_v52 = vadd.f32 %v1617_v58, %v16188_v28  ;;  %v1649_v50 = vadd.f32 %v1627_v45, %v16192_v32 }
 0x623   :  { %v1636_v63 = vcombine.high %v1634_v42, %v1634_v42  ;;  %v1648_v61 = vadd.f32 %v1619_v46, %v16190_v29  ;;  %v1663_v48 = vcombine.low %v1645_v39, %v1646_v5  ;;  %v1650_v53 = vadd.f32 %v1635_v19, %v16194_v33 }
 0x624   :  { %v1651_v55 = vadd.f32 %v1634_v42, %v16196_v34  ;;  %v16001_v33 = vmov 269488144   ;;  %v16002_v34 = vmov 842150450  }
 0x625   :  { %v1664_v11 = vcombine.low %v1647_v52, %v1648_v61  ;;  %v1652_v26 = vadd.f32 %v1636_v63, %v16198_v35  ;;  %v1680_v4 = vcombine.low %v1649_v50, %v1650_v53  ;;  %v1671_v27 = vrot.slane %v1663_v48, %v16201_v37 }
 0x626   :  { %v1709_v31 = vunpack.c.l.s4 %v16001_v33  ;;  %v1716_v6 = vunpack.c.l.s4 %v16002_v34  ;;  %v1723_v35 = vunpack.c.l.s4 %v16003_v7  ;;  %v15143_v33 = vld [vmem:[#allocation7 + $0x24] ss:$8 sps:$4 sm:$0xff]   ;;  %v15146_v34 = vld [vmem:[#allocation7 + $0x34] ss:$8 sps:$4 sm:$0xff]  }
 0x627   :  { %v1678_v59 = vrot.slane %v1664_v11, %v16201_v37  ;;  %v1681_v3 = vcombine.low %v1651_v55, %v1652_v26  ;;  %v1688_v14 = vrot.slane %v1680_v4, %v16201_v37  ;;  %v15149_v7 = vld [vmem:[#allocation7 + $0x44] ss:$8 sps:$4 sm:$0xff]  }
 0x628   :  { %v1710_v16 = vunpack.c.0.s8 %v1709_v31  ;;  %v1717_v18 = vunpack.c.0.s8 %v1716_v6  ;;  %v1724_v24 = vunpack.c.0.s8 %v1723_v35  ;;  %v15141_v31 = vld [vmem:[#allocation7 + $0x20] ss:$8 sps:$4 sm:$0xff]   ;;  %v15144_v6 = vld [vmem:[#allocation7 + $0x30] ss:$8 sps:$4 sm:$0xff]  }
 0x629   :  { %v1679_v28 = vcombine.low %v1671_v27, %v1678_v59  ;;  %v1695_v29 = vrot.slane %v1681_v3, %v16201_v37  ;;  %v15147_v35 = vld [vmem:[#allocation7 + $0x40] ss:$8 sps:$4 sm:$0xff]  }
 0x62a   :  { %v16587_v20 = vsub.s32 %v1710_v16, %v16155_v12  ;;  %v16590_v9 = vsub.s32 %v1717_v18, %v16155_v12  ;;  %v16593_v22 = vsub.s32 %v1724_v24, %v16155_v12  ;;  %v15155_v16 = vld [vmem:[#allocation7 + $0x64] ss:$8 sps:$4 sm:$0xff]   ;;  %v15153_v18 = vld [vmem:[#allocation7 + $0x60] ss:$8 sps:$4 sm:$0xff]   ;;  %v15158_v24 = vld [vmem:[#allocation7 + $0x74] ss:$8 sps:$4 sm:$0xff]  }
 0x62b   :  { %1699 = vadd.xlane.f32.xlu0 %v1679_v28  ;;  %v1696_v32 = vcombine.low %v1688_v14, %v1695_v29  ;;  %v15137_v28 = vld [vmem:[#allocation7 + $0x4] ss:$8 sps:$4 sm:$0xff]   ;;  %v15135_v14 = vld [vmem:[#allocation7] ss:$8 sps:$4 sm:$0xff]   ;;  %v15140_v29 = vld [vmem:[#allocation7 + $0x14] ss:$8 sps:$4 sm:$0xff]  }
 0x62c   :  { %2137 = vmatprep.subr.bf16.mxu1 %v15137_v28 }
 0x62d   :  { %1701 = vadd.xlane.f32.xlu1 %v1696_v32  ;;  %2138 = vmatpush1.bf16.msra.mxu1 %v15135_v14  ;;  %v15138_v32 = vld [vmem:[#allocation7 + $0x10] ss:$8 sps:$4 sm:$0xff]  }
 0x62e   :  { %2139 = vmatprep.subr.bf16.mxu1 %v15140_v29 }
 0x631   :  { %2140 = vmatpush1.bf16.msra.mxu1 %v15138_v32 }
 0x632   :  { %2141 = vmatprep.subr.bf16.mxu1 %v15143_v33 }
 0x635   :  { %2142 = vmatpush1.bf16.msra.mxu1 %v15141_v31 }
 0x636   :  { %2143 = vmatprep.subr.bf16.mxu1 %v15146_v34 }
 0x639   :  { %2144 = vmatpush1.bf16.msra.mxu1 %v15144_v6 }
 0x63a   :  { %2145 = vmatprep.subr.bf16.mxu1 %v15149_v7 }
 0x63d   :  { %2146 = vmatpush1.bf16.msra.mxu1 %v15147_v35 }
 0x63e   :  { %2147 = vmatprep.subr.bf16.mxu1 %v15152_v8 }
 0x641   :  { %2148 = vmatpush1.bf16.msra.mxu1 %v15150_v13 }
 0x642   :  { %2149 = vmatprep.subr.bf16.mxu1 %v15155_v16 }
 0x645   :  { %2150 = vmatpush1.bf16.msra.mxu1 %v15153_v18 }
 0x646   :  { %2151 = vmatprep.subr.bf16.mxu1 %v15158_v24 }
 0x649   :  { %2152 = vmatpush1.bf16.msra.mxu1 %v15156_v10 }
 0x6b8   :  { %v1700_v54 = vpop.xlane.xlu0 %1699 }
 0x6b9   :  { %v1704_v56 = vmul.f32 0.0078125, %v1700_v54  ;;  %v15159_v54 = vld [vmem:[#allocation8 + $0x40] sm:$0xff]  }
 0x6ba   :  { %v1702_v36 = vpop.xlane.xlu1 %1701  ;;  %13828 = vmatprep.subr.bf16.mxu0 %v15159_v54 }
 0x6bb   :  { %v1714_v47 = vrot.slane %v1704_v56, %v16587_v20  ;;  %v1721_v41 = vrot.slane %v1704_v56, %v16590_v9  ;;  %v1728_v25 = vrot.slane %v1704_v56, %v16593_v22  ;;  %v1735_v30 = vrot.slane %v1704_v56, %v16596_v43  ;;  %v15160_v56 = vld [vmem:[#allocation8] sm:$0xff]  }
 0x6bc   :  { %v1705_v49 = vmul.f32 0.0078125, %v1702_v36  ;;  %v15161_v36 = vld [vmem:[#allocation8 + $0x48] sm:$0xff]   ;;  %13829 = vmatpush3.bf16.msra.mxu0 %v15160_v56 }
 0x6bd   :  { %v16602_v51 = vsub.f32 %v1645_v39, %v1714_v47  ;;  %v16604_v2 = vsub.f32 %v1646_v5, %v1721_v41  ;;  %v16606_v21 = vsub.f32 %v1647_v52, %v1728_v25  ;;  %v16608_v12 = vsub.f32 %v1648_v61, %v1735_v30  ;;  %v15162_v47 = vld [vmem:[#allocation8 + $0x8] sm:$0xff]   ;;  %13830 = vmatprep.subr.bf16.mxu0 %v15161_v36  ;;  %v15163_v41 = vld [vmem:[#allocation8 + $0x50] sm:$0xff]   ;;  %v15165_v30 = vld [vmem:[#allocation8 + $0x58] sm:$0xff]  }
 0x6be   :  { %v1742_v44 = vrot.slane %v1705_v49, %v16587_v20  ;;  %v1749_v38 = vrot.slane %v1705_v49, %v16590_v9  ;;  %v1756_v23 = vrot.slane %v1705_v49, %v16593_v22  ;;  %v1763_v40 = vrot.slane %v1705_v49, %v16596_v43  ;;  %v15164_v25 = vld [vmem:[#allocation8 + $0x10] sm:$0xff]   ;;  %v15166_v49 = vld [vmem:[#allocation8 + $0x18] sm:$0xff]  }
 0x6bf   :  { %v1780_v58 = vmul.f32 %v16602_v51, %v16602_v51  ;;  %v1781_v17 = vmul.f32 %v16604_v2, %v16604_v2  ;;  %v1782_v57 = vmul.f32 %v16606_v21, %v16606_v21  ;;  %v1783_v45 = vmul.f32 %v16608_v12, %v16608_v12 }
 0x6c0   :  { %v16622_v46 = vsub.f32 %v1649_v50, %v1742_v44  ;;  %v16624_v39 = vsub.f32 %v1650_v53, %v1749_v38  ;;  %v16626_v5 = vsub.f32 %v1651_v55, %v1756_v23  ;;  %v16628_v42 = vsub.f32 %v1652_v26, %v1763_v40  ;;  %13831 = vmatpush3.bf16.msra.mxu0 %v15162_v47  ;;  %v15167_v44 = vld [vmem:[#allocation8 + $0x60] sm:$0xff]   ;;  %v15169_v23 = vld [vmem:[#allocation8 + $0x68] sm:$0xff]  }
 0x6c1   :  { %v1796_v19 = vcombine.low %v1780_v58, %v1781_v17  ;;  %v1797_v52 = vcombine.low %v1782_v57, %v1783_v45  ;;  %13832 = vmatprep.subr.bf16.mxu0 %v15163_v41  ;;  %v15168_v38 = vld [vmem:[#allocation8 + $0x20] sm:$0xff]  }
 0x6c2   :  { %v1784_v63 = vmul.f32 %v16622_v46, %v16622_v46  ;;  %v1785_v61 = vmul.f32 %v16624_v39, %v16624_v39  ;;  %v1786_v48 = vmul.f32 %v16626_v5, %v16626_v5  ;;  %v1787_v50 = vmul.f32 %v16628_v42, %v16628_v42 }
 0x6c3   :  { %v1804_v53 = vrot.slane %v1796_v19, %v16201_v37  ;;  %v1811_v55 = vrot.slane %v1797_v52, %v16201_v37  ;;  %v13364_v19 = vld [vmem:[%s19202_s7] ss:$0 sm:$0xff] }
 0x6c4   :  { %v1813_v11 = vcombine.low %v1784_v63, %v1785_v61  ;;  %v1814_v26 = vcombine.low %v1786_v48, %v1787_v50  ;;  %13833 = vmatpush3.bf16.msra.mxu0 %v15164_v25  ;;  %v13365_v63 = vld [vmem:[%s19203_s8] ss:$0 sm:$0xff]  ;;  %v1921_v61 = vcombine.high %v13364_v19, %v13364_v19  ;;  %v1928_v50 = vrot.slane %v13364_v19, %v16201_v37 }
 0x6c5   :  { %v1812_v4 = vcombine.low %v1804_v53, %v1811_v55  ;;  %13834 = vmatprep.subr.bf16.mxu0 %v15165_v30  ;;  %v1955_v48 = vcombine.high %v13365_v63, %v13365_v63 }
 0x6c6   :  { %v1821_v27 = vrot.slane %v1813_v11, %v16201_v37  ;;  %v1828_v59 = vrot.slane %v1814_v26, %v16201_v37  ;;  %v1935_v53 = vrot.slane %v1921_v61, %v16201_v37  ;;  %v1962_v11 = vrot.slane %v13365_v63, %v16201_v37 }
 0x6c7   :  { %1832 = vadd.xlane.f32.xlu0 %v1812_v4  ;;  %v1969_v26 = vrot.slane %v1955_v48, %v16201_v37  ;;  %v1936_v28 = vcombine.high %v1928_v50, %v1928_v50  ;;  %v15170_v48 = vld [vmem:[#allocation8 + $0x28] sm:$0xff]  }
 0x6c8   :  { %v1829_v3 = vcombine.low %v1821_v27, %v1828_v59  ;;  %13835 = vmatpush3.bf16.msra.mxu0 %v15166_v49  ;;  %v1937_v14 = vcombine.high %v1935_v53, %v1935_v53  ;;  %v1970_v6 = vcombine.high %v1962_v11, %v1962_v11 }
 0x6c9   :  { %13836 = vmatprep.subr.bf16.mxu0 %v15167_v44  ;;  %v1971_v7 = vcombine.high %v1969_v26, %v1969_v26 }
 0x6cb   :  { %1834 = vadd.xlane.f32.xlu0 %v1829_v3 }
 0x6cc   :  { %13837 = vmatpush3.bf16.msra.mxu0 %v15168_v38 }
 0x6cd   :  { %13838 = vmatprep.subr.bf16.mxu0 %v15169_v23 }
 0x6d0   :  { %13839 = vmatpush3.bf16.msra.mxu0 %v15170_v48 }
 0x754   :  { %v1833_v40 = vpop.xlane.xlu0 %1832 }
 0x755   :  { %v1836_v58 = vmul.f32 0.0078125, %v1833_v40 }
 0x757   :  { %v1838_v17 = vadd.f32 1e-05, %v1836_v58 }
 0x758   :  { %v1835_v57 = vpop.xlane.xlu0 %1834 }
 0x759   :  { %15559 = vrsqrt.f32 %v1838_v17  ;;  %v1837_v45 = vmul.f32 0.0078125, %v1835_v57 }
 0x75b   :  { %v1839_v52 = vadd.f32 1e-05, %v1837_v45 }
 0x75d   :  { %15561 = vrsqrt.f32 %v1839_v52 }
 0x763   :  { %v15560_v55 = vpop.eup %15559 }
 0x764   :  { %v1850_v4 = vrot.slane %v15560_v55, %v16587_v20  ;;  %v1857_v27 = vrot.slane %v15560_v55, %v16590_v9  ;;  %v1864_v59 = vrot.slane %v15560_v55, %v16593_v22  ;;  %v1871_v3 = vrot.slane %v15560_v55, %v16596_v43  ;;  %v15173_v55 = vld [vmem:[#allocation8 + $0x78] sm:$0xff]  }
 0x766   :  { %v1908_v29 = vmul.f32 %v1850_v4, %v16602_v51  ;;  %v1909_v32 = vmul.f32 %v1857_v27, %v16604_v2  ;;  %v1910_v33 = vmul.f32 %v1864_v59, %v16606_v21  ;;  %v1911_v31 = vmul.f32 %v1871_v3, %v16608_v12 }
 0x767   :  { %v15562_v34 = vpop.eup %15561 }
 0x768   :  { %v1878_v35 = vrot.slane %v15562_v34, %v16587_v20  ;;  %v1885_v8 = vrot.slane %v15562_v34, %v16590_v9  ;;  %v1892_v13 = vrot.slane %v15562_v34, %v16593_v22  ;;  %v1899_v16 = vrot.slane %v15562_v34, %v16596_v43 }
 0x769   :  { %v1942_v18 = vmul.f32 %v1928_v50, %v1908_v29  ;;  %v1943_v24 = vmul.f32 %v1936_v28, %v1909_v32  ;;  %v1944_v51 = vmul.f32 %v1935_v53, %v1910_v33  ;;  %v1945_v10 = vmul.f32 %v1937_v14, %v1911_v31 }
 0x76a   :  { %v1912_v2 = vmul.f32 %v1878_v35, %v16622_v46  ;;  %v1913_v21 = vmul.f32 %v1885_v8, %v16624_v39  ;;  %v1914_v12 = vmul.f32 %v1892_v13, %v16626_v5  ;;  %v1915_v54 = vmul.f32 %v1899_v16, %v16628_v42 }
 0x76b   :  { %v16668_v56 = vadd.f32 %v1962_v11, %v1942_v18  ;;  %v16670_v36 = vadd.f32 %v1970_v6, %v1943_v24  ;;  %v16672_v47 = vadd.f32 %v1969_v26, %v1944_v51  ;;  %v16674_v41 = vadd.f32 %v1971_v7, %v1945_v10  ;;  %v13382_v18 = vld [vmem:[%s19207_s12] ss:$0 sm:$0xff] }
 0x76c   :  { %v1946_v25 = vmul.f32 %v1928_v50, %v1912_v2  ;;  %v1947_v30 = vmul.f32 %v1936_v28, %v1913_v21  ;;  %v1948_v49 = vmul.f32 %v1935_v53, %v1914_v12  ;;  %v1949_v44 = vmul.f32 %v1937_v14, %v1915_v54  ;;  %v15171_v50 = vld [vmem:[#allocation8 + $0x70] sm:$0xff]  }
 0x76d   :  { %v1992_v46 = vcombine.low %v16668_v56, %v16670_v36  ;;  %v1993_v39 = vcombine.low %v16672_v47, %v16674_v41  ;;  %v15172_v53 = vld [vmem:[#allocation8 + $0x30] sm:$0xff]   ;;  %13840 = vmatprep.subr.bf16.mxu0 %v15171_v50 }
 0x76e   :  { %v16680_v5 = vadd.f32 %v1962_v11, %v1946_v25  ;;  %v16682_v42 = vadd.f32 %v1970_v6, %v1947_v30  ;;  %v16684_v38 = vadd.f32 %v1969_v26, %v1948_v49  ;;  %v16686_v23 = vadd.f32 %v1971_v7, %v1949_v44  ;;  %13841 = vmatpush3.bf16.msra.mxu0 %v15172_v53  ;;  %v15174_v11 = vld [vmem:[#allocation8 + $0x38] sm:$0xff]   ;;  %v2045_v26 = vld [vmem:[%s19205_s10] sm:$0x3] }
 0x76f   :  { %v2000_v40 = vrot.slane %v1992_v46, %v16201_v37  ;;  %v2007_v58 = vrot.slane %v1993_v39, %v16201_v37  ;;  %13842 = vmatprep.subr.bf16.mxu0 %v15173_v55  ;;  %v2050_v4 = vrot.slane %v2045_v26, %v16229_v60  ;;  %v2054_v27 = vrot.slane %v2045_v26, %v16235_v62 }
 0x770   :  { %v2009_v17 = vcombine.low %v16680_v5, %v16682_v42  ;;  %v2010_v57 = vcombine.low %v16684_v38, %v16686_v23 }
 0x771   :  { %v2008_v52 = vcombine.low %v2000_v40, %v2007_v58 }
 0x772   :  { %v2017_v45 = vrot.slane %v2009_v17, %v16201_v37  ;;  %v2024_v19 = vrot.slane %v2010_v57, %v16201_v37  ;;  %13843 = vmatpush3.bf16.msra.mxu0 %v15174_v11 }
 0x773   :  { %14291 = vmatprep.subr.bf16.mxu0 %v15992_v1 }
 0x774   :  { %v2025_v63 = vcombine.low %v2017_v45, %v2024_v19 }
 0x776   :  { %v2028_v61 = vpack.c.bf16 %v2025_v63, %v2008_v52 }
 0x778   :  { %2170 = vmatmul.mubr.bf16.vlgmr.msra.gmra.mrb[36].mxu1 %v2028_v61 }
 0x779   :  { %3000 = vmatprep.mubr.bf16.mxu1 %v15991_v0 }
 0x84b   :  { %v2171_v59 = vpop.f32.mrb[36].mxu1 }
 0x84c   :  { %v2172_v3 = vadd.f32 %v2171_v59, %v2050_v4  ;;  %v2173_v28 = vpop.f32.mrb[37].mxu1 }
 0x84d   :  { %v2174_v14 = vadd.f32 %v2173_v28, %v2054_v27  ;;  %v2175_v29 = vpop.f32.mrb[38].mxu1 }
 0x84e   :  { %v2176_v32 = vadd.f32 %v2175_v29, %v2050_v4  ;;  %v2177_v33 = vpop.f32.mrb[39].mxu1  ;;  %v2180_v34 = vmax.f32 %v2172_v3, 0.0 }
 0x84f   :  { %v2178_v31 = vadd.f32 %v2177_v33, %v2054_v27  ;;  %v2181_v7 = vmax.f32 %v2174_v14, 0.0 }
 0x850   :  { %v2182_v6 = vmax.f32 %v2176_v32, 0.0 }
 0x851   :  { %v2183_v35 = vmax.f32 %v2178_v31, 0.0 }
 0x852   :  { %v2184_v8 = vpack.c.bf16 %v2182_v6, %v2180_v34 }
 0x853   :  { %v2185_v13 = vpack.c.bf16 %v2183_v35, %v2181_v7 }
 0x855   :  { %2353 = vmatprep.mubr.bf16.mxu0 %v2185_v13 }
 0x856   :  { %2354 = vmatmul.mubr.bf16.vlgmr.msra.gmra.mrb[40].mxu0 %v2184_v8 }
 0x857   :  { %14307 = vmatprep.mubr.msk.bf16.mxu0 %vm15993_vm0, %v15992_v1 }
 0x929   :  { %v13844_v16 = vpop.f32.mrb[40].mxu0 }
 0x92a   :  { %v13845_v24 = vpop.f32.mrb[41].mxu0 }
 0x92b   :  { %v13846_v51 = vadd.f32 %v13845_v24, %v13844_v16  ;;  %v13847_v10 = vpop.f32.mrb[42].mxu0 }
 0x92c   :  { %v13848_v2 = vpop.f32.mrb[43].mxu0 }
 0x92d   :  { %v2356_v21 = vadd.f32 %v13846_v51, %v13382_v18  ;;  %v13849_v12 = vadd.f32 %v13848_v2, %v13847_v10 }
 0x92f   :  { %v2364_v54 = vcombine.high %v2356_v21, %v2356_v21  ;;  %v2371_v25 = vrot.slane %v2356_v21, %v16201_v37  ;;  %v2359_v30 = vadd.f32 %v13849_v12, %v13382_v18 }
 0x931   :  { %v2378_v49 = vrot.slane %v2364_v54, %v16201_v37  ;;  %v2379_v44 = vcombine.high %v2371_v25, %v2371_v25  ;;  %v2381_v46 = vcombine.high %v2359_v30, %v2359_v30  ;;  %v2388_v39 = vrot.slane %v2359_v30, %v16201_v37 }
 0x932   :  { %v2406_v58 = vadd.f32 %v2371_v25, %v16668_v56 }
 0x933   :  { %v2380_v40 = vcombine.high %v2378_v49, %v2378_v49  ;;  %v2395_v17 = vrot.slane %v2381_v46, %v16201_v37  ;;  %v2407_v57 = vadd.f32 %v2379_v44, %v16670_v36  ;;  %v2396_v45 = vcombine.high %v2388_v39, %v2388_v39 }
 0x934   :  { %v2408_v52 = vadd.f32 %v2378_v49, %v16672_v47  ;;  %v2410_v48 = vadd.f32 %v2388_v39, %v16680_v5 }
 0x935   :  { %v2397_v19 = vcombine.high %v2395_v17, %v2395_v17  ;;  %v2409_v63 = vadd.f32 %v2380_v40, %v16674_v41  ;;  %v2424_v61 = vcombine.low %v2406_v58, %v2407_v57  ;;  %v2411_v50 = vadd.f32 %v2396_v45, %v16682_v42 }
 0x936   :  { %v2412_v55 = vadd.f32 %v2395_v17, %v16684_v38 }
 0x937   :  { %v2425_v53 = vcombine.low %v2408_v52, %v2409_v63  ;;  %v2413_v56 = vadd.f32 %v2397_v19, %v16686_v23  ;;  %v2441_v11 = vcombine.low %v2410_v48, %v2411_v50  ;;  %v2432_v26 = vrot.slane %v2424_v61, %v16201_v37  ;;  %v15178_v61 = vld [vmem:[#allocation2 + $0xc8] ss:$12 sps:$4 sm:$0xff]  }
 0x938   :  { %14292 = vmatpush3.bf16.msra.mxu0 %v15178_v61 }
 0x939   :  { %v2439_v36 = vrot.slane %v2425_v53, %v16201_v37  ;;  %v2442_v4 = vcombine.low %v2412_v55, %v2413_v56  ;;  %v2449_v47 = vrot.slane %v2441_v11, %v16201_v37  ;;  %14293 = vmatprep.subr.bf16.mxu0 %v15992_v1  ;;  %v15182_v53 = vld [vmem:[#allocation2 + $0xe0] ss:$12 sps:$4 sm:$0xff]   ;;  %v15186_v11 = vld [vmem:[#allocation2 + $0xf8] ss:$12 sps:$4 sm:$0xff]  }
 0x93b   :  { %v2440_v27 = vcombine.low %v2432_v26, %v2439_v36  ;;  %v2456_v41 = vrot.slane %v2442_v4, %v16201_v37  ;;  %v15189_v26 = vld [vmem:[#allocation2 + $0x10c] ss:$12 sps:$4 sm:$0xff]   ;;  %v15187_v36 = vld [vmem:[#allocation2 + $0x108] ss:$12 sps:$4 sm:$0xff]   ;;  %v15190_v4 = vld [vmem:[#allocation2 + $0x110] ss:$12 sps:$4 sm:$0xff]  }
 0x93c   :  { %14294 = vmatpush3.bf16.msra.mxu0 %v15182_v53 }
 0x93d   :  { %2460 = vadd.xlane.f32.xlu1 %v2440_v27  ;;  %v2457_v5 = vcombine.low %v2449_v47, %v2456_v41  ;;  %14295 = vmatprep.subr.bf16.mxu0 %v15992_v1  ;;  %v15193_v27 = vld [vmem:[#allocation2 + $0x124] ss:$12 sps:$4 sm:$0xff]   ;;  %v15191_v47 = vld [vmem:[#allocation2 + $0x120] ss:$12 sps:$4 sm:$0xff]   ;;  %v15194_v41 = vld [vmem:[#allocation2 + $0x128] ss:$12 sps:$4 sm:$0xff]  }
 0x93f   :  { %2462 = vadd.xlane.f32.xlu0 %v2457_v5  ;;  %v15197_v5 = vld [vmem:[#allocation2 + $0x13c] ss:$12 sps:$4 sm:$0xff]  }
 0x940   :  { %14296 = vmatpush3.bf16.msra.mxu0 %v15186_v11 }
 0x941   :  { %14297 = vmatprep.subr.bf16.mxu0 %v15992_v1 }
 0x944   :  { %14298 = vmatpush3.bf16.msra.mxu0 %v15190_v4 }
 0x945   :  { %14299 = vmatprep.subr.bf16.mxu0 %v15992_v1 }
 0x948   :  { %14300 = vmatpush3.bf16.msra.mxu0 %v15194_v41 }
 0x949   :  { %14301 = vmatprep.subr.bf16.mxu0 %v15992_v1 }
 0x9ca   :  { %v2461_v42 = vpop.xlane.xlu1 %2460 }
 0x9cb   :  { %v2464_v59 = vmul.f32 0.0078125, %v2461_v42  ;;  %v15195_v42 = vld [vmem:[#allocation2 + $0x138] ss:$12 sps:$4 sm:$0xff]  }
 0x9cc   :  { %v2463_v3 = vpop.xlane.xlu0 %2462 }
 0x9cd   :  { %v2474_v38 = vrot.slane %v2464_v59, %v16587_v20  ;;  %v2481_v23 = vrot.slane %v2464_v59, %v16590_v9  ;;  %v2488_v28 = vrot.slane %v2464_v59, %v16593_v22  ;;  %v2495_v14 = vrot.slane %v2464_v59, %v16596_v43  ;;  %v15198_v59 = vld [vmem:[#allocation2 + $0x140] ss:$12 sps:$4 sm:$0xff]  }
 0x9ce   :  { %v2465_v29 = vmul.f32 0.0078125, %v2463_v3  ;;  %v15201_v3 = vld [vmem:[#allocation2 + $0x154] ss:$12 sps:$4 sm:$0xff]   ;;  %14302 = vmatpush3.bf16.msra.mxu0 %v15198_v59 }
 0x9cf   :  { %v16728_v32 = vsub.f32 %v2406_v58, %v2474_v38  ;;  %v16730_v33 = vsub.f32 %v2407_v57, %v2481_v23  ;;  %v16732_v31 = vsub.f32 %v2408_v52, %v2488_v28  ;;  %v16734_v34 = vsub.f32 %v2409_v63, %v2495_v14  ;;  %v15177_v52 = vld [vmem:[#allocation2 + $0xc4] ss:$12 sps:$4 sm:$0xff]   ;;  %v15175_v63 = vld [vmem:[#allocation2 + $0xc0] ss:$12 sps:$4 sm:$0xff]   ;;  %14303 = vmatprep.subr.bf16.mxu0 %v15992_v1  ;;  %v15203_v14 = vld [vmem:[#allocation2 + $0x168] ss:$12 sps:$4 sm:$0xff]  }
 0x9d0   :  { %v2502_v6 = vrot.slane %v2465_v29, %v16587_v20  ;;  %v2509_v7 = vrot.slane %v2465_v29, %v16590_v9  ;;  %v2516_v35 = vrot.slane %v2465_v29, %v16593_v22  ;;  %v2523_v8 = vrot.slane %v2465_v29, %v16596_v43  ;;  %2968 = vmatprep.subr.bf16.mxu1 %v15177_v52  ;;  %v15199_v38 = vld [vmem:[#allocation2 + $0x150] ss:$12 sps:$4 sm:$0xff]   ;;  %v15202_v23 = vld [vmem:[#allocation2 + $0x158] ss:$12 sps:$4 sm:$0xff]  }
 0x9d1   :  { %v2540_v13 = vmul.f32 %v16728_v32, %v16728_v32  ;;  %v2541_v16 = vmul.f32 %v16730_v33, %v16730_v33  ;;  %v2542_v18 = vmul.f32 %v16732_v31, %v16732_v31  ;;  %v2543_v24 = vmul.f32 %v16734_v34, %v16734_v34  ;;  %2969 = vmatpush1.bf16.msra.mxu1 %v15175_v63  ;;  %v15205_v28 = vld [vmem:[#allocation2 + $0x16c] ss:$12 sps:$4 sm:$0xff]   ;;  %v15206_v29 = vld [vmem:[#allocation2 + $0x170] ss:$12 sps:$4 sm:$0xff]  }
 0x9d2   :  { %v16748_v51 = vsub.f32 %v2410_v48, %v2502_v6  ;;  %v16750_v10 = vsub.f32 %v2411_v50, %v2509_v7  ;;  %v16752_v2 = vsub.f32 %v2412_v55, %v2516_v35  ;;  %v16754_v21 = vsub.f32 %v2413_v56, %v2523_v8  ;;  %v15181_v48 = vld [vmem:[#allocation2 + $0xdc] ss:$12 sps:$4 sm:$0xff]   ;;  %v15179_v50 = vld [vmem:[#allocation2 + $0xd8] ss:$12 sps:$4 sm:$0xff]   ;;  %v15185_v56 = vld [vmem:[#allocation2 + $0xf4] ss:$12 sps:$4 sm:$0xff]   ;;  %14304 = vmatpush3.bf16.msra.mxu0 %v15202_v23 }
 0x9d3   :  { %v2556_v12 = vcombine.low %v2540_v13, %v2541_v16  ;;  %v2557_v54 = vcombine.low %v2542_v18, %v2543_v24  ;;  %2970 = vmatprep.subr.bf16.mxu1 %v15181_v48  ;;  %v15183_v55 = vld [vmem:[#allocation2 + $0xf0] ss:$12 sps:$4 sm:$0xff]   ;;  %14305 = vmatprep.subr.bf16.mxu0 %v15992_v1  ;;  %v13399_v16 = vld [vmem:[%s19208_s13] ss:$0 sm:$0xff] }
 0x9d4   :  { %v2544_v25 = vmul.f32 %v16748_v51, %v16748_v51  ;;  %v2545_v30 = vmul.f32 %v16750_v10, %v16750_v10  ;;  %v2546_v49 = vmul.f32 %v16752_v2, %v16752_v2  ;;  %v2547_v44 = vmul.f32 %v16754_v21, %v16754_v21  ;;  %v13400_v24 = vld [vmem:[%s19209_s14] ss:$0 sm:$0xff] }
 0x9d5   :  { %v2564_v46 = vrot.slane %v2556_v12, %v16201_v37  ;;  %v2571_v39 = vrot.slane %v2557_v54, %v16201_v37  ;;  %2971 = vmatpush1.bf16.msra.mxu1 %v15179_v50  ;;  %v2681_v12 = vcombine.high %v13399_v16, %v13399_v16  ;;  %v2715_v54 = vcombine.high %v13400_v24, %v13400_v24 }
 0x9d6   :  { %v2573_v40 = vcombine.low %v2544_v25, %v2545_v30  ;;  %v2574_v58 = vcombine.low %v2546_v49, %v2547_v44  ;;  %2972 = vmatprep.subr.bf16.mxu1 %v15185_v56  ;;  %14306 = vmatpush3.bf16.msra.mxu0 %v15206_v29  ;;  %v2688_v25 = vrot.slane %v13399_v16, %v16201_v37 }
 0x9d7   :  { %v2572_v17 = vcombine.low %v2564_v46, %v2571_v39  ;;  %14335 = vmatprep.subr.bf16.mxu0 %v15992_v1  ;;  %v2695_v30 = vrot.slane %v2681_v12, %v16201_v37  ;;  %v2722_v49 = vrot.slane %v13400_v24, %v16201_v37  ;;  %v2729_v44 = vrot.slane %v2715_v54, %v16201_v37  ;;  %v13401_v54 = vld [vmem:[%s19199_s4 + $0x3] sm:$0x7] }
 0x9d8   :  { %v2581_v57 = vrot.slane %v2573_v40, %v16201_v37  ;;  %v2588_v45 = vrot.slane %v2574_v58, %v16201_v37  ;;  %v2696_v39 = vcombine.high %v2688_v25, %v2688_v25 }
 0x9d9   :  { %2592 = vadd.xlane.f32.xlu1 %v2572_v17  ;;  %2973 = vmatpush1.bf16.msra.mxu1 %v15183_v55  ;;  %v2697_v40 = vcombine.high %v2695_v30, %v2695_v30  ;;  %v2731_v52 = vcombine.high %v2729_v44, %v2729_v44 }
 0x9da   :  { %v2589_v19 = vcombine.low %v2581_v57, %v2588_v45  ;;  %2974 = vmatprep.subr.bf16.mxu1 %v15189_v26 }
 0x9dc   :  { %2594 = vadd.xlane.f32.xlu0 %v2589_v19  ;;  %v2730_v19 = vcombine.high %v2722_v49, %v2722_v49 }
 0x9dd   :  { %2975 = vmatpush1.bf16.msra.mxu1 %v15187_v36 }
 0x9de   :  { %2976 = vmatprep.subr.bf16.mxu1 %v15193_v27 }
 0x9e1   :  { %2977 = vmatpush1.bf16.msra.mxu1 %v15191_v47 }
 0x9e2   :  { %2978 = vmatprep.subr.bf16.mxu1 %v15197_v5 }
 0x9e5   :  { %2979 = vmatpush1.bf16.msra.mxu1 %v15195_v42 }
 0x9e6   :  { %2980 = vmatprep.subr.bf16.mxu1 %v15201_v3 }
 0x9e9   :  { %2981 = vmatpush1.bf16.msra.mxu1 %v15199_v38 }
 0x9ea   :  { %2982 = vmatprep.subr.bf16.mxu1 %v15205_v28 }
 0x9ed   :  { %2983 = vmatpush1.bf16.msra.mxu1 %v15203_v14 }
 0x9ee   :  { %14311 = vmatprep.subr.bf16.mxu1 %v15992_v1 }
 0xa66   :  { %v2593_v6 = vpop.xlane.xlu1 %2592 }
 0xa67   :  { %v2596_v7 = vmul.f32 0.0078125, %v2593_v6 }
 0xa69   :  { %v2598_v35 = vadd.f32 1e-05, %v2596_v7  ;;  %v2595_v8 = vpop.xlane.xlu0 %2594 }
 0xa6a   :  { %v2597_v13 = vmul.f32 0.0078125, %v2595_v8 }
 0xa6b   :  { %15563 = vrsqrt.f32 %v2598_v35 }
 0xa6c   :  { %v2599_v18 = vadd.f32 1e-05, %v2597_v13 }
 0xa6e   :  { %15565 = vrsqrt.f32 %v2599_v18 }
 0xa75   :  { %v15564_v46 = vpop.eup %15563 }
 0xa76   :  { %v2610_v58 = vrot.slane %v15564_v46, %v16587_v20  ;;  %v2617_v17 = vrot.slane %v15564_v46, %v16590_v9  ;;  %v2624_v57 = vrot.slane %v15564_v46, %v16593_v22  ;;  %v2631_v45 = vrot.slane %v15564_v46, %v16596_v43 }
 0xa77   :  { %v2832_v46 = vrot.slane %v13401_v54, %v16235_v62 }
 0xa78   :  { %v15566_v63 = vpop.eup %15565  ;;  %v2668_v61 = vmul.f32 %v2610_v58, %v16728_v32  ;;  %v2669_v48 = vmul.f32 %v2617_v17, %v16730_v33  ;;  %v2670_v50 = vmul.f32 %v2624_v57, %v16732_v31  ;;  %v2671_v53 = vmul.f32 %v2631_v45, %v16734_v34 }
 0xa79   :  { %v2638_v55 = vrot.slane %v15566_v63, %v16587_v20  ;;  %v2645_v56 = vrot.slane %v15566_v63, %v16590_v9  ;;  %v2652_v11 = vrot.slane %v15566_v63, %v16593_v22  ;;  %v2659_v26 = vrot.slane %v15566_v63, %v16596_v43 }
 0xa7a   :  { %v2702_v36 = vmul.f32 %v2688_v25, %v2668_v61  ;;  %v2703_v4 = vmul.f32 %v2696_v39, %v2669_v48  ;;  %v2704_v27 = vmul.f32 %v2695_v30, %v2670_v50  ;;  %v2705_v47 = vmul.f32 %v2697_v40, %v2671_v53 }
 0xa7b   :  { %v2672_v32 = vmul.f32 %v2638_v55, %v16748_v51  ;;  %v2673_v33 = vmul.f32 %v2645_v56, %v16750_v10  ;;  %v2674_v31 = vmul.f32 %v2652_v11, %v16752_v2  ;;  %v2675_v34 = vmul.f32 %v2659_v26, %v16754_v21 }
 0xa7c   :  { %v16803_v41 = vadd.f32 %v2722_v49, %v2702_v36  ;;  %v16805_v5 = vadd.f32 %v2730_v19, %v2703_v4  ;;  %v16807_v42 = vadd.f32 %v2729_v44, %v2704_v27  ;;  %v16809_v59 = vadd.f32 %v2731_v52, %v2705_v47 }
 0xa7d   :  { %v2706_v3 = vmul.f32 %v2688_v25, %v2672_v32  ;;  %v2707_v38 = vmul.f32 %v2696_v39, %v2673_v33  ;;  %v2708_v23 = vmul.f32 %v2695_v30, %v2674_v31  ;;  %v2709_v28 = vmul.f32 %v2697_v40, %v2675_v34 }
 0xa7e   :  { %v2752_v51 = vcombine.low %v16803_v41, %v16805_v5  ;;  %v2753_v10 = vcombine.low %v16807_v42, %v16809_v59  ;;  %v2828_v25 = vrot.slane %v13401_v54, %v16229_v60  ;;  %v2836_v30 = vrot.slane %v13401_v54, %v16256_v15 }
 0xa7f   :  { %v16815_v2 = vadd.f32 %v2722_v49, %v2706_v3  ;;  %v16817_v21 = vadd.f32 %v2730_v19, %v2707_v38  ;;  %v16819_v14 = vadd.f32 %v2729_v44, %v2708_v23  ;;  %v16821_v29 = vadd.f32 %v2731_v52, %v2709_v28 }
 0xa80   :  { %v2760_v6 = vrot.slane %v2752_v51, %v16201_v37  ;;  %v2767_v7 = vrot.slane %v2753_v10, %v16201_v37 }
 0xa81   :  { %v2769_v35 = vcombine.low %v16815_v2, %v16817_v21  ;;  %v2770_v8 = vcombine.low %v16819_v14, %v16821_v29 }
 0xa82   :  { %v2768_v18 = vcombine.low %v2760_v6, %v2767_v7 }
 0xa83   :  { %v2777_v13 = vrot.slane %v2769_v35, %v16201_v37  ;;  %v2784_v16 = vrot.slane %v2770_v8, %v16201_v37 }
 0xa85   :  { %v2785_v24 = vcombine.low %v2777_v13, %v2784_v16 }
 0xa87   :  { %v2788_v12 = vpack.c.bf16 %v2785_v24, %v2768_v18 }
 0xa89   :  { %3001 = vmatmul.mubr.bf16.vlgmr.msra.gmra.mrb[40].mxu1 %v2788_v12  ;;  %14308 = vmatmul.mubr.bf16.vlgmr.msra.gmra.mrb[44].mxu0 %v2788_v12  ;;  %v16905_v12 = vld [vmem:[%s19197_s2] sm:$0xff] }
 0xa8a   :  { %14313 = vmatprep.mubr.msk.bf16.mxu1 %vm15993_vm0, %v15992_v1  ;;  %14337 = vmatprep.mubr.msk.bf16.mxu0 %vm15993_vm0, %v15992_v1 }
 0xb5c   :  { %v3002_v49 = vpop.f32.mrb[40].mxu1  ;;  %v3045_v44 = vpop.f32.mrb[44].mxu0 }
 0xb5d   :  { %v3004_v39 = vpop.f32.mrb[41].mxu1  ;;  %v14309_v40 = vpop.f32.mrb[45].mxu0  ;;  %v3003_v57 = vadd.f32 %v3002_v49, %v2828_v25  ;;  %v3046_v45 = vadd.f32 %v3045_v44, %v2836_v30  ;;  %v16913_v49 = vld [vmem:[%s19197_s2 + $0x8] sm:$0xff] }
 0xb5e   :  { %v3006_v58 = vpop.f32.mrb[42].mxu1  ;;  %v3048_v17 = vpop.f32.mrb[46].mxu0  ;;  %v3005_v48 = vadd.f32 %v3004_v39, %v2832_v46 }
 0xb5f   :  { %v3007_v19 = vadd.f32 %v3006_v58, %v2828_v25  ;;  %v3049_v52 = vadd.f32 %v3048_v17, %v2836_v30  ;;  %v3008_v63 = vpop.f32.mrb[43].mxu1  ;;  %v14310_v61 = vpop.f32.mrb[47].mxu0 }
 0xb60   :  { %v3009_v50 = vadd.f32 %v3008_v63, %v2832_v46 }
 0xb61   :  { %v3052_v53 = vpack.c.bf16 %v3007_v19, %v3003_v57  ;;  %v16841_v55 = vpack.c.bf16 %v3049_v52, %v3046_v45 }
 0xb62   :  { %v3053_v56 = vpack.c.bf16 %v3009_v50, %v3005_v48 }
 0xb63   :  { %3056 = vrot.lane.b32.xlu0 %v3052_v53, %s15995_s5 }
 0xb64   :  { %3071 = vrot.lane.b32.xlu1 %v3053_v56, %s15995_s5  ;;  %v3111_v11 = vsel %vm499_vm1, %v3053_v56, 0 }
 0xb65   :  { %14312 = vmatpush3.bf16.xpose.msra.mxu1 %v3111_v11 }
 0xb66   :  { %14317 = vmatprep.subr.bf16.mxu1 %v15992_v1 }
 0xb67   :  { %3075 = vrot.lane.b32.xlu0 %v3053_v56, %s15996_s25 }
 0xb68   :  { %3073 = vrot.lane.b32.xlu1 %v3053_v56, %s15997_s21 }
 0xb6b   :  { %3060 = vrot.lane.b32.xlu0 %v3052_v53, %s15996_s25 }
 0xb6c   :  { %3058 = vrot.lane.b32.xlu1 %v3052_v53, %s15997_s21  ;;  %14314 = vmatmul.mubr.msk.bf16.vlgmr.msra.gmra.mrb[44].mxu1 %vm499_vm1, %v3052_v53 }
 0xb6d   :  { %14319 = vmatprep.mubr.msk.bf16.mxu1 %vm15993_vm0, %v15992_v1 }
 0xb6f   :  { %3062 = vrot.lane.b32.xlu0 %v3052_v53, %s19218_s9 }
 0xb70   :  { %3077 = vrot.lane.b32.xlu1 %v3053_v56, %s19218_s9 }
 0xb73   :  { %3064 = vrot.lane.b32.xlu0 %v3052_v53, %s15998_s22 }
 0xb74   :  { %3079 = vrot.lane.b32.xlu1 %v3053_v56, %s15998_s22 }
 0xb77   :  { %3066 = vrot.lane.b32.xlu0 %v3052_v53, %s15999_s23 }
 0xb78   :  { %3081 = vrot.lane.b32.xlu1 %v3053_v56, %s15999_s23 }
 0xb7c   :  { %3083 = vrot.lane.b32.xlu1 %v3053_v56, %s16000_s27 }
 0xb80   :  { %3068 = vrot.lane.b32.xlu1 %v3052_v53, %s16000_s27 }
 0xb84   :  { %3086 = vrot.lane.b32.xlu1 %v16841_v55, %s15995_s5 }
 0xbd5   :  { %v3057_v26 = vpop.permute.xlu0 %3056 }
 0xbd6   :  { %v3072_v36 = vpop.permute.xlu1 %3071 }
 0xbd7   :  { %v3158_v4 = vsel %vm499_vm1, %v3072_v36, 0 }
 0xbd8   :  { %14318 = vmatpush3.bf16.xpose.msra.mxu1 %v3158_v4 }
 0xbd9   :  { %14323 = vmatprep.subr.bf16.mxu1 %v15992_v1  ;;  %v3076_v27 = vpop.permute.xlu0 %3075 }
 0xbda   :  { %v3074_v47 = vpop.permute.xlu1 %3073  ;;  %v3252_v28 = vsel %vm499_vm1, %v3076_v27, 0 }
 0xbdb   :  { %v3205_v33 = vsel %vm499_vm1, %v3074_v47, 0 }
 0xbdd   :  { %v3061_v31 = vpop.permute.xlu0 %3060 }
 0xbde   :  { %v3059_v32 = vpop.permute.xlu1 %3058 }
 0xbdf   :  { %14320 = vmatmul.mubr.msk.bf16.vlgmr.msra.gmra.mrb[48].mxu1 %vm499_vm1, %v3057_v26 }
 0xbe0   :  { %14324 = vmatpush3.bf16.xpose.msra.mxu1 %v3205_v33  ;;  %14325 = vmatprep.mubr.msk.bf16.mxu1 %vm15993_vm0, %v15992_v1 }
 0xbe1   :  { %14329 = vmatprep.subr.bf16.mxu1 %v15992_v1  ;;  %v3063_v38 = vpop.permute.xlu0 %3062 }
 0xbe2   :  { %v3078_v34 = vpop.permute.xlu1 %3077 }
 0xbe3   :  { %v3299_v3 = vsel %vm499_vm1, %v3078_v34, 0 }
 0xbe4   :  { %14336 = vmatpush3.bf16.xpose.msra.mxu0 %v3299_v3 }
 0xbe5   :  { %14347 = vmatprep.subr.bf16.mxu0 %v15992_v1  ;;  %v3065_v6 = vpop.permute.xlu0 %3064 }
 0xbe6   :  { %v3080_v23 = vpop.permute.xlu1 %3079 }
 0xbe7   :  { %14326 = vmatmul.mubr.msk.bf16.vlgmr.msra.gmra.mrb[52].mxu1 %vm499_vm1, %v3059_v32  ;;  %v3346_v7 = vsel %vm499_vm1, %v3080_v23, 0 }
 0xbe8   :  { %14330 = vmatpush3.bf16.xpose.msra.mxu1 %v3252_v28  ;;  %14331 = vmatprep.mubr.msk.bf16.mxu1 %vm15993_vm0, %v15992_v1 }
 0xbe9   :  { %14341 = vmatprep.subr.bf16.mxu1 %v15992_v1  ;;  %v3067_v35 = vpop.permute.xlu0 %3066 }
 0xbea   :  { %v3082_v51 = vpop.permute.xlu1 %3081 }
 0xbeb   :  { %v3393_v10 = vsel %vm499_vm1, %v3082_v51, 0  ;;  %14338 = vmatmul.mubr.msk.bf16.vlgmr.msra.gmra.mrb[48].mxu0 %vm499_vm1, %v3063_v38 }
 0xbec   :  { %14348 = vmatpush3.bf16.xpose.msra.mxu0 %v3393_v10  ;;  %14349 = vmatprep.mubr.msk.bf16.mxu0 %vm15993_vm0, %v15992_v1 }
 0xbed   :  { %14359 = vmatprep.subr.bf16.mxu0 %v15992_v1 }
 0xbee   :  { %v3084_v8 = vpop.permute.xlu1 %3083 }
 0xbef   :  { %14332 = vmatmul.mubr.msk.bf16.vlgmr.msra.gmra.mrb[56].mxu1 %vm499_vm1, %v3061_v31  ;;  %v3440_v13 = vsel %vm499_vm1, %v3084_v8, 0 }
 0xbf0   :  { %14342 = vmatpush3.bf16.xpose.msra.mxu1 %v3346_v7  ;;  %14343 = vmatprep.mubr.msk.bf16.mxu1 %vm15993_vm0, %v15992_v1 }
 0xbf1   :  { %14353 = vmatprep.subr.bf16.mxu1 %v15992_v1 }
 0xbf2   :  { %v3069_v16 = vpop.permute.xlu1 %3068 }
 0xbf3   :  { %14350 = vmatmul.mubr.msk.bf16.vlgmr.msra.gmra.mrb[52].mxu0 %vm499_vm1, %v3067_v35 }
 0xbf4   :  { %14360 = vmatpush3.bf16.msra.mxu0 %v16841_v55  ;;  %14361 = vmatprep.mubr.msk.bf16.mxu0 %vm15993_vm0, %v15992_v1 }
 0xbf5   :  { %14371 = vmatprep.subr.bf16.mxu0 %v15992_v1 }
 0xbf6   :  { %v3087_v18 = vpop.permute.xlu1 %3086 }
 0xbf7   :  { %14344 = vmatmul.mubr.msk.bf16.vlgmr.msra.gmra.mrb[60].mxu1 %vm499_vm1, %v3065_v6 }
 0xbf8   :  { %14354 = vmatpush3.bf16.xpose.msra.mxu1 %v3440_v13  ;;  %14355 = vmatprep.mubr.msk.bf16.mxu1 %vm15993_vm0, %v15992_v1 }
 0xbf9   :  { %14365 = vmatprep.subr.bf16.mxu1 %v15992_v1 }
 0xbff   :  { %14356 = vmatmul.mubr.msk.bf16.vlgmr.msra.gmra.mrb[64].mxu1 %vm499_vm1, %v3069_v16 }
 0xc00   :  { %14366 = vmatpush3.bf16.msra.mxu1 %v3087_v18  ;;  %14367 = vmatprep.mubr.msk.bf16.mxu1 %vm15993_vm0, %v15992_v1 }
 0xc01   :  { %14377 = vmatprep.subr.bf16.mxu1 %v15992_v1 }
 0xc3f   :  { %v3147_v24 = vpop.f32.mrb[44].mxu1 }
 0xc40   :  { %v16908_v54 = vadd.f32 %v16905_v12, %v3147_v24  ;;  %v14315_v25 = vpop.f32.mrb[45].mxu1 }
 0xc41   :  { %v3150_v30 = vpop.f32.mrb[46].mxu1 }
 0xc42   :  { %v16916_v44 = vadd.f32 %v16913_v49, %v3150_v30  ;;  %v14316_v46 = vpop.f32.mrb[47].mxu1  ;;  %v3483_v39 = vsel %vm499_vm1, %v16908_v54, -inf }
 0xc43   :  { %3484 = vmax.xlane.f32.xlu0 %v3483_v39 }
 0xc44   :  { %v3486_v40 = vsel %vm499_vm1, %v16916_v44, -inf }
 0xc45   :  { %3487 = vmax.xlane.f32.xlu1 %v3486_v40 }
 0xcb2   :  { %v3194_v58 = vpop.f32.mrb[48].mxu1 }
 0xcb3   :  { %v16923_v17 = vadd.f32 %v16905_v12, %v3194_v58  ;;  %v14321_v57 = vpop.f32.mrb[49].mxu1 }
 0xcb4   :  { %v3197_v45 = vpop.f32.mrb[50].mxu1 }
 0xcb5   :  { %v16926_v19 = vadd.f32 %v16913_v49, %v3197_v45  ;;  %v14322_v52 = vpop.f32.mrb[51].mxu1  ;;  %v3489_v63 = vsel %vm499_vm1, %v16923_v17, -inf }
 0xcb6   :  { %3490 = vmax.xlane.f32.xlu0 %v3489_v63 }
 0xcb7   :  { %v3492_v61 = vsel %vm499_vm1, %v16926_v19, -inf }
 0xcba   :  { %3493 = vmax.xlane.f32.xlu0 %v3492_v61  ;;  %v3241_v48 = vpop.f32.mrb[52].mxu1 }
 0xcbb   :  { %v14327_v50 = vpop.f32.mrb[53].mxu1  ;;  %v16936_v27 = vadd.f32 %v16905_v12, %v3241_v48 }
 0xcbc   :  { %v3244_v53 = vpop.f32.mrb[54].mxu1 }
 0xcbd   :  { %v14328_v56 = vpop.f32.mrb[55].mxu1  ;;  %v16944_v34 = vadd.f32 %v16913_v49, %v3244_v53  ;;  %v3495_v51 = vsel %vm499_vm1, %v16936_v27, -inf }
 0xcbe   :  { %v3335_v11 = vpop.f32.mrb[48].mxu0 }
 0xcbf   :  { %v16933_v26 = vadd.f32 %v16905_v12, %v3335_v11  ;;  %v14339_v36 = vpop.f32.mrb[49].mxu0  ;;  %v3498_v35 = vsel %vm499_vm1, %v16944_v34, -inf }
 0xcc0   :  { %v3338_v4 = vpop.f32.mrb[50].mxu0 }
 0xcc1   :  { %v16939_v47 = vadd.f32 %v16913_v49, %v3338_v4  ;;  %v14340_v32 = vpop.f32.mrb[51].mxu0  ;;  %v3507_v33 = vsel %vm499_vm1, %v16933_v26, -inf }
 0xcc2   :  { %3508 = vmax.xlane.f32.xlu1 %v3507_v33  ;;  %v3288_v31 = vpop.f32.mrb[56].mxu1 }
 0xcc3   :  { %v14333_v3 = vpop.f32.mrb[57].mxu1  ;;  %v3510_v38 = vsel %vm499_vm1, %v16939_v47, -inf  ;;  %v16956_v13 = vadd.f32 %v16905_v12, %v3288_v31 }
 0xcc4   :  { %3511 = vmax.xlane.f32.xlu0 %v3510_v38  ;;  %v3291_v23 = vpop.f32.mrb[58].mxu1 }
 0xcc5   :  { %v14334_v28 = vpop.f32.mrb[59].mxu1  ;;  %v16964_v30 = vadd.f32 %v16913_v49, %v3291_v23  ;;  %v3501_v45 = vsel %vm499_vm1, %v16956_v13, -inf }
 0xcc6   :  { %v3429_v10 = vpop.f32.mrb[52].mxu0  ;;  %3496 = vmax.xlane.f32.xlu1 %v3495_v51 }
 0xcc7   :  { %v16951_v6 = vadd.f32 %v16905_v12, %v3429_v10  ;;  %v14351_v7 = vpop.f32.mrb[53].mxu0  ;;  %v3504_v63 = vsel %vm499_vm1, %v16964_v30, -inf }
 0xcc8   :  { %v3432_v8 = vpop.f32.mrb[54].mxu0  ;;  %3499 = vmax.xlane.f32.xlu0 %v3498_v35 }
 0xcc9   :  { %v16959_v16 = vadd.f32 %v16913_v49, %v3432_v8  ;;  %v14352_v18 = vpop.f32.mrb[55].mxu0  ;;  %v3519_v24 = vsel %vm499_vm1, %v16951_v6, -inf }
 0xcca   :  { %3520 = vmax.xlane.f32.xlu1 %v3519_v24  ;;  %v3382_v25 = vpop.f32.mrb[60].mxu1 }
 0xccb   :  { %v14345_v46 = vpop.f32.mrb[61].mxu1  ;;  %v3522_v39 = vsel %vm499_vm1, %v16959_v16, -inf  ;;  %v16969_v58 = vadd.f32 %v16905_v12, %v3382_v25 }
 0xccc   :  { %3523 = vmax.xlane.f32.xlu0 %v3522_v39  ;;  %v3385_v40 = vpop.f32.mrb[62].mxu1 }
 0xccd   :  { %v14346_v57 = vpop.f32.mrb[63].mxu1  ;;  %v16974_v52 = vadd.f32 %v16913_v49, %v3385_v40  ;;  %v3513_v61 = vsel %vm499_vm1, %v16969_v58, -inf }
 0xcce   :  { %3502 = vmax.xlane.f32.xlu1 %v3501_v45 }
 0xccf   :  { %v3516_v56 = vsel %vm499_vm1, %v16974_v52, -inf }
 0xcd0   :  { %3505 = vmax.xlane.f32.xlu0 %v3504_v63 }
 0xcd2   :  { %3514 = vmax.xlane.f32.xlu1 %v3513_v61  ;;  %v3476_v48 = vpop.f32.mrb[64].mxu1 }
 0xcd3   :  { %v16981_v50 = vadd.f32 %v16905_v12, %v3476_v48  ;;  %v14357_v53 = vpop.f32.mrb[65].mxu1  ;;  %v3488_v12 = vpop.xlane.xlu1 %3487 }
 0xcd4   :  { %3517 = vmax.xlane.f32.xlu0 %v3516_v56  ;;  %v3479_v11 = vpop.f32.mrb[66].mxu1  ;;  %v3532_v31 = vsub.f32 %v16916_v44, %v3488_v12 }
 0xcd5   :  { %v16986_v36 = vadd.f32 %v16913_v49, %v3479_v11  ;;  %v14358_v4 = vpop.f32.mrb[67].mxu1  ;;  %v3525_v32 = vsel %vm499_vm1, %v16981_v50, -inf  ;;  %v3485_v49 = vpop.xlane.xlu0 %3484 }
 0xcd6   :  { %3526 = vmax.xlane.f32.xlu1 %v3525_v32  ;;  %v3531_v3 = vsub.f32 %v16908_v54, %v3485_v49  ;;  %v3549_v38 = vmul.f32 1.442695, %v3532_v31 }
 0xcd7   :  { %v3528_v33 = vsel %vm499_vm1, %v16986_v36, -inf }
 0xcd8   :  { %3529 = vmax.xlane.f32.xlu0 %v3528_v33  ;;  %v3547_v23 = vmul.f32 1.442695, %v3531_v3  ;;  %15567 = vpow2.f32 %v3549_v38 }
 0xcda   :  { %15569 = vpow2.f32 %v3547_v23 }
 0xce2   :  { %v17000_v28 = vpop.eup %15567 }
 0xce3   :  { %v3582_v10 = vsel %vm499_vm1, %v17000_v28, 0.0 }
 0xce4   :  { %v17002_v51 = vpop.eup %15569 }
 0xce5   :  { %v3579_v7 = vsel %vm499_vm1, %v17002_v51, 0.0 }
 0xce7   :  { %3092 = vrot.lane.b32.xlu1 %v16841_v55, %s15996_s25 }
 0xceb   :  { %3095 = vrot.lane.b32.xlu1 %v16841_v55, %s19218_s9 }
 0xcee   :  { %3089 = vrot.lane.b32.xlu0 %v16841_v55, %s15997_s21 }
 0xd0d   :  { %3583 = vadd.xlane.f32.xlu0 %v3582_v10 }
 0xd0f   :  { %3580 = vadd.xlane.f32.xlu1 %v3579_v7 }
 0xd43   :  { %v3491_v35 = vpop.xlane.xlu0 %3490 }
 0xd44   :  { %v3533_v44 = vsub.f32 %v16923_v17, %v3491_v35 }
 0xd46   :  { %v3551_v54 = vmul.f32 1.442695, %v3533_v44 }
 0xd47   :  { %v3494_v8 = vpop.xlane.xlu0 %3493 }
 0xd48   :  { %15571 = vpow2.f32 %v3551_v54  ;;  %v3534_v18 = vsub.f32 %v16926_v19, %v3494_v8 }
 0xd4a   :  { %v3553_v24 = vmul.f32 1.442695, %v3534_v18 }
 0xd4c   :  { %15573 = vpow2.f32 %v3553_v24 }
 0xd4f   :  { %v3509_v25 = vpop.xlane.xlu1 %3508 }
 0xd50   :  { %v3539_v46 = vsub.f32 %v16933_v26, %v3509_v25 }
 0xd51   :  { %v3512_v39 = vpop.xlane.xlu0 %3511 }
 0xd52   :  { %v17011_v40 = vpop.eup %15571  ;;  %v3563_v57 = vmul.f32 1.442695, %v3539_v46  ;;  %v3540_v45 = vsub.f32 %v16939_v47, %v3512_v39 }
 0xd53   :  { %v3497_v63 = vpop.xlane.xlu1 %3496  ;;  %v3585_v17 = vsel %vm499_vm1, %v17011_v40, 0.0 }
 0xd54   :  { %15575 = vpow2.f32 %v3563_v57  ;;  %v3565_v61 = vmul.f32 1.442695, %v3540_v45  ;;  %v3535_v48 = vsub.f32 %v16936_v27, %v3497_v63  ;;  %3586 = vadd.xlane.f32.xlu1 %v3585_v17 }
 0xd55   :  { %v3500_v19 = vpop.xlane.xlu0 %3499 }
 0xd56   :  { %v17017_v53 = vpop.eup %15573  ;;  %15577 = vpow2.f32 %v3565_v61  ;;  %v3555_v26 = vmul.f32 1.442695, %v3535_v48  ;;  %v3536_v56 = vsub.f32 %v16944_v34, %v3500_v19 }
 0xd57   :  { %v3521_v11 = vpop.xlane.xlu1 %3520  ;;  %v3588_v47 = vsel %vm499_vm1, %v17017_v53, 0.0 }
 0xd58   :  { %15579 = vpow2.f32 %v3555_v26  ;;  %v3557_v4 = vmul.f32 1.442695, %v3536_v56  ;;  %v3543_v32 = vsub.f32 %v16951_v6, %v3521_v11  ;;  %3589 = vadd.xlane.f32.xlu0 %v3588_v47 }
 0xd59   :  { %v3524_v33 = vpop.xlane.xlu0 %3523 }
 0xd5a   :  { %15581 = vpow2.f32 %v3557_v4  ;;  %v3571_v27 = vmul.f32 1.442695, %v3543_v32  ;;  %v3544_v12 = vsub.f32 %v16959_v16, %v3524_v33 }
 0xd5b   :  { %v3503_v49 = vpop.xlane.xlu1 %3502 }
 0xd5c   :  { %15583 = vpow2.f32 %v3571_v27  ;;  %v3573_v31 = vmul.f32 1.442695, %v3544_v12  ;;  %v3537_v3 = vsub.f32 %v16956_v13, %v3503_v49 }
 0xd5d   :  { %v3506_v34 = vpop.xlane.xlu0 %3505 }
 0xd5e   :  { %v17025_v38 = vpop.eup %15575  ;;  %15585 = vpow2.f32 %v3573_v31  ;;  %v3559_v23 = vmul.f32 1.442695, %v3537_v3  ;;  %v3538_v10 = vsub.f32 %v16964_v30, %v3506_v34 }
 0xd5f   :  { %v3515_v7 = vpop.xlane.xlu1 %3514  ;;  %v3603_v6 = vsel %vm499_vm1, %v17025_v38, 0.0 }
 0xd60   :  { %v17030_v35 = vpop.eup %15577  ;;  %15587 = vpow2.f32 %v3559_v23  ;;  %v3561_v16 = vmul.f32 1.442695, %v3538_v10  ;;  %v3541_v44 = vsub.f32 %v16969_v58, %v3515_v7  ;;  %3604 = vadd.xlane.f32.xlu1 %v3603_v6 }
 0xd61   :  { %v3606_v13 = vsel %vm499_vm1, %v17030_v35, 0.0  ;;  %v3518_v47 = vpop.xlane.xlu0 %3517 }
 0xd62   :  { %v17035_v54 = vpop.eup %15579  ;;  %15589 = vpow2.f32 %v3561_v16  ;;  %v3567_v8 = vmul.f32 1.442695, %v3541_v44  ;;  %3607 = vadd.xlane.f32.xlu0 %v3606_v13  ;;  %v3542_v4 = vsub.f32 %v16974_v52, %v3518_v47 }
 0xd63   :  { %v3527_v30 = vpop.xlane.xlu1 %3526  ;;  %v3591_v18 = vsel %vm499_vm1, %v17035_v54, 0.0 }
 0xd64   :  { %v17039_v24 = vpop.eup %15581  ;;  %15591 = vpow2.f32 %v3567_v8  ;;  %v3545_v25 = vsub.f32 %v16981_v50, %v3527_v30  ;;  %3592 = vadd.xlane.f32.xlu1 %v3591_v18  ;;  %v3569_v33 = vmul.f32 1.442695, %v3542_v4 }
 0xd65   :  { %v3594_v58 = vsel %vm499_vm1, %v17039_v24, 0.0  ;;  %v3530_v32 = vpop.xlane.xlu0 %3529 }
 0xd66   :  { %v17044_v46 = vpop.eup %15583  ;;  %v3575_v39 = vmul.f32 1.442695, %v3545_v25  ;;  %3595 = vadd.xlane.f32.xlu0 %v3594_v58  ;;  %v3546_v27 = vsub.f32 %v16986_v36, %v3530_v32 }
 0xd67   :  { %v3615_v57 = vsel %vm499_vm1, %v17044_v46, 0.0  ;;  %v3093_v12 = vpop.permute.xlu1 %3092 }
 0xd68   :  { %v17048_v45 = vpop.eup %15585  ;;  %15593 = vpow2.f32 %v3575_v39  ;;  %3616 = vadd.xlane.f32.xlu1 %v3615_v57  ;;  %v3577_v49 = vmul.f32 1.442695, %v3546_v27 }
 0xd69   :  { %v3618_v63 = vsel %vm499_vm1, %v17048_v45, 0.0  ;;  %15595 = vpow2.f32 %v3569_v33  ;;  %v3090_v31 = vpop.permute.xlu0 %3089 }
 0xd6a   :  { %v17052_v17 = vpop.eup %15587  ;;  %3619 = vadd.xlane.f32.xlu0 %v3618_v63  ;;  %15597 = vpow2.f32 %v3577_v49 }
 0xd6b   :  { %v3597_v50 = vsel %vm499_vm1, %v17052_v17, 0.0  ;;  %v3096_v3 = vpop.permute.xlu1 %3095 }
 0xd6c   :  { %v17056_v61 = vpop.eup %15589  ;;  %3598 = vadd.xlane.f32.xlu1 %v3597_v50 }
 0xd6d   :  { %v3600_v48 = vsel %vm499_vm1, %v17056_v61, 0.0 }
 0xd6e   :  { %v17060_v19 = vpop.eup %15591  ;;  %3601 = vadd.xlane.f32.xlu0 %v3600_v48 }
 0xd6f   :  { %v3609_v26 = vsel %vm499_vm1, %v17060_v19, 0.0 }
 0xd70   :  { %3610 = vadd.xlane.f32.xlu1 %v3609_v26 }
 0xd72   :  { %v17064_v56 = vpop.eup %15593 }
 0xd73   :  { %v3621_v11 = vsel %vm499_vm1, %v17064_v56, 0.0  ;;  %v17074_v10 = vpop.eup %15595 }
 0xd74   :  { %3622 = vadd.xlane.f32.xlu1 %v3621_v11  ;;  %v3612_v7 = vsel %vm499_vm1, %v17074_v10, 0.0  ;;  %v17078_v52 = vpop.eup %15597 }
 0xd75   :  { %v3624_v36 = vsel %vm499_vm1, %v17078_v52, 0.0 }
 0xd84   :  { %3098 = vrot.lane.b32.xlu0 %v16841_v55, %s15998_s22 }
 0xd85   :  { %3101 = vrot.lane.b32.xlu1 %v16841_v55, %s15999_s23 }
 0xd9a   :  { %v3584_v34 = vpop.xlane.xlu0 %3583 }
 0xd9b   :  { %15599 = vrcp.f32 %v3584_v34 }
 0xd9c   :  { %v3581_v23 = vpop.xlane.xlu1 %3580 }
 0xd9d   :  { %15601 = vrcp.f32 %v3581_v23 }
 0xda3   :  { %3613 = vadd.xlane.f32.xlu0 %v3612_v7 }
 0xda5   :  { %v15600_v6 = vpop.eup %15599 }
 0xda6   :  { %v3644_v44 = vmul.f32 %v15600_v6, %v17000_v28 }
 0xda7   :  { %v15602_v16 = vpop.eup %15601  ;;  %3625 = vadd.xlane.f32.xlu0 %v3624_v36 }
 0xda8   :  { %v3643_v13 = vmul.f32 %v15602_v16, %v17002_v51 }
 0xdaa   :  { %v3659_v8 = vpack.c.bf16 %v3644_v44, %v3643_v13 }
 0xdac   :  { %14362 = vmatmul.mubr.msk.bf16.vlgmr.msra.gmra.mrb[56].mxu0 %vm499_vm1, %v3659_v8 }
 0xdad   :  { %14372 = vmatpush3.bf16.msra.mxu0 %v3090_v31  ;;  %14373 = vmatprep.mubr.msk.bf16.mxu0 %vm15993_vm0, %v15992_v1 }
 0xdae   :  { %14383 = vmatprep.subr.bf16.mxu0 %v15992_v1 }
 0xdbd   :  { %3104 = vrot.lane.b32.xlu0 %v16841_v55, %s16000_s27 }
 0xde1   :  { %v3587_v30 = vpop.xlane.xlu1 %3586 }
 0xde2   :  { %15603 = vrcp.f32 %v3587_v30 }
 0xde5   :  { %v3590_v18 = vpop.xlane.xlu0 %3589 }
 0xde6   :  { %15605 = vrcp.f32 %v3590_v18 }
 0xdec   :  { %v15604_v28 = vpop.eup %15603 }
 0xded   :  { %v3605_v25 = vpop.xlane.xlu1 %3604  ;;  %v3645_v39 = vmul.f32 %v15604_v28, %v17011_v40 }
 0xdef   :  { %v3608_v58 = vpop.xlane.xlu0 %3607 }
 0xdf0   :  { %v15606_v51 = vpop.eup %15605 }
 0xdf1   :  { %v3646_v57 = vmul.f32 %v15606_v51, %v17017_v53  ;;  %v3593_v63 = vpop.xlane.xlu1 %3592 }
 0xdf2   :  { %15607 = vrcp.f32 %v3593_v63 }
 0xdf3   :  { %v3596_v50 = vpop.xlane.xlu0 %3595  ;;  %v3660_v48 = vpack.c.bf16 %v3646_v57, %v3645_v39 }
 0xdf4   :  { %15609 = vrcp.f32 %v3596_v50 }
 0xdf5   :  { %v3617_v26 = vpop.xlane.xlu1 %3616  ;;  %14368 = vmatmul.mubr.msk.bf16.vlgmr.msra.gmra.mrb[68].mxu1 %vm499_vm1, %v3660_v48  ;;  %15611 = vrcp.f32 %v3608_v58 }
 0xdf6   :  { %14378 = vmatpush3.bf16.msra.mxu1 %v3093_v12  ;;  %14379 = vmatprep.mubr.msk.bf16.mxu1 %vm15993_vm0, %v15992_v1  ;;  %15613 = vrcp.f32 %v3605_v25 }
 0xdf7   :  { %v3620_v55 = vpop.xlane.xlu0 %3619  ;;  %14389 = vmatprep.subr.bf16.mxu1 %v15992_v1 }
 0xdf9   :  { %v3599_v40 = vpop.xlane.xlu1 %3598 }
 0xdfa   :  { %15615 = vrcp.f32 %v3599_v40 }
 0xdfb   :  { %v3602_v53 = vpop.xlane.xlu0 %3601 }
 0xdfc   :  { %v15608_v11 = vpop.eup %15607  ;;  %15617 = vrcp.f32 %v3602_v53 }
 0xdfd   :  { %v3647_v4 = vmul.f32 %v15608_v11, %v17035_v54  ;;  %v3611_v33 = vpop.xlane.xlu1 %3610  ;;  %15619 = vrcp.f32 %v3620_v55 }
 0xdfe   :  { %v15610_v47 = vpop.eup %15609  ;;  %15621 = vrcp.f32 %v3617_v26 }
 0xdff   :  { %v3648_v32 = vmul.f32 %v15610_v47, %v17039_v24  ;;  %v15612_v12 = vpop.eup %15611  ;;  %v3099_v13 = vpop.permute.xlu0 %3098  ;;  %15623 = vrcp.f32 %v3611_v33 }
 0xe00   :  { %v15614_v49 = vpop.eup %15613  ;;  %v3652_v34 = vmul.f32 %v15612_v12, %v17030_v35 }
 0xe01   :  { %v3661_v27 = vpack.c.bf16 %v3648_v32, %v3647_v4  ;;  %v3623_v23 = vpop.xlane.xlu1 %3622  ;;  %v3651_v24 = vmul.f32 %v15614_v49, %v17025_v38  ;;  %v15207_v49 = vld [vmem:[#allocation5 + $0x40] sm:$0xff]  }
 0xe03   :  { %14374 = vmatmul.mubr.msk.bf16.vlgmr.msra.gmra.mrb[60].mxu0 %vm499_vm1, %v3661_v27  ;;  %v3663_v16 = vpack.c.bf16 %v3652_v34, %v3651_v24  ;;  %v15208_v24 = vld [vmem:[#allocation5 + $0x48] sm:$0xff]  }
 0xe04   :  { %v15616_v31 = vpop.eup %15615  ;;  %14384 = vmatpush3.bf16.msra.mxu0 %v3096_v3  ;;  %14385 = vmatprep.mubr.msk.bf16.mxu0 %vm15993_vm0, %v15992_v1 }
 0xe05   :  { %14395 = vmatprep.subr.bf16.mxu0 %v15992_v1  ;;  %v3649_v7 = vmul.f32 %v15616_v31, %v17052_v17  ;;  %v3102_v3 = vpop.permute.xlu1 %3101 }
 0xe06   :  { %v15618_v54 = vpop.eup %15617 }
 0xe07   :  { %v3650_v6 = vmul.f32 %v15618_v54, %v17056_v61  ;;  %v15620_v44 = vpop.eup %15619 }
 0xe08   :  { %v15622_v35 = vpop.eup %15621  ;;  %v3656_v8 = vmul.f32 %v15620_v44, %v17048_v45  ;;  %v15209_v44 = vld [vmem:[#allocation5 + $0x50] sm:$0xff]  }
 0xe09   :  { %v3662_v36 = vpack.c.bf16 %v3650_v6, %v3649_v7  ;;  %v3655_v38 = vmul.f32 %v15622_v35, %v17044_v46  ;;  %v15624_v30 = vpop.eup %15623 }
 0xe0a   :  { %v3653_v25 = vmul.f32 %v15624_v30, %v17060_v19  ;;  %v15213_v30 = vld [vmem:[#allocation5 + $0x70] sm:$0xff]  }
 0xe0b   :  { %14380 = vmatmul.mubr.msk.bf16.vlgmr.msra.gmra.mrb[72].mxu1 %vm499_vm1, %v3662_v36  ;;  %14386 = vmatmul.mubr.msk.bf16.vlgmr.msra.gmra.mrb[64].mxu0 %vm499_vm1, %v3663_v16  ;;  %v3665_v17 = vpack.c.bf16 %v3656_v8, %v3655_v38  ;;  %v15210_v8 = vld [vmem:[#allocation5 + $0x58] sm:$0xff]  }
 0xe0c   :  { %14390 = vmatpush3.bf16.msra.mxu1 %v3099_v13  ;;  %14396 = vmatpush3.bf16.msra.mxu0 %v3102_v3 }
 0xe0d   :  { %14397 = vmatprep.mubr.msk.bf16.mxu0 %vm15993_vm0, %v15992_v1  ;;  %14391 = vmatprep.mubr.msk.bf16.mxu1 %vm15993_vm0, %v15992_v1 }
 0xe0e   :  { %14401 = vmatprep.subr.bf16.mxu1 %v15992_v1  ;;  %14407 = vmatprep.subr.bf16.mxu0 %v15992_v1 }
 0xe13   :  { %14398 = vmatmul.mubr.msk.bf16.vlgmr.msra.gmra.mrb[68].mxu0 %vm499_vm1, %v3665_v17 }
 0xe14   :  { %14423 = vmatprep.mubr.msk.bf16.mxu0 %vm15993_vm0, %v15992_v1  ;;  %14408 = vmatpush3.bf16.msra.mxu0 %v15207_v49 }
 0xe15   :  { %14409 = vmatprep.subr.bf16.mxu0 %v15992_v1 }
 0xe18   :  { %14410 = vmatpush3.bf16.msra.mxu0 %v15208_v24 }
 0xe19   :  { %14411 = vmatprep.subr.bf16.mxu0 %v15992_v1 }
 0xe1c   :  { %14412 = vmatpush3.bf16.msra.mxu0 %v15209_v44 }
 0xe1d   :  { %14413 = vmatprep.subr.bf16.mxu0 %v15992_v1 }
 0xe20   :  { %14414 = vmatpush3.bf16.msra.mxu0 %v15210_v8 }
 0xe21   :  { %14415 = vmatprep.subr.bf16.mxu0 %v15992_v1 }
 0xe30   :  { %v3614_v45 = vpop.xlane.xlu0 %3613 }
 0xe31   :  { %15625 = vrcp.f32 %v3614_v45  ;;  %v15211_v45 = vld [vmem:[#allocation5 + $0x60] sm:$0xff]  }
 0xe32   :  { %14416 = vmatpush3.bf16.msra.mxu0 %v15211_v45 }
 0xe33   :  { %14417 = vmatprep.subr.bf16.mxu0 %v15992_v1 }
 0xe34   :  { %v3626_v61 = vpop.xlane.xlu0 %3625 }
 0xe35   :  { %15627 = vrcp.f32 %v3626_v61  ;;  %v15212_v61 = vld [vmem:[#allocation5 + $0x68] sm:$0xff]  }
 0xe36   :  { %15629 = vrcp.f32 %v3623_v23  ;;  %14418 = vmatpush3.bf16.msra.mxu0 %v15212_v61 }
 0xe37   :  { %14419 = vmatprep.subr.bf16.mxu0 %v15992_v1 }
 0xe38   :  { %v3105_v51 = vpop.permute.xlu0 %3104 }
 0xe3a   :  { %14420 = vmatpush3.bf16.msra.mxu0 %v15213_v30 }
 0xe3b   :  { %v15626_v18 = vpop.eup %15625  ;;  %14421 = vmatprep.subr.bf16.mxu0 %v15992_v1 }
 0xe3c   :  { %v3654_v28 = vmul.f32 %v15626_v18, %v17074_v10 }
 0xe3e   :  { %v3664_v58 = vpack.c.bf16 %v3654_v28, %v3653_v25  ;;  %v15214_v28 = vld [vmem:[#allocation5 + $0x78] sm:$0xff]  }
 0xe3f   :  { %v15628_v46 = vpop.eup %15627  ;;  %14422 = vmatpush3.bf16.msra.mxu0 %v15214_v28 }
 0xe40   :  { %14392 = vmatmul.mubr.msk.bf16.vlgmr.msra.gmra.mrb[76].mxu1 %vm499_vm1, %v3664_v58  ;;  %v15630_v39 = vpop.eup %15629  ;;  %v3658_v57 = vmul.f32 %v15628_v46, %v17078_v52 }
 0xe41   :  { %14402 = vmatpush3.bf16.msra.mxu1 %v3105_v51  ;;  %14403 = vmatprep.mubr.msk.bf16.mxu1 %vm15993_vm0, %v15992_v1  ;;  %v3657_v63 = vmul.f32 %v15630_v39, %v17064_v56 }
 0xe43   :  { %v3666_v50 = vpack.c.bf16 %v3658_v57, %v3657_v63 }
 0xe48   :  { %14404 = vmatmul.mubr.msk.bf16.vlgmr.msra.gmra.mrb[80].mxu1 %vm499_vm1, %v3666_v50 }
 0xe49   :  { %4775 = vmatprep.mubr.bf16.mxu1 %v15991_v0 }
 0xe7f   :  { %v17128_v19 = vpop.f32.mrb[56].mxu0 }
 0xe80   :  { %v14363_v10 = vpop.f32.mrb[57].mxu0 }
 0xe81   :  { %v17130_v48 = vpop.f32.mrb[58].mxu0 }
 0xe82   :  { %v14364_v26 = vpop.f32.mrb[59].mxu0 }
 0xec8   :  { %v3748_v55 = vpop.f32.mrb[68].mxu1 }
 0xec9   :  { %v14369_v40 = vpop.f32.mrb[69].mxu1 }
 0xeca   :  { %v3751_v53 = vpop.f32.mrb[70].mxu1 }
 0xecb   :  { %v14955_v11 = vpack.i.bf16 %v3751_v53, %v3748_v55  ;;  %v14370_v47 = vpop.f32.mrb[71].mxu1 }
 0xecd   :  { %14956 = vrot.lane.b32.xlu1 %v14955_v11, %s16000_s27 }
 0xed6   :  { %v3792_v52 = vpop.f32.mrb[60].mxu0 }
 0xed7   :  { %v14375_v56 = vpop.f32.mrb[61].mxu0 }
 0xed8   :  { %v3795_v4 = vpop.f32.mrb[62].mxu0 }
 0xed9   :  { %v14960_v32 = vpack.i.bf16 %v3795_v4, %v3792_v52  ;;  %v14376_v33 = vpop.f32.mrb[63].mxu0 }
 0xedb   :  { %14961 = vrot.lane.b32.xlu0 %v14960_v32, %s15999_s23 }
 0xede   :  { %v3836_v27 = vpop.f32.mrb[72].mxu1  ;;  %v3880_v12 = vpop.f32.mrb[64].mxu0 }
 0xedf   :  { %v14381_v31 = vpop.f32.mrb[73].mxu1  ;;  %v14387_v34 = vpop.f32.mrb[65].mxu0 }
 0xee0   :  { %v3839_v23 = vpop.f32.mrb[74].mxu1  ;;  %v3883_v54 = vpop.f32.mrb[66].mxu0 }
 0xee1   :  { %v14965_v7 = vpack.i.bf16 %v3839_v23, %v3836_v27  ;;  %v14970_v6 = vpack.i.bf16 %v3883_v54, %v3880_v12  ;;  %v14382_v36 = vpop.f32.mrb[75].mxu1  ;;  %v14388_v16 = vpop.f32.mrb[67].mxu0 }
 0xee3   :  { %14971 = vrot.lane.b32.xlu0 %v14970_v6, %s19218_s9  ;;  %14966 = vrot.lane.b32.xlu1 %v14965_v7, %s15998_s22 }
 0xee6   :  { %v3968_v13 = vpop.f32.mrb[68].mxu0 }
 0xee7   :  { %v14399_v3 = vpop.f32.mrb[69].mxu0 }
 0xee8   :  { %v3971_v35 = vpop.f32.mrb[70].mxu0 }
 0xee9   :  { %v14980_v38 = vpack.i.bf16 %v3971_v35, %v3968_v13  ;;  %v14400_v17 = vpop.f32.mrb[71].mxu0 }
 0xeeb   :  { %14981 = vrot.lane.b32.xlu0 %v14980_v38, %s15997_s21 }
 0xf13   :  { %v3924_v18 = vpop.f32.mrb[76].mxu1 }
 0xf14   :  { %v14393_v25 = vpop.f32.mrb[77].mxu1 }
 0xf15   :  { %v3927_v58 = vpop.f32.mrb[78].mxu1  ;;  %v13443_v25 = vld [vmem:[%s19201_s6 + $0x1] ss:$0 sm:$0xff] }
 0xf16   :  { %v14975_v46 = vpack.i.bf16 %v3927_v58, %v3924_v18  ;;  %v14394_v51 = vpop.f32.mrb[79].mxu1 }
 0xf18   :  { %14976 = vrot.lane.b32.xlu1 %v14975_v46, %s15996_s25 }
 0xf1b   :  { %v4012_v39 = vpop.f32.mrb[80].mxu1 }
 0xf1c   :  { %v14405_v57 = vpop.f32.mrb[81].mxu1 }
 0xf1d   :  { %v4015_v63 = vpop.f32.mrb[82].mxu1 }
 0xf1e   :  { %v14985_v50 = vpack.i.bf16 %v4015_v63, %v4012_v39  ;;  %v14406_v10 = vpop.f32.mrb[83].mxu1 }
 0xf20   :  { %14986 = vrot.lane.b32.xlu1 %v14985_v50, %s15995_s5 }
 0xf3f   :  { %v14957_v26 = vpop.permute.xlu1 %14956 }
 0xf40   :  { %v14959_v53 = vunpack.i.h.bf16 %v14957_v26  ;;  %v14958_v11 = vunpack.i.l.bf16 %v14957_v26 }
 0xf42   :  { %v4076_v27 = vsel %vm499_vm1, %v17130_v48, %v14959_v53  ;;  %v4075_v12 = vsel %vm499_vm1, %v17128_v19, %v14958_v11 }
 0xf4d   :  { %v14962_v55 = vpop.permute.xlu0 %14961 }
 0xf4e   :  { %v14964_v47 = vunpack.i.h.bf16 %v14962_v55  ;;  %v14963_v52 = vunpack.i.l.bf16 %v14962_v55 }
 0xf50   :  { %v4077_v49 = vsel %vm1470_vm2, %v4075_v12, %v14963_v52  ;;  %v4078_v31 = vsel %vm1470_vm2, %v4076_v27, %v14964_v47 }
 0xf55   :  { %v14967_v40 = vpop.permute.xlu1 %14966  ;;  %v14972_v56 = vpop.permute.xlu0 %14971 }
 0xf56   :  { %v14969_v4 = vunpack.i.h.bf16 %v14967_v40  ;;  %v14968_v32 = vunpack.i.l.bf16 %v14967_v40  ;;  %v14974_v34 = vunpack.i.h.bf16 %v14972_v56  ;;  %v14973_v23 = vunpack.i.l.bf16 %v14972_v56 }
 0xf58   :  { %v4080_v54 = vsel %vm1473_vm3, %v4078_v31, %v14969_v4  ;;  %v4079_v24 = vsel %vm1473_vm3, %v4077_v49, %v14968_v32 }
 0xf59   :  { %v4081_v16 = vsel %vm1476_vm4, %v4079_v24, %v14973_v23  ;;  %v4082_v48 = vsel %vm1476_vm4, %v4080_v54, %v14974_v34 }
 0xf5d   :  { %v14982_v36 = vpop.permute.xlu0 %14981 }
 0xf5e   :  { %v14984_v13 = vunpack.i.h.bf16 %v14982_v36  ;;  %v14983_v3 = vunpack.i.l.bf16 %v14982_v36 }
 0xf8a   :  { %v14977_v33 = vpop.permute.xlu1 %14976 }
 0xf8b   :  { %v14979_v7 = vunpack.i.h.bf16 %v14977_v33  ;;  %v14978_v6 = vunpack.i.l.bf16 %v14977_v33 }
 0xf8d   :  { %v4084_v44 = vsel %vm1479_vm5, %v4082_v48, %v14979_v7  ;;  %v4083_v19 = vsel %vm1479_vm5, %v4081_v16, %v14978_v6 }
 0xf8e   :  { %v4085_v17 = vsel %vm1482_vm6, %v4083_v19, %v14983_v3  ;;  %v4086_v45 = vsel %vm1482_vm6, %v4084_v44, %v14984_v13 }
 0xf92   :  { %v14987_v35 = vpop.permute.xlu1 %14986 }
 0xf93   :  { %v14989_v8 = vunpack.i.h.bf16 %v14987_v35  ;;  %v14988_v38 = vunpack.i.l.bf16 %v14987_v35 }
 0xf95   :  { %v4088_v61 = vsel %vm1485_vm7, %v4086_v45, %v14989_v8  ;;  %v4087_v30 = vsel %vm1485_vm7, %v4085_v17, %v14988_v38 }
 0xf96   :  { %v4089_v18 = vpack.c.bf16 %v4088_v61, %v4087_v30 }
 0xf98   :  { %14424 = vmatmul.mubr.bf16.vlgmr.msra.gmra.mrb[72].mxu0 %v4089_v18 }
0x106b   :  { %v4197_v28 = vpop.f32.mrb[72].mxu0 }
0x106c   :  { %v4198_v58 = vadd.f32 %v13443_v25, %v4197_v28  ;;  %v14425_v46 = vpop.f32.mrb[73].mxu0 }
0x106d   :  { %v4200_v51 = vpop.f32.mrb[74].mxu0 }
0x106e   :  { %v4206_v39 = vcombine.high %v4198_v58, %v4198_v58  ;;  %v4213_v57 = vrot.slane %v4198_v58, %v16201_v37  ;;  %v4201_v63 = vadd.f32 %v13443_v25, %v4200_v51  ;;  %v14426_v50 = vpop.f32.mrb[75].mxu0 }
0x1070   :  { %v4220_v10 = vrot.slane %v4206_v39, %v16201_v37  ;;  %v4221_v26 = vcombine.high %v4213_v57, %v4213_v57  ;;  %v4223_v55 = vcombine.high %v4201_v63, %v4201_v63  ;;  %v4230_v40 = vrot.slane %v4201_v63, %v16201_v37 }
0x1071   :  { %v4248_v11 = vadd.f32 %v4213_v57, %v16803_v41 }
0x1072   :  { %v4222_v53 = vcombine.high %v4220_v10, %v4220_v10  ;;  %v4249_v47 = vadd.f32 %v4221_v26, %v16805_v5  ;;  %v4237_v52 = vrot.slane %v4223_v55, %v16201_v37  ;;  %v4238_v56 = vcombine.high %v4230_v40, %v4230_v40 }
0x1073   :  { %v4250_v4 = vadd.f32 %v4220_v10, %v16807_v42  ;;  %v4252_v12 = vadd.f32 %v4230_v40, %v16815_v2 }
0x1074   :  { %v4251_v32 = vadd.f32 %v4222_v53, %v16809_v59  ;;  %v4268_v33 = vcombine.low %v4248_v11, %v4249_v47  ;;  %v4239_v27 = vcombine.high %v4237_v52, %v4237_v52  ;;  %v4253_v49 = vadd.f32 %v4238_v56, %v16817_v21 }
0x1075   :  { %v4254_v31 = vadd.f32 %v4237_v52, %v16819_v14 }
0x1076   :  { %v4255_v34 = vadd.f32 %v4239_v27, %v16821_v29  ;;  %v4269_v41 = vcombine.low %v4250_v4, %v4251_v32  ;;  %v4285_v23 = vcombine.low %v4252_v12, %v4253_v49  ;;  %v4276_v5 = vrot.slane %v4268_v33, %v16201_v37  ;;  %v15215_v33 = vld [vmem:[#allocation7 + $0x80] ss:$8 sps:$4 sm:$0xff]   ;;  %v15220_v27 = vld [vmem:[#allocation7 + $0x94] ss:$8 sps:$4 sm:$0xff]  }
0x1078   :  { %v4283_v54 = vrot.slane %v4269_v41, %v16201_v37  ;;  %v4286_v24 = vcombine.low %v4254_v31, %v4255_v34  ;;  %v4293_v59 = vrot.slane %v4285_v23, %v16201_v37  ;;  %v15224_v41 = vld [vmem:[#allocation7 + $0xb0] ss:$8 sps:$4 sm:$0xff]   ;;  %v15229_v23 = vld [vmem:[#allocation7 + $0xc4] ss:$8 sps:$4 sm:$0xff]  }
0x107a   :  { %v4284_v42 = vcombine.low %v4276_v5, %v4283_v54  ;;  %v4300_v7 = vrot.slane %v4286_v24, %v16201_v37  ;;  %v15227_v5 = vld [vmem:[#allocation7 + $0xc0] ss:$8 sps:$4 sm:$0xff]   ;;  %v15232_v54 = vld [vmem:[#allocation7 + $0xd4] ss:$8 sps:$4 sm:$0xff]   ;;  %v15230_v24 = vld [vmem:[#allocation7 + $0xd0] ss:$8 sps:$4 sm:$0xff]  }
0x107c   :  { %4304 = vadd.xlane.f32.xlu0 %v4284_v42  ;;  %v4301_v2 = vcombine.low %v4293_v59, %v4300_v7  ;;  %v15235_v42 = vld [vmem:[#allocation7 + $0xe4] ss:$8 sps:$4 sm:$0xff]   ;;  %v15233_v59 = vld [vmem:[#allocation7 + $0xe0] ss:$8 sps:$4 sm:$0xff]   ;;  %v15238_v7 = vld [vmem:[#allocation7 + $0xf4] ss:$8 sps:$4 sm:$0xff]  }
0x107e   :  { %4306 = vadd.xlane.f32.xlu1 %v4301_v2  ;;  %v15236_v2 = vld [vmem:[#allocation7 + $0xf0] ss:$8 sps:$4 sm:$0xff]  }
0x1109   :  { %v4305_v21 = vpop.xlane.xlu0 %4304 }
0x110a   :  { %v4308_v6 = vmul.f32 0.0078125, %v4305_v21  ;;  %v15239_v21 = vld [vmem:[#allocation8 + $0xc0] sm:$0xff]  }
0x110b   :  { %v4307_v14 = vpop.xlane.xlu1 %4306  ;;  %13900 = vmatprep.subr.bf16.mxu0 %v15239_v21 }
0x110c   :  { %v4318_v29 = vrot.slane %v4308_v6, %v16587_v20  ;;  %v4325_v36 = vrot.slane %v4308_v6, %v16590_v9  ;;  %v4332_v16 = vrot.slane %v4308_v6, %v16593_v22  ;;  %v4339_v48 = vrot.slane %v4308_v6, %v16596_v43  ;;  %v15240_v6 = vld [vmem:[#allocation8 + $0x80] sm:$0xff]  }
0x110d   :  { %v4309_v44 = vmul.f32 0.0078125, %v4307_v14  ;;  %v15241_v14 = vld [vmem:[#allocation8 + $0xc8] sm:$0xff]   ;;  %13901 = vmatpush3.bf16.msra.mxu0 %v15240_v6 }
0x110e   :  { %v17185_v19 = vsub.f32 %v4248_v11, %v4318_v29  ;;  %v17187_v13 = vsub.f32 %v4249_v47, %v4325_v36  ;;  %v17189_v3 = vsub.f32 %v4250_v4, %v4332_v16  ;;  %v17191_v35 = vsub.f32 %v4251_v32, %v4339_v48  ;;  %v15217_v32 = vld [vmem:[#allocation7 + $0x84] ss:$8 sps:$4 sm:$0xff]   ;;  %13902 = vmatprep.subr.bf16.mxu0 %v15241_v14  ;;  %v15243_v36 = vld [vmem:[#allocation8 + $0xd0] sm:$0xff]   ;;  %v15245_v48 = vld [vmem:[#allocation8 + $0xd8] sm:$0xff]  }
0x110f   :  { %v4346_v8 = vrot.slane %v4309_v44, %v16587_v20  ;;  %v4353_v38 = vrot.slane %v4309_v44, %v16590_v9  ;;  %v4360_v17 = vrot.slane %v4309_v44, %v16593_v22  ;;  %v4367_v45 = vrot.slane %v4309_v44, %v16596_v43  ;;  %4743 = vmatprep.subr.bf16.mxu1 %v15217_v32  ;;  %v15242_v29 = vld [vmem:[#allocation8 + $0x88] sm:$0xff]   ;;  %v15244_v16 = vld [vmem:[#allocation8 + $0x90] sm:$0xff]   ;;  %v15246_v44 = vld [vmem:[#allocation8 + $0x98] sm:$0xff]  }
0x1110   :  { %v4384_v61 = vmul.f32 %v17185_v19, %v17185_v19  ;;  %v4385_v30 = vmul.f32 %v17187_v13, %v17187_v13  ;;  %v4386_v18 = vmul.f32 %v17189_v3, %v17189_v3  ;;  %v4387_v25 = vmul.f32 %v17191_v35, %v17191_v35  ;;  %4744 = vmatpush1.bf16.msra.mxu1 %v15215_v33 }
0x1111   :  { %v17205_v28 = vsub.f32 %v4252_v12, %v4346_v8  ;;  %v17207_v58 = vsub.f32 %v4253_v49, %v4353_v38  ;;  %v17209_v46 = vsub.f32 %v4254_v31, %v4360_v17  ;;  %v17211_v51 = vsub.f32 %v4255_v34, %v4367_v45  ;;  %v15218_v12 = vld [vmem:[#allocation7 + $0x90] ss:$8 sps:$4 sm:$0xff]   ;;  %4745 = vmatprep.subr.bf16.mxu1 %v15220_v27  ;;  %v15223_v49 = vld [vmem:[#allocation7 + $0xa4] ss:$8 sps:$4 sm:$0xff]   ;;  %v15221_v31 = vld [vmem:[#allocation7 + $0xa0] ss:$8 sps:$4 sm:$0xff]  }
0x1112   :  { %v4400_v39 = vcombine.low %v4384_v61, %v4385_v30  ;;  %v4401_v57 = vcombine.low %v4386_v18, %v4387_v25  ;;  %v15226_v34 = vld [vmem:[#allocation7 + $0xb4] ss:$8 sps:$4 sm:$0xff]   ;;  %13903 = vmatpush3.bf16.msra.mxu0 %v15242_v29  ;;  %v15247_v8 = vld [vmem:[#allocation8 + $0xe0] sm:$0xff]   ;;  %v15249_v17 = vld [vmem:[#allocation8 + $0xe8] sm:$0xff]  }
0x1113   :  { %v4388_v63 = vmul.f32 %v17205_v28, %v17205_v28  ;;  %v4389_v50 = vmul.f32 %v17207_v58, %v17207_v58  ;;  %v4390_v10 = vmul.f32 %v17209_v46, %v17209_v46  ;;  %v4391_v26 = vmul.f32 %v17211_v51, %v17211_v51  ;;  %13904 = vmatprep.subr.bf16.mxu0 %v15243_v36  ;;  %v15248_v38 = vld [vmem:[#allocation8 + $0xa0] sm:$0xff]  }
0x1114   :  { %v4408_v55 = vrot.slane %v4400_v39, %v16201_v37  ;;  %v4415_v40 = vrot.slane %v4401_v57, %v16201_v37  ;;  %4746 = vmatpush1.bf16.msra.mxu1 %v15218_v12  ;;  %v13454_v39 = vld [vmem:[%s19202_s7 + $0x1] ss:$0 sm:$0xff] }
0x1115   :  { %v4417_v53 = vcombine.low %v4388_v63, %v4389_v50  ;;  %v4418_v11 = vcombine.low %v4390_v10, %v4391_v26  ;;  %4747 = vmatprep.subr.bf16.mxu1 %v15223_v49  ;;  %v13455_v63 = vld [vmem:[%s19203_s8 + $0x1] ss:$0 sm:$0xff]  ;;  %v4525_v50 = vcombine.high %v13454_v39, %v13454_v39  ;;  %v4532_v26 = vrot.slane %v13454_v39, %v16201_v37 }
0x1116   :  { %v4416_v47 = vcombine.low %v4408_v55, %v4415_v40  ;;  %13905 = vmatpush3.bf16.msra.mxu0 %v15244_v16  ;;  %v4559_v10 = vcombine.high %v13455_v63, %v13455_v63 }
0x1117   :  { %v4425_v52 = vrot.slane %v4417_v53, %v16201_v37  ;;  %v4432_v56 = vrot.slane %v4418_v11, %v16201_v37  ;;  %13906 = vmatprep.subr.bf16.mxu0 %v15245_v48  ;;  %v4539_v55 = vrot.slane %v4525_v50, %v16201_v37  ;;  %v4566_v53 = vrot.slane %v13455_v63, %v16201_v37 }
0x1118   :  { %4436 = vadd.xlane.f32.xlu0 %v4416_v47  ;;  %4748 = vmatpush1.bf16.msra.mxu1 %v15221_v31  ;;  %v4573_v11 = vrot.slane %v4559_v10, %v16201_v37  ;;  %v4540_v32 = vcombine.high %v4532_v26, %v4532_v26  ;;  %v15250_v10 = vld [vmem:[#allocation8 + $0xa8] sm:$0xff]  }
0x1119   :  { %v4433_v4 = vcombine.low %v4425_v52, %v4432_v56  ;;  %4749 = vmatprep.subr.bf16.mxu1 %v15226_v34  ;;  %v4541_v33 = vcombine.high %v4539_v55, %v4539_v55 }
0x111a   :  { %13907 = vmatpush3.bf16.msra.mxu0 %v15246_v44 }
0x111b   :  { %13908 = vmatprep.subr.bf16.mxu0 %v15247_v8 }
0x111c   :  { %4438 = vadd.xlane.f32.xlu0 %v4433_v4  ;;  %4750 = vmatpush1.bf16.msra.mxu1 %v15224_v41  ;;  %v4574_v41 = vcombine.high %v4566_v53, %v4566_v53 }
0x111d   :  { %4751 = vmatprep.subr.bf16.mxu1 %v15229_v23  ;;  %v4575_v23 = vcombine.high %v4573_v11, %v4573_v11 }
0x111e   :  { %13909 = vmatpush3.bf16.msra.mxu0 %v15248_v38 }
0x111f   :  { %13910 = vmatprep.subr.bf16.mxu0 %v15249_v17 }
0x1120   :  { %4752 = vmatpush1.bf16.msra.mxu1 %v15227_v5 }
0x1121   :  { %4753 = vmatprep.subr.bf16.mxu1 %v15232_v54 }
0x1122   :  { %13911 = vmatpush3.bf16.msra.mxu0 %v15250_v10 }
0x1124   :  { %4754 = vmatpush1.bf16.msra.mxu1 %v15230_v24 }
0x1125   :  { %4755 = vmatprep.subr.bf16.mxu1 %v15235_v42 }
0x1128   :  { %4756 = vmatpush1.bf16.msra.mxu1 %v15233_v59 }
0x1129   :  { %4757 = vmatprep.subr.bf16.mxu1 %v15238_v7 }
0x112c   :  { %4758 = vmatpush1.bf16.msra.mxu1 %v15236_v2 }
0x11a5   :  { %v4437_v45 = vpop.xlane.xlu0 %4436 }
0x11a6   :  { %v4440_v61 = vmul.f32 0.0078125, %v4437_v45 }
0x11a8   :  { %v4442_v30 = vadd.f32 1e-05, %v4440_v61 }
0x11a9   :  { %v4439_v18 = vpop.xlane.xlu0 %4438 }
0x11aa   :  { %15631 = vrsqrt.f32 %v4442_v30  ;;  %v4441_v25 = vmul.f32 0.0078125, %v4439_v18 }
0x11ac   :  { %v4443_v57 = vadd.f32 1e-05, %v4441_v25 }
0x11ae   :  { %15633 = vrsqrt.f32 %v4443_v57 }
0x11b4   :  { %v15632_v40 = vpop.eup %15631 }
0x11b5   :  { %v4454_v47 = vrot.slane %v15632_v40, %v16587_v20  ;;  %v4461_v52 = vrot.slane %v15632_v40, %v16590_v9  ;;  %v4468_v56 = vrot.slane %v15632_v40, %v16593_v22  ;;  %v4475_v4 = vrot.slane %v15632_v40, %v16596_v43  ;;  %v15253_v40 = vld [vmem:[#allocation8 + $0xf8] sm:$0xff]  }
0x11b7   :  { %v4512_v27 = vmul.f32 %v4454_v47, %v17185_v19  ;;  %v4513_v12 = vmul.f32 %v4461_v52, %v17187_v13  ;;  %v4514_v49 = vmul.f32 %v4468_v56, %v17189_v3  ;;  %v4515_v31 = vmul.f32 %v4475_v4, %v17191_v35 }
0x11b8   :  { %v15634_v34 = vpop.eup %15633 }
0x11b9   :  { %v4482_v5 = vrot.slane %v15634_v34, %v16587_v20  ;;  %v4489_v54 = vrot.slane %v15634_v34, %v16590_v9  ;;  %v4496_v24 = vrot.slane %v15634_v34, %v16593_v22  ;;  %v4503_v42 = vrot.slane %v15634_v34, %v16596_v43 }
0x11ba   :  { %v4546_v59 = vmul.f32 %v4532_v26, %v4512_v27  ;;  %v4547_v7 = vmul.f32 %v4540_v32, %v4513_v12  ;;  %v4548_v19 = vmul.f32 %v4539_v55, %v4514_v49  ;;  %v4549_v2 = vmul.f32 %v4541_v33, %v4515_v31 }
0x11bb   :  { %v4516_v13 = vmul.f32 %v4482_v5, %v17205_v28  ;;  %v4517_v3 = vmul.f32 %v4489_v54, %v17207_v58  ;;  %v4518_v35 = vmul.f32 %v4496_v24, %v17209_v46  ;;  %v4519_v21 = vmul.f32 %v4503_v42, %v17211_v51 }
0x11bc   :  { %v17251_v6 = vadd.f32 %v4566_v53, %v4546_v59  ;;  %v17253_v14 = vadd.f32 %v4574_v41, %v4547_v7  ;;  %v17255_v29 = vadd.f32 %v4573_v11, %v4548_v19  ;;  %v17257_v36 = vadd.f32 %v4575_v23, %v4549_v2  ;;  %v13474_v59 = vld [vmem:[%s19207_s12 + $0x1] ss:$0 sm:$0xff] }
0x11bd   :  { %v4550_v16 = vmul.f32 %v4532_v26, %v4516_v13  ;;  %v4551_v48 = vmul.f32 %v4540_v32, %v4517_v3  ;;  %v4552_v44 = vmul.f32 %v4539_v55, %v4518_v35  ;;  %v4553_v8 = vmul.f32 %v4541_v33, %v4519_v21  ;;  %v15251_v26 = vld [vmem:[#allocation8 + $0xf0] sm:$0xff]  }
0x11be   :  { %v4596_v28 = vcombine.low %v17251_v6, %v17253_v14  ;;  %v4597_v58 = vcombine.low %v17255_v29, %v17257_v36  ;;  %v15252_v55 = vld [vmem:[#allocation8 + $0xb0] sm:$0xff]   ;;  %13912 = vmatprep.subr.bf16.mxu0 %v15251_v26 }
0x11bf   :  { %v17263_v46 = vadd.f32 %v4566_v53, %v4550_v16  ;;  %v17265_v51 = vadd.f32 %v4574_v41, %v4551_v48  ;;  %v17267_v38 = vadd.f32 %v4573_v11, %v4552_v44  ;;  %v17269_v17 = vadd.f32 %v4575_v23, %v4553_v8  ;;  %13913 = vmatpush3.bf16.msra.mxu0 %v15252_v55  ;;  %v15254_v53 = vld [vmem:[#allocation8 + $0xb8] sm:$0xff]   ;;  %v13456_v11 = vld [vmem:[%s19205_s10 + $0x2] sm:$0x3] }
0x11c0   :  { %v4604_v45 = vrot.slane %v4596_v28, %v16201_v37  ;;  %v4611_v61 = vrot.slane %v4597_v58, %v16201_v37  ;;  %13914 = vmatprep.subr.bf16.mxu0 %v15253_v40  ;;  %v4656_v47 = vrot.slane %v13456_v11, %v16229_v60  ;;  %v4660_v52 = vrot.slane %v13456_v11, %v16235_v62 }
0x11c1   :  { %v4613_v30 = vcombine.low %v17263_v46, %v17265_v51  ;;  %v4614_v18 = vcombine.low %v17267_v38, %v17269_v17 }
0x11c2   :  { %v4612_v57 = vcombine.low %v4604_v45, %v4611_v61 }
0x11c3   :  { %v4621_v25 = vrot.slane %v4613_v30, %v16201_v37  ;;  %v4628_v39 = vrot.slane %v4614_v18, %v16201_v37  ;;  %13915 = vmatpush3.bf16.msra.mxu0 %v15254_v53 }
0x11c4   :  { %14427 = vmatprep.subr.bf16.mxu0 %v15992_v1 }
0x11c5   :  { %v4629_v63 = vcombine.low %v4621_v25, %v4628_v39 }
0x11c7   :  { %v4632_v50 = vpack.c.bf16 %v4629_v63, %v4612_v57 }
0x11c9   :  { %4776 = vmatmul.mubr.bf16.vlgmr.msra.gmra.mrb[84].mxu1 %v4632_v50 }
0x11ca   :  { %5610 = vmatprep.mubr.bf16.mxu1 %v15991_v0 }
0x129c   :  { %v4777_v56 = vpop.f32.mrb[84].mxu1 }
0x129d   :  { %v4778_v4 = vadd.f32 %v4777_v56, %v4656_v47  ;;  %v4779_v32 = vpop.f32.mrb[85].mxu1 }
0x129e   :  { %v4780_v33 = vadd.f32 %v4779_v32, %v4660_v52  ;;  %v4781_v27 = vpop.f32.mrb[86].mxu1 }
0x129f   :  { %v4782_v12 = vadd.f32 %v4781_v27, %v4656_v47  ;;  %v4783_v49 = vpop.f32.mrb[87].mxu1  ;;  %v4786_v34 = vmax.f32 %v4778_v4, 0.0 }
0x12a0   :  { %v4784_v31 = vadd.f32 %v4783_v49, %v4660_v52  ;;  %v4787_v23 = vmax.f32 %v4780_v33, 0.0 }
0x12a1   :  { %v4788_v41 = vmax.f32 %v4782_v12, 0.0 }
0x12a2   :  { %v4789_v5 = vmax.f32 %v4784_v31, 0.0 }
0x12a3   :  { %v4790_v54 = vpack.c.bf16 %v4788_v41, %v4786_v34 }
0x12a4   :  { %v4791_v24 = vpack.c.bf16 %v4789_v5, %v4787_v23 }
0x12a6   :  { %4961 = vmatprep.mubr.bf16.mxu0 %v4791_v24 }
0x12a7   :  { %4962 = vmatmul.mubr.bf16.vlgmr.msra.gmra.mrb[76].mxu0 %v4790_v54 }
0x12a8   :  { %14443 = vmatprep.mubr.msk.bf16.mxu0 %vm15993_vm0, %v15992_v1 }
0x137a   :  { %v13916_v42 = vpop.f32.mrb[76].mxu0 }
0x137b   :  { %v13917_v7 = vpop.f32.mrb[77].mxu0 }
0x137c   :  { %v13918_v19 = vadd.f32 %v13917_v7, %v13916_v42  ;;  %v13919_v2 = vpop.f32.mrb[78].mxu0 }
0x137d   :  { %v13920_v13 = vpop.f32.mrb[79].mxu0 }
0x137e   :  { %v4964_v3 = vadd.f32 %v13918_v19, %v13474_v59  ;;  %v13921_v35 = vadd.f32 %v13920_v13, %v13919_v2 }
0x1380   :  { %v4972_v21 = vcombine.high %v4964_v3, %v4964_v3  ;;  %v4979_v16 = vrot.slane %v4964_v3, %v16201_v37  ;;  %v4967_v48 = vadd.f32 %v13921_v35, %v13474_v59 }
0x1382   :  { %v4986_v44 = vrot.slane %v4972_v21, %v16201_v37  ;;  %v4987_v8 = vcombine.high %v4979_v16, %v4979_v16  ;;  %v4989_v28 = vcombine.high %v4967_v48, %v4967_v48  ;;  %v4996_v58 = vrot.slane %v4967_v48, %v16201_v37 }
0x1383   :  { %v5014_v61 = vadd.f32 %v4979_v16, %v17251_v6 }
0x1384   :  { %v4988_v45 = vcombine.high %v4986_v44, %v4986_v44  ;;  %v5015_v30 = vadd.f32 %v4987_v8, %v17253_v14  ;;  %v5003_v18 = vrot.slane %v4989_v28, %v16201_v37  ;;  %v5004_v25 = vcombine.high %v4996_v58, %v4996_v58 }
0x1385   :  { %v5016_v39 = vadd.f32 %v4986_v44, %v17255_v29  ;;  %v5018_v10 = vadd.f32 %v4996_v58, %v17263_v46 }
0x1386   :  { %v5005_v57 = vcombine.high %v5003_v18, %v5003_v18  ;;  %v5017_v63 = vadd.f32 %v4988_v45, %v17257_v36  ;;  %v5034_v50 = vcombine.low %v5014_v61, %v5015_v30  ;;  %v5019_v26 = vadd.f32 %v5004_v25, %v17265_v51 }
0x1387   :  { %v5020_v55 = vadd.f32 %v5003_v18, %v17267_v38 }
0x1388   :  { %v5035_v40 = vcombine.low %v5016_v39, %v5017_v63  ;;  %v5021_v6 = vadd.f32 %v5005_v57, %v17269_v17  ;;  %v5051_v53 = vcombine.low %v5018_v10, %v5019_v26  ;;  %v5042_v14 = vrot.slane %v5034_v50, %v16201_v37  ;;  %v15257_v57 = vld [vmem:[#allocation2 + $0x184] ss:$12 sps:$4 sm:$0xff]   ;;  %v15258_v50 = vld [vmem:[#allocation2 + $0x188] ss:$12 sps:$4 sm:$0xff]  }
0x1389   :  { %5578 = vmatprep.subr.bf16.mxu1 %v15257_v57  ;;  %14428 = vmatpush3.bf16.msra.mxu0 %v15258_v50 }
0x138a   :  { %v5049_v11 = vrot.slane %v5035_v40, %v16201_v37  ;;  %v5052_v47 = vcombine.low %v5020_v55, %v5021_v6  ;;  %v5059_v52 = vrot.slane %v5051_v53, %v16201_v37  ;;  %14429 = vmatprep.subr.bf16.mxu0 %v15992_v1  ;;  %v15263_v40 = vld [vmem:[#allocation2 + $0x1b0] ss:$12 sps:$4 sm:$0xff]   ;;  %v15266_v53 = vld [vmem:[#allocation2 + $0x1b8] ss:$12 sps:$4 sm:$0xff]  }
0x138c   :  { %v5050_v29 = vcombine.low %v5042_v14, %v5049_v11  ;;  %v5066_v36 = vrot.slane %v5052_v47, %v16201_v37  ;;  %v15269_v14 = vld [vmem:[#allocation2 + $0x1cc] ss:$12 sps:$4 sm:$0xff]   ;;  %v15267_v11 = vld [vmem:[#allocation2 + $0x1c8] ss:$12 sps:$4 sm:$0xff]   ;;  %v15270_v47 = vld [vmem:[#allocation2 + $0x1d0] ss:$12 sps:$4 sm:$0xff]  }
0x138e   :  { %5070 = vadd.xlane.f32.xlu1 %v5050_v29  ;;  %v5067_v46 = vcombine.low %v5059_v52, %v5066_v36  ;;  %v15273_v29 = vld [vmem:[#allocation2 + $0x1e4] ss:$12 sps:$4 sm:$0xff]   ;;  %v15271_v52 = vld [vmem:[#allocation2 + $0x1e0] ss:$12 sps:$4 sm:$0xff]   ;;  %v15274_v36 = vld [vmem:[#allocation2 + $0x1e8] ss:$12 sps:$4 sm:$0xff]  }
0x1390   :  { %5072 = vadd.xlane.f32.xlu0 %v5067_v46  ;;  %v15277_v46 = vld [vmem:[#allocation2 + $0x1fc] ss:$12 sps:$4 sm:$0xff]  }
0x141b   :  { %v5071_v51 = vpop.xlane.xlu1 %5070 }
0x141c   :  { %v5074_v56 = vmul.f32 0.0078125, %v5071_v51  ;;  %v15275_v51 = vld [vmem:[#allocation2 + $0x1f8] ss:$12 sps:$4 sm:$0xff]  }
0x141d   :  { %v5073_v38 = vpop.xlane.xlu0 %5072 }
0x141e   :  { %v5084_v4 = vrot.slane %v5074_v56, %v16587_v20  ;;  %v5091_v17 = vrot.slane %v5074_v56, %v16590_v9  ;;  %v5098_v32 = vrot.slane %v5074_v56, %v16593_v22  ;;  %v5105_v33 = vrot.slane %v5074_v56, %v16596_v43  ;;  %v15278_v56 = vld [vmem:[#allocation2 + $0x200] ss:$12 sps:$4 sm:$0xff]  }
0x141f   :  { %v5075_v27 = vmul.f32 0.0078125, %v5073_v38  ;;  %v15281_v38 = vld [vmem:[#allocation2 + $0x214] ss:$12 sps:$4 sm:$0xff]  }
0x1420   :  { %v17311_v12 = vsub.f32 %v5014_v61, %v5084_v4  ;;  %v17313_v49 = vsub.f32 %v5015_v30, %v5091_v17  ;;  %v17315_v31 = vsub.f32 %v5016_v39, %v5098_v32  ;;  %v17317_v34 = vsub.f32 %v5017_v63, %v5105_v33  ;;  %v15255_v63 = vld [vmem:[#allocation2 + $0x180] ss:$12 sps:$4 sm:$0xff]   ;;  %v15279_v4 = vld [vmem:[#allocation2 + $0x210] ss:$12 sps:$4 sm:$0xff]   ;;  %v15282_v17 = vld [vmem:[#allocation2 + $0x218] ss:$12 sps:$4 sm:$0xff]  }
0x1421   :  { %v5112_v41 = vrot.slane %v5075_v27, %v16587_v20  ;;  %v5119_v23 = vrot.slane %v5075_v27, %v16590_v9  ;;  %v5126_v5 = vrot.slane %v5075_v27, %v16593_v22  ;;  %v5133_v54 = vrot.slane %v5075_v27, %v16596_v43  ;;  %5579 = vmatpush1.bf16.msra.mxu1 %v15255_v63  ;;  %v15285_v32 = vld [vmem:[#allocation2 + $0x22c] ss:$12 sps:$4 sm:$0xff]   ;;  %v15283_v33 = vld [vmem:[#allocation2 + $0x228] ss:$12 sps:$4 sm:$0xff]   ;;  %v15286_v27 = vld [vmem:[#allocation2 + $0x230] ss:$12 sps:$4 sm:$0xff]  }
0x1422   :  { %v5150_v24 = vmul.f32 %v17311_v12, %v17311_v12  ;;  %v5151_v42 = vmul.f32 %v17313_v49, %v17313_v49  ;;  %v5152_v59 = vmul.f32 %v17315_v31, %v17315_v31  ;;  %v5153_v7 = vmul.f32 %v17317_v34, %v17317_v34 }
0x1423   :  { %v17331_v19 = vsub.f32 %v5018_v10, %v5112_v41  ;;  %v17333_v2 = vsub.f32 %v5019_v26, %v5119_v23  ;;  %v17335_v13 = vsub.f32 %v5020_v55, %v5126_v5  ;;  %v17337_v3 = vsub.f32 %v5021_v6, %v5133_v54  ;;  %v15261_v10 = vld [vmem:[#allocation2 + $0x19c] ss:$12 sps:$4 sm:$0xff]   ;;  %v15259_v26 = vld [vmem:[#allocation2 + $0x198] ss:$12 sps:$4 sm:$0xff]   ;;  %v15262_v55 = vld [vmem:[#allocation2 + $0x1a0] ss:$12 sps:$4 sm:$0xff]  }
0x1424   :  { %v5166_v35 = vcombine.low %v5150_v24, %v5151_v42  ;;  %v5167_v21 = vcombine.low %v5152_v59, %v5153_v7  ;;  %5580 = vmatprep.subr.bf16.mxu1 %v15261_v10  ;;  %14430 = vmatpush3.bf16.msra.mxu0 %v15262_v55  ;;  %v15265_v6 = vld [vmem:[#allocation2 + $0x1b4] ss:$12 sps:$4 sm:$0xff]  }
0x1425   :  { %v5154_v16 = vmul.f32 %v17331_v19, %v17331_v19  ;;  %v5155_v48 = vmul.f32 %v17333_v2, %v17333_v2  ;;  %v5156_v44 = vmul.f32 %v17335_v13, %v17335_v13  ;;  %v5157_v8 = vmul.f32 %v17337_v3, %v17337_v3  ;;  %5581 = vmatpush1.bf16.msra.mxu1 %v15259_v26  ;;  %v13493_v42 = vld [vmem:[%s19208_s13 + $0x1] ss:$0 sm:$0xff] }
0x1426   :  { %v5174_v28 = vrot.slane %v5166_v35, %v16201_v37  ;;  %v5181_v58 = vrot.slane %v5167_v21, %v16201_v37  ;;  %14431 = vmatprep.subr.bf16.mxu0 %v15992_v1  ;;  %5582 = vmatprep.subr.bf16.mxu1 %v15265_v6  ;;  %v13494_v7 = vld [vmem:[%s19209_s14 + $0x1] ss:$0 sm:$0xff]  ;;  %v5291_v35 = vcombine.high %v13493_v42, %v13493_v42 }
0x1427   :  { %v5183_v45 = vcombine.low %v5154_v16, %v5155_v48  ;;  %v5184_v61 = vcombine.low %v5156_v44, %v5157_v8  ;;  %v5325_v21 = vcombine.high %v13494_v7, %v13494_v7  ;;  %v5298_v16 = vrot.slane %v13493_v42, %v16201_v37 }
0x1428   :  { %v5182_v30 = vcombine.low %v5174_v28, %v5181_v58  ;;  %14432 = vmatpush3.bf16.msra.mxu0 %v15266_v53  ;;  %v5305_v48 = vrot.slane %v5291_v35, %v16201_v37  ;;  %v5332_v44 = vrot.slane %v13494_v7, %v16201_v37 }
0x1429   :  { %v5191_v18 = vrot.slane %v5183_v45, %v16201_v37  ;;  %v5198_v25 = vrot.slane %v5184_v61, %v16201_v37  ;;  %5583 = vmatpush1.bf16.msra.mxu1 %v15263_v40  ;;  %14433 = vmatprep.subr.bf16.mxu0 %v15992_v1  ;;  %v5339_v8 = vrot.slane %v5325_v21, %v16201_v37  ;;  %v13495_v21 = vld [vmem:[%s19199_s4 + $0x6] sm:$0x7] }
0x142a   :  { %5202 = vadd.xlane.f32.xlu1 %v5182_v30  ;;  %5584 = vmatprep.subr.bf16.mxu1 %v15269_v14  ;;  %v5306_v58 = vcombine.high %v5298_v16, %v5298_v16  ;;  %v5307_v45 = vcombine.high %v5305_v48, %v5305_v48 }
0x142b   :  { %v5199_v39 = vcombine.low %v5191_v18, %v5198_v25  ;;  %v5341_v57 = vcombine.high %v5339_v8, %v5339_v8 }
0x142c   :  { %14434 = vmatpush3.bf16.msra.mxu0 %v15270_v47 }
0x142d   :  { %5204 = vadd.xlane.f32.xlu0 %v5199_v39  ;;  %5585 = vmatpush1.bf16.msra.mxu1 %v15267_v11  ;;  %v5340_v39 = vcombine.high %v5332_v44, %v5332_v44 }
0x142e   :  { %5586 = vmatprep.subr.bf16.mxu1 %v15273_v29  ;;  %14435 = vmatprep.subr.bf16.mxu0 %v15992_v1 }
0x1430   :  { %14436 = vmatpush3.bf16.msra.mxu0 %v15274_v36 }
0x1431   :  { %5587 = vmatpush1.bf16.msra.mxu1 %v15271_v52  ;;  %14437 = vmatprep.subr.bf16.mxu0 %v15992_v1 }
0x1432   :  { %5588 = vmatprep.subr.bf16.mxu1 %v15277_v46 }
0x1434   :  { %14438 = vmatpush3.bf16.msra.mxu0 %v15278_v56 }
0x1435   :  { %5589 = vmatpush1.bf16.msra.mxu1 %v15275_v51  ;;  %14439 = vmatprep.subr.bf16.mxu0 %v15992_v1 }
0x1436   :  { %5590 = vmatprep.subr.bf16.mxu1 %v15281_v38 }
0x1438   :  { %14440 = vmatpush3.bf16.msra.mxu0 %v15282_v17 }
0x1439   :  { %5591 = vmatpush1.bf16.msra.mxu1 %v15279_v4  ;;  %14441 = vmatprep.subr.bf16.mxu0 %v15992_v1 }
0x143a   :  { %5592 = vmatprep.subr.bf16.mxu1 %v15285_v32 }
0x143c   :  { %14442 = vmatpush3.bf16.msra.mxu0 %v15286_v27 }
0x143d   :  { %5593 = vmatpush1.bf16.msra.mxu1 %v15283_v33  ;;  %14471 = vmatprep.subr.bf16.mxu0 %v15992_v1 }
0x143e   :  { %14447 = vmatprep.subr.bf16.mxu1 %v15992_v1 }
0x14b7   :  { %v5203_v41 = vpop.xlane.xlu1 %5202 }
0x14b8   :  { %v5206_v23 = vmul.f32 0.0078125, %v5203_v41 }
0x14ba   :  { %v5208_v5 = vadd.f32 1e-05, %v5206_v23  ;;  %v5205_v54 = vpop.xlane.xlu0 %5204 }
0x14bb   :  { %v5207_v24 = vmul.f32 0.0078125, %v5205_v54 }
0x14bc   :  { %15635 = vrsqrt.f32 %v5208_v5 }
0x14bd   :  { %v5209_v59 = vadd.f32 1e-05, %v5207_v24 }
0x14bf   :  { %15637 = vrsqrt.f32 %v5209_v59 }
0x14c6   :  { %v15636_v28 = vpop.eup %15635 }
0x14c7   :  { %v5220_v61 = vrot.slane %v15636_v28, %v16587_v20  ;;  %v5227_v30 = vrot.slane %v15636_v28, %v16590_v9  ;;  %v5234_v18 = vrot.slane %v15636_v28, %v16593_v22  ;;  %v5241_v25 = vrot.slane %v15636_v28, %v16596_v43 }
0x14c8   :  { %v5442_v28 = vrot.slane %v13495_v21, %v16235_v62 }
0x14c9   :  { %v15638_v63 = vpop.eup %15637  ;;  %v5278_v50 = vmul.f32 %v5220_v61, %v17311_v12  ;;  %v5279_v10 = vmul.f32 %v5227_v30, %v17313_v49  ;;  %v5280_v26 = vmul.f32 %v5234_v18, %v17315_v31  ;;  %v5281_v55 = vmul.f32 %v5241_v25, %v17317_v34 }
0x14ca   :  { %v5248_v40 = vrot.slane %v15638_v63, %v16587_v20  ;;  %v5255_v6 = vrot.slane %v15638_v63, %v16590_v9  ;;  %v5262_v53 = vrot.slane %v15638_v63, %v16593_v22  ;;  %v5269_v14 = vrot.slane %v15638_v63, %v16596_v43 }
0x14cb   :  { %v5312_v11 = vmul.f32 %v5298_v16, %v5278_v50  ;;  %v5313_v47 = vmul.f32 %v5306_v58, %v5279_v10  ;;  %v5314_v29 = vmul.f32 %v5305_v48, %v5280_v26  ;;  %v5315_v52 = vmul.f32 %v5307_v45, %v5281_v55 }
0x14cc   :  { %v5282_v12 = vmul.f32 %v5248_v40, %v17331_v19  ;;  %v5283_v49 = vmul.f32 %v5255_v6, %v17333_v2  ;;  %v5284_v31 = vmul.f32 %v5262_v53, %v17335_v13  ;;  %v5285_v34 = vmul.f32 %v5269_v14, %v17337_v3 }
0x14cd   :  { %v17386_v36 = vadd.f32 %v5332_v44, %v5312_v11  ;;  %v17388_v46 = vadd.f32 %v5340_v39, %v5313_v47  ;;  %v17390_v51 = vadd.f32 %v5339_v8, %v5314_v29  ;;  %v17392_v56 = vadd.f32 %v5341_v57, %v5315_v52 }
0x14ce   :  { %v5316_v38 = vmul.f32 %v5298_v16, %v5282_v12  ;;  %v5317_v4 = vmul.f32 %v5306_v58, %v5283_v49  ;;  %v5318_v17 = vmul.f32 %v5305_v48, %v5284_v31  ;;  %v5319_v32 = vmul.f32 %v5307_v45, %v5285_v34 }
0x14cf   :  { %v5362_v19 = vcombine.low %v17386_v36, %v17388_v46  ;;  %v5363_v2 = vcombine.low %v17390_v51, %v17392_v56  ;;  %v5438_v16 = vrot.slane %v13495_v21, %v16229_v60  ;;  %v5446_v48 = vrot.slane %v13495_v21, %v16256_v15 }
0x14d0   :  { %v17398_v13 = vadd.f32 %v5332_v44, %v5316_v38  ;;  %v17400_v3 = vadd.f32 %v5340_v39, %v5317_v4  ;;  %v17402_v33 = vadd.f32 %v5339_v8, %v5318_v17  ;;  %v17404_v27 = vadd.f32 %v5341_v57, %v5319_v32 }
0x14d1   :  { %v5370_v41 = vrot.slane %v5362_v19, %v16201_v37  ;;  %v5377_v23 = vrot.slane %v5363_v2, %v16201_v37 }
0x14d2   :  { %v5379_v5 = vcombine.low %v17398_v13, %v17400_v3  ;;  %v5380_v54 = vcombine.low %v17402_v33, %v17404_v27 }
0x14d3   :  { %v5378_v59 = vcombine.low %v5370_v41, %v5377_v23 }
0x14d4   :  { %v5387_v24 = vrot.slane %v5379_v5, %v16201_v37  ;;  %v5394_v42 = vrot.slane %v5380_v54, %v16201_v37 }
0x14d6   :  { %v5395_v7 = vcombine.low %v5387_v24, %v5394_v42 }
0x14d8   :  { %v5398_v35 = vpack.c.bf16 %v5395_v7, %v5378_v59 }
0x14da   :  { %5611 = vmatmul.mubr.bf16.vlgmr.msra.gmra.mrb[88].mxu1 %v5398_v35  ;;  %14444 = vmatmul.mubr.bf16.vlgmr.msra.gmra.mrb[80].mxu0 %v5398_v35  ;;  %v17488_v35 = vld [vmem:[%s19197_s2] sm:$0xff] }
0x14db   :  { %14449 = vmatprep.mubr.msk.bf16.mxu1 %vm15993_vm0, %v15992_v1  ;;  %14473 = vmatprep.mubr.msk.bf16.mxu0 %vm15993_vm0, %v15992_v1 }
0x15ad   :  { %v5612_v44 = vpop.f32.mrb[88].mxu1  ;;  %v5655_v8 = vpop.f32.mrb[80].mxu0 }
0x15ae   :  { %v5614_v58 = vpop.f32.mrb[89].mxu1  ;;  %v14445_v45 = vpop.f32.mrb[81].mxu0  ;;  %v5613_v18 = vadd.f32 %v5612_v44, %v5438_v16  ;;  %v5656_v25 = vadd.f32 %v5655_v8, %v5446_v48  ;;  %v17496_v44 = vld [vmem:[%s19197_s2 + $0x8] sm:$0xff] }
0x15af   :  { %v5616_v61 = vpop.f32.mrb[90].mxu1  ;;  %v5658_v30 = vpop.f32.mrb[82].mxu0  ;;  %v5615_v10 = vadd.f32 %v5614_v58, %v5442_v28 }
0x15b0   :  { %v5617_v39 = vadd.f32 %v5616_v61, %v5438_v16  ;;  %v5659_v57 = vadd.f32 %v5658_v30, %v5446_v48  ;;  %v5618_v63 = vpop.f32.mrb[91].mxu1  ;;  %v14446_v50 = vpop.f32.mrb[83].mxu0 }
0x15b1   :  { %v5619_v26 = vadd.f32 %v5618_v63, %v5442_v28 }
0x15b2   :  { %v5662_v55 = vpack.c.bf16 %v5617_v39, %v5613_v18  ;;  %v17424_v40 = vpack.c.bf16 %v5659_v57, %v5656_v25 }
0x15b3   :  { %v5663_v6 = vpack.c.bf16 %v5619_v26, %v5615_v10 }
0x15b4   :  { %5666 = vrot.lane.b32.xlu0 %v5662_v55, %s15995_s5 }
0x15b5   :  { %5681 = vrot.lane.b32.xlu1 %v5663_v6, %s15995_s5  ;;  %v5721_v53 = vsel %vm499_vm1, %v5663_v6, 0 }
0x15b6   :  { %14448 = vmatpush3.bf16.xpose.msra.mxu1 %v5721_v53 }
0x15b7   :  { %14453 = vmatprep.subr.bf16.mxu1 %v15992_v1 }
0x15b8   :  { %5685 = vrot.lane.b32.xlu0 %v5663_v6, %s15996_s25 }
0x15b9   :  { %5683 = vrot.lane.b32.xlu1 %v5663_v6, %s15997_s21 }
0x15bc   :  { %5670 = vrot.lane.b32.xlu0 %v5662_v55, %s15996_s25 }
0x15bd   :  { %5668 = vrot.lane.b32.xlu1 %v5662_v55, %s15997_s21  ;;  %14450 = vmatmul.mubr.msk.bf16.vlgmr.msra.gmra.mrb[92].mxu1 %vm499_vm1, %v5662_v55 }
0x15be   :  { %14455 = vmatprep.mubr.msk.bf16.mxu1 %vm15993_vm0, %v15992_v1 }
0x15c0   :  { %5672 = vrot.lane.b32.xlu0 %v5662_v55, %s19218_s9 }
0x15c1   :  { %5687 = vrot.lane.b32.xlu1 %v5663_v6, %s19218_s9 }
0x15c4   :  { %5674 = vrot.lane.b32.xlu0 %v5662_v55, %s15998_s22 }
0x15c5   :  { %5689 = vrot.lane.b32.xlu1 %v5663_v6, %s15998_s22 }
0x15c8   :  { %5676 = vrot.lane.b32.xlu0 %v5662_v55, %s15999_s23 }
0x15c9   :  { %5691 = vrot.lane.b32.xlu1 %v5663_v6, %s15999_s23 }
0x15cd   :  { %5693 = vrot.lane.b32.xlu1 %v5663_v6, %s16000_s27 }
0x15d1   :  { %5678 = vrot.lane.b32.xlu1 %v5662_v55, %s16000_s27 }
0x15d5   :  { %5696 = vrot.lane.b32.xlu1 %v17424_v40, %s15995_s5 }
0x1626   :  { %v5667_v14 = vpop.permute.xlu0 %5666 }
0x1627   :  { %v5682_v11 = vpop.permute.xlu1 %5681 }
0x1628   :  { %v5768_v47 = vsel %vm499_vm1, %v5682_v11, 0 }
0x1629   :  { %14454 = vmatpush3.bf16.xpose.msra.mxu1 %v5768_v47 }
0x162a   :  { %14459 = vmatprep.subr.bf16.mxu1 %v15992_v1  ;;  %v5686_v29 = vpop.permute.xlu0 %5685 }
0x162b   :  { %v5684_v52 = vpop.permute.xlu1 %5683  ;;  %v5862_v32 = vsel %vm499_vm1, %v5686_v29, 0 }
0x162c   :  { %v5815_v49 = vsel %vm499_vm1, %v5684_v52, 0 }
0x162e   :  { %v5671_v31 = vpop.permute.xlu0 %5670 }
0x162f   :  { %v5669_v12 = vpop.permute.xlu1 %5668 }
0x1630   :  { %14456 = vmatmul.mubr.msk.bf16.vlgmr.msra.gmra.mrb[96].mxu1 %vm499_vm1, %v5667_v14 }
0x1631   :  { %14460 = vmatpush3.bf16.xpose.msra.mxu1 %v5815_v49  ;;  %14461 = vmatprep.mubr.msk.bf16.mxu1 %vm15993_vm0, %v15992_v1 }
0x1632   :  { %14465 = vmatprep.subr.bf16.mxu1 %v15992_v1  ;;  %v5673_v4 = vpop.permute.xlu0 %5672 }
0x1633   :  { %v5688_v34 = vpop.permute.xlu1 %5687 }
0x1634   :  { %v5909_v38 = vsel %vm499_vm1, %v5688_v34, 0 }
0x1635   :  { %14472 = vmatpush3.bf16.xpose.msra.mxu0 %v5909_v38 }
0x1636   :  { %14483 = vmatprep.subr.bf16.mxu0 %v15992_v1  ;;  %v5675_v41 = vpop.permute.xlu0 %5674 }
0x1637   :  { %v5690_v17 = vpop.permute.xlu1 %5689 }
0x1638   :  { %14462 = vmatmul.mubr.msk.bf16.vlgmr.msra.gmra.mrb[100].mxu1 %vm499_vm1, %v5669_v12  ;;  %v5956_v23 = vsel %vm499_vm1, %v5690_v17, 0 }
0x1639   :  { %14466 = vmatpush3.bf16.xpose.msra.mxu1 %v5862_v32  ;;  %14467 = vmatprep.mubr.msk.bf16.mxu1 %vm15993_vm0, %v15992_v1 }
0x163a   :  { %14477 = vmatprep.subr.bf16.mxu1 %v15992_v1  ;;  %v5677_v5 = vpop.permute.xlu0 %5676 }
0x163b   :  { %v5692_v19 = vpop.permute.xlu1 %5691 }
0x163c   :  { %v6003_v2 = vsel %vm499_vm1, %v5692_v19, 0  ;;  %14474 = vmatmul.mubr.msk.bf16.vlgmr.msra.gmra.mrb[84].mxu0 %vm499_vm1, %v5673_v4 }
0x163d   :  { %14484 = vmatpush3.bf16.xpose.msra.mxu0 %v6003_v2  ;;  %14485 = vmatprep.mubr.msk.bf16.mxu0 %vm15993_vm0, %v15992_v1 }
0x163e   :  { %14495 = vmatprep.subr.bf16.mxu0 %v15992_v1 }
0x163f   :  { %v5694_v54 = vpop.permute.xlu1 %5693 }
0x1640   :  { %14468 = vmatmul.mubr.msk.bf16.vlgmr.msra.gmra.mrb[104].mxu1 %vm499_vm1, %v5671_v31  ;;  %v6050_v24 = vsel %vm499_vm1, %v5694_v54, 0 }
0x1641   :  { %14478 = vmatpush3.bf16.xpose.msra.mxu1 %v5956_v23  ;;  %14479 = vmatprep.mubr.msk.bf16.mxu1 %vm15993_vm0, %v15992_v1 }
0x1642   :  { %14489 = vmatprep.subr.bf16.mxu1 %v15992_v1 }
0x1643   :  { %v5679_v42 = vpop.permute.xlu1 %5678 }
0x1644   :  { %14486 = vmatmul.mubr.msk.bf16.vlgmr.msra.gmra.mrb[88].mxu0 %vm499_vm1, %v5677_v5 }
0x1645   :  { %14496 = vmatpush3.bf16.msra.mxu0 %v17424_v40  ;;  %14497 = vmatprep.mubr.msk.bf16.mxu0 %vm15993_vm0, %v15992_v1 }
0x1646   :  { %14507 = vmatprep.subr.bf16.mxu0 %v15992_v1 }
0x1647   :  { %v5697_v59 = vpop.permute.xlu1 %5696 }
0x1648   :  { %14480 = vmatmul.mubr.msk.bf16.vlgmr.msra.gmra.mrb[108].mxu1 %vm499_vm1, %v5675_v41 }
0x1649   :  { %14490 = vmatpush3.bf16.xpose.msra.mxu1 %v6050_v24  ;;  %14491 = vmatprep.mubr.msk.bf16.mxu1 %vm15993_vm0, %v15992_v1 }
0x164a   :  { %14501 = vmatprep.subr.bf16.mxu1 %v15992_v1 }
0x1650   :  { %14492 = vmatmul.mubr.msk.bf16.vlgmr.msra.gmra.mrb[112].mxu1 %vm499_vm1, %v5679_v42 }
0x1651   :  { %14502 = vmatpush3.bf16.msra.mxu1 %v5697_v59  ;;  %14503 = vmatprep.mubr.msk.bf16.mxu1 %vm15993_vm0, %v15992_v1 }
0x1652   :  { %14513 = vmatprep.subr.bf16.mxu1 %v15992_v1 }
0x1690   :  { %v5757_v7 = vpop.f32.mrb[92].mxu1 }
0x1691   :  { %v17491_v21 = vadd.f32 %v17488_v35, %v5757_v7  ;;  %v14451_v16 = vpop.f32.mrb[93].mxu1 }
0x1692   :  { %v5760_v48 = vpop.f32.mrb[94].mxu1 }
0x1693   :  { %v17499_v8 = vadd.f32 %v17496_v44, %v5760_v48  ;;  %v14452_v28 = vpop.f32.mrb[95].mxu1  ;;  %v6093_v58 = vsel %vm499_vm1, %v17491_v21, -inf }
0x1694   :  { %6094 = vmax.xlane.f32.xlu0 %v6093_v58 }
0x1695   :  { %v6096_v45 = vsel %vm499_vm1, %v17499_v8, -inf }
0x1696   :  { %6097 = vmax.xlane.f32.xlu1 %v6096_v45 }
0x1703   :  { %v5804_v61 = vpop.f32.mrb[96].mxu1 }
0x1704   :  { %v17506_v30 = vadd.f32 %v17488_v35, %v5804_v61  ;;  %v14457_v18 = vpop.f32.mrb[97].mxu1 }
0x1705   :  { %v5807_v25 = vpop.f32.mrb[98].mxu1 }
0x1706   :  { %v17509_v39 = vadd.f32 %v17496_v44, %v5807_v25  ;;  %v14458_v57 = vpop.f32.mrb[99].mxu1  ;;  %v6099_v63 = vsel %vm499_vm1, %v17506_v30, -inf }
0x1707   :  { %6100 = vmax.xlane.f32.xlu0 %v6099_v63 }
0x1708   :  { %v6102_v50 = vsel %vm499_vm1, %v17509_v39, -inf }
0x170b   :  { %6103 = vmax.xlane.f32.xlu0 %v6102_v50  ;;  %v5851_v10 = vpop.f32.mrb[100].mxu1 }
0x170c   :  { %v14463_v26 = vpop.f32.mrb[101].mxu1  ;;  %v17519_v29 = vadd.f32 %v17488_v35, %v5851_v10 }
0x170d   :  { %v5854_v55 = vpop.f32.mrb[102].mxu1 }
0x170e   :  { %v14464_v6 = vpop.f32.mrb[103].mxu1  ;;  %v17527_v34 = vadd.f32 %v17496_v44, %v5854_v55  ;;  %v6105_v19 = vsel %vm499_vm1, %v17519_v29, -inf }
0x170f   :  { %v5945_v53 = vpop.f32.mrb[84].mxu0 }
0x1710   :  { %v17516_v14 = vadd.f32 %v17488_v35, %v5945_v53  ;;  %v14475_v11 = vpop.f32.mrb[85].mxu0  ;;  %v6108_v5 = vsel %vm499_vm1, %v17527_v34, -inf }
0x1711   :  { %v5948_v47 = vpop.f32.mrb[86].mxu0 }
0x1712   :  { %v17522_v52 = vadd.f32 %v17496_v44, %v5948_v47  ;;  %v14476_v12 = vpop.f32.mrb[87].mxu0  ;;  %v6117_v49 = vsel %vm499_vm1, %v17516_v14, -inf }
0x1713   :  { %6118 = vmax.xlane.f32.xlu1 %v6117_v49  ;;  %v5898_v31 = vpop.f32.mrb[104].mxu1 }
0x1714   :  { %v14469_v38 = vpop.f32.mrb[105].mxu1  ;;  %v6120_v4 = vsel %vm499_vm1, %v17522_v52, -inf  ;;  %v17539_v24 = vadd.f32 %v17488_v35, %v5898_v31 }
0x1715   :  { %6121 = vmax.xlane.f32.xlu0 %v6120_v4  ;;  %v5901_v17 = vpop.f32.mrb[106].mxu1 }
0x1716   :  { %v14470_v32 = vpop.f32.mrb[107].mxu1  ;;  %v17547_v48 = vadd.f32 %v17496_v44, %v5901_v17  ;;  %v6111_v25 = vsel %vm499_vm1, %v17539_v24, -inf }
0x1717   :  { %v6039_v2 = vpop.f32.mrb[88].mxu0  ;;  %6106 = vmax.xlane.f32.xlu1 %v6105_v19 }
0x1718   :  { %v17534_v41 = vadd.f32 %v17488_v35, %v6039_v2  ;;  %v14487_v23 = vpop.f32.mrb[89].mxu0  ;;  %v6114_v63 = vsel %vm499_vm1, %v17547_v48, -inf }
0x1719   :  { %v6042_v54 = vpop.f32.mrb[90].mxu0  ;;  %6109 = vmax.xlane.f32.xlu0 %v6108_v5 }
0x171a   :  { %v17542_v42 = vadd.f32 %v17496_v44, %v6042_v54  ;;  %v14488_v59 = vpop.f32.mrb[91].mxu0  ;;  %v6129_v7 = vsel %vm499_vm1, %v17534_v41, -inf }
0x171b   :  { %6130 = vmax.xlane.f32.xlu1 %v6129_v7  ;;  %v5992_v16 = vpop.f32.mrb[108].mxu1 }
0x171c   :  { %v14481_v28 = vpop.f32.mrb[109].mxu1  ;;  %v6132_v58 = vsel %vm499_vm1, %v17542_v42, -inf  ;;  %v17552_v61 = vadd.f32 %v17488_v35, %v5992_v16 }
0x171d   :  { %6133 = vmax.xlane.f32.xlu0 %v6132_v58  ;;  %v5995_v45 = vpop.f32.mrb[110].mxu1 }
0x171e   :  { %v14482_v18 = vpop.f32.mrb[111].mxu1  ;;  %v17557_v57 = vadd.f32 %v17496_v44, %v5995_v45  ;;  %v6123_v50 = vsel %vm499_vm1, %v17552_v61, -inf }
0x171f   :  { %6112 = vmax.xlane.f32.xlu1 %v6111_v25 }
0x1720   :  { %v6126_v6 = vsel %vm499_vm1, %v17557_v57, -inf }
0x1721   :  { %6115 = vmax.xlane.f32.xlu0 %v6114_v63 }
0x1723   :  { %6124 = vmax.xlane.f32.xlu1 %v6123_v50  ;;  %v6086_v10 = vpop.f32.mrb[112].mxu1 }
0x1724   :  { %v17564_v26 = vadd.f32 %v17488_v35, %v6086_v10  ;;  %v14493_v55 = vpop.f32.mrb[113].mxu1  ;;  %v6098_v35 = vpop.xlane.xlu1 %6097 }
0x1725   :  { %6127 = vmax.xlane.f32.xlu0 %v6126_v6  ;;  %v6089_v53 = vpop.f32.mrb[114].mxu1  ;;  %v6142_v31 = vsub.f32 %v17499_v8, %v6098_v35 }
0x1726   :  { %v17569_v11 = vadd.f32 %v17496_v44, %v6089_v53  ;;  %v14494_v47 = vpop.f32.mrb[115].mxu1  ;;  %v6135_v12 = vsel %vm499_vm1, %v17564_v26, -inf  ;;  %v6095_v44 = vpop.xlane.xlu0 %6094 }
0x1727   :  { %6136 = vmax.xlane.f32.xlu1 %v6135_v12  ;;  %v6141_v38 = vsub.f32 %v17491_v21, %v6095_v44  ;;  %v6159_v4 = vmul.f32 1.442695, %v6142_v31 }
0x1728   :  { %v6138_v49 = vsel %vm499_vm1, %v17569_v11, -inf }
0x1729   :  { %6139 = vmax.xlane.f32.xlu0 %v6138_v49  ;;  %v6157_v17 = vmul.f32 1.442695, %v6141_v38  ;;  %15639 = vpow2.f32 %v6159_v4 }
0x172b   :  { %15641 = vpow2.f32 %v6157_v17 }
0x1733   :  { %v17583_v32 = vpop.eup %15639 }
0x1734   :  { %v6192_v2 = vsel %vm499_vm1, %v17583_v32, 0.0 }
0x1735   :  { %v17585_v19 = vpop.eup %15641 }
0x1736   :  { %v6189_v23 = vsel %vm499_vm1, %v17585_v19, 0.0 }
0x1738   :  { %5702 = vrot.lane.b32.xlu1 %v17424_v40, %s15996_s25 }
0x173c   :  { %5705 = vrot.lane.b32.xlu1 %v17424_v40, %s19218_s9 }
0x173f   :  { %5699 = vrot.lane.b32.xlu0 %v17424_v40, %s15997_s21 }
0x175e   :  { %6193 = vadd.xlane.f32.xlu0 %v6192_v2 }
0x1760   :  { %6190 = vadd.xlane.f32.xlu1 %v6189_v23 }
0x1794   :  { %v6101_v5 = vpop.xlane.xlu0 %6100 }
0x1795   :  { %v6143_v8 = vsub.f32 %v17506_v30, %v6101_v5 }
0x1797   :  { %v6161_v21 = vmul.f32 1.442695, %v6143_v8 }
0x1798   :  { %v6104_v54 = vpop.xlane.xlu0 %6103 }
0x1799   :  { %15643 = vpow2.f32 %v6161_v21  ;;  %v6144_v59 = vsub.f32 %v17509_v39, %v6104_v54 }
0x179b   :  { %v6163_v7 = vmul.f32 1.442695, %v6144_v59 }
0x179d   :  { %15645 = vpow2.f32 %v6163_v7 }
0x17a0   :  { %v6119_v16 = vpop.xlane.xlu1 %6118 }
0x17a1   :  { %v6149_v28 = vsub.f32 %v17516_v14, %v6119_v16 }
0x17a2   :  { %v6122_v58 = vpop.xlane.xlu0 %6121 }
0x17a3   :  { %v17594_v45 = vpop.eup %15643  ;;  %v6173_v18 = vmul.f32 1.442695, %v6149_v28  ;;  %v6150_v25 = vsub.f32 %v17522_v52, %v6122_v58 }
0x17a4   :  { %v6107_v63 = vpop.xlane.xlu1 %6106  ;;  %v6195_v30 = vsel %vm499_vm1, %v17594_v45, 0.0 }
0x17a5   :  { %15647 = vpow2.f32 %v6173_v18  ;;  %v6175_v50 = vmul.f32 1.442695, %v6150_v25  ;;  %v6145_v10 = vsub.f32 %v17519_v29, %v6107_v63  ;;  %6196 = vadd.xlane.f32.xlu1 %v6195_v30 }
0x17a6   :  { %v6110_v39 = vpop.xlane.xlu0 %6109 }
0x17a7   :  { %v17600_v55 = vpop.eup %15645  ;;  %15649 = vpow2.f32 %v6175_v50  ;;  %v6165_v14 = vmul.f32 1.442695, %v6145_v10  ;;  %v6146_v6 = vsub.f32 %v17527_v34, %v6110_v39 }
0x17a8   :  { %v6131_v53 = vpop.xlane.xlu1 %6130  ;;  %v6198_v52 = vsel %vm499_vm1, %v17600_v55, 0.0 }
0x17a9   :  { %15651 = vpow2.f32 %v6165_v14  ;;  %v6167_v47 = vmul.f32 1.442695, %v6146_v6  ;;  %v6153_v12 = vsub.f32 %v17534_v41, %v6131_v53  ;;  %6199 = vadd.xlane.f32.xlu0 %v6198_v52 }
0x17aa   :  { %v6134_v49 = vpop.xlane.xlu0 %6133 }
0x17ab   :  { %15653 = vpow2.f32 %v6167_v47  ;;  %v6181_v29 = vmul.f32 1.442695, %v6153_v12  ;;  %v6154_v35 = vsub.f32 %v17542_v42, %v6134_v49 }
0x17ac   :  { %v6113_v44 = vpop.xlane.xlu1 %6112 }
0x17ad   :  { %15655 = vpow2.f32 %v6181_v29  ;;  %v6183_v31 = vmul.f32 1.442695, %v6154_v35  ;;  %v6147_v38 = vsub.f32 %v17539_v24, %v6113_v44 }
0x17ae   :  { %v6116_v34 = vpop.xlane.xlu0 %6115 }
0x17af   :  { %v17608_v4 = vpop.eup %15647  ;;  %15657 = vpow2.f32 %v6183_v31  ;;  %v6169_v17 = vmul.f32 1.442695, %v6147_v38  ;;  %v6148_v2 = vsub.f32 %v17547_v48, %v6116_v34 }
0x17b0   :  { %v6125_v23 = vpop.xlane.xlu1 %6124  ;;  %v6213_v41 = vsel %vm499_vm1, %v17608_v4, 0.0 }
0x17b1   :  { %v17613_v5 = vpop.eup %15649  ;;  %15659 = vpow2.f32 %v6169_v17  ;;  %v6171_v42 = vmul.f32 1.442695, %v6148_v2  ;;  %v6151_v8 = vsub.f32 %v17552_v61, %v6125_v23  ;;  %6214 = vadd.xlane.f32.xlu1 %v6213_v41 }
0x17b2   :  { %v6216_v24 = vsel %vm499_vm1, %v17613_v5, 0.0  ;;  %v6128_v52 = vpop.xlane.xlu0 %6127 }
0x17b3   :  { %v17618_v21 = vpop.eup %15651  ;;  %15661 = vpow2.f32 %v6171_v42  ;;  %v6177_v54 = vmul.f32 1.442695, %v6151_v8  ;;  %6217 = vadd.xlane.f32.xlu0 %v6216_v24  ;;  %v6152_v47 = vsub.f32 %v17557_v57, %v6128_v52 }
0x17b4   :  { %v6137_v48 = vpop.xlane.xlu1 %6136  ;;  %v6201_v59 = vsel %vm499_vm1, %v17618_v21, 0.0 }
0x17b5   :  { %v17622_v7 = vpop.eup %15653  ;;  %15663 = vpow2.f32 %v6177_v54  ;;  %v6155_v16 = vsub.f32 %v17564_v26, %v6137_v48  ;;  %6202 = vadd.xlane.f32.xlu1 %v6201_v59  ;;  %v6179_v49 = vmul.f32 1.442695, %v6152_v47 }
0x17b6   :  { %v6204_v61 = vsel %vm499_vm1, %v17622_v7, 0.0  ;;  %v6140_v12 = vpop.xlane.xlu0 %6139 }
0x17b7   :  { %v17627_v28 = vpop.eup %15655  ;;  %v6185_v58 = vmul.f32 1.442695, %v6155_v16  ;;  %6205 = vadd.xlane.f32.xlu0 %v6204_v61  ;;  %v6156_v29 = vsub.f32 %v17569_v11, %v6140_v12 }
0x17b8   :  { %v6225_v18 = vsel %vm499_vm1, %v17627_v28, 0.0  ;;  %v5703_v35 = vpop.permute.xlu1 %5702 }
0x17b9   :  { %v17631_v25 = vpop.eup %15657  ;;  %15665 = vpow2.f32 %v6185_v58  ;;  %6226 = vadd.xlane.f32.xlu1 %v6225_v18  ;;  %v6187_v44 = vmul.f32 1.442695, %v6156_v29 }
0x17ba   :  { %v6228_v63 = vsel %vm499_vm1, %v17631_v25, 0.0  ;;  %15667 = vpow2.f32 %v6179_v49  ;;  %v5700_v31 = vpop.permute.xlu0 %5699 }
0x17bb   :  { %v17635_v30 = vpop.eup %15659  ;;  %6229 = vadd.xlane.f32.xlu0 %v6228_v63  ;;  %15669 = vpow2.f32 %v6187_v44 }
0x17bc   :  { %v6207_v26 = vsel %vm499_vm1, %v17635_v30, 0.0  ;;  %v5706_v38 = vpop.permute.xlu1 %5705 }
0x17bd   :  { %v17639_v50 = vpop.eup %15661  ;;  %6208 = vadd.xlane.f32.xlu1 %v6207_v26 }
0x17be   :  { %v6210_v10 = vsel %vm499_vm1, %v17639_v50, 0.0 }
0x17bf   :  { %v17643_v39 = vpop.eup %15663  ;;  %6211 = vadd.xlane.f32.xlu0 %v6210_v10 }
0x17c0   :  { %v6219_v14 = vsel %vm499_vm1, %v17643_v39, 0.0 }
0x17c1   :  { %6220 = vadd.xlane.f32.xlu1 %v6219_v14 }
0x17c3   :  { %v17647_v6 = vpop.eup %15665 }
0x17c4   :  { %v6231_v53 = vsel %vm499_vm1, %v17647_v6, 0.0  ;;  %v17657_v2 = vpop.eup %15667 }
0x17c5   :  { %6232 = vadd.xlane.f32.xlu1 %v6231_v53  ;;  %v6222_v23 = vsel %vm499_vm1, %v17657_v2, 0.0  ;;  %v17661_v57 = vpop.eup %15669 }
0x17c6   :  { %v6234_v11 = vsel %vm499_vm1, %v17661_v57, 0.0 }
0x17d5   :  { %5708 = vrot.lane.b32.xlu0 %v17424_v40, %s15998_s22 }
0x17d6   :  { %5711 = vrot.lane.b32.xlu1 %v17424_v40, %s15999_s23 }
0x17eb   :  { %v6194_v34 = vpop.xlane.xlu0 %6193 }
0x17ec   :  { %15671 = vrcp.f32 %v6194_v34 }
0x17ed   :  { %v6191_v17 = vpop.xlane.xlu1 %6190 }
0x17ee   :  { %15673 = vrcp.f32 %v6191_v17 }
0x17f4   :  { %6223 = vadd.xlane.f32.xlu0 %v6222_v23 }
0x17f6   :  { %v15672_v41 = vpop.eup %15671 }
0x17f7   :  { %v6254_v8 = vmul.f32 %v15672_v41, %v17583_v32 }
0x17f8   :  { %v15674_v42 = vpop.eup %15673  ;;  %6235 = vadd.xlane.f32.xlu0 %v6234_v11 }
0x17f9   :  { %v6253_v24 = vmul.f32 %v15674_v42, %v17585_v19 }
0x17fb   :  { %v6269_v54 = vpack.c.bf16 %v6254_v8, %v6253_v24 }
0x17fd   :  { %14498 = vmatmul.mubr.msk.bf16.vlgmr.msra.gmra.mrb[92].mxu0 %vm499_vm1, %v6269_v54 }
0x17fe   :  { %14508 = vmatpush3.bf16.msra.mxu0 %v5700_v31  ;;  %14509 = vmatprep.mubr.msk.bf16.mxu0 %vm15993_vm0, %v15992_v1 }
0x17ff   :  { %14519 = vmatprep.subr.bf16.mxu0 %v15992_v1 }
0x180e   :  { %5714 = vrot.lane.b32.xlu0 %v17424_v40, %s16000_s27 }
0x1832   :  { %v6197_v48 = vpop.xlane.xlu1 %6196 }
0x1833   :  { %15675 = vrcp.f32 %v6197_v48 }
0x1836   :  { %v6200_v59 = vpop.xlane.xlu0 %6199 }
0x1837   :  { %15677 = vrcp.f32 %v6200_v59 }
0x183d   :  { %v15676_v32 = vpop.eup %15675 }
0x183e   :  { %v6215_v16 = vpop.xlane.xlu1 %6214  ;;  %v6255_v58 = vmul.f32 %v15676_v32, %v17594_v45 }
0x1840   :  { %v6218_v61 = vpop.xlane.xlu0 %6217 }
0x1841   :  { %v15678_v19 = vpop.eup %15677 }
0x1842   :  { %v6256_v18 = vmul.f32 %v15678_v19, %v17600_v55  ;;  %v6203_v63 = vpop.xlane.xlu1 %6202 }
0x1843   :  { %15679 = vrcp.f32 %v6203_v63 }
0x1844   :  { %v6206_v26 = vpop.xlane.xlu0 %6205  ;;  %v6270_v10 = vpack.c.bf16 %v6256_v18, %v6255_v58 }
0x1845   :  { %15681 = vrcp.f32 %v6206_v26 }
0x1846   :  { %v6227_v14 = vpop.xlane.xlu1 %6226  ;;  %14504 = vmatmul.mubr.msk.bf16.vlgmr.msra.gmra.mrb[116].mxu1 %vm499_vm1, %v6270_v10  ;;  %15683 = vrcp.f32 %v6218_v61 }
0x1847   :  { %14514 = vmatpush3.bf16.msra.mxu1 %v5703_v35  ;;  %14515 = vmatprep.mubr.msk.bf16.mxu1 %vm15993_vm0, %v15992_v1  ;;  %15685 = vrcp.f32 %v6215_v16 }
0x1848   :  { %v6230_v40 = vpop.xlane.xlu0 %6229  ;;  %14525 = vmatprep.subr.bf16.mxu1 %v15992_v1 }
0x184a   :  { %v6209_v45 = vpop.xlane.xlu1 %6208 }
0x184b   :  { %15687 = vrcp.f32 %v6209_v45 }
0x184c   :  { %v6212_v55 = vpop.xlane.xlu0 %6211 }
0x184d   :  { %v15680_v53 = vpop.eup %15679  ;;  %15689 = vrcp.f32 %v6212_v55 }
0x184e   :  { %v6257_v47 = vmul.f32 %v15680_v53, %v17618_v21  ;;  %v6221_v49 = vpop.xlane.xlu1 %6220  ;;  %15691 = vrcp.f32 %v6230_v40 }
0x184f   :  { %v15682_v52 = vpop.eup %15681  ;;  %15693 = vrcp.f32 %v6227_v14 }
0x1850   :  { %v6258_v12 = vmul.f32 %v15682_v52, %v17622_v7  ;;  %v15684_v35 = vpop.eup %15683  ;;  %v5709_v24 = vpop.permute.xlu0 %5708  ;;  %15695 = vrcp.f32 %v6221_v49 }
0x1851   :  { %v15686_v44 = vpop.eup %15685  ;;  %v6262_v34 = vmul.f32 %v15684_v35, %v17613_v5 }
0x1852   :  { %v6271_v29 = vpack.c.bf16 %v6258_v12, %v6257_v47  ;;  %v6233_v17 = vpop.xlane.xlu1 %6232  ;;  %v6261_v7 = vmul.f32 %v15686_v44, %v17608_v4  ;;  %v15287_v44 = vld [vmem:[#allocation5 + $0x80] sm:$0xff]  }
0x1854   :  { %14510 = vmatmul.mubr.msk.bf16.vlgmr.msra.gmra.mrb[96].mxu0 %vm499_vm1, %v6271_v29  ;;  %v6273_v42 = vpack.c.bf16 %v6262_v34, %v6261_v7  ;;  %v15288_v7 = vld [vmem:[#allocation5 + $0x88] sm:$0xff]  }
0x1855   :  { %v15688_v31 = vpop.eup %15687  ;;  %14520 = vmatpush3.bf16.msra.mxu0 %v5706_v38  ;;  %14521 = vmatprep.mubr.msk.bf16.mxu0 %vm15993_vm0, %v15992_v1 }
0x1856   :  { %14531 = vmatprep.subr.bf16.mxu0 %v15992_v1  ;;  %v6259_v23 = vmul.f32 %v15688_v31, %v17635_v30  ;;  %v5712_v38 = vpop.permute.xlu1 %5711 }
0x1857   :  { %v15690_v21 = vpop.eup %15689 }
0x1858   :  { %v6260_v41 = vmul.f32 %v15690_v21, %v17639_v50  ;;  %v15692_v8 = vpop.eup %15691 }
0x1859   :  { %v15694_v5 = vpop.eup %15693  ;;  %v6266_v54 = vmul.f32 %v15692_v8, %v17631_v25  ;;  %v15289_v8 = vld [vmem:[#allocation5 + $0x90] sm:$0xff]  }
0x185a   :  { %v6272_v11 = vpack.c.bf16 %v6260_v41, %v6259_v23  ;;  %v6265_v4 = vmul.f32 %v15694_v5, %v17627_v28  ;;  %v15696_v48 = vpop.eup %15695 }
0x185b   :  { %v6263_v16 = vmul.f32 %v15696_v48, %v17643_v39  ;;  %v15293_v48 = vld [vmem:[#allocation5 + $0xb0] sm:$0xff]  }
0x185c   :  { %14516 = vmatmul.mubr.msk.bf16.vlgmr.msra.gmra.mrb[120].mxu1 %vm499_vm1, %v6272_v11  ;;  %14522 = vmatmul.mubr.msk.bf16.vlgmr.msra.gmra.mrb[100].mxu0 %vm499_vm1, %v6273_v42  ;;  %v6275_v30 = vpack.c.bf16 %v6266_v54, %v6265_v4  ;;  %v15290_v54 = vld [vmem:[#allocation5 + $0x98] sm:$0xff]  }
0x185d   :  { %14526 = vmatpush3.bf16.msra.mxu1 %v5709_v24  ;;  %14532 = vmatpush3.bf16.msra.mxu0 %v5712_v38 }
0x185e   :  { %14533 = vmatprep.mubr.msk.bf16.mxu0 %vm15993_vm0, %v15992_v1  ;;  %14527 = vmatprep.mubr.msk.bf16.mxu1 %vm15993_vm0, %v15992_v1 }
0x185f   :  { %14537 = vmatprep.subr.bf16.mxu1 %v15992_v1  ;;  %14543 = vmatprep.subr.bf16.mxu0 %v15992_v1 }
0x1864   :  { %14534 = vmatmul.mubr.msk.bf16.vlgmr.msra.gmra.mrb[104].mxu0 %vm499_vm1, %v6275_v30 }
0x1865   :  { %14559 = vmatprep.mubr.msk.bf16.mxu0 %vm15993_vm0, %v15992_v1  ;;  %14544 = vmatpush3.bf16.msra.mxu0 %v15287_v44 }
0x1866   :  { %14545 = vmatprep.subr.bf16.mxu0 %v15992_v1 }
0x1869   :  { %14546 = vmatpush3.bf16.msra.mxu0 %v15288_v7 }
0x186a   :  { %14547 = vmatprep.subr.bf16.mxu0 %v15992_v1 }
0x186d   :  { %14548 = vmatpush3.bf16.msra.mxu0 %v15289_v8 }
0x186e   :  { %14549 = vmatprep.subr.bf16.mxu0 %v15992_v1 }
0x1871   :  { %14550 = vmatpush3.bf16.msra.mxu0 %v15290_v54 }
0x1872   :  { %14551 = vmatprep.subr.bf16.mxu0 %v15992_v1 }
0x1881   :  { %v6224_v25 = vpop.xlane.xlu0 %6223 }
0x1882   :  { %15697 = vrcp.f32 %v6224_v25  ;;  %v15291_v25 = vld [vmem:[#allocation5 + $0xa0] sm:$0xff]  }
0x1883   :  { %14552 = vmatpush3.bf16.msra.mxu0 %v15291_v25 }
0x1884   :  { %14553 = vmatprep.subr.bf16.mxu0 %v15992_v1 }
0x1885   :  { %v6236_v50 = vpop.xlane.xlu0 %6235 }
0x1886   :  { %15699 = vrcp.f32 %v6236_v50  ;;  %v15292_v50 = vld [vmem:[#allocation5 + $0xa8] sm:$0xff]  }
0x1887   :  { %15701 = vrcp.f32 %v6233_v17  ;;  %14554 = vmatpush3.bf16.msra.mxu0 %v15292_v50 }
0x1888   :  { %14555 = vmatprep.subr.bf16.mxu0 %v15992_v1 }
0x1889   :  { %v5715_v19 = vpop.permute.xlu0 %5714 }
0x188b   :  { %14556 = vmatpush3.bf16.msra.mxu0 %v15293_v48 }
0x188c   :  { %v15698_v59 = vpop.eup %15697  ;;  %14557 = vmatprep.subr.bf16.mxu0 %v15992_v1 }
0x188d   :  { %v6264_v32 = vmul.f32 %v15698_v59, %v17657_v2 }
0x188f   :  { %v6274_v61 = vpack.c.bf16 %v6264_v32, %v6263_v16  ;;  %v15294_v32 = vld [vmem:[#allocation5 + $0xb8] sm:$0xff]  }
0x1890   :  { %v15700_v28 = vpop.eup %15699  ;;  %14558 = vmatpush3.bf16.msra.mxu0 %v15294_v32 }
0x1891   :  { %14528 = vmatmul.mubr.msk.bf16.vlgmr.msra.gmra.mrb[124].mxu1 %vm499_vm1, %v6274_v61  ;;  %v15702_v58 = vpop.eup %15701  ;;  %v6268_v18 = vmul.f32 %v15700_v28, %v17661_v57 }
0x1892   :  { %14538 = vmatpush3.bf16.msra.mxu1 %v5715_v19  ;;  %14539 = vmatprep.mubr.msk.bf16.mxu1 %vm15993_vm0, %v15992_v1  ;;  %v6267_v63 = vmul.f32 %v15702_v58, %v17647_v6 }
0x1894   :  { %v6276_v26 = vpack.c.bf16 %v6268_v18, %v6267_v63 }
0x1899   :  { %14540 = vmatmul.mubr.msk.bf16.vlgmr.msra.gmra.mrb[128].mxu1 %vm499_vm1, %v6276_v26 }
0x189a   :  { %7385 = vmatprep.mubr.bf16.mxu1 %v15991_v0 }
0x18d0   :  { %v17711_v39 = vpop.f32.mrb[92].mxu0 }
0x18d1   :  { %v14499_v2 = vpop.f32.mrb[93].mxu0 }
0x18d2   :  { %v17713_v10 = vpop.f32.mrb[94].mxu0 }
0x18d3   :  { %v14500_v14 = vpop.f32.mrb[95].mxu0 }
0x1919   :  { %v6358_v40 = vpop.f32.mrb[116].mxu1 }
0x191a   :  { %v14505_v45 = vpop.f32.mrb[117].mxu1 }
0x191b   :  { %v6361_v55 = vpop.f32.mrb[118].mxu1 }
0x191c   :  { %v14990_v53 = vpack.i.bf16 %v6361_v55, %v6358_v40  ;;  %v14506_v52 = vpop.f32.mrb[119].mxu1 }
0x191e   :  { %14991 = vrot.lane.b32.xlu1 %v14990_v53, %s16000_s27 }
0x1927   :  { %v6402_v57 = vpop.f32.mrb[96].mxu0 }
0x1928   :  { %v14511_v6 = vpop.f32.mrb[97].mxu0 }
0x1929   :  { %v6405_v47 = vpop.f32.mrb[98].mxu0 }
0x192a   :  { %v14995_v12 = vpack.i.bf16 %v6405_v47, %v6402_v57  ;;  %v14512_v49 = vpop.f32.mrb[99].mxu0 }
0x192c   :  { %14996 = vrot.lane.b32.xlu0 %v14995_v12, %s15999_s23 }
0x192f   :  { %v6446_v29 = vpop.f32.mrb[120].mxu1  ;;  %v6490_v35 = vpop.f32.mrb[100].mxu0 }
0x1930   :  { %v14517_v31 = vpop.f32.mrb[121].mxu1  ;;  %v14523_v34 = vpop.f32.mrb[101].mxu0 }
0x1931   :  { %v6449_v17 = vpop.f32.mrb[122].mxu1  ;;  %v6493_v21 = vpop.f32.mrb[102].mxu0 }
0x1932   :  { %v15000_v23 = vpack.i.bf16 %v6449_v17, %v6446_v29  ;;  %v15005_v41 = vpack.i.bf16 %v6493_v21, %v6490_v35  ;;  %v14518_v11 = vpop.f32.mrb[123].mxu1  ;;  %v14524_v42 = vpop.f32.mrb[103].mxu0 }
0x1934   :  { %15006 = vrot.lane.b32.xlu0 %v15005_v41, %s19218_s9  ;;  %15001 = vrot.lane.b32.xlu1 %v15000_v23, %s15998_s22 }
0x1937   :  { %v6578_v24 = vpop.f32.mrb[104].mxu0 }
0x1938   :  { %v14535_v38 = vpop.f32.mrb[105].mxu0 }
0x1939   :  { %v6581_v5 = vpop.f32.mrb[106].mxu0 }
0x193a   :  { %v15015_v4 = vpack.i.bf16 %v6581_v5, %v6578_v24  ;;  %v14536_v30 = vpop.f32.mrb[107].mxu0 }
0x193c   :  { %15016 = vrot.lane.b32.xlu0 %v15015_v4, %s15997_s21 }
0x1964   :  { %v6534_v59 = vpop.f32.mrb[124].mxu1 }
0x1965   :  { %v14529_v16 = vpop.f32.mrb[125].mxu1 }
0x1966   :  { %v6537_v61 = vpop.f32.mrb[126].mxu1  ;;  %v13537_v16 = vld [vmem:[%s19201_s6 + $0x2] ss:$0 sm:$0xff] }
0x1967   :  { %v15010_v28 = vpack.i.bf16 %v6537_v61, %v6534_v59  ;;  %v14530_v19 = vpop.f32.mrb[127].mxu1 }
0x1969   :  { %15011 = vrot.lane.b32.xlu1 %v15010_v28, %s15996_s25 }
0x196c   :  { %v6622_v58 = vpop.f32.mrb[128].mxu1 }
0x196d   :  { %v14541_v18 = vpop.f32.mrb[129].mxu1 }
0x196e   :  { %v6625_v63 = vpop.f32.mrb[130].mxu1 }
0x196f   :  { %v15020_v26 = vpack.i.bf16 %v6625_v63, %v6622_v58  ;;  %v14542_v2 = vpop.f32.mrb[131].mxu1 }
0x1971   :  { %15021 = vrot.lane.b32.xlu1 %v15020_v26, %s15995_s5 }
0x1990   :  { %v14992_v14 = vpop.permute.xlu1 %14991 }
0x1991   :  { %v14994_v55 = vunpack.i.h.bf16 %v14992_v14  ;;  %v14993_v53 = vunpack.i.l.bf16 %v14992_v14 }
0x1993   :  { %v6686_v29 = vsel %vm499_vm1, %v17713_v10, %v14994_v55  ;;  %v6685_v35 = vsel %vm499_vm1, %v17711_v39, %v14993_v53 }
0x199e   :  { %v14997_v40 = vpop.permute.xlu0 %14996 }
0x199f   :  { %v14999_v52 = vunpack.i.h.bf16 %v14997_v40  ;;  %v14998_v57 = vunpack.i.l.bf16 %v14997_v40 }
0x19a1   :  { %v6687_v44 = vsel %vm1470_vm2, %v6685_v35, %v14998_v57  ;;  %v6688_v31 = vsel %vm1470_vm2, %v6686_v29, %v14999_v52 }
0x19a6   :  { %v15002_v45 = vpop.permute.xlu1 %15001  ;;  %v15007_v6 = vpop.permute.xlu0 %15006 }
0x19a7   :  { %v15004_v47 = vunpack.i.h.bf16 %v15002_v45  ;;  %v15003_v12 = vunpack.i.l.bf16 %v15002_v45  ;;  %v15009_v34 = vunpack.i.h.bf16 %v15007_v6  ;;  %v15008_v17 = vunpack.i.l.bf16 %v15007_v6 }
0x19a9   :  { %v6690_v21 = vsel %vm1473_vm3, %v6688_v31, %v15004_v47  ;;  %v6689_v7 = vsel %vm1473_vm3, %v6687_v44, %v15003_v12 }
0x19aa   :  { %v6691_v42 = vsel %vm1476_vm4, %v6689_v7, %v15008_v17  ;;  %v6692_v10 = vsel %vm1476_vm4, %v6690_v21, %v15009_v34 }
0x19ae   :  { %v15017_v11 = vpop.permute.xlu0 %15016 }
0x19af   :  { %v15019_v24 = vunpack.i.h.bf16 %v15017_v11  ;;  %v15018_v38 = vunpack.i.l.bf16 %v15017_v11 }
0x19db   :  { %v15012_v49 = vpop.permute.xlu1 %15011 }
0x19dc   :  { %v15014_v23 = vunpack.i.h.bf16 %v15012_v49  ;;  %v15013_v41 = vunpack.i.l.bf16 %v15012_v49 }
0x19de   :  { %v6694_v8 = vsel %vm1479_vm5, %v6692_v10, %v15014_v23  ;;  %v6693_v39 = vsel %vm1479_vm5, %v6691_v42, %v15013_v41 }
0x19df   :  { %v6695_v30 = vsel %vm1482_vm6, %v6693_v39, %v15018_v38  ;;  %v6696_v25 = vsel %vm1482_vm6, %v6694_v8, %v15019_v24 }
0x19e3   :  { %v15022_v5 = vpop.permute.xlu1 %15021 }
0x19e4   :  { %v15024_v54 = vunpack.i.h.bf16 %v15022_v5  ;;  %v15023_v4 = vunpack.i.l.bf16 %v15022_v5 }
0x19e6   :  { %v6698_v50 = vsel %vm1485_vm7, %v6696_v25, %v15024_v54  ;;  %v6697_v48 = vsel %vm1485_vm7, %v6695_v30, %v15023_v4 }
0x19e7   :  { %v6699_v59 = vpack.c.bf16 %v6698_v50, %v6697_v48 }
0x19e9   :  { %14560 = vmatmul.mubr.bf16.vlgmr.msra.gmra.mrb[108].mxu0 %v6699_v59 }
0x1abc   :  { %v6807_v32 = vpop.f32.mrb[108].mxu0 }
0x1abd   :  { %v6808_v61 = vadd.f32 %v13537_v16, %v6807_v32  ;;  %v14561_v28 = vpop.f32.mrb[109].mxu0 }
0x1abe   :  { %v6810_v19 = vpop.f32.mrb[110].mxu0 }
0x1abf   :  { %v6816_v58 = vcombine.high %v6808_v61, %v6808_v61  ;;  %v6823_v18 = vrot.slane %v6808_v61, %v16201_v37  ;;  %v6811_v63 = vadd.f32 %v13537_v16, %v6810_v19  ;;  %v14562_v26 = vpop.f32.mrb[111].mxu0 }
0x1ac1   :  { %v6830_v2 = vrot.slane %v6816_v58, %v16201_v37  ;;  %v6831_v14 = vcombine.high %v6823_v18, %v6823_v18  ;;  %v6833_v40 = vcombine.high %v6811_v63, %v6811_v63  ;;  %v6840_v45 = vrot.slane %v6811_v63, %v16201_v37 }
0x1ac2   :  { %v6858_v53 = vadd.f32 %v6823_v18, %v17386_v36 }
0x1ac3   :  { %v6832_v55 = vcombine.high %v6830_v2, %v6830_v2  ;;  %v6859_v52 = vadd.f32 %v6831_v14, %v17388_v46  ;;  %v6847_v57 = vrot.slane %v6833_v40, %v16201_v37  ;;  %v6848_v6 = vcombine.high %v6840_v45, %v6840_v45 }
0x1ac4   :  { %v6860_v47 = vadd.f32 %v6830_v2, %v17390_v51  ;;  %v6862_v35 = vadd.f32 %v6840_v45, %v17398_v13 }
0x1ac5   :  { %v6861_v12 = vadd.f32 %v6832_v55, %v17392_v56  ;;  %v6878_v49 = vcombine.low %v6858_v53, %v6859_v52  ;;  %v6849_v29 = vcombine.high %v6847_v57, %v6847_v57  ;;  %v6863_v44 = vadd.f32 %v6848_v6, %v17400_v3 }
0x1ac6   :  { %v6864_v31 = vadd.f32 %v6847_v57, %v17402_v33 }
0x1ac7   :  { %v6865_v34 = vadd.f32 %v6849_v29, %v17404_v27  ;;  %v6879_v36 = vcombine.low %v6860_v47, %v6861_v12  ;;  %v6895_v17 = vcombine.low %v6862_v35, %v6863_v44  ;;  %v6886_v46 = vrot.slane %v6878_v49, %v16201_v37  ;;  %v15295_v49 = vld [vmem:[#allocation7 + $0x100] ss:$8 sps:$4 sm:$0xff]   ;;  %v15300_v29 = vld [vmem:[#allocation7 + $0x114] ss:$8 sps:$4 sm:$0xff]  }
0x1ac9   :  { %v6893_v21 = vrot.slane %v6879_v36, %v16201_v37  ;;  %v6896_v7 = vcombine.low %v6864_v31, %v6865_v34  ;;  %v6903_v56 = vrot.slane %v6895_v17, %v16201_v37  ;;  %v15304_v36 = vld [vmem:[#allocation7 + $0x130] ss:$8 sps:$4 sm:$0xff]   ;;  %v15309_v17 = vld [vmem:[#allocation7 + $0x144] ss:$8 sps:$4 sm:$0xff]  }
0x1acb   :  { %v6894_v51 = vcombine.low %v6886_v46, %v6893_v21  ;;  %v6910_v23 = vrot.slane %v6896_v7, %v16201_v37  ;;  %v15307_v46 = vld [vmem:[#allocation7 + $0x140] ss:$8 sps:$4 sm:$0xff]   ;;  %v15312_v21 = vld [vmem:[#allocation7 + $0x154] ss:$8 sps:$4 sm:$0xff]   ;;  %v15310_v7 = vld [vmem:[#allocation7 + $0x150] ss:$8 sps:$4 sm:$0xff]  }
0x1acd   :  { %6914 = vadd.xlane.f32.xlu0 %v6894_v51  ;;  %v6911_v13 = vcombine.low %v6903_v56, %v6910_v23  ;;  %v15315_v51 = vld [vmem:[#allocation7 + $0x164] ss:$8 sps:$4 sm:$0xff]   ;;  %v15313_v56 = vld [vmem:[#allocation7 + $0x160] ss:$8 sps:$4 sm:$0xff]   ;;  %v15318_v23 = vld [vmem:[#allocation7 + $0x174] ss:$8 sps:$4 sm:$0xff]  }
0x1acf   :  { %6916 = vadd.xlane.f32.xlu1 %v6911_v13  ;;  %v15316_v13 = vld [vmem:[#allocation7 + $0x170] ss:$8 sps:$4 sm:$0xff]  }
0x1b5a   :  { %v6915_v3 = vpop.xlane.xlu0 %6914 }
0x1b5b   :  { %v6918_v41 = vmul.f32 0.0078125, %v6915_v3  ;;  %v15319_v3 = vld [vmem:[#allocation8 + $0x140] sm:$0xff]  }
0x1b5c   :  { %v6917_v33 = vpop.xlane.xlu1 %6916  ;;  %13972 = vmatprep.subr.bf16.mxu0 %v15319_v3 }
0x1b5d   :  { %v6928_v27 = vrot.slane %v6918_v41, %v16587_v20  ;;  %v6935_v11 = vrot.slane %v6918_v41, %v16590_v9  ;;  %v6942_v42 = vrot.slane %v6918_v41, %v16593_v22  ;;  %v6949_v10 = vrot.slane %v6918_v41, %v16596_v43  ;;  %v15320_v41 = vld [vmem:[#allocation8 + $0x100] sm:$0xff]  }
0x1b5e   :  { %v6919_v8 = vmul.f32 0.0078125, %v6917_v33  ;;  %v15321_v33 = vld [vmem:[#allocation8 + $0x148] sm:$0xff]   ;;  %13973 = vmatpush3.bf16.msra.mxu0 %v15320_v41 }
0x1b5f   :  { %v17768_v39 = vsub.f32 %v6858_v53, %v6928_v27  ;;  %v17770_v24 = vsub.f32 %v6859_v52, %v6935_v11  ;;  %v17772_v38 = vsub.f32 %v6860_v47, %v6942_v42  ;;  %v17774_v5 = vsub.f32 %v6861_v12, %v6949_v10  ;;  %v15297_v12 = vld [vmem:[#allocation7 + $0x104] ss:$8 sps:$4 sm:$0xff]   ;;  %13974 = vmatprep.subr.bf16.mxu0 %v15321_v33  ;;  %v15323_v11 = vld [vmem:[#allocation8 + $0x150] sm:$0xff]   ;;  %v15325_v10 = vld [vmem:[#allocation8 + $0x158] sm:$0xff]  }
0x1b60   :  { %v6956_v54 = vrot.slane %v6919_v8, %v16587_v20  ;;  %v6963_v4 = vrot.slane %v6919_v8, %v16590_v9  ;;  %v6970_v30 = vrot.slane %v6919_v8, %v16593_v22  ;;  %v6977_v25 = vrot.slane %v6919_v8, %v16596_v43  ;;  %7353 = vmatprep.subr.bf16.mxu1 %v15297_v12  ;;  %v15322_v27 = vld [vmem:[#allocation8 + $0x108] sm:$0xff]   ;;  %v15324_v42 = vld [vmem:[#allocation8 + $0x110] sm:$0xff]   ;;  %v15326_v8 = vld [vmem:[#allocation8 + $0x118] sm:$0xff]  }
0x1b61   :  { %v6994_v50 = vmul.f32 %v17768_v39, %v17768_v39  ;;  %v6995_v48 = vmul.f32 %v17770_v24, %v17770_v24  ;;  %v6996_v59 = vmul.f32 %v17772_v38, %v17772_v38  ;;  %v6997_v16 = vmul.f32 %v17774_v5, %v17774_v5  ;;  %7354 = vmatpush1.bf16.msra.mxu1 %v15295_v49 }
0x1b62   :  { %v17788_v32 = vsub.f32 %v6862_v35, %v6956_v54  ;;  %v17790_v61 = vsub.f32 %v6863_v44, %v6963_v4  ;;  %v17792_v28 = vsub.f32 %v6864_v31, %v6970_v30  ;;  %v17794_v19 = vsub.f32 %v6865_v34, %v6977_v25  ;;  %v15298_v35 = vld [vmem:[#allocation7 + $0x110] ss:$8 sps:$4 sm:$0xff]   ;;  %7355 = vmatprep.subr.bf16.mxu1 %v15300_v29  ;;  %v15303_v44 = vld [vmem:[#allocation7 + $0x124] ss:$8 sps:$4 sm:$0xff]   ;;  %v15301_v31 = vld [vmem:[#allocation7 + $0x120] ss:$8 sps:$4 sm:$0xff]  }
0x1b63   :  { %v7010_v58 = vcombine.low %v6994_v50, %v6995_v48  ;;  %v7011_v18 = vcombine.low %v6996_v59, %v6997_v16  ;;  %v15306_v34 = vld [vmem:[#allocation7 + $0x134] ss:$8 sps:$4 sm:$0xff]   ;;  %13975 = vmatpush3.bf16.msra.mxu0 %v15322_v27  ;;  %v15327_v54 = vld [vmem:[#allocation8 + $0x160] sm:$0xff]   ;;  %v15329_v30 = vld [vmem:[#allocation8 + $0x168] sm:$0xff]  }
0x1b64   :  { %v6998_v63 = vmul.f32 %v17788_v32, %v17788_v32  ;;  %v6999_v26 = vmul.f32 %v17790_v61, %v17790_v61  ;;  %v7000_v2 = vmul.f32 %v17792_v28, %v17792_v28  ;;  %v7001_v14 = vmul.f32 %v17794_v19, %v17794_v19  ;;  %13976 = vmatprep.subr.bf16.mxu0 %v15323_v11  ;;  %v15328_v4 = vld [vmem:[#allocation8 + $0x120] sm:$0xff]  }
0x1b65   :  { %v7018_v40 = vrot.slane %v7010_v58, %v16201_v37  ;;  %v7025_v45 = vrot.slane %v7011_v18, %v16201_v37  ;;  %7356 = vmatpush1.bf16.msra.mxu1 %v15298_v35  ;;  %v13548_v58 = vld [vmem:[%s19202_s7 + $0x2] ss:$0 sm:$0xff] }
0x1b66   :  { %v7027_v55 = vcombine.low %v6998_v63, %v6999_v26  ;;  %v7028_v53 = vcombine.low %v7000_v2, %v7001_v14  ;;  %7357 = vmatprep.subr.bf16.mxu1 %v15303_v44  ;;  %v13549_v63 = vld [vmem:[%s19203_s8 + $0x2] ss:$0 sm:$0xff]  ;;  %v7135_v26 = vcombine.high %v13548_v58, %v13548_v58  ;;  %v7142_v14 = vrot.slane %v13548_v58, %v16201_v37 }
0x1b67   :  { %v7026_v52 = vcombine.low %v7018_v40, %v7025_v45  ;;  %13977 = vmatpush3.bf16.msra.mxu0 %v15324_v42  ;;  %v7169_v2 = vcombine.high %v13549_v63, %v13549_v63 }
0x1b68   :  { %v7035_v57 = vrot.slane %v7027_v55, %v16201_v37  ;;  %v7042_v6 = vrot.slane %v7028_v53, %v16201_v37  ;;  %13978 = vmatprep.subr.bf16.mxu0 %v15325_v10  ;;  %v7149_v40 = vrot.slane %v7135_v26, %v16201_v37  ;;  %v7176_v55 = vrot.slane %v13549_v63, %v16201_v37 }
0x1b69   :  { %7046 = vadd.xlane.f32.xlu0 %v7026_v52  ;;  %7358 = vmatpush1.bf16.msra.mxu1 %v15301_v31  ;;  %v7183_v53 = vrot.slane %v7169_v2, %v16201_v37  ;;  %v7150_v12 = vcombine.high %v7142_v14, %v7142_v14  ;;  %v15330_v2 = vld [vmem:[#allocation8 + $0x128] sm:$0xff]  }
0x1b6a   :  { %v7043_v47 = vcombine.low %v7035_v57, %v7042_v6  ;;  %7359 = vmatprep.subr.bf16.mxu1 %v15306_v34  ;;  %v7151_v49 = vcombine.high %v7149_v40, %v7149_v40 }
0x1b6b   :  { %13979 = vmatpush3.bf16.msra.mxu0 %v15326_v8 }
0x1b6c   :  { %13980 = vmatprep.subr.bf16.mxu0 %v15327_v54 }
0x1b6d   :  { %7048 = vadd.xlane.f32.xlu0 %v7043_v47  ;;  %7360 = vmatpush1.bf16.msra.mxu1 %v15304_v36  ;;  %v7184_v36 = vcombine.high %v7176_v55, %v7176_v55 }
0x1b6e   :  { %7361 = vmatprep.subr.bf16.mxu1 %v15309_v17  ;;  %v7185_v17 = vcombine.high %v7183_v53, %v7183_v53 }
0x1b6f   :  { %13981 = vmatpush3.bf16.msra.mxu0 %v15328_v4 }
0x1b70   :  { %13982 = vmatprep.subr.bf16.mxu0 %v15329_v30 }
0x1b71   :  { %7362 = vmatpush1.bf16.msra.mxu1 %v15307_v46 }
0x1b72   :  { %7363 = vmatprep.subr.bf16.mxu1 %v15312_v21 }
0x1b73   :  { %13983 = vmatpush3.bf16.msra.mxu0 %v15330_v2 }
0x1b75   :  { %7364 = vmatpush1.bf16.msra.mxu1 %v15310_v7 }
0x1b76   :  { %7365 = vmatprep.subr.bf16.mxu1 %v15315_v51 }
0x1b79   :  { %7366 = vmatpush1.bf16.msra.mxu1 %v15313_v56 }
0x1b7a   :  { %7367 = vmatprep.subr.bf16.mxu1 %v15318_v23 }
0x1b7d   :  { %7368 = vmatpush1.bf16.msra.mxu1 %v15316_v13 }
0x1bf6   :  { %v7047_v25 = vpop.xlane.xlu0 %7046 }
0x1bf7   :  { %v7050_v50 = vmul.f32 0.0078125, %v7047_v25 }
0x1bf9   :  { %v7052_v48 = vadd.f32 1e-05, %v7050_v50 }
0x1bfa   :  { %v7049_v59 = vpop.xlane.xlu0 %7048 }
0x1bfb   :  { %15703 = vrsqrt.f32 %v7052_v48  ;;  %v7051_v16 = vmul.f32 0.0078125, %v7049_v59 }
0x1bfd   :  { %v7053_v18 = vadd.f32 1e-05, %v7051_v16 }
0x1bff   :  { %15705 = vrsqrt.f32 %v7053_v18 }
0x1c05   :  { %v15704_v45 = vpop.eup %15703 }
0x1c06   :  { %v7064_v52 = vrot.slane %v15704_v45, %v16587_v20  ;;  %v7071_v57 = vrot.slane %v15704_v45, %v16590_v9  ;;  %v7078_v6 = vrot.slane %v15704_v45, %v16593_v22  ;;  %v7085_v47 = vrot.slane %v15704_v45, %v16596_v43  ;;  %v15333_v45 = vld [vmem:[#allocation8 + $0x178] sm:$0xff]  }
0x1c08   :  { %v7122_v29 = vmul.f32 %v7064_v52, %v17768_v39  ;;  %v7123_v35 = vmul.f32 %v7071_v57, %v17770_v24  ;;  %v7124_v44 = vmul.f32 %v7078_v6, %v17772_v38  ;;  %v7125_v31 = vmul.f32 %v7085_v47, %v17774_v5 }
0x1c09   :  { %v15706_v34 = vpop.eup %15705 }
0x1c0a   :  { %v7092_v46 = vrot.slane %v15706_v34, %v16587_v20  ;;  %v7099_v21 = vrot.slane %v15706_v34, %v16590_v9  ;;  %v7106_v7 = vrot.slane %v15706_v34, %v16593_v22  ;;  %v7113_v51 = vrot.slane %v15706_v34, %v16596_v43 }
0x1c0b   :  { %v7156_v56 = vmul.f32 %v7142_v14, %v7122_v29  ;;  %v7157_v23 = vmul.f32 %v7150_v12, %v7123_v35  ;;  %v7158_v39 = vmul.f32 %v7149_v40, %v7124_v44  ;;  %v7159_v13 = vmul.f32 %v7151_v49, %v7125_v31 }
0x1c0c   :  { %v7126_v24 = vmul.f32 %v7092_v46, %v17788_v32  ;;  %v7127_v38 = vmul.f32 %v7099_v21, %v17790_v61  ;;  %v7128_v5 = vmul.f32 %v7106_v7, %v17792_v28  ;;  %v7129_v3 = vmul.f32 %v7113_v51, %v17794_v19 }
0x1c0d   :  { %v17834_v41 = vadd.f32 %v7176_v55, %v7156_v56  ;;  %v17836_v33 = vadd.f32 %v7184_v36, %v7157_v23  ;;  %v17838_v27 = vadd.f32 %v7183_v53, %v7158_v39  ;;  %v17840_v11 = vadd.f32 %v7185_v17, %v7159_v13  ;;  %v13568_v56 = vld [vmem:[%s19207_s12 + $0x2] ss:$0 sm:$0xff] }
0x1c0e   :  { %v7160_v42 = vmul.f32 %v7142_v14, %v7126_v24  ;;  %v7161_v10 = vmul.f32 %v7150_v12, %v7127_v38  ;;  %v7162_v8 = vmul.f32 %v7149_v40, %v7128_v5  ;;  %v7163_v54 = vmul.f32 %v7151_v49, %v7129_v3  ;;  %v15331_v14 = vld [vmem:[#allocation8 + $0x170] sm:$0xff]  }
0x1c0f   :  { %v7206_v32 = vcombine.low %v17834_v41, %v17836_v33  ;;  %v7207_v61 = vcombine.low %v17838_v27, %v17840_v11  ;;  %v15332_v40 = vld [vmem:[#allocation8 + $0x130] sm:$0xff]   ;;  %13984 = vmatprep.subr.bf16.mxu0 %v15331_v14 }
0x1c10   :  { %v17846_v28 = vadd.f32 %v7176_v55, %v7160_v42  ;;  %v17848_v19 = vadd.f32 %v7184_v36, %v7161_v10  ;;  %v17850_v4 = vadd.f32 %v7183_v53, %v7162_v8  ;;  %v17852_v30 = vadd.f32 %v7185_v17, %v7163_v54  ;;  %13985 = vmatpush3.bf16.msra.mxu0 %v15332_v40  ;;  %v15334_v55 = vld [vmem:[#allocation8 + $0x138] sm:$0xff]   ;;  %v13550_v53 = vld [vmem:[%s19205_s10 + $0x4] sm:$0x3] }
0x1c11   :  { %v7214_v25 = vrot.slane %v7206_v32, %v16201_v37  ;;  %v7221_v50 = vrot.slane %v7207_v61, %v16201_v37  ;;  %13986 = vmatprep.subr.bf16.mxu0 %v15333_v45  ;;  %v7266_v52 = vrot.slane %v13550_v53, %v16229_v60  ;;  %v7270_v57 = vrot.slane %v13550_v53, %v16235_v62 }
0x1c12   :  { %v7223_v48 = vcombine.low %v17846_v28, %v17848_v19  ;;  %v7224_v59 = vcombine.low %v17850_v4, %v17852_v30 }
0x1c13   :  { %v7222_v18 = vcombine.low %v7214_v25, %v7221_v50 }
0x1c14   :  { %v7231_v16 = vrot.slane %v7223_v48, %v16201_v37  ;;  %v7238_v58 = vrot.slane %v7224_v59, %v16201_v37  ;;  %13987 = vmatpush3.bf16.msra.mxu0 %v15334_v55 }
0x1c15   :  { %14563 = vmatprep.subr.bf16.mxu0 %v15992_v1 }
0x1c16   :  { %v7239_v63 = vcombine.low %v7231_v16, %v7238_v58 }
0x1c18   :  { %v7242_v26 = vpack.c.bf16 %v7239_v63, %v7222_v18 }
0x1c1a   :  { %7386 = vmatmul.mubr.bf16.vlgmr.msra.gmra.mrb[132].mxu1 %v7242_v26 }
0x1c1b   :  { %8220 = vmatprep.mubr.bf16.mxu1 %v15991_v0 }
0x1ced   :  { %v7387_v6 = vpop.f32.mrb[132].mxu1 }
0x1cee   :  { %v7388_v47 = vadd.f32 %v7387_v6, %v7266_v52  ;;  %v7389_v12 = vpop.f32.mrb[133].mxu1 }
0x1cef   :  { %v7390_v49 = vadd.f32 %v7389_v12, %v7270_v57  ;;  %v7391_v29 = vpop.f32.mrb[134].mxu1 }
0x1cf0   :  { %v7392_v35 = vadd.f32 %v7391_v29, %v7266_v52  ;;  %v7393_v44 = vpop.f32.mrb[135].mxu1  ;;  %v7396_v34 = vmax.f32 %v7388_v47, 0.0 }
0x1cf1   :  { %v7394_v31 = vadd.f32 %v7393_v44, %v7270_v57  ;;  %v7397_v17 = vmax.f32 %v7390_v49, 0.0 }
0x1cf2   :  { %v7398_v36 = vmax.f32 %v7392_v35, 0.0 }
0x1cf3   :  { %v7399_v46 = vmax.f32 %v7394_v31, 0.0 }
0x1cf4   :  { %v7400_v21 = vpack.c.bf16 %v7398_v36, %v7396_v34 }
0x1cf5   :  { %v7401_v7 = vpack.c.bf16 %v7399_v46, %v7397_v17 }
0x1cf7   :  { %7571 = vmatprep.mubr.bf16.mxu0 %v7401_v7 }
0x1cf8   :  { %7572 = vmatmul.mubr.bf16.vlgmr.msra.gmra.mrb[112].mxu0 %v7400_v21 }
0x1cf9   :  { %14579 = vmatprep.mubr.msk.bf16.mxu0 %vm15993_vm0, %v15992_v1 }
0x1dcb   :  { %v13988_v51 = vpop.f32.mrb[112].mxu0 }
0x1dcc   :  { %v13989_v23 = vpop.f32.mrb[113].mxu0 }
0x1dcd   :  { %v13990_v39 = vadd.f32 %v13989_v23, %v13988_v51  ;;  %v13991_v13 = vpop.f32.mrb[114].mxu0 }
0x1dce   :  { %v13992_v24 = vpop.f32.mrb[115].mxu0 }
0x1dcf   :  { %v7574_v38 = vadd.f32 %v13990_v39, %v13568_v56  ;;  %v13993_v5 = vadd.f32 %v13992_v24, %v13991_v13 }
0x1dd1   :  { %v7582_v3 = vcombine.high %v7574_v38, %v7574_v38  ;;  %v7589_v42 = vrot.slane %v7574_v38, %v16201_v37  ;;  %v7577_v10 = vadd.f32 %v13993_v5, %v13568_v56 }
0x1dd3   :  { %v7596_v8 = vrot.slane %v7582_v3, %v16201_v37  ;;  %v7597_v54 = vcombine.high %v7589_v42, %v7589_v42  ;;  %v7599_v32 = vcombine.high %v7577_v10, %v7577_v10  ;;  %v7606_v61 = vrot.slane %v7577_v10, %v16201_v37 }
0x1dd4   :  { %v7624_v50 = vadd.f32 %v7589_v42, %v17834_v41 }
0x1dd5   :  { %v7598_v25 = vcombine.high %v7596_v8, %v7596_v8  ;;  %v7625_v48 = vadd.f32 %v7597_v54, %v17836_v33  ;;  %v7613_v59 = vrot.slane %v7599_v32, %v16201_v37  ;;  %v7614_v16 = vcombine.high %v7606_v61, %v7606_v61 }
0x1dd6   :  { %v7626_v58 = vadd.f32 %v7596_v8, %v17838_v27  ;;  %v7628_v2 = vadd.f32 %v7606_v61, %v17846_v28 }
0x1dd7   :  { %v7615_v18 = vcombine.high %v7613_v59, %v7613_v59  ;;  %v7627_v63 = vadd.f32 %v7598_v25, %v17840_v11  ;;  %v7644_v26 = vcombine.low %v7624_v50, %v7625_v48  ;;  %v7629_v14 = vadd.f32 %v7614_v16, %v17848_v19 }
0x1dd8   :  { %v7630_v40 = vadd.f32 %v7613_v59, %v17850_v4 }
0x1dd9   :  { %v7645_v45 = vcombine.low %v7626_v58, %v7627_v63  ;;  %v7631_v41 = vadd.f32 %v7615_v18, %v17852_v30  ;;  %v7661_v55 = vcombine.low %v7628_v2, %v7629_v14  ;;  %v7652_v33 = vrot.slane %v7644_v26, %v16201_v37  ;;  %v15337_v18 = vld [vmem:[#allocation2 + $0x244] ss:$12 sps:$4 sm:$0xff]   ;;  %v15338_v26 = vld [vmem:[#allocation2 + $0x248] ss:$12 sps:$4 sm:$0xff]  }
0x1dda   :  { %8188 = vmatprep.subr.bf16.mxu1 %v15337_v18  ;;  %14564 = vmatpush3.bf16.msra.mxu0 %v15338_v26 }
0x1ddb   :  { %v7659_v53 = vrot.slane %v7645_v45, %v16201_v37  ;;  %v7662_v52 = vcombine.low %v7630_v40, %v7631_v41  ;;  %v7669_v57 = vrot.slane %v7661_v55, %v16201_v37  ;;  %14565 = vmatprep.subr.bf16.mxu0 %v15992_v1  ;;  %v15343_v45 = vld [vmem:[#allocation2 + $0x270] ss:$12 sps:$4 sm:$0xff]   ;;  %v15346_v55 = vld [vmem:[#allocation2 + $0x278] ss:$12 sps:$4 sm:$0xff]  }
0x1ddd   :  { %v7660_v27 = vcombine.low %v7652_v33, %v7659_v53  ;;  %v7676_v11 = vrot.slane %v7662_v52, %v16201_v37  ;;  %v15349_v33 = vld [vmem:[#allocation2 + $0x28c] ss:$12 sps:$4 sm:$0xff]   ;;  %v15347_v53 = vld [vmem:[#allocation2 + $0x288] ss:$12 sps:$4 sm:$0xff]   ;;  %v15350_v52 = vld [vmem:[#allocation2 + $0x290] ss:$12 sps:$4 sm:$0xff]  }
0x1ddf   :  { %7680 = vadd.xlane.f32.xlu1 %v7660_v27  ;;  %v7677_v28 = vcombine.low %v7669_v57, %v7676_v11  ;;  %v15353_v27 = vld [vmem:[#allocation2 + $0x2a4] ss:$12 sps:$4 sm:$0xff]   ;;  %v15351_v57 = vld [vmem:[#allocation2 + $0x2a0] ss:$12 sps:$4 sm:$0xff]   ;;  %v15354_v11 = vld [vmem:[#allocation2 + $0x2a8] ss:$12 sps:$4 sm:$0xff]  }
0x1de1   :  { %7682 = vadd.xlane.f32.xlu0 %v7677_v28  ;;  %v15357_v28 = vld [vmem:[#allocation2 + $0x2bc] ss:$12 sps:$4 sm:$0xff]  }
0x1e6c   :  { %v7681_v19 = vpop.xlane.xlu1 %7680 }
0x1e6d   :  { %v7684_v6 = vmul.f32 0.0078125, %v7681_v19  ;;  %v15355_v19 = vld [vmem:[#allocation2 + $0x2b8] ss:$12 sps:$4 sm:$0xff]  }
0x1e6e   :  { %v7683_v4 = vpop.xlane.xlu0 %7682 }
0x1e6f   :  { %v7694_v47 = vrot.slane %v7684_v6, %v16587_v20  ;;  %v7701_v30 = vrot.slane %v7684_v6, %v16590_v9  ;;  %v7708_v12 = vrot.slane %v7684_v6, %v16593_v22  ;;  %v7715_v49 = vrot.slane %v7684_v6, %v16596_v43  ;;  %v15358_v6 = vld [vmem:[#allocation2 + $0x2c0] ss:$12 sps:$4 sm:$0xff]  }
0x1e70   :  { %v7685_v29 = vmul.f32 0.0078125, %v7683_v4  ;;  %v15361_v4 = vld [vmem:[#allocation2 + $0x2d4] ss:$12 sps:$4 sm:$0xff]  }
0x1e71   :  { %v17894_v35 = vsub.f32 %v7624_v50, %v7694_v47  ;;  %v17896_v44 = vsub.f32 %v7625_v48, %v7701_v30  ;;  %v17898_v31 = vsub.f32 %v7626_v58, %v7708_v12  ;;  %v17900_v34 = vsub.f32 %v7627_v63, %v7715_v49  ;;  %v15335_v63 = vld [vmem:[#allocation2 + $0x240] ss:$12 sps:$4 sm:$0xff]   ;;  %v15359_v47 = vld [vmem:[#allocation2 + $0x2d0] ss:$12 sps:$4 sm:$0xff]   ;;  %v15362_v30 = vld [vmem:[#allocation2 + $0x2d8] ss:$12 sps:$4 sm:$0xff]  }
0x1e72   :  { %v7722_v36 = vrot.slane %v7685_v29, %v16587_v20  ;;  %v7729_v17 = vrot.slane %v7685_v29, %v16590_v9  ;;  %v7736_v46 = vrot.slane %v7685_v29, %v16593_v22  ;;  %v7743_v21 = vrot.slane %v7685_v29, %v16596_v43  ;;  %8189 = vmatpush1.bf16.msra.mxu1 %v15335_v63  ;;  %v15365_v12 = vld [vmem:[#allocation2 + $0x2ec] ss:$12 sps:$4 sm:$0xff]   ;;  %v15363_v49 = vld [vmem:[#allocation2 + $0x2e8] ss:$12 sps:$4 sm:$0xff]   ;;  %v15366_v29 = vld [vmem:[#allocation2 + $0x2f0] ss:$12 sps:$4 sm:$0xff]  }
0x1e73   :  { %v7760_v7 = vmul.f32 %v17894_v35, %v17894_v35  ;;  %v7761_v51 = vmul.f32 %v17896_v44, %v17896_v44  ;;  %v7762_v56 = vmul.f32 %v17898_v31, %v17898_v31  ;;  %v7763_v23 = vmul.f32 %v17900_v34, %v17900_v34 }
0x1e74   :  { %v17914_v39 = vsub.f32 %v7628_v2, %v7722_v36  ;;  %v17916_v13 = vsub.f32 %v7629_v14, %v7729_v17  ;;  %v17918_v24 = vsub.f32 %v7630_v40, %v7736_v46  ;;  %v17920_v38 = vsub.f32 %v7631_v41, %v7743_v21  ;;  %v15341_v2 = vld [vmem:[#allocation2 + $0x25c] ss:$12 sps:$4 sm:$0xff]   ;;  %v15339_v14 = vld [vmem:[#allocation2 + $0x258] ss:$12 sps:$4 sm:$0xff]   ;;  %v15342_v40 = vld [vmem:[#allocation2 + $0x260] ss:$12 sps:$4 sm:$0xff]  }
0x1e75   :  { %v7776_v5 = vcombine.low %v7760_v7, %v7761_v51  ;;  %v7777_v3 = vcombine.low %v7762_v56, %v7763_v23  ;;  %8190 = vmatprep.subr.bf16.mxu1 %v15341_v2  ;;  %14566 = vmatpush3.bf16.msra.mxu0 %v15342_v40  ;;  %v15345_v41 = vld [vmem:[#allocation2 + $0x274] ss:$12 sps:$4 sm:$0xff]  }
0x1e76   :  { %v7764_v42 = vmul.f32 %v17914_v39, %v17914_v39  ;;  %v7765_v10 = vmul.f32 %v17916_v13, %v17916_v13  ;;  %v7766_v8 = vmul.f32 %v17918_v24, %v17918_v24  ;;  %v7767_v54 = vmul.f32 %v17920_v38, %v17920_v38  ;;  %8191 = vmatpush1.bf16.msra.mxu1 %v15339_v14  ;;  %v13587_v51 = vld [vmem:[%s19208_s13 + $0x2] ss:$0 sm:$0xff] }
0x1e77   :  { %v7784_v32 = vrot.slane %v7776_v5, %v16201_v37  ;;  %v7791_v61 = vrot.slane %v7777_v3, %v16201_v37  ;;  %14567 = vmatprep.subr.bf16.mxu0 %v15992_v1  ;;  %8192 = vmatprep.subr.bf16.mxu1 %v15345_v41  ;;  %v13588_v23 = vld [vmem:[%s19209_s14 + $0x2] ss:$0 sm:$0xff]  ;;  %v7901_v5 = vcombine.high %v13587_v51, %v13587_v51 }
0x1e78   :  { %v7793_v25 = vcombine.low %v7764_v42, %v7765_v10  ;;  %v7794_v50 = vcombine.low %v7766_v8, %v7767_v54  ;;  %v7935_v3 = vcombine.high %v13588_v23, %v13588_v23  ;;  %v7908_v42 = vrot.slane %v13587_v51, %v16201_v37 }
0x1e79   :  { %v7792_v48 = vcombine.low %v7784_v32, %v7791_v61  ;;  %14568 = vmatpush3.bf16.msra.mxu0 %v15346_v55  ;;  %v7915_v10 = vrot.slane %v7901_v5, %v16201_v37  ;;  %v7942_v8 = vrot.slane %v13588_v23, %v16201_v37 }
0x1e7a   :  { %v7801_v59 = vrot.slane %v7793_v25, %v16201_v37  ;;  %v7808_v16 = vrot.slane %v7794_v50, %v16201_v37  ;;  %8193 = vmatpush1.bf16.msra.mxu1 %v15343_v45  ;;  %14569 = vmatprep.subr.bf16.mxu0 %v15992_v1  ;;  %v7949_v54 = vrot.slane %v7935_v3, %v16201_v37  ;;  %v13589_v3 = vld [vmem:[%s19199_s4 + $0x9] sm:$0x7] }
0x1e7b   :  { %7812 = vadd.xlane.f32.xlu1 %v7792_v48  ;;  %8194 = vmatprep.subr.bf16.mxu1 %v15349_v33  ;;  %v7916_v61 = vcombine.high %v7908_v42, %v7908_v42  ;;  %v7917_v25 = vcombine.high %v7915_v10, %v7915_v10 }
0x1e7c   :  { %v7809_v58 = vcombine.low %v7801_v59, %v7808_v16  ;;  %v7951_v18 = vcombine.high %v7949_v54, %v7949_v54 }
0x1e7d   :  { %14570 = vmatpush3.bf16.msra.mxu0 %v15350_v52 }
0x1e7e   :  { %7814 = vadd.xlane.f32.xlu0 %v7809_v58  ;;  %8195 = vmatpush1.bf16.msra.mxu1 %v15347_v53  ;;  %v7950_v58 = vcombine.high %v7942_v8, %v7942_v8 }
0x1e7f   :  { %8196 = vmatprep.subr.bf16.mxu1 %v15353_v27  ;;  %14571 = vmatprep.subr.bf16.mxu0 %v15992_v1 }
0x1e81   :  { %14572 = vmatpush3.bf16.msra.mxu0 %v15354_v11 }
0x1e82   :  { %8197 = vmatpush1.bf16.msra.mxu1 %v15351_v57  ;;  %14573 = vmatprep.subr.bf16.mxu0 %v15992_v1 }
0x1e83   :  { %8198 = vmatprep.subr.bf16.mxu1 %v15357_v28 }
0x1e85   :  { %14574 = vmatpush3.bf16.msra.mxu0 %v15358_v6 }
0x1e86   :  { %8199 = vmatpush1.bf16.msra.mxu1 %v15355_v19  ;;  %14575 = vmatprep.subr.bf16.mxu0 %v15992_v1 }
0x1e87   :  { %8200 = vmatprep.subr.bf16.mxu1 %v15361_v4 }
0x1e89   :  { %14576 = vmatpush3.bf16.msra.mxu0 %v15362_v30 }
0x1e8a   :  { %8201 = vmatpush1.bf16.msra.mxu1 %v15359_v47  ;;  %14577 = vmatprep.subr.bf16.mxu0 %v15992_v1 }
0x1e8b   :  { %8202 = vmatprep.subr.bf16.mxu1 %v15365_v12 }
0x1e8d   :  { %14578 = vmatpush3.bf16.msra.mxu0 %v15366_v29 }
0x1e8e   :  { %8203 = vmatpush1.bf16.msra.mxu1 %v15363_v49  ;;  %14607 = vmatprep.subr.bf16.mxu0 %v15992_v1 }
0x1e8f   :  { %14583 = vmatprep.subr.bf16.mxu1 %v15992_v1 }
0x1f08   :  { %v7813_v36 = vpop.xlane.xlu1 %7812 }
0x1f09   :  { %v7816_v17 = vmul.f32 0.0078125, %v7813_v36 }
0x1f0b   :  { %v7818_v46 = vadd.f32 1e-05, %v7816_v17  ;;  %v7815_v21 = vpop.xlane.xlu0 %7814 }
0x1f0c   :  { %v7817_v7 = vmul.f32 0.0078125, %v7815_v21 }
0x1f0d   :  { %15707 = vrsqrt.f32 %v7818_v46 }
0x1f0e   :  { %v7819_v56 = vadd.f32 1e-05, %v7817_v7 }
0x1f10   :  { %15709 = vrsqrt.f32 %v7819_v56 }
0x1f17   :  { %v15708_v32 = vpop.eup %15707 }
0x1f18   :  { %v7830_v50 = vrot.slane %v15708_v32, %v16587_v20  ;;  %v7837_v48 = vrot.slane %v15708_v32, %v16590_v9  ;;  %v7844_v59 = vrot.slane %v15708_v32, %v16593_v22  ;;  %v7851_v16 = vrot.slane %v15708_v32, %v16596_v43 }
0x1f19   :  { %v8052_v32 = vrot.slane %v13589_v3, %v16235_v62 }
0x1f1a   :  { %v15710_v63 = vpop.eup %15709  ;;  %v7888_v26 = vmul.f32 %v7830_v50, %v17894_v35  ;;  %v7889_v2 = vmul.f32 %v7837_v48, %v17896_v44  ;;  %v7890_v14 = vmul.f32 %v7844_v59, %v17898_v31  ;;  %v7891_v40 = vmul.f32 %v7851_v16, %v17900_v34 }
0x1f1b   :  { %v7858_v45 = vrot.slane %v15710_v63, %v16587_v20  ;;  %v7865_v41 = vrot.slane %v15710_v63, %v16590_v9  ;;  %v7872_v55 = vrot.slane %v15710_v63, %v16593_v22  ;;  %v7879_v33 = vrot.slane %v15710_v63, %v16596_v43 }
0x1f1c   :  { %v7922_v53 = vmul.f32 %v7908_v42, %v7888_v26  ;;  %v7923_v52 = vmul.f32 %v7916_v61, %v7889_v2  ;;  %v7924_v27 = vmul.f32 %v7915_v10, %v7890_v14  ;;  %v7925_v57 = vmul.f32 %v7917_v25, %v7891_v40 }
0x1f1d   :  { %v7892_v35 = vmul.f32 %v7858_v45, %v17914_v39  ;;  %v7893_v44 = vmul.f32 %v7865_v41, %v17916_v13  ;;  %v7894_v31 = vmul.f32 %v7872_v55, %v17918_v24  ;;  %v7895_v34 = vmul.f32 %v7879_v33, %v17920_v38 }
0x1f1e   :  { %v17969_v11 = vadd.f32 %v7942_v8, %v7922_v53  ;;  %v17971_v28 = vadd.f32 %v7950_v58, %v7923_v52  ;;  %v17973_v19 = vadd.f32 %v7949_v54, %v7924_v27  ;;  %v17975_v6 = vadd.f32 %v7951_v18, %v7925_v57 }
0x1f1f   :  { %v7926_v4 = vmul.f32 %v7908_v42, %v7892_v35  ;;  %v7927_v47 = vmul.f32 %v7916_v61, %v7893_v44  ;;  %v7928_v30 = vmul.f32 %v7915_v10, %v7894_v31  ;;  %v7929_v12 = vmul.f32 %v7917_v25, %v7895_v34 }
0x1f20   :  { %v7972_v39 = vcombine.low %v17969_v11, %v17971_v28  ;;  %v7973_v13 = vcombine.low %v17973_v19, %v17975_v6  ;;  %v8048_v42 = vrot.slane %v13589_v3, %v16229_v60  ;;  %v8056_v10 = vrot.slane %v13589_v3, %v16256_v15 }
0x1f21   :  { %v17981_v24 = vadd.f32 %v7942_v8, %v7926_v4  ;;  %v17983_v38 = vadd.f32 %v7950_v58, %v7927_v47  ;;  %v17985_v49 = vadd.f32 %v7949_v54, %v7928_v30  ;;  %v17987_v29 = vadd.f32 %v7951_v18, %v7929_v12 }
0x1f22   :  { %v7980_v36 = vrot.slane %v7972_v39, %v16201_v37  ;;  %v7987_v17 = vrot.slane %v7973_v13, %v16201_v37 }
0x1f23   :  { %v7989_v46 = vcombine.low %v17981_v24, %v17983_v38  ;;  %v7990_v21 = vcombine.low %v17985_v49, %v17987_v29 }
0x1f24   :  { %v7988_v56 = vcombine.low %v7980_v36, %v7987_v17 }
0x1f25   :  { %v7997_v7 = vrot.slane %v7989_v46, %v16201_v37  ;;  %v8004_v51 = vrot.slane %v7990_v21, %v16201_v37 }
0x1f27   :  { %v8005_v23 = vcombine.low %v7997_v7, %v8004_v51 }
0x1f29   :  { %v8008_v5 = vpack.c.bf16 %v8005_v23, %v7988_v56 }
0x1f2b   :  { %8221 = vmatmul.mubr.bf16.vlgmr.msra.gmra.mrb[136].mxu1 %v8008_v5  ;;  %14580 = vmatmul.mubr.bf16.vlgmr.msra.gmra.mrb[116].mxu0 %v8008_v5  ;;  %v18071_v5 = vld [vmem:[%s19197_s2] sm:$0xff] }
0x1f2c   :  { %14585 = vmatprep.mubr.msk.bf16.mxu1 %vm15993_vm0, %v15992_v1  ;;  %14609 = vmatprep.mubr.msk.bf16.mxu0 %vm15993_vm0, %v15992_v1 }
0x1ffe   :  { %v8222_v8 = vpop.f32.mrb[136].mxu1  ;;  %v8265_v54 = vpop.f32.mrb[116].mxu0 }
0x1fff   :  { %v8224_v61 = vpop.f32.mrb[137].mxu1  ;;  %v14581_v25 = vpop.f32.mrb[117].mxu0  ;;  %v8223_v59 = vadd.f32 %v8222_v8, %v8048_v42  ;;  %v8266_v16 = vadd.f32 %v8265_v54, %v8056_v10  ;;  %v18079_v8 = vld [vmem:[%s19197_s2 + $0x8] sm:$0xff] }
0x2000   :  { %v8226_v50 = vpop.f32.mrb[138].mxu1  ;;  %v8268_v48 = vpop.f32.mrb[118].mxu0  ;;  %v8225_v2 = vadd.f32 %v8224_v61, %v8052_v32 }
0x2001   :  { %v8227_v58 = vadd.f32 %v8226_v50, %v8048_v42  ;;  %v8269_v18 = vadd.f32 %v8268_v48, %v8056_v10  ;;  %v8228_v63 = vpop.f32.mrb[139].mxu1  ;;  %v14582_v26 = vpop.f32.mrb[119].mxu0 }
0x2002   :  { %v8229_v14 = vadd.f32 %v8228_v63, %v8052_v32 }
0x2003   :  { %v8272_v40 = vpack.c.bf16 %v8227_v58, %v8223_v59  ;;  %v18007_v45 = vpack.c.bf16 %v8269_v18, %v8266_v16 }
0x2004   :  { %v8273_v41 = vpack.c.bf16 %v8229_v14, %v8225_v2 }
0x2005   :  { %8276 = vrot.lane.b32.xlu0 %v8272_v40, %s15995_s5 }
0x2006   :  { %8291 = vrot.lane.b32.xlu1 %v8273_v41, %s15995_s5  ;;  %v8331_v55 = vsel %vm499_vm1, %v8273_v41, 0 }
0x2007   :  { %14584 = vmatpush3.bf16.xpose.msra.mxu1 %v8331_v55 }
0x2008   :  { %14589 = vmatprep.subr.bf16.mxu1 %v15992_v1 }
0x2009   :  { %8295 = vrot.lane.b32.xlu0 %v8273_v41, %s15996_s25 }
0x200a   :  { %8293 = vrot.lane.b32.xlu1 %v8273_v41, %s15997_s21 }
0x200d   :  { %8280 = vrot.lane.b32.xlu0 %v8272_v40, %s15996_s25 }
0x200e   :  { %8278 = vrot.lane.b32.xlu1 %v8272_v40, %s15997_s21  ;;  %14586 = vmatmul.mubr.msk.bf16.vlgmr.msra.gmra.mrb[140].mxu1 %vm499_vm1, %v8272_v40 }
0x200f   :  { %14591 = vmatprep.mubr.msk.bf16.mxu1 %vm15993_vm0, %v15992_v1 }
0x2011   :  { %8282 = vrot.lane.b32.xlu0 %v8272_v40, %s19218_s9 }
0x2012   :  { %8297 = vrot.lane.b32.xlu1 %v8273_v41, %s19218_s9 }
0x2015   :  { %8284 = vrot.lane.b32.xlu0 %v8272_v40, %s15998_s22 }
0x2016   :  { %8299 = vrot.lane.b32.xlu1 %v8273_v41, %s15998_s22 }
0x2019   :  { %8286 = vrot.lane.b32.xlu0 %v8272_v40, %s15999_s23 }
0x201a   :  { %8301 = vrot.lane.b32.xlu1 %v8273_v41, %s15999_s23 }
0x201e   :  { %8303 = vrot.lane.b32.xlu1 %v8273_v41, %s16000_s27 }
0x2022   :  { %8288 = vrot.lane.b32.xlu1 %v8272_v40, %s16000_s27 }
0x2026   :  { %8306 = vrot.lane.b32.xlu1 %v18007_v45, %s15995_s5 }
0x2077   :  { %v8277_v33 = vpop.permute.xlu0 %8276 }
0x2078   :  { %v8292_v53 = vpop.permute.xlu1 %8291 }
0x2079   :  { %v8378_v52 = vsel %vm499_vm1, %v8292_v53, 0 }
0x207a   :  { %14590 = vmatpush3.bf16.xpose.msra.mxu1 %v8378_v52 }
0x207b   :  { %14595 = vmatprep.subr.bf16.mxu1 %v15992_v1  ;;  %v8296_v27 = vpop.permute.xlu0 %8295 }
0x207c   :  { %v8294_v57 = vpop.permute.xlu1 %8293  ;;  %v8472_v12 = vsel %vm499_vm1, %v8296_v27, 0 }
0x207d   :  { %v8425_v44 = vsel %vm499_vm1, %v8294_v57, 0 }
0x207f   :  { %v8281_v31 = vpop.permute.xlu0 %8280 }
0x2080   :  { %v8279_v35 = vpop.permute.xlu1 %8278 }
0x2081   :  { %14592 = vmatmul.mubr.msk.bf16.vlgmr.msra.gmra.mrb[144].mxu1 %vm499_vm1, %v8277_v33 }
0x2082   :  { %14596 = vmatpush3.bf16.xpose.msra.mxu1 %v8425_v44  ;;  %14597 = vmatprep.mubr.msk.bf16.mxu1 %vm15993_vm0, %v15992_v1 }
0x2083   :  { %14601 = vmatprep.subr.bf16.mxu1 %v15992_v1  ;;  %v8283_v47 = vpop.permute.xlu0 %8282 }
0x2084   :  { %v8298_v34 = vpop.permute.xlu1 %8297 }
0x2085   :  { %v8519_v4 = vsel %vm499_vm1, %v8298_v34, 0 }
0x2086   :  { %14608 = vmatpush3.bf16.xpose.msra.mxu0 %v8519_v4 }
0x2087   :  { %14619 = vmatprep.subr.bf16.mxu0 %v15992_v1  ;;  %v8285_v36 = vpop.permute.xlu0 %8284 }
0x2088   :  { %v8300_v30 = vpop.permute.xlu1 %8299 }
0x2089   :  { %14598 = vmatmul.mubr.msk.bf16.vlgmr.msra.gmra.mrb[148].mxu1 %vm499_vm1, %v8279_v35  ;;  %v8566_v17 = vsel %vm499_vm1, %v8300_v30, 0 }
0x208a   :  { %14602 = vmatpush3.bf16.xpose.msra.mxu1 %v8472_v12  ;;  %14603 = vmatprep.mubr.msk.bf16.mxu1 %vm15993_vm0, %v15992_v1 }
0x208b   :  { %14613 = vmatprep.subr.bf16.mxu1 %v15992_v1  ;;  %v8287_v46 = vpop.permute.xlu0 %8286 }
0x208c   :  { %v8302_v39 = vpop.permute.xlu1 %8301 }
0x208d   :  { %v8613_v13 = vsel %vm499_vm1, %v8302_v39, 0  ;;  %14610 = vmatmul.mubr.msk.bf16.vlgmr.msra.gmra.mrb[120].mxu0 %vm499_vm1, %v8283_v47 }
0x208e   :  { %14620 = vmatpush3.bf16.xpose.msra.mxu0 %v8613_v13  ;;  %14621 = vmatprep.mubr.msk.bf16.mxu0 %vm15993_vm0, %v15992_v1 }
0x208f   :  { %14631 = vmatprep.subr.bf16.mxu0 %v15992_v1 }
0x2090   :  { %v8304_v21 = vpop.permute.xlu1 %8303 }
0x2091   :  { %14604 = vmatmul.mubr.msk.bf16.vlgmr.msra.gmra.mrb[152].mxu1 %vm499_vm1, %v8281_v31  ;;  %v8660_v7 = vsel %vm499_vm1, %v8304_v21, 0 }
0x2092   :  { %14614 = vmatpush3.bf16.xpose.msra.mxu1 %v8566_v17  ;;  %14615 = vmatprep.mubr.msk.bf16.mxu1 %vm15993_vm0, %v15992_v1 }
0x2093   :  { %14625 = vmatprep.subr.bf16.mxu1 %v15992_v1 }
0x2094   :  { %v8289_v51 = vpop.permute.xlu1 %8288 }
0x2095   :  { %14622 = vmatmul.mubr.msk.bf16.vlgmr.msra.gmra.mrb[124].mxu0 %vm499_vm1, %v8287_v46 }
0x2096   :  { %14632 = vmatpush3.bf16.msra.mxu0 %v18007_v45  ;;  %14633 = vmatprep.mubr.msk.bf16.mxu0 %vm15993_vm0, %v15992_v1 }
0x2097   :  { %14643 = vmatprep.subr.bf16.mxu0 %v15992_v1 }
0x2098   :  { %v8307_v56 = vpop.permute.xlu1 %8306 }
0x2099   :  { %14616 = vmatmul.mubr.msk.bf16.vlgmr.msra.gmra.mrb[156].mxu1 %vm499_vm1, %v8285_v36 }
0x209a   :  { %14626 = vmatpush3.bf16.xpose.msra.mxu1 %v8660_v7  ;;  %14627 = vmatprep.mubr.msk.bf16.mxu1 %vm15993_vm0, %v15992_v1 }
0x209b   :  { %14637 = vmatprep.subr.bf16.mxu1 %v15992_v1 }
0x20a1   :  { %14628 = vmatmul.mubr.msk.bf16.vlgmr.msra.gmra.mrb[160].mxu1 %vm499_vm1, %v8289_v51 }
0x20a2   :  { %14638 = vmatpush3.bf16.msra.mxu1 %v8307_v56  ;;  %14639 = vmatprep.mubr.msk.bf16.mxu1 %vm15993_vm0, %v15992_v1 }
0x20a3   :  { %14649 = vmatprep.subr.bf16.mxu1 %v15992_v1 }
0x20e1   :  { %v8367_v23 = vpop.f32.mrb[140].mxu1 }
0x20e2   :  { %v18074_v3 = vadd.f32 %v18071_v5, %v8367_v23  ;;  %v14587_v42 = vpop.f32.mrb[141].mxu1 }
0x20e3   :  { %v8370_v10 = vpop.f32.mrb[142].mxu1 }
0x20e4   :  { %v18082_v54 = vadd.f32 %v18079_v8, %v8370_v10  ;;  %v14588_v32 = vpop.f32.mrb[143].mxu1  ;;  %v8703_v61 = vsel %vm499_vm1, %v18074_v3, -inf }
0x20e5   :  { %8704 = vmax.xlane.f32.xlu0 %v8703_v61 }
0x20e6   :  { %v8706_v25 = vsel %vm499_vm1, %v18082_v54, -inf }
0x20e7   :  { %8707 = vmax.xlane.f32.xlu1 %v8706_v25 }
0x2154   :  { %v8414_v50 = vpop.f32.mrb[144].mxu1 }
0x2155   :  { %v18089_v48 = vadd.f32 %v18071_v5, %v8414_v50  ;;  %v14593_v59 = vpop.f32.mrb[145].mxu1 }
0x2156   :  { %v8417_v16 = vpop.f32.mrb[146].mxu1 }
0x2157   :  { %v18092_v58 = vadd.f32 %v18079_v8, %v8417_v16  ;;  %v14594_v18 = vpop.f32.mrb[147].mxu1  ;;  %v8709_v63 = vsel %vm499_vm1, %v18089_v48, -inf }
0x2158   :  { %8710 = vmax.xlane.f32.xlu0 %v8709_v63 }
0x2159   :  { %v8712_v26 = vsel %vm499_vm1, %v18092_v58, -inf }
0x215c   :  { %8713 = vmax.xlane.f32.xlu0 %v8712_v26  ;;  %v8461_v2 = vpop.f32.mrb[148].mxu1 }
0x215d   :  { %v14599_v14 = vpop.f32.mrb[149].mxu1  ;;  %v18102_v27 = vadd.f32 %v18071_v5, %v8461_v2 }
0x215e   :  { %v8464_v40 = vpop.f32.mrb[150].mxu1 }
0x215f   :  { %v14600_v41 = vpop.f32.mrb[151].mxu1  ;;  %v18110_v34 = vadd.f32 %v18079_v8, %v8464_v40  ;;  %v8715_v39 = vsel %vm499_vm1, %v18102_v27, -inf }
0x2160   :  { %v8555_v55 = vpop.f32.mrb[120].mxu0 }
0x2161   :  { %v18099_v33 = vadd.f32 %v18071_v5, %v8555_v55  ;;  %v14611_v53 = vpop.f32.mrb[121].mxu0  ;;  %v8718_v46 = vsel %vm499_vm1, %v18110_v34, -inf }
0x2162   :  { %v8558_v52 = vpop.f32.mrb[122].mxu0 }
0x2163   :  { %v18105_v57 = vadd.f32 %v18079_v8, %v8558_v52  ;;  %v14612_v35 = vpop.f32.mrb[123].mxu0  ;;  %v8727_v44 = vsel %vm499_vm1, %v18099_v33, -inf }
0x2164   :  { %8728 = vmax.xlane.f32.xlu1 %v8727_v44  ;;  %v8508_v31 = vpop.f32.mrb[152].mxu1 }
0x2165   :  { %v14605_v4 = vpop.f32.mrb[153].mxu1  ;;  %v8730_v47 = vsel %vm499_vm1, %v18105_v57, -inf  ;;  %v18122_v7 = vadd.f32 %v18071_v5, %v8508_v31 }
0x2166   :  { %8731 = vmax.xlane.f32.xlu0 %v8730_v47  ;;  %v8511_v30 = vpop.f32.mrb[154].mxu1 }
0x2167   :  { %v14606_v12 = vpop.f32.mrb[155].mxu1  ;;  %v18130_v10 = vadd.f32 %v18079_v8, %v8511_v30  ;;  %v8721_v16 = vsel %vm499_vm1, %v18122_v7, -inf }
0x2168   :  { %v8649_v13 = vpop.f32.mrb[124].mxu0  ;;  %8716 = vmax.xlane.f32.xlu1 %v8715_v39 }
0x2169   :  { %v18117_v36 = vadd.f32 %v18071_v5, %v8649_v13  ;;  %v14623_v17 = vpop.f32.mrb[125].mxu0  ;;  %v8724_v63 = vsel %vm499_vm1, %v18130_v10, -inf }
0x216a   :  { %v8652_v21 = vpop.f32.mrb[126].mxu0  ;;  %8719 = vmax.xlane.f32.xlu0 %v8718_v46 }
0x216b   :  { %v18125_v51 = vadd.f32 %v18079_v8, %v8652_v21  ;;  %v14624_v56 = vpop.f32.mrb[127].mxu0  ;;  %v8739_v23 = vsel %vm499_vm1, %v18117_v36, -inf }
0x216c   :  { %8740 = vmax.xlane.f32.xlu1 %v8739_v23  ;;  %v8602_v42 = vpop.f32.mrb[156].mxu1 }
0x216d   :  { %v14617_v32 = vpop.f32.mrb[157].mxu1  ;;  %v8742_v61 = vsel %vm499_vm1, %v18125_v51, -inf  ;;  %v18135_v50 = vadd.f32 %v18071_v5, %v8602_v42 }
0x216e   :  { %8743 = vmax.xlane.f32.xlu0 %v8742_v61  ;;  %v8605_v25 = vpop.f32.mrb[158].mxu1 }
0x216f   :  { %v14618_v59 = vpop.f32.mrb[159].mxu1  ;;  %v18140_v18 = vadd.f32 %v18079_v8, %v8605_v25  ;;  %v8733_v26 = vsel %vm499_vm1, %v18135_v50, -inf }
0x2170   :  { %8722 = vmax.xlane.f32.xlu1 %v8721_v16 }
0x2171   :  { %v8736_v41 = vsel %vm499_vm1, %v18140_v18, -inf }
0x2172   :  { %8725 = vmax.xlane.f32.xlu0 %v8724_v63 }
0x2174   :  { %8734 = vmax.xlane.f32.xlu1 %v8733_v26  ;;  %v8696_v2 = vpop.f32.mrb[160].mxu1 }
0x2175   :  { %v18147_v14 = vadd.f32 %v18071_v5, %v8696_v2  ;;  %v14629_v40 = vpop.f32.mrb[161].mxu1  ;;  %v8708_v5 = vpop.xlane.xlu1 %8707 }
0x2176   :  { %8737 = vmax.xlane.f32.xlu0 %v8736_v41  ;;  %v8699_v55 = vpop.f32.mrb[162].mxu1  ;;  %v8752_v31 = vsub.f32 %v18082_v54, %v8708_v5 }
0x2177   :  { %v18152_v53 = vadd.f32 %v18079_v8, %v8699_v55  ;;  %v14630_v52 = vpop.f32.mrb[163].mxu1  ;;  %v8745_v35 = vsel %vm499_vm1, %v18147_v14, -inf  ;;  %v8705_v8 = vpop.xlane.xlu0 %8704 }
0x2178   :  { %8746 = vmax.xlane.f32.xlu1 %v8745_v35  ;;  %v8751_v4 = vsub.f32 %v18074_v3, %v8705_v8  ;;  %v8769_v47 = vmul.f32 1.442695, %v8752_v31 }
0x2179   :  { %v8748_v44 = vsel %vm499_vm1, %v18152_v53, -inf }
0x217a   :  { %8749 = vmax.xlane.f32.xlu0 %v8748_v44  ;;  %v8767_v30 = vmul.f32 1.442695, %v8751_v4  ;;  %15711 = vpow2.f32 %v8769_v47 }
0x217c   :  { %15713 = vpow2.f32 %v8767_v30 }
0x2184   :  { %v18166_v12 = vpop.eup %15711 }
0x2185   :  { %v8802_v13 = vsel %vm499_vm1, %v18166_v12, 0.0 }
0x2186   :  { %v18168_v39 = vpop.eup %15713 }
0x2187   :  { %v8799_v17 = vsel %vm499_vm1, %v18168_v39, 0.0 }
0x2189   :  { %8312 = vrot.lane.b32.xlu1 %v18007_v45, %s15996_s25 }
0x218d   :  { %8315 = vrot.lane.b32.xlu1 %v18007_v45, %s19218_s9 }
0x2190   :  { %8309 = vrot.lane.b32.xlu0 %v18007_v45, %s15997_s21 }
0x21af   :  { %8803 = vadd.xlane.f32.xlu0 %v8802_v13 }
0x21b1   :  { %8800 = vadd.xlane.f32.xlu1 %v8799_v17 }
0x21e5   :  { %v8711_v46 = vpop.xlane.xlu0 %8710 }
0x21e6   :  { %v8753_v54 = vsub.f32 %v18089_v48, %v8711_v46 }
0x21e8   :  { %v8771_v3 = vmul.f32 1.442695, %v8753_v54 }
0x21e9   :  { %v8714_v21 = vpop.xlane.xlu0 %8713 }
0x21ea   :  { %15715 = vpow2.f32 %v8771_v3  ;;  %v8754_v56 = vsub.f32 %v18092_v58, %v8714_v21 }
0x21ec   :  { %v8773_v23 = vmul.f32 1.442695, %v8754_v56 }
0x21ee   :  { %15717 = vpow2.f32 %v8773_v23 }
0x21f1   :  { %v8729_v42 = vpop.xlane.xlu1 %8728 }
0x21f2   :  { %v8759_v32 = vsub.f32 %v18099_v33, %v8729_v42 }
0x21f3   :  { %v8732_v61 = vpop.xlane.xlu0 %8731 }
0x21f4   :  { %v18177_v25 = vpop.eup %15715  ;;  %v8783_v59 = vmul.f32 1.442695, %v8759_v32  ;;  %v8760_v16 = vsub.f32 %v18105_v57, %v8732_v61 }
0x21f5   :  { %v8717_v63 = vpop.xlane.xlu1 %8716  ;;  %v8805_v48 = vsel %vm499_vm1, %v18177_v25, 0.0 }
0x21f6   :  { %15719 = vpow2.f32 %v8783_v59  ;;  %v8785_v26 = vmul.f32 1.442695, %v8760_v16  ;;  %v8755_v2 = vsub.f32 %v18102_v27, %v8717_v63  ;;  %8806 = vadd.xlane.f32.xlu1 %v8805_v48 }
0x21f7   :  { %v8720_v58 = vpop.xlane.xlu0 %8719 }
0x21f8   :  { %v18183_v40 = vpop.eup %15717  ;;  %15721 = vpow2.f32 %v8785_v26  ;;  %v8775_v33 = vmul.f32 1.442695, %v8755_v2  ;;  %v8756_v41 = vsub.f32 %v18110_v34, %v8720_v58 }
0x21f9   :  { %v8741_v55 = vpop.xlane.xlu1 %8740  ;;  %v8808_v57 = vsel %vm499_vm1, %v18183_v40, 0.0 }
0x21fa   :  { %15723 = vpow2.f32 %v8775_v33  ;;  %v8777_v52 = vmul.f32 1.442695, %v8756_v41  ;;  %v8763_v35 = vsub.f32 %v18117_v36, %v8741_v55  ;;  %8809 = vadd.xlane.f32.xlu0 %v8808_v57 }
0x21fb   :  { %v8744_v44 = vpop.xlane.xlu0 %8743 }
0x21fc   :  { %15725 = vpow2.f32 %v8777_v52  ;;  %v8791_v27 = vmul.f32 1.442695, %v8763_v35  ;;  %v8764_v5 = vsub.f32 %v18125_v51, %v8744_v44 }
0x21fd   :  { %v8723_v8 = vpop.xlane.xlu1 %8722 }
0x21fe   :  { %15727 = vpow2.f32 %v8791_v27  ;;  %v8793_v31 = vmul.f32 1.442695, %v8764_v5  ;;  %v8757_v4 = vsub.f32 %v18122_v7, %v8723_v8 }
0x21ff   :  { %v8726_v34 = vpop.xlane.xlu0 %8725 }
0x2200   :  { %v18191_v47 = vpop.eup %15719  ;;  %15729 = vpow2.f32 %v8793_v31  ;;  %v8779_v30 = vmul.f32 1.442695, %v8757_v4  ;;  %v8758_v13 = vsub.f32 %v18130_v10, %v8726_v34 }
0x2201   :  { %v8735_v17 = vpop.xlane.xlu1 %8734  ;;  %v8823_v36 = vsel %vm499_vm1, %v18191_v47, 0.0 }
0x2202   :  { %v18196_v46 = vpop.eup %15721  ;;  %15731 = vpow2.f32 %v8779_v30  ;;  %v8781_v51 = vmul.f32 1.442695, %v8758_v13  ;;  %v8761_v54 = vsub.f32 %v18135_v50, %v8735_v17  ;;  %8824 = vadd.xlane.f32.xlu1 %v8823_v36 }
0x2203   :  { %v8826_v7 = vsel %vm499_vm1, %v18196_v46, 0.0  ;;  %v8738_v57 = vpop.xlane.xlu0 %8737 }
0x2204   :  { %v18201_v3 = vpop.eup %15723  ;;  %15733 = vpow2.f32 %v8781_v51  ;;  %v8787_v21 = vmul.f32 1.442695, %v8761_v54  ;;  %8827 = vadd.xlane.f32.xlu0 %v8826_v7  ;;  %v8762_v52 = vsub.f32 %v18140_v18, %v8738_v57 }
0x2205   :  { %v8747_v10 = vpop.xlane.xlu1 %8746  ;;  %v8811_v56 = vsel %vm499_vm1, %v18201_v3, 0.0 }
0x2206   :  { %v18205_v23 = vpop.eup %15725  ;;  %15735 = vpow2.f32 %v8787_v21  ;;  %v8765_v42 = vsub.f32 %v18147_v14, %v8747_v10  ;;  %8812 = vadd.xlane.f32.xlu1 %v8811_v56  ;;  %v8789_v44 = vmul.f32 1.442695, %v8762_v52 }
0x2207   :  { %v8814_v50 = vsel %vm499_vm1, %v18205_v23, 0.0  ;;  %v8750_v35 = vpop.xlane.xlu0 %8749 }
0x2208   :  { %v18210_v32 = vpop.eup %15727  ;;  %v8795_v61 = vmul.f32 1.442695, %v8765_v42  ;;  %8815 = vadd.xlane.f32.xlu0 %v8814_v50  ;;  %v8766_v27 = vsub.f32 %v18152_v53, %v8750_v35 }
0x2209   :  { %v8835_v59 = vsel %vm499_vm1, %v18210_v32, 0.0  ;;  %v8313_v5 = vpop.permute.xlu1 %8312 }
0x220a   :  { %v18214_v16 = vpop.eup %15729  ;;  %15737 = vpow2.f32 %v8795_v61  ;;  %8836 = vadd.xlane.f32.xlu1 %v8835_v59  ;;  %v8797_v8 = vmul.f32 1.442695, %v8766_v27 }
0x220b   :  { %v8838_v63 = vsel %vm499_vm1, %v18214_v16, 0.0  ;;  %15739 = vpow2.f32 %v8789_v44  ;;  %v8310_v31 = vpop.permute.xlu0 %8309 }
0x220c   :  { %v18218_v48 = vpop.eup %15731  ;;  %8839 = vadd.xlane.f32.xlu0 %v8838_v63  ;;  %15741 = vpow2.f32 %v8797_v8 }
0x220d   :  { %v8817_v14 = vsel %vm499_vm1, %v18218_v48, 0.0  ;;  %v8316_v4 = vpop.permute.xlu1 %8315 }
0x220e   :  { %v18222_v26 = vpop.eup %15733  ;;  %8818 = vadd.xlane.f32.xlu1 %v8817_v14 }
0x220f   :  { %v8820_v2 = vsel %vm499_vm1, %v18222_v26, 0.0 }
0x2210   :  { %v18226_v58 = vpop.eup %15735  ;;  %8821 = vadd.xlane.f32.xlu0 %v8820_v2 }
0x2211   :  { %v8829_v33 = vsel %vm499_vm1, %v18226_v58, 0.0 }
0x2212   :  { %8830 = vadd.xlane.f32.xlu1 %v8829_v33 }
0x2214   :  { %v18230_v41 = vpop.eup %15737 }
0x2215   :  { %v8841_v55 = vsel %vm499_vm1, %v18230_v41, 0.0  ;;  %v18240_v13 = vpop.eup %15739 }
0x2216   :  { %8842 = vadd.xlane.f32.xlu1 %v8841_v55  ;;  %v8832_v17 = vsel %vm499_vm1, %v18240_v13, 0.0  ;;  %v18244_v18 = vpop.eup %15741 }
0x2217   :  { %v8844_v53 = vsel %vm499_vm1, %v18244_v18, 0.0 }
0x2226   :  { %8318 = vrot.lane.b32.xlu0 %v18007_v45, %s15998_s22 }
0x2227   :  { %8321 = vrot.lane.b32.xlu1 %v18007_v45, %s15999_s23 }
0x223c   :  { %v8804_v34 = vpop.xlane.xlu0 %8803 }
0x223d   :  { %15743 = vrcp.f32 %v8804_v34 }
0x223e   :  { %v8801_v30 = vpop.xlane.xlu1 %8800 }
0x223f   :  { %15745 = vrcp.f32 %v8801_v30 }
0x2245   :  { %8833 = vadd.xlane.f32.xlu0 %v8832_v17 }
0x2247   :  { %v15744_v36 = vpop.eup %15743 }
0x2248   :  { %v8864_v54 = vmul.f32 %v15744_v36, %v18166_v12 }
0x2249   :  { %v15746_v51 = vpop.eup %15745  ;;  %8845 = vadd.xlane.f32.xlu0 %v8844_v53 }
0x224a   :  { %v8863_v7 = vmul.f32 %v15746_v51, %v18168_v39 }
0x224c   :  { %v8879_v21 = vpack.c.bf16 %v8864_v54, %v8863_v7 }
0x224e   :  { %14634 = vmatmul.mubr.msk.bf16.vlgmr.msra.gmra.mrb[128].mxu0 %vm499_vm1, %v8879_v21 }
0x224f   :  { %14644 = vmatpush3.bf16.msra.mxu0 %v8310_v31  ;;  %14645 = vmatprep.mubr.msk.bf16.mxu0 %vm15993_vm0, %v15992_v1 }
0x2250   :  { %14655 = vmatprep.subr.bf16.mxu0 %v15992_v1 }
0x225f   :  { %8324 = vrot.lane.b32.xlu0 %v18007_v45, %s16000_s27 }
0x2283   :  { %v8807_v10 = vpop.xlane.xlu1 %8806 }
0x2284   :  { %15747 = vrcp.f32 %v8807_v10 }
0x2287   :  { %v8810_v56 = vpop.xlane.xlu0 %8809 }
0x2288   :  { %15749 = vrcp.f32 %v8810_v56 }
0x228e   :  { %v15748_v12 = vpop.eup %15747 }
0x228f   :  { %v8825_v42 = vpop.xlane.xlu1 %8824  ;;  %v8865_v61 = vmul.f32 %v15748_v12, %v18177_v25 }
0x2291   :  { %v8828_v50 = vpop.xlane.xlu0 %8827 }
0x2292   :  { %v15750_v39 = vpop.eup %15749 }
0x2293   :  { %v8866_v59 = vmul.f32 %v15750_v39, %v18183_v40  ;;  %v8813_v63 = vpop.xlane.xlu1 %8812 }
0x2294   :  { %15751 = vrcp.f32 %v8813_v63 }
0x2295   :  { %v8816_v14 = vpop.xlane.xlu0 %8815  ;;  %v8880_v2 = vpack.c.bf16 %v8866_v59, %v8865_v61 }
0x2296   :  { %15753 = vrcp.f32 %v8816_v14 }
0x2297   :  { %v8837_v33 = vpop.xlane.xlu1 %8836  ;;  %14640 = vmatmul.mubr.msk.bf16.vlgmr.msra.gmra.mrb[164].mxu1 %vm499_vm1, %v8880_v2  ;;  %15755 = vrcp.f32 %v8828_v50 }
0x2298   :  { %14650 = vmatpush3.bf16.msra.mxu1 %v8313_v5  ;;  %14651 = vmatprep.mubr.msk.bf16.mxu1 %vm15993_vm0, %v15992_v1  ;;  %15757 = vrcp.f32 %v8825_v42 }
0x2299   :  { %v8840_v45 = vpop.xlane.xlu0 %8839  ;;  %14661 = vmatprep.subr.bf16.mxu1 %v15992_v1 }
0x229b   :  { %v8819_v25 = vpop.xlane.xlu1 %8818 }
0x229c   :  { %15759 = vrcp.f32 %v8819_v25 }
0x229d   :  { %v8822_v40 = vpop.xlane.xlu0 %8821 }
0x229e   :  { %v15752_v55 = vpop.eup %15751  ;;  %15761 = vrcp.f32 %v8822_v40 }
0x229f   :  { %v8867_v52 = vmul.f32 %v15752_v55, %v18201_v3  ;;  %v8831_v44 = vpop.xlane.xlu1 %8830  ;;  %15763 = vrcp.f32 %v8840_v45 }
0x22a0   :  { %v15754_v57 = vpop.eup %15753  ;;  %15765 = vrcp.f32 %v8837_v33 }
0x22a1   :  { %v8868_v35 = vmul.f32 %v15754_v57, %v18205_v23  ;;  %v15756_v5 = vpop.eup %15755  ;;  %v8319_v7 = vpop.permute.xlu0 %8318  ;;  %15767 = vrcp.f32 %v8831_v44 }
0x22a2   :  { %v15758_v8 = vpop.eup %15757  ;;  %v8872_v34 = vmul.f32 %v15756_v5, %v18196_v46 }
0x22a3   :  { %v8881_v27 = vpack.c.bf16 %v8868_v35, %v8867_v52  ;;  %v8843_v30 = vpop.xlane.xlu1 %8842  ;;  %v8871_v23 = vmul.f32 %v15758_v8, %v18191_v47  ;;  %v15367_v8 = vld [vmem:[#allocation5 + $0xc0] sm:$0xff]  }
0x22a5   :  { %14646 = vmatmul.mubr.msk.bf16.vlgmr.msra.gmra.mrb[132].mxu0 %vm499_vm1, %v8881_v27  ;;  %v8883_v51 = vpack.c.bf16 %v8872_v34, %v8871_v23  ;;  %v15368_v23 = vld [vmem:[#allocation5 + $0xc8] sm:$0xff]  }
0x22a6   :  { %v15760_v31 = vpop.eup %15759  ;;  %14656 = vmatpush3.bf16.msra.mxu0 %v8316_v4  ;;  %14657 = vmatprep.mubr.msk.bf16.mxu0 %vm15993_vm0, %v15992_v1 }
0x22a7   :  { %14667 = vmatprep.subr.bf16.mxu0 %v15992_v1  ;;  %v8869_v17 = vmul.f32 %v15760_v31, %v18218_v48  ;;  %v8322_v4 = vpop.permute.xlu1 %8321 }
0x22a8   :  { %v15762_v3 = vpop.eup %15761 }
0x22a9   :  { %v8870_v36 = vmul.f32 %v15762_v3, %v18222_v26  ;;  %v15764_v54 = vpop.eup %15763 }
0x22aa   :  { %v15766_v46 = vpop.eup %15765  ;;  %v8876_v21 = vmul.f32 %v15764_v54, %v18214_v16  ;;  %v15369_v54 = vld [vmem:[#allocation5 + $0xd0] sm:$0xff]  }
0x22ab   :  { %v8882_v53 = vpack.c.bf16 %v8870_v36, %v8869_v17  ;;  %v8875_v47 = vmul.f32 %v15766_v46, %v18210_v32  ;;  %v15768_v10 = vpop.eup %15767 }
0x22ac   :  { %v8873_v42 = vmul.f32 %v15768_v10, %v18226_v58  ;;  %v15373_v10 = vld [vmem:[#allocation5 + $0xf0] sm:$0xff]  }
0x22ad   :  { %14652 = vmatmul.mubr.msk.bf16.vlgmr.msra.gmra.mrb[168].mxu1 %vm499_vm1, %v8882_v53  ;;  %14658 = vmatmul.mubr.msk.bf16.vlgmr.msra.gmra.mrb[136].mxu0 %vm499_vm1, %v8883_v51  ;;  %v8885_v48 = vpack.c.bf16 %v8876_v21, %v8875_v47  ;;  %v15370_v21 = vld [vmem:[#allocation5 + $0xd8] sm:$0xff]  }
0x22ae   :  { %14662 = vmatpush3.bf16.msra.mxu1 %v8319_v7  ;;  %14668 = vmatpush3.bf16.msra.mxu0 %v8322_v4 }
0x22af   :  { %14669 = vmatprep.mubr.msk.bf16.mxu0 %vm15993_vm0, %v15992_v1  ;;  %14663 = vmatprep.mubr.msk.bf16.mxu1 %vm15993_vm0, %v15992_v1 }
0x22b0   :  { %14673 = vmatprep.subr.bf16.mxu1 %v15992_v1  ;;  %14679 = vmatprep.subr.bf16.mxu0 %v15992_v1 }
0x22b5   :  { %14670 = vmatmul.mubr.msk.bf16.vlgmr.msra.gmra.mrb[140].mxu0 %vm499_vm1, %v8885_v48 }
0x22b6   :  { %14695 = vmatprep.mubr.msk.bf16.mxu0 %vm15993_vm0, %v15992_v1  ;;  %14680 = vmatpush3.bf16.msra.mxu0 %v15367_v8 }
0x22b7   :  { %14681 = vmatprep.subr.bf16.mxu0 %v15992_v1 }
0x22ba   :  { %14682 = vmatpush3.bf16.msra.mxu0 %v15368_v23 }
0x22bb   :  { %14683 = vmatprep.subr.bf16.mxu0 %v15992_v1 }
0x22be   :  { %14684 = vmatpush3.bf16.msra.mxu0 %v15369_v54 }
0x22bf   :  { %14685 = vmatprep.subr.bf16.mxu0 %v15992_v1 }
0x22c2   :  { %14686 = vmatpush3.bf16.msra.mxu0 %v15370_v21 }
0x22c3   :  { %14687 = vmatprep.subr.bf16.mxu0 %v15992_v1 }
0x22d2   :  { %v8834_v16 = vpop.xlane.xlu0 %8833 }
0x22d3   :  { %15769 = vrcp.f32 %v8834_v16  ;;  %v15371_v16 = vld [vmem:[#allocation5 + $0xe0] sm:$0xff]  }
0x22d4   :  { %14688 = vmatpush3.bf16.msra.mxu0 %v15371_v16 }
0x22d5   :  { %14689 = vmatprep.subr.bf16.mxu0 %v15992_v1 }
0x22d6   :  { %v8846_v26 = vpop.xlane.xlu0 %8845 }
0x22d7   :  { %15771 = vrcp.f32 %v8846_v26  ;;  %v15372_v26 = vld [vmem:[#allocation5 + $0xe8] sm:$0xff]  }
0x22d8   :  { %15773 = vrcp.f32 %v8843_v30  ;;  %14690 = vmatpush3.bf16.msra.mxu0 %v15372_v26 }
0x22d9   :  { %14691 = vmatprep.subr.bf16.mxu0 %v15992_v1 }
0x22da   :  { %v8325_v39 = vpop.permute.xlu0 %8324 }
0x22dc   :  { %14692 = vmatpush3.bf16.msra.mxu0 %v15373_v10 }
0x22dd   :  { %v15770_v56 = vpop.eup %15769  ;;  %14693 = vmatprep.subr.bf16.mxu0 %v15992_v1 }
0x22de   :  { %v8874_v12 = vmul.f32 %v15770_v56, %v18240_v13 }
0x22e0   :  { %v8884_v50 = vpack.c.bf16 %v8874_v12, %v8873_v42  ;;  %v15374_v12 = vld [vmem:[#allocation5 + $0xf8] sm:$0xff]  }
0x22e1   :  { %v15772_v32 = vpop.eup %15771  ;;  %14694 = vmatpush3.bf16.msra.mxu0 %v15374_v12 }
0x22e2   :  { %14664 = vmatmul.mubr.msk.bf16.vlgmr.msra.gmra.mrb[172].mxu1 %vm499_vm1, %v8884_v50  ;;  %v15774_v61 = vpop.eup %15773  ;;  %v8878_v59 = vmul.f32 %v15772_v32, %v18244_v18 }
0x22e3   :  { %14674 = vmatpush3.bf16.msra.mxu1 %v8325_v39  ;;  %14675 = vmatprep.mubr.msk.bf16.mxu1 %vm15993_vm0, %v15992_v1  ;;  %v8877_v63 = vmul.f32 %v15774_v61, %v18230_v41 }
0x22e5   :  { %v8886_v14 = vpack.c.bf16 %v8878_v59, %v8877_v63 }
0x22ea   :  { %14676 = vmatmul.mubr.msk.bf16.vlgmr.msra.gmra.mrb[176].mxu1 %vm499_vm1, %v8886_v14 }
0x22eb   :  { %9995 = vmatprep.mubr.bf16.mxu1 %v15991_v0 }
0x2321   :  { %v18294_v58 = vpop.f32.mrb[128].mxu0 }
0x2322   :  { %v14635_v13 = vpop.f32.mrb[129].mxu0 }
0x2323   :  { %v18296_v2 = vpop.f32.mrb[130].mxu0 }
0x2324   :  { %v14636_v33 = vpop.f32.mrb[131].mxu0 }
0x236a   :  { %v8968_v45 = vpop.f32.mrb[164].mxu1 }
0x236b   :  { %v14641_v25 = vpop.f32.mrb[165].mxu1 }
0x236c   :  { %v8971_v40 = vpop.f32.mrb[166].mxu1 }
0x236d   :  { %v15025_v55 = vpack.i.bf16 %v8971_v40, %v8968_v45  ;;  %v14642_v57 = vpop.f32.mrb[167].mxu1 }
0x236f   :  { %15026 = vrot.lane.b32.xlu1 %v15025_v55, %s16000_s27 }
0x2378   :  { %v9012_v18 = vpop.f32.mrb[132].mxu0 }
0x2379   :  { %v14647_v41 = vpop.f32.mrb[133].mxu0 }
0x237a   :  { %v9015_v52 = vpop.f32.mrb[134].mxu0 }
0x237b   :  { %v15030_v35 = vpack.i.bf16 %v9015_v52, %v9012_v18  ;;  %v14648_v44 = vpop.f32.mrb[135].mxu0 }
0x237d   :  { %15031 = vrot.lane.b32.xlu0 %v15030_v35, %s15999_s23 }
0x2380   :  { %v9056_v27 = vpop.f32.mrb[168].mxu1  ;;  %v9100_v5 = vpop.f32.mrb[136].mxu0 }
0x2381   :  { %v14653_v31 = vpop.f32.mrb[169].mxu1  ;;  %v14659_v34 = vpop.f32.mrb[137].mxu0 }
0x2382   :  { %v9059_v30 = vpop.f32.mrb[170].mxu1  ;;  %v9103_v3 = vpop.f32.mrb[138].mxu0 }
0x2383   :  { %v15035_v17 = vpack.i.bf16 %v9059_v30, %v9056_v27  ;;  %v15040_v36 = vpack.i.bf16 %v9103_v3, %v9100_v5  ;;  %v14654_v53 = vpop.f32.mrb[171].mxu1  ;;  %v14660_v51 = vpop.f32.mrb[139].mxu0 }
0x2385   :  { %15041 = vrot.lane.b32.xlu0 %v15040_v36, %s19218_s9  ;;  %15036 = vrot.lane.b32.xlu1 %v15035_v17, %s15998_s22 }
0x2388   :  { %v9188_v7 = vpop.f32.mrb[140].mxu0 }
0x2389   :  { %v14671_v4 = vpop.f32.mrb[141].mxu0 }
0x238a   :  { %v9191_v46 = vpop.f32.mrb[142].mxu0 }
0x238b   :  { %v15050_v47 = vpack.i.bf16 %v9191_v46, %v9188_v7  ;;  %v14672_v48 = vpop.f32.mrb[143].mxu0 }
0x238d   :  { %15051 = vrot.lane.b32.xlu0 %v15050_v47, %s15997_s21 }
0x23b5   :  { %v9144_v56 = vpop.f32.mrb[172].mxu1 }
0x23b6   :  { %v14665_v42 = vpop.f32.mrb[173].mxu1 }
0x23b7   :  { %v9147_v50 = vpop.f32.mrb[174].mxu1  ;;  %v13631_v42 = vld [vmem:[%s19201_s6 + $0x3] ss:$0 sm:$0xff] }
0x23b8   :  { %v15045_v32 = vpack.i.bf16 %v9147_v50, %v9144_v56  ;;  %v14666_v39 = vpop.f32.mrb[175].mxu1 }
0x23ba   :  { %15046 = vrot.lane.b32.xlu1 %v15045_v32, %s15996_s25 }
0x23bd   :  { %v9232_v61 = vpop.f32.mrb[176].mxu1 }
0x23be   :  { %v14677_v59 = vpop.f32.mrb[177].mxu1 }
0x23bf   :  { %v9235_v63 = vpop.f32.mrb[178].mxu1 }
0x23c0   :  { %v15055_v14 = vpack.i.bf16 %v9235_v63, %v9232_v61  ;;  %v14678_v13 = vpop.f32.mrb[179].mxu1 }
0x23c2   :  { %15056 = vrot.lane.b32.xlu1 %v15055_v14, %s15995_s5 }
0x23e1   :  { %v15027_v33 = vpop.permute.xlu1 %15026 }
0x23e2   :  { %v15029_v40 = vunpack.i.h.bf16 %v15027_v33  ;;  %v15028_v55 = vunpack.i.l.bf16 %v15027_v33 }
0x23e4   :  { %v9296_v27 = vsel %vm499_vm1, %v18296_v2, %v15029_v40  ;;  %v9295_v5 = vsel %vm499_vm1, %v18294_v58, %v15028_v55 }
0x23ef   :  { %v15032_v45 = vpop.permute.xlu0 %15031 }
0x23f0   :  { %v15034_v57 = vunpack.i.h.bf16 %v15032_v45  ;;  %v15033_v18 = vunpack.i.l.bf16 %v15032_v45 }
0x23f2   :  { %v9297_v8 = vsel %vm1470_vm2, %v9295_v5, %v15033_v18  ;;  %v9298_v31 = vsel %vm1470_vm2, %v9296_v27, %v15034_v57 }
0x23f7   :  { %v15037_v25 = vpop.permute.xlu1 %15036  ;;  %v15042_v41 = vpop.permute.xlu0 %15041 }
0x23f8   :  { %v15039_v52 = vunpack.i.h.bf16 %v15037_v25  ;;  %v15038_v35 = vunpack.i.l.bf16 %v15037_v25  ;;  %v15044_v34 = vunpack.i.h.bf16 %v15042_v41  ;;  %v15043_v30 = vunpack.i.l.bf16 %v15042_v41 }
0x23fa   :  { %v9300_v3 = vsel %vm1473_vm3, %v9298_v31, %v15039_v52  ;;  %v9299_v23 = vsel %vm1473_vm3, %v9297_v8, %v15038_v35 }
0x23fb   :  { %v9301_v51 = vsel %vm1476_vm4, %v9299_v23, %v15043_v30  ;;  %v9302_v2 = vsel %vm1476_vm4, %v9300_v3, %v15044_v34 }
0x23ff   :  { %v15052_v53 = vpop.permute.xlu0 %15051 }
0x2400   :  { %v15054_v7 = vunpack.i.h.bf16 %v15052_v53  ;;  %v15053_v4 = vunpack.i.l.bf16 %v15052_v53 }
0x242c   :  { %v15047_v44 = vpop.permute.xlu1 %15046 }
0x242d   :  { %v15049_v17 = vunpack.i.h.bf16 %v15047_v44  ;;  %v15048_v36 = vunpack.i.l.bf16 %v15047_v44 }
0x242f   :  { %v9304_v54 = vsel %vm1479_vm5, %v9302_v2, %v15049_v17  ;;  %v9303_v58 = vsel %vm1479_vm5, %v9301_v51, %v15048_v36 }
0x2430   :  { %v9305_v48 = vsel %vm1482_vm6, %v9303_v58, %v15053_v4  ;;  %v9306_v16 = vsel %vm1482_vm6, %v9304_v54, %v15054_v7 }
0x2434   :  { %v15057_v46 = vpop.permute.xlu1 %15056 }
0x2435   :  { %v15059_v21 = vunpack.i.h.bf16 %v15057_v46  ;;  %v15058_v47 = vunpack.i.l.bf16 %v15057_v46 }
0x2437   :  { %v9308_v26 = vsel %vm1485_vm7, %v9306_v16, %v15059_v21  ;;  %v9307_v10 = vsel %vm1485_vm7, %v9305_v48, %v15058_v47 }
0x2438   :  { %v9309_v56 = vpack.c.bf16 %v9308_v26, %v9307_v10 }
0x243a   :  { %14696 = vmatmul.mubr.bf16.vlgmr.msra.gmra.mrb[144].mxu0 %v9309_v56 }
0x250d   :  { %v9417_v12 = vpop.f32.mrb[144].mxu0 }
0x250e   :  { %v9418_v50 = vadd.f32 %v13631_v42, %v9417_v12  ;;  %v14697_v32 = vpop.f32.mrb[145].mxu0 }
0x250f   :  { %v9420_v39 = vpop.f32.mrb[146].mxu0 }
0x2510   :  { %v9426_v61 = vcombine.high %v9418_v50, %v9418_v50  ;;  %v9433_v59 = vrot.slane %v9418_v50, %v16201_v37  ;;  %v9421_v63 = vadd.f32 %v13631_v42, %v9420_v39  ;;  %v14698_v14 = vpop.f32.mrb[147].mxu0 }
0x2512   :  { %v9440_v13 = vrot.slane %v9426_v61, %v16201_v37  ;;  %v9441_v33 = vcombine.high %v9433_v59, %v9433_v59  ;;  %v9443_v45 = vcombine.high %v9421_v63, %v9421_v63  ;;  %v9450_v25 = vrot.slane %v9421_v63, %v16201_v37 }
0x2513   :  { %v9468_v55 = vadd.f32 %v9433_v59, %v17969_v11 }
0x2514   :  { %v9442_v40 = vcombine.high %v9440_v13, %v9440_v13  ;;  %v9469_v57 = vadd.f32 %v9441_v33, %v17971_v28  ;;  %v9457_v18 = vrot.slane %v9443_v45, %v16201_v37  ;;  %v9458_v41 = vcombine.high %v9450_v25, %v9450_v25 }
0x2515   :  { %v9470_v52 = vadd.f32 %v9440_v13, %v17973_v19  ;;  %v9472_v5 = vadd.f32 %v9450_v25, %v17981_v24 }
0x2516   :  { %v9471_v35 = vadd.f32 %v9442_v40, %v17975_v6  ;;  %v9488_v44 = vcombine.low %v9468_v55, %v9469_v57  ;;  %v9459_v27 = vcombine.high %v9457_v18, %v9457_v18  ;;  %v9473_v8 = vadd.f32 %v9458_v41, %v17983_v38 }
0x2517   :  { %v9474_v31 = vadd.f32 %v9457_v18, %v17985_v49 }
0x2518   :  { %v9475_v34 = vadd.f32 %v9459_v27, %v17987_v29  ;;  %v9489_v11 = vcombine.low %v9470_v52, %v9471_v35  ;;  %v9505_v30 = vcombine.low %v9472_v5, %v9473_v8  ;;  %v9496_v28 = vrot.slane %v9488_v44, %v16201_v37  ;;  %v15375_v44 = vld [vmem:[#allocation7 + $0x180] ss:$8 sps:$4 sm:$0xff]   ;;  %v15380_v27 = vld [vmem:[#allocation7 + $0x194] ss:$8 sps:$4 sm:$0xff]  }
0x251a   :  { %v9503_v3 = vrot.slane %v9489_v11, %v16201_v37  ;;  %v9506_v23 = vcombine.low %v9474_v31, %v9475_v34  ;;  %v9513_v6 = vrot.slane %v9505_v30, %v16201_v37  ;;  %v15384_v11 = vld [vmem:[#allocation7 + $0x1b0] ss:$8 sps:$4 sm:$0xff]   ;;  %v15389_v30 = vld [vmem:[#allocation7 + $0x1c4] ss:$8 sps:$4 sm:$0xff]  }
0x251c   :  { %v9504_v19 = vcombine.low %v9496_v28, %v9503_v3  ;;  %v9520_v17 = vrot.slane %v9506_v23, %v16201_v37  ;;  %v15387_v28 = vld [vmem:[#allocation7 + $0x1c0] ss:$8 sps:$4 sm:$0xff]   ;;  %v15392_v3 = vld [vmem:[#allocation7 + $0x1d4] ss:$8 sps:$4 sm:$0xff]   ;;  %v15390_v23 = vld [vmem:[#allocation7 + $0x1d0] ss:$8 sps:$4 sm:$0xff]  }
0x251e   :  { %9524 = vadd.xlane.f32.xlu0 %v9504_v19  ;;  %v9521_v24 = vcombine.low %v9513_v6, %v9520_v17  ;;  %v15395_v19 = vld [vmem:[#allocation7 + $0x1e4] ss:$8 sps:$4 sm:$0xff]   ;;  %v15393_v6 = vld [vmem:[#allocation7 + $0x1e0] ss:$8 sps:$4 sm:$0xff]   ;;  %v15398_v17 = vld [vmem:[#allocation7 + $0x1f4] ss:$8 sps:$4 sm:$0xff]  }
0x2520   :  { %9526 = vadd.xlane.f32.xlu1 %v9521_v24  ;;  %v15396_v24 = vld [vmem:[#allocation7 + $0x1f0] ss:$8 sps:$4 sm:$0xff]  }
0x25ab   :  { %v9525_v38 = vpop.xlane.xlu0 %9524 }
0x25ac   :  { %v9528_v36 = vmul.f32 0.0078125, %v9525_v38  ;;  %v15399_v38 = vld [vmem:[#allocation8 + $0x1c0] sm:$0xff]  }
0x25ad   :  { %v9527_v49 = vpop.xlane.xlu1 %9526  ;;  %14044 = vmatprep.subr.bf16.mxu0 %v15399_v38 }
0x25ae   :  { %v9538_v29 = vrot.slane %v9528_v36, %v16587_v20  ;;  %v9545_v53 = vrot.slane %v9528_v36, %v16590_v9  ;;  %v9552_v51 = vrot.slane %v9528_v36, %v16593_v22  ;;  %v9559_v2 = vrot.slane %v9528_v36, %v16596_v43  ;;  %v15400_v36 = vld [vmem:[#allocation8 + $0x180] sm:$0xff]  }
0x25af   :  { %v9529_v54 = vmul.f32 0.0078125, %v9527_v49  ;;  %v15401_v49 = vld [vmem:[#allocation8 + $0x1c8] sm:$0xff]   ;;  %14045 = vmatpush3.bf16.msra.mxu0 %v15400_v36 }
0x25b0   :  { %v18351_v58 = vsub.f32 %v9468_v55, %v9538_v29  ;;  %v18353_v7 = vsub.f32 %v9469_v57, %v9545_v53  ;;  %v18355_v4 = vsub.f32 %v9470_v52, %v9552_v51  ;;  %v18357_v46 = vsub.f32 %v9471_v35, %v9559_v2  ;;  %v15377_v35 = vld [vmem:[#allocation7 + $0x184] ss:$8 sps:$4 sm:$0xff]   ;;  %14046 = vmatprep.subr.bf16.mxu0 %v15401_v49  ;;  %v15403_v53 = vld [vmem:[#allocation8 + $0x1d0] sm:$0xff]   ;;  %v15405_v2 = vld [vmem:[#allocation8 + $0x1d8] sm:$0xff]  }
0x25b1   :  { %v9566_v21 = vrot.slane %v9529_v54, %v16587_v20  ;;  %v9573_v47 = vrot.slane %v9529_v54, %v16590_v9  ;;  %v9580_v48 = vrot.slane %v9529_v54, %v16593_v22  ;;  %v9587_v16 = vrot.slane %v9529_v54, %v16596_v43  ;;  %9963 = vmatprep.subr.bf16.mxu1 %v15377_v35  ;;  %v15402_v29 = vld [vmem:[#allocation8 + $0x188] sm:$0xff]   ;;  %v15404_v51 = vld [vmem:[#allocation8 + $0x190] sm:$0xff]   ;;  %v15406_v54 = vld [vmem:[#allocation8 + $0x198] sm:$0xff]  }
0x25b2   :  { %v9604_v26 = vmul.f32 %v18351_v58, %v18351_v58  ;;  %v9605_v10 = vmul.f32 %v18353_v7, %v18353_v7  ;;  %v9606_v56 = vmul.f32 %v18355_v4, %v18355_v4  ;;  %v9607_v42 = vmul.f32 %v18357_v46, %v18357_v46  ;;  %9964 = vmatpush1.bf16.msra.mxu1 %v15375_v44 }
0x25b3   :  { %v18371_v12 = vsub.f32 %v9472_v5, %v9566_v21  ;;  %v18373_v50 = vsub.f32 %v9473_v8, %v9573_v47  ;;  %v18375_v32 = vsub.f32 %v9474_v31, %v9580_v48  ;;  %v18377_v39 = vsub.f32 %v9475_v34, %v9587_v16  ;;  %v15378_v5 = vld [vmem:[#allocation7 + $0x190] ss:$8 sps:$4 sm:$0xff]   ;;  %9965 = vmatprep.subr.bf16.mxu1 %v15380_v27  ;;  %v15383_v8 = vld [vmem:[#allocation7 + $0x1a4] ss:$8 sps:$4 sm:$0xff]   ;;  %v15381_v31 = vld [vmem:[#allocation7 + $0x1a0] ss:$8 sps:$4 sm:$0xff]  }
0x25b4   :  { %v9620_v61 = vcombine.low %v9604_v26, %v9605_v10  ;;  %v9621_v59 = vcombine.low %v9606_v56, %v9607_v42  ;;  %v15386_v34 = vld [vmem:[#allocation7 + $0x1b4] ss:$8 sps:$4 sm:$0xff]   ;;  %14047 = vmatpush3.bf16.msra.mxu0 %v15402_v29  ;;  %v15407_v21 = vld [vmem:[#allocation8 + $0x1e0] sm:$0xff]   ;;  %v15409_v48 = vld [vmem:[#allocation8 + $0x1e8] sm:$0xff]  }
0x25b5   :  { %v9608_v63 = vmul.f32 %v18371_v12, %v18371_v12  ;;  %v9609_v14 = vmul.f32 %v18373_v50, %v18373_v50  ;;  %v9610_v13 = vmul.f32 %v18375_v32, %v18375_v32  ;;  %v9611_v33 = vmul.f32 %v18377_v39, %v18377_v39  ;;  %14048 = vmatprep.subr.bf16.mxu0 %v15403_v53  ;;  %v15408_v47 = vld [vmem:[#allocation8 + $0x1a0] sm:$0xff]  }
0x25b6   :  { %v9628_v45 = vrot.slane %v9620_v61, %v16201_v37  ;;  %v9635_v25 = vrot.slane %v9621_v59, %v16201_v37  ;;  %9966 = vmatpush1.bf16.msra.mxu1 %v15378_v5  ;;  %v13642_v61 = vld [vmem:[%s19202_s7 + $0x3] ss:$0 sm:$0xff] }
0x25b7   :  { %v9637_v40 = vcombine.low %v9608_v63, %v9609_v14  ;;  %v9638_v55 = vcombine.low %v9610_v13, %v9611_v33  ;;  %9967 = vmatprep.subr.bf16.mxu1 %v15383_v8  ;;  %v13643_v63 = vld [vmem:[%s19203_s8 + $0x3] ss:$0 sm:$0xff]  ;;  %v9745_v14 = vcombine.high %v13642_v61, %v13642_v61  ;;  %v9752_v33 = vrot.slane %v13642_v61, %v16201_v37 }
0x25b8   :  { %v9636_v57 = vcombine.low %v9628_v45, %v9635_v25  ;;  %14049 = vmatpush3.bf16.msra.mxu0 %v15404_v51  ;;  %v9779_v13 = vcombine.high %v13643_v63, %v13643_v63 }
0x25b9   :  { %v9645_v18 = vrot.slane %v9637_v40, %v16201_v37  ;;  %v9652_v41 = vrot.slane %v9638_v55, %v16201_v37  ;;  %14050 = vmatprep.subr.bf16.mxu0 %v15405_v2  ;;  %v9759_v45 = vrot.slane %v9745_v14, %v16201_v37  ;;  %v9786_v40 = vrot.slane %v13643_v63, %v16201_v37 }
0x25ba   :  { %9656 = vadd.xlane.f32.xlu0 %v9636_v57  ;;  %9968 = vmatpush1.bf16.msra.mxu1 %v15381_v31  ;;  %v9793_v55 = vrot.slane %v9779_v13, %v16201_v37  ;;  %v9760_v35 = vcombine.high %v9752_v33, %v9752_v33  ;;  %v15410_v13 = vld [vmem:[#allocation8 + $0x1a8] sm:$0xff]  }
0x25bb   :  { %v9653_v52 = vcombine.low %v9645_v18, %v9652_v41  ;;  %9969 = vmatprep.subr.bf16.mxu1 %v15386_v34  ;;  %v9761_v44 = vcombine.high %v9759_v45, %v9759_v45 }
0x25bc   :  { %14051 = vmatpush3.bf16.msra.mxu0 %v15406_v54 }
0x25bd   :  { %14052 = vmatprep.subr.bf16.mxu0 %v15407_v21 }
0x25be   :  { %9658 = vadd.xlane.f32.xlu0 %v9653_v52  ;;  %9970 = vmatpush1.bf16.msra.mxu1 %v15384_v11  ;;  %v9794_v11 = vcombine.high %v9786_v40, %v9786_v40 }
0x25bf   :  { %9971 = vmatprep.subr.bf16.mxu1 %v15389_v30  ;;  %v9795_v30 = vcombine.high %v9793_v55, %v9793_v55 }
0x25c0   :  { %14053 = vmatpush3.bf16.msra.mxu0 %v15408_v47 }
0x25c1   :  { %14054 = vmatprep.subr.bf16.mxu0 %v15409_v48 }
0x25c2   :  { %9972 = vmatpush1.bf16.msra.mxu1 %v15387_v28 }
0x25c3   :  { %9973 = vmatprep.subr.bf16.mxu1 %v15392_v3 }
0x25c4   :  { %14055 = vmatpush3.bf16.msra.mxu0 %v15410_v13 }
0x25c6   :  { %9974 = vmatpush1.bf16.msra.mxu1 %v15390_v23 }
0x25c7   :  { %9975 = vmatprep.subr.bf16.mxu1 %v15395_v19 }
0x25ca   :  { %9976 = vmatpush1.bf16.msra.mxu1 %v15393_v6 }
0x25cb   :  { %9977 = vmatprep.subr.bf16.mxu1 %v15398_v17 }
0x25ce   :  { %9978 = vmatpush1.bf16.msra.mxu1 %v15396_v24 }
0x2647   :  { %v9657_v16 = vpop.xlane.xlu0 %9656 }
0x2648   :  { %v9660_v26 = vmul.f32 0.0078125, %v9657_v16 }
0x264a   :  { %v9662_v10 = vadd.f32 1e-05, %v9660_v26 }
0x264b   :  { %v9659_v56 = vpop.xlane.xlu0 %9658 }
0x264c   :  { %15775 = vrsqrt.f32 %v9662_v10  ;;  %v9661_v42 = vmul.f32 0.0078125, %v9659_v56 }
0x264e   :  { %v9663_v59 = vadd.f32 1e-05, %v9661_v42 }
0x2650   :  { %15777 = vrsqrt.f32 %v9663_v59 }
0x2656   :  { %v15776_v25 = vpop.eup %15775 }
0x2657   :  { %v9674_v57 = vrot.slane %v15776_v25, %v16587_v20  ;;  %v9681_v18 = vrot.slane %v15776_v25, %v16590_v9  ;;  %v9688_v41 = vrot.slane %v15776_v25, %v16593_v22  ;;  %v9695_v52 = vrot.slane %v15776_v25, %v16596_v43  ;;  %v15413_v25 = vld [vmem:[#allocation8 + $0x1f8] sm:$0xff]  }
0x2659   :  { %v9732_v27 = vmul.f32 %v9674_v57, %v18351_v58  ;;  %v9733_v5 = vmul.f32 %v9681_v18, %v18353_v7  ;;  %v9734_v8 = vmul.f32 %v9688_v41, %v18355_v4  ;;  %v9735_v31 = vmul.f32 %v9695_v52, %v18357_v46 }
0x265a   :  { %v15778_v34 = vpop.eup %15777 }
0x265b   :  { %v9702_v28 = vrot.slane %v15778_v34, %v16587_v20  ;;  %v9709_v3 = vrot.slane %v15778_v34, %v16590_v9  ;;  %v9716_v23 = vrot.slane %v15778_v34, %v16593_v22  ;;  %v9723_v19 = vrot.slane %v15778_v34, %v16596_v43 }
0x265c   :  { %v9766_v6 = vmul.f32 %v9752_v33, %v9732_v27  ;;  %v9767_v17 = vmul.f32 %v9760_v35, %v9733_v5  ;;  %v9768_v58 = vmul.f32 %v9759_v45, %v9734_v8  ;;  %v9769_v24 = vmul.f32 %v9761_v44, %v9735_v31 }
0x265d   :  { %v9736_v7 = vmul.f32 %v9702_v28, %v18371_v12  ;;  %v9737_v4 = vmul.f32 %v9709_v3, %v18373_v50  ;;  %v9738_v46 = vmul.f32 %v9716_v23, %v18375_v32  ;;  %v9739_v38 = vmul.f32 %v9723_v19, %v18377_v39 }
0x265e   :  { %v18417_v36 = vadd.f32 %v9786_v40, %v9766_v6  ;;  %v18419_v49 = vadd.f32 %v9794_v11, %v9767_v17  ;;  %v18421_v29 = vadd.f32 %v9793_v55, %v9768_v58  ;;  %v18423_v53 = vadd.f32 %v9795_v30, %v9769_v24  ;;  %v13662_v6 = vld [vmem:[%s19207_s12 + $0x3] ss:$0 sm:$0xff] }
0x265f   :  { %v9770_v51 = vmul.f32 %v9752_v33, %v9736_v7  ;;  %v9771_v2 = vmul.f32 %v9760_v35, %v9737_v4  ;;  %v9772_v54 = vmul.f32 %v9759_v45, %v9738_v46  ;;  %v9773_v21 = vmul.f32 %v9761_v44, %v9739_v38  ;;  %v15411_v33 = vld [vmem:[#allocation8 + $0x1f0] sm:$0xff]  }
0x2660   :  { %v9816_v12 = vcombine.low %v18417_v36, %v18419_v49  ;;  %v9817_v50 = vcombine.low %v18421_v29, %v18423_v53  ;;  %v15412_v45 = vld [vmem:[#allocation8 + $0x1b0] sm:$0xff]   ;;  %14056 = vmatprep.subr.bf16.mxu0 %v15411_v33 }
0x2661   :  { %v18429_v32 = vadd.f32 %v9786_v40, %v9770_v51  ;;  %v18431_v39 = vadd.f32 %v9794_v11, %v9771_v2  ;;  %v18433_v47 = vadd.f32 %v9793_v55, %v9772_v54  ;;  %v18435_v48 = vadd.f32 %v9795_v30, %v9773_v21  ;;  %14057 = vmatpush3.bf16.msra.mxu0 %v15412_v45  ;;  %v15414_v40 = vld [vmem:[#allocation8 + $0x1b8] sm:$0xff]   ;;  %v13644_v55 = vld [vmem:[%s19205_s10 + $0x6] sm:$0x3] }
0x2662   :  { %v9824_v16 = vrot.slane %v9816_v12, %v16201_v37  ;;  %v9831_v26 = vrot.slane %v9817_v50, %v16201_v37  ;;  %14058 = vmatprep.subr.bf16.mxu0 %v15413_v25  ;;  %v9876_v57 = vrot.slane %v13644_v55, %v16229_v60  ;;  %v9880_v18 = vrot.slane %v13644_v55, %v16235_v62 }
0x2663   :  { %v9833_v10 = vcombine.low %v18429_v32, %v18431_v39  ;;  %v9834_v56 = vcombine.low %v18433_v47, %v18435_v48 }
0x2664   :  { %v9832_v59 = vcombine.low %v9824_v16, %v9831_v26 }
0x2665   :  { %v9841_v42 = vrot.slane %v9833_v10, %v16201_v37  ;;  %v9848_v61 = vrot.slane %v9834_v56, %v16201_v37  ;;  %14059 = vmatpush3.bf16.msra.mxu0 %v15414_v40 }
0x2666   :  { %14699 = vmatprep.subr.bf16.mxu0 %v15992_v1 }
0x2667   :  { %v9849_v63 = vcombine.low %v9841_v42, %v9848_v61 }
0x2669   :  { %v9852_v14 = vpack.c.bf16 %v9849_v63, %v9832_v59 }
0x266b   :  { %9996 = vmatmul.mubr.bf16.vlgmr.msra.gmra.mrb[180].mxu1 %v9852_v14 }
0x266c   :  { %10830 = vmatprep.mubr.bf16.mxu1 %v15991_v0 }
0x273e   :  { %v9997_v41 = vpop.f32.mrb[180].mxu1 }
0x273f   :  { %v9998_v52 = vadd.f32 %v9997_v41, %v9876_v57  ;;  %v9999_v35 = vpop.f32.mrb[181].mxu1 }
0x2740   :  { %v10000_v44 = vadd.f32 %v9999_v35, %v9880_v18  ;;  %v10001_v27 = vpop.f32.mrb[182].mxu1 }
0x2741   :  { %v10002_v5 = vadd.f32 %v10001_v27, %v9876_v57  ;;  %v10003_v8 = vpop.f32.mrb[183].mxu1  ;;  %v10006_v34 = vmax.f32 %v9998_v52, 0.0 }
0x2742   :  { %v10004_v31 = vadd.f32 %v10003_v8, %v9880_v18  ;;  %v10007_v30 = vmax.f32 %v10000_v44, 0.0 }
0x2743   :  { %v10008_v11 = vmax.f32 %v10002_v5, 0.0 }
0x2744   :  { %v10009_v28 = vmax.f32 %v10004_v31, 0.0 }
0x2745   :  { %v10010_v3 = vpack.c.bf16 %v10008_v11, %v10006_v34 }
0x2746   :  { %v10011_v23 = vpack.c.bf16 %v10009_v28, %v10007_v30 }
0x2748   :  { %10181 = vmatprep.mubr.bf16.mxu0 %v10011_v23 }
0x2749   :  { %10182 = vmatmul.mubr.bf16.vlgmr.msra.gmra.mrb[148].mxu0 %v10010_v3 }
0x274a   :  { %14715 = vmatprep.mubr.msk.bf16.mxu0 %vm15993_vm0, %v15992_v1 }
0x281c   :  { %v14060_v19 = vpop.f32.mrb[148].mxu0 }
0x281d   :  { %v14061_v17 = vpop.f32.mrb[149].mxu0 }
0x281e   :  { %v14062_v58 = vadd.f32 %v14061_v17, %v14060_v19  ;;  %v14063_v24 = vpop.f32.mrb[150].mxu0 }
0x281f   :  { %v14064_v7 = vpop.f32.mrb[151].mxu0 }
0x2820   :  { %v10184_v4 = vadd.f32 %v14062_v58, %v13662_v6  ;;  %v14065_v46 = vadd.f32 %v14064_v7, %v14063_v24 }
0x2822   :  { %v10192_v38 = vcombine.high %v10184_v4, %v10184_v4  ;;  %v10199_v51 = vrot.slane %v10184_v4, %v16201_v37  ;;  %v10187_v2 = vadd.f32 %v14065_v46, %v13662_v6 }
0x2824   :  { %v10206_v54 = vrot.slane %v10192_v38, %v16201_v37  ;;  %v10207_v21 = vcombine.high %v10199_v51, %v10199_v51  ;;  %v10209_v12 = vcombine.high %v10187_v2, %v10187_v2  ;;  %v10216_v50 = vrot.slane %v10187_v2, %v16201_v37 }
0x2825   :  { %v10234_v26 = vadd.f32 %v10199_v51, %v18417_v36 }
0x2826   :  { %v10208_v16 = vcombine.high %v10206_v54, %v10206_v54  ;;  %v10235_v10 = vadd.f32 %v10207_v21, %v18419_v49  ;;  %v10223_v56 = vrot.slane %v10209_v12, %v16201_v37  ;;  %v10224_v42 = vcombine.high %v10216_v50, %v10216_v50 }
0x2827   :  { %v10236_v61 = vadd.f32 %v10206_v54, %v18421_v29  ;;  %v10238_v13 = vadd.f32 %v10216_v50, %v18429_v32 }
0x2828   :  { %v10225_v59 = vcombine.high %v10223_v56, %v10223_v56  ;;  %v10237_v63 = vadd.f32 %v10208_v16, %v18423_v53  ;;  %v10254_v14 = vcombine.low %v10234_v26, %v10235_v10  ;;  %v10239_v33 = vadd.f32 %v10224_v42, %v18431_v39 }
0x2829   :  { %v10240_v45 = vadd.f32 %v10223_v56, %v18433_v47 }
0x282a   :  { %v10255_v25 = vcombine.low %v10236_v61, %v10237_v63  ;;  %v10241_v36 = vadd.f32 %v10225_v59, %v18435_v48  ;;  %v10271_v40 = vcombine.low %v10238_v13, %v10239_v33  ;;  %v10262_v49 = vrot.slane %v10254_v14, %v16201_v37  ;;  %v15417_v59 = vld [vmem:[#allocation2 + $0x304] ss:$12 sps:$4 sm:$0xff]   ;;  %v15418_v14 = vld [vmem:[#allocation2 + $0x308] ss:$12 sps:$4 sm:$0xff]  }
0x282b   :  { %10798 = vmatprep.subr.bf16.mxu1 %v15417_v59  ;;  %14700 = vmatpush3.bf16.msra.mxu0 %v15418_v14 }
0x282c   :  { %v10269_v55 = vrot.slane %v10255_v25, %v16201_v37  ;;  %v10272_v57 = vcombine.low %v10240_v45, %v10241_v36  ;;  %v10279_v18 = vrot.slane %v10271_v40, %v16201_v37  ;;  %14701 = vmatprep.subr.bf16.mxu0 %v15992_v1  ;;  %v15423_v25 = vld [vmem:[#allocation2 + $0x330] ss:$12 sps:$4 sm:$0xff]   ;;  %v15426_v40 = vld [vmem:[#allocation2 + $0x338] ss:$12 sps:$4 sm:$0xff]  }
0x282e   :  { %v10270_v29 = vcombine.low %v10262_v49, %v10269_v55  ;;  %v10286_v53 = vrot.slane %v10272_v57, %v16201_v37  ;;  %v15429_v49 = vld [vmem:[#allocation2 + $0x34c] ss:$12 sps:$4 sm:$0xff]   ;;  %v15427_v55 = vld [vmem:[#allocation2 + $0x348] ss:$12 sps:$4 sm:$0xff]   ;;  %v15430_v57 = vld [vmem:[#allocation2 + $0x350] ss:$12 sps:$4 sm:$0xff]  }
0x2830   :  { %10290 = vadd.xlane.f32.xlu1 %v10270_v29  ;;  %v10287_v32 = vcombine.low %v10279_v18, %v10286_v53  ;;  %v15433_v29 = vld [vmem:[#allocation2 + $0x364] ss:$12 sps:$4 sm:$0xff]   ;;  %v15431_v18 = vld [vmem:[#allocation2 + $0x360] ss:$12 sps:$4 sm:$0xff]   ;;  %v15434_v53 = vld [vmem:[#allocation2 + $0x368] ss:$12 sps:$4 sm:$0xff]  }
0x2832   :  { %10292 = vadd.xlane.f32.xlu0 %v10287_v32  ;;  %v15437_v32 = vld [vmem:[#allocation2 + $0x37c] ss:$12 sps:$4 sm:$0xff]  }
0x28bd   :  { %v10291_v39 = vpop.xlane.xlu1 %10290 }
0x28be   :  { %v10294_v41 = vmul.f32 0.0078125, %v10291_v39  ;;  %v15435_v39 = vld [vmem:[#allocation2 + $0x378] ss:$12 sps:$4 sm:$0xff]  }
0x28bf   :  { %v10293_v47 = vpop.xlane.xlu0 %10292 }
0x28c0   :  { %v10304_v52 = vrot.slane %v10294_v41, %v16587_v20  ;;  %v10311_v48 = vrot.slane %v10294_v41, %v16590_v9  ;;  %v10318_v35 = vrot.slane %v10294_v41, %v16593_v22  ;;  %v10325_v44 = vrot.slane %v10294_v41, %v16596_v43  ;;  %v15438_v41 = vld [vmem:[#allocation2 + $0x380] ss:$12 sps:$4 sm:$0xff]  }
0x28c1   :  { %v10295_v27 = vmul.f32 0.0078125, %v10293_v47  ;;  %v15441_v47 = vld [vmem:[#allocation2 + $0x394] ss:$12 sps:$4 sm:$0xff]  }
0x28c2   :  { %v18477_v5 = vsub.f32 %v10234_v26, %v10304_v52  ;;  %v18479_v8 = vsub.f32 %v10235_v10, %v10311_v48  ;;  %v18481_v31 = vsub.f32 %v10236_v61, %v10318_v35  ;;  %v18483_v34 = vsub.f32 %v10237_v63, %v10325_v44  ;;  %v15415_v63 = vld [vmem:[#allocation2 + $0x300] ss:$12 sps:$4 sm:$0xff]   ;;  %v15439_v52 = vld [vmem:[#allocation2 + $0x390] ss:$12 sps:$4 sm:$0xff]   ;;  %v15442_v48 = vld [vmem:[#allocation2 + $0x398] ss:$12 sps:$4 sm:$0xff]  }
0x28c3   :  { %v10332_v11 = vrot.slane %v10295_v27, %v16587_v20  ;;  %v10339_v30 = vrot.slane %v10295_v27, %v16590_v9  ;;  %v10346_v28 = vrot.slane %v10295_v27, %v16593_v22  ;;  %v10353_v3 = vrot.slane %v10295_v27, %v16596_v43  ;;  %10799 = vmatpush1.bf16.msra.mxu1 %v15415_v63  ;;  %v15445_v35 = vld [vmem:[#allocation2 + $0x3ac] ss:$12 sps:$4 sm:$0xff]   ;;  %v15443_v44 = vld [vmem:[#allocation2 + $0x3a8] ss:$12 sps:$4 sm:$0xff]   ;;  %v15446_v27 = vld [vmem:[#allocation2 + $0x3b0] ss:$12 sps:$4 sm:$0xff]  }
0x28c4   :  { %v10370_v23 = vmul.f32 %v18477_v5, %v18477_v5  ;;  %v10371_v19 = vmul.f32 %v18479_v8, %v18479_v8  ;;  %v10372_v6 = vmul.f32 %v18481_v31, %v18481_v31  ;;  %v10373_v17 = vmul.f32 %v18483_v34, %v18483_v34 }
0x28c5   :  { %v18497_v58 = vsub.f32 %v10238_v13, %v10332_v11  ;;  %v18499_v24 = vsub.f32 %v10239_v33, %v10339_v30  ;;  %v18501_v7 = vsub.f32 %v10240_v45, %v10346_v28  ;;  %v18503_v4 = vsub.f32 %v10241_v36, %v10353_v3  ;;  %v15421_v13 = vld [vmem:[#allocation2 + $0x31c] ss:$12 sps:$4 sm:$0xff]   ;;  %v15419_v33 = vld [vmem:[#allocation2 + $0x318] ss:$12 sps:$4 sm:$0xff]   ;;  %v15422_v45 = vld [vmem:[#allocation2 + $0x320] ss:$12 sps:$4 sm:$0xff]  }
0x28c6   :  { %v10386_v46 = vcombine.low %v10370_v23, %v10371_v19  ;;  %v10387_v38 = vcombine.low %v10372_v6, %v10373_v17  ;;  %10800 = vmatprep.subr.bf16.mxu1 %v15421_v13  ;;  %14702 = vmatpush3.bf16.msra.mxu0 %v15422_v45  ;;  %v15425_v36 = vld [vmem:[#allocation2 + $0x334] ss:$12 sps:$4 sm:$0xff]  }
0x28c7   :  { %v10374_v51 = vmul.f32 %v18497_v58, %v18497_v58  ;;  %v10375_v2 = vmul.f32 %v18499_v24, %v18499_v24  ;;  %v10376_v54 = vmul.f32 %v18501_v7, %v18501_v7  ;;  %v10377_v21 = vmul.f32 %v18503_v4, %v18503_v4  ;;  %10801 = vmatpush1.bf16.msra.mxu1 %v15419_v33  ;;  %v13681_v19 = vld [vmem:[%s19208_s13 + $0x3] ss:$0 sm:$0xff] }
0x28c8   :  { %v10394_v12 = vrot.slane %v10386_v46, %v16201_v37  ;;  %v10401_v50 = vrot.slane %v10387_v38, %v16201_v37  ;;  %14703 = vmatprep.subr.bf16.mxu0 %v15992_v1  ;;  %10802 = vmatprep.subr.bf16.mxu1 %v15425_v36  ;;  %v13682_v17 = vld [vmem:[%s19209_s14 + $0x3] ss:$0 sm:$0xff]  ;;  %v10511_v46 = vcombine.high %v13681_v19, %v13681_v19 }
0x28c9   :  { %v10403_v16 = vcombine.low %v10374_v51, %v10375_v2  ;;  %v10404_v26 = vcombine.low %v10376_v54, %v10377_v21  ;;  %v10545_v38 = vcombine.high %v13682_v17, %v13682_v17  ;;  %v10518_v51 = vrot.slane %v13681_v19, %v16201_v37 }
0x28ca   :  { %v10402_v10 = vcombine.low %v10394_v12, %v10401_v50  ;;  %14704 = vmatpush3.bf16.msra.mxu0 %v15426_v40  ;;  %v10525_v2 = vrot.slane %v10511_v46, %v16201_v37  ;;  %v10552_v54 = vrot.slane %v13682_v17, %v16201_v37 }
0x28cb   :  { %v10411_v56 = vrot.slane %v10403_v16, %v16201_v37  ;;  %v10418_v42 = vrot.slane %v10404_v26, %v16201_v37  ;;  %10803 = vmatpush1.bf16.msra.mxu1 %v15423_v25  ;;  %14705 = vmatprep.subr.bf16.mxu0 %v15992_v1  ;;  %v10559_v21 = vrot.slane %v10545_v38, %v16201_v37  ;;  %v13683_v38 = vld [vmem:[%s19199_s4 + $0xc] sm:$0x7] }
0x28cc   :  { %10422 = vadd.xlane.f32.xlu1 %v10402_v10  ;;  %10804 = vmatprep.subr.bf16.mxu1 %v15429_v49  ;;  %v10526_v50 = vcombine.high %v10518_v51, %v10518_v51  ;;  %v10527_v16 = vcombine.high %v10525_v2, %v10525_v2 }
0x28cd   :  { %v10419_v61 = vcombine.low %v10411_v56, %v10418_v42  ;;  %v10561_v59 = vcombine.high %v10559_v21, %v10559_v21 }
0x28ce   :  { %14706 = vmatpush3.bf16.msra.mxu0 %v15430_v57 }
0x28cf   :  { %10424 = vadd.xlane.f32.xlu0 %v10419_v61  ;;  %10805 = vmatpush1.bf16.msra.mxu1 %v15427_v55  ;;  %v10560_v61 = vcombine.high %v10552_v54, %v10552_v54 }
0x28d0   :  { %10806 = vmatprep.subr.bf16.mxu1 %v15433_v29  ;;  %14707 = vmatprep.subr.bf16.mxu0 %v15992_v1 }
0x28d2   :  { %14708 = vmatpush3.bf16.msra.mxu0 %v15434_v53 }
0x28d3   :  { %10807 = vmatpush1.bf16.msra.mxu1 %v15431_v18  ;;  %14709 = vmatprep.subr.bf16.mxu0 %v15992_v1 }
0x28d4   :  { %10808 = vmatprep.subr.bf16.mxu1 %v15437_v32 }
0x28d6   :  { %14710 = vmatpush3.bf16.msra.mxu0 %v15438_v41 }
0x28d7   :  { %10809 = vmatpush1.bf16.msra.mxu1 %v15435_v39  ;;  %14711 = vmatprep.subr.bf16.mxu0 %v15992_v1 }
0x28d8   :  { %10810 = vmatprep.subr.bf16.mxu1 %v15441_v47 }
0x28da   :  { %14712 = vmatpush3.bf16.msra.mxu0 %v15442_v48 }
0x28db   :  { %10811 = vmatpush1.bf16.msra.mxu1 %v15439_v52  ;;  %14713 = vmatprep.subr.bf16.mxu0 %v15992_v1 }
0x28dc   :  { %10812 = vmatprep.subr.bf16.mxu1 %v15445_v35 }
0x28de   :  { %14714 = vmatpush3.bf16.msra.mxu0 %v15446_v27 }
0x28df   :  { %10813 = vmatpush1.bf16.msra.mxu1 %v15443_v44  ;;  %14743 = vmatprep.subr.bf16.mxu0 %v15992_v1 }
0x28e0   :  { %14719 = vmatprep.subr.bf16.mxu1 %v15992_v1 }
0x2959   :  { %v10423_v11 = vpop.xlane.xlu1 %10422 }
0x295a   :  { %v10426_v30 = vmul.f32 0.0078125, %v10423_v11 }
0x295c   :  { %v10428_v28 = vadd.f32 1e-05, %v10426_v30  ;;  %v10425_v3 = vpop.xlane.xlu0 %10424 }
0x295d   :  { %v10427_v23 = vmul.f32 0.0078125, %v10425_v3 }
0x295e   :  { %15779 = vrsqrt.f32 %v10428_v28 }
0x295f   :  { %v10429_v6 = vadd.f32 1e-05, %v10427_v23 }
0x2961   :  { %15781 = vrsqrt.f32 %v10429_v6 }
0x2968   :  { %v15780_v12 = vpop.eup %15779 }
0x2969   :  { %v10440_v26 = vrot.slane %v15780_v12, %v16587_v20  ;;  %v10447_v10 = vrot.slane %v15780_v12, %v16590_v9  ;;  %v10454_v56 = vrot.slane %v15780_v12, %v16593_v22  ;;  %v10461_v42 = vrot.slane %v15780_v12, %v16596_v43 }
0x296a   :  { %v10662_v12 = vrot.slane %v13683_v38, %v16235_v62 }
0x296b   :  { %v15782_v63 = vpop.eup %15781  ;;  %v10498_v14 = vmul.f32 %v10440_v26, %v18477_v5  ;;  %v10499_v13 = vmul.f32 %v10447_v10, %v18479_v8  ;;  %v10500_v33 = vmul.f32 %v10454_v56, %v18481_v31  ;;  %v10501_v45 = vmul.f32 %v10461_v42, %v18483_v34 }
0x296c   :  { %v10468_v25 = vrot.slane %v15782_v63, %v16587_v20  ;;  %v10475_v36 = vrot.slane %v15782_v63, %v16590_v9  ;;  %v10482_v40 = vrot.slane %v15782_v63, %v16593_v22  ;;  %v10489_v49 = vrot.slane %v15782_v63, %v16596_v43 }
0x296d   :  { %v10532_v55 = vmul.f32 %v10518_v51, %v10498_v14  ;;  %v10533_v57 = vmul.f32 %v10526_v50, %v10499_v13  ;;  %v10534_v29 = vmul.f32 %v10525_v2, %v10500_v33  ;;  %v10535_v18 = vmul.f32 %v10527_v16, %v10501_v45 }
0x296e   :  { %v10502_v5 = vmul.f32 %v10468_v25, %v18497_v58  ;;  %v10503_v8 = vmul.f32 %v10475_v36, %v18499_v24  ;;  %v10504_v31 = vmul.f32 %v10482_v40, %v18501_v7  ;;  %v10505_v34 = vmul.f32 %v10489_v49, %v18503_v4 }
0x296f   :  { %v18552_v53 = vadd.f32 %v10552_v54, %v10532_v55  ;;  %v18554_v32 = vadd.f32 %v10560_v61, %v10533_v57  ;;  %v18556_v39 = vadd.f32 %v10559_v21, %v10534_v29  ;;  %v18558_v41 = vadd.f32 %v10561_v59, %v10535_v18 }
0x2970   :  { %v10536_v47 = vmul.f32 %v10518_v51, %v10502_v5  ;;  %v10537_v52 = vmul.f32 %v10526_v50, %v10503_v8  ;;  %v10538_v48 = vmul.f32 %v10525_v2, %v10504_v31  ;;  %v10539_v35 = vmul.f32 %v10527_v16, %v10505_v34 }
0x2971   :  { %v10582_v58 = vcombine.low %v18552_v53, %v18554_v32  ;;  %v10583_v24 = vcombine.low %v18556_v39, %v18558_v41  ;;  %v10658_v51 = vrot.slane %v13683_v38, %v16229_v60  ;;  %v10666_v2 = vrot.slane %v13683_v38, %v16256_v15 }
0x2972   :  { %v18564_v7 = vadd.f32 %v10552_v54, %v10536_v47  ;;  %v18566_v4 = vadd.f32 %v10560_v61, %v10537_v52  ;;  %v18568_v44 = vadd.f32 %v10559_v21, %v10538_v48  ;;  %v18570_v27 = vadd.f32 %v10561_v59, %v10539_v35 }
0x2973   :  { %v10590_v11 = vrot.slane %v10582_v58, %v16201_v37  ;;  %v10597_v30 = vrot.slane %v10583_v24, %v16201_v37 }
0x2974   :  { %v10599_v28 = vcombine.low %v18564_v7, %v18566_v4  ;;  %v10600_v3 = vcombine.low %v18568_v44, %v18570_v27 }
0x2975   :  { %v10598_v6 = vcombine.low %v10590_v11, %v10597_v30 }
0x2976   :  { %v10607_v23 = vrot.slane %v10599_v28, %v16201_v37  ;;  %v10614_v19 = vrot.slane %v10600_v3, %v16201_v37 }
0x2978   :  { %v10615_v17 = vcombine.low %v10607_v23, %v10614_v19 }
0x297a   :  { %v10618_v46 = vpack.c.bf16 %v10615_v17, %v10598_v6  ;;  %v18654_v17 = vld [vmem:[%s19197_s2] sm:$0xff] }
0x297c   :  { %10831 = vmatmul.mubr.bf16.vlgmr.msra.gmra.mrb[184].mxu1 %v10618_v46  ;;  %14716 = vmatmul.mubr.bf16.vlgmr.msra.gmra.mrb[152].mxu0 %v10618_v46 }
0x297d   :  { %14721 = vmatprep.mubr.msk.bf16.mxu1 %vm15993_vm0, %v15992_v1  ;;  %14745 = vmatprep.mubr.msk.bf16.mxu0 %vm15993_vm0, %v15992_v1 }
0x2a4f   :  { %v10832_v54 = vpop.f32.mrb[184].mxu1  ;;  %v10875_v21 = vpop.f32.mrb[152].mxu0 }
0x2a50   :  { %v10834_v50 = vpop.f32.mrb[185].mxu1  ;;  %v14717_v16 = vpop.f32.mrb[153].mxu0  ;;  %v10833_v56 = vadd.f32 %v10832_v54, %v10658_v51  ;;  %v10876_v42 = vadd.f32 %v10875_v21, %v10666_v2 }
0x2a51   :  { %v10836_v26 = vpop.f32.mrb[186].mxu1  ;;  %v10878_v10 = vpop.f32.mrb[154].mxu0  ;;  %v10835_v13 = vadd.f32 %v10834_v50, %v10662_v12 }
0x2a52   :  { %v10837_v61 = vadd.f32 %v10836_v26, %v10658_v51  ;;  %v10879_v59 = vadd.f32 %v10878_v10, %v10666_v2  ;;  %v10838_v63 = vpop.f32.mrb[187].mxu1  ;;  %v14718_v14 = vpop.f32.mrb[155].mxu0  ;;  %v18662_v2 = vld [vmem:[%s19197_s2 + $0x8] sm:$0xff] }
0x2a53   :  { %v10839_v33 = vadd.f32 %v10838_v63, %v10662_v12 }
0x2a54   :  { %v10882_v45 = vpack.c.bf16 %v10837_v61, %v10833_v56  ;;  %v18590_v25 = vpack.c.bf16 %v10879_v59, %v10876_v42 }
0x2a55   :  { %v10883_v15 = vpack.c.bf16 %v10839_v33, %v10835_v13 }
0x2a56   :  { %10886 = vrot.lane.b32.xlu0 %v10882_v45, %s15995_s5 }
0x2a57   :  { %10901 = vrot.lane.b32.xlu1 %v10883_v15, %s15995_s5  ;;  %v10941_v36 = vsel %vm499_vm1, %v10883_v15, 0 }
0x2a58   :  { %14720 = vmatpush3.bf16.xpose.msra.mxu1 %v10941_v36 }
0x2a59   :  { %14725 = vmatprep.subr.bf16.mxu1 %v15992_v1 }
0x2a5a   :  { %10905 = vrot.lane.b32.xlu0 %v10883_v15, %s15996_s25 }
0x2a5b   :  { %10903 = vrot.lane.b32.xlu1 %v10883_v15, %s15997_s21 }
0x2a5e   :  { %10890 = vrot.lane.b32.xlu0 %v10882_v45, %s15996_s25 }
0x2a5f   :  { %10888 = vrot.lane.b32.xlu1 %v10882_v45, %s15997_s21  ;;  %14722 = vmatmul.mubr.msk.bf16.vlgmr.msra.gmra.mrb[188].mxu1 %vm499_vm1, %v10882_v45 }
0x2a60   :  { %14727 = vmatprep.mubr.msk.bf16.mxu1 %vm15993_vm0, %v15992_v1 }
0x2a62   :  { %10892 = vrot.lane.b32.xlu0 %v10882_v45, %s19218_s9 }
0x2a63   :  { %10907 = vrot.lane.b32.xlu1 %v10883_v15, %s19218_s9 }
0x2a66   :  { %10894 = vrot.lane.b32.xlu0 %v10882_v45, %s15998_s22 }
0x2a67   :  { %10909 = vrot.lane.b32.xlu1 %v10883_v15, %s15998_s22 }
0x2a6a   :  { %10896 = vrot.lane.b32.xlu0 %v10882_v45, %s15999_s23 }
0x2a6b   :  { %10911 = vrot.lane.b32.xlu1 %v10883_v15, %s15999_s23 }
0x2a6f   :  { %10913 = vrot.lane.b32.xlu1 %v10883_v15, %s16000_s27 }
0x2a73   :  { %10898 = vrot.lane.b32.xlu1 %v10882_v45, %s16000_s27 }
0x2a77   :  { %10916 = vrot.lane.b32.xlu1 %v18590_v25, %s15995_s5 }
0x2ac8   :  { %v10887_v40 = vpop.permute.xlu0 %10886 }
0x2ac9   :  { %v10902_v49 = vpop.permute.xlu1 %10901 }
0x2aca   :  { %v10988_v55 = vsel %vm499_vm1, %v10902_v49, 0 }
0x2acb   :  { %14726 = vmatpush3.bf16.xpose.msra.mxu1 %v10988_v55 }
0x2acc   :  { %14731 = vmatprep.subr.bf16.mxu1 %v15992_v1  ;;  %v10906_v57 = vpop.permute.xlu0 %10905 }
0x2acd   :  { %v10904_v29 = vpop.permute.xlu1 %10903  ;;  %v11082_v48 = vsel %vm499_vm1, %v10906_v57, 0 }
0x2ace   :  { %v11035_v5 = vsel %vm499_vm1, %v10904_v29, 0 }
0x2ad0   :  { %v10891_v8 = vpop.permute.xlu0 %10890 }
0x2ad1   :  { %v10889_v18 = vpop.permute.xlu1 %10888 }
0x2ad2   :  { %14728 = vmatmul.mubr.msk.bf16.vlgmr.msra.gmra.mrb[192].mxu1 %vm499_vm1, %v10887_v40 }
0x2ad3   :  { %14732 = vmatpush3.bf16.xpose.msra.mxu1 %v11035_v5  ;;  %14733 = vmatprep.mubr.msk.bf16.mxu1 %vm15993_vm0, %v15992_v1 }
0x2ad4   :  { %14737 = vmatprep.subr.bf16.mxu1 %v15992_v1  ;;  %v10893_v47 = vpop.permute.xlu0 %10892 }
0x2ad5   :  { %v10908_v31 = vpop.permute.xlu1 %10907 }
0x2ad6   :  { %v11129_v34 = vsel %vm499_vm1, %v10908_v31, 0 }
0x2ad7   :  { %14744 = vmatpush3.bf16.xpose.msra.mxu0 %v11129_v34 }
0x2ad8   :  { %14755 = vmatprep.subr.bf16.mxu0 %v15992_v1  ;;  %v10895_v24 = vpop.permute.xlu0 %10894 }
0x2ad9   :  { %v10910_v52 = vpop.permute.xlu1 %10909 }
0x2ada   :  { %14734 = vmatmul.mubr.msk.bf16.vlgmr.msra.gmra.mrb[196].mxu1 %vm499_vm1, %v10889_v18  ;;  %v11176_v11 = vsel %vm499_vm1, %v10910_v52, 0 }
0x2adb   :  { %14738 = vmatpush3.bf16.xpose.msra.mxu1 %v11082_v48  ;;  %14739 = vmatprep.mubr.msk.bf16.mxu1 %vm15993_vm0, %v15992_v1 }
0x2adc   :  { %14749 = vmatprep.subr.bf16.mxu1 %v15992_v1  ;;  %v10897_v30 = vpop.permute.xlu0 %10896 }
0x2add   :  { %v10912_v35 = vpop.permute.xlu1 %10911 }
0x2ade   :  { %v11223_v58 = vsel %vm499_vm1, %v10912_v35, 0  ;;  %14746 = vmatmul.mubr.msk.bf16.vlgmr.msra.gmra.mrb[156].mxu0 %vm499_vm1, %v10893_v47 }
0x2adf   :  { %14756 = vmatpush3.bf16.xpose.msra.mxu0 %v11223_v58  ;;  %14757 = vmatprep.mubr.msk.bf16.mxu0 %vm15993_vm0, %v15992_v1 }
0x2ae0   :  { %14767 = vmatprep.subr.bf16.mxu0 %v15992_v1 }
0x2ae1   :  { %v10914_v28 = vpop.permute.xlu1 %10913 }
0x2ae2   :  { %14740 = vmatmul.mubr.msk.bf16.vlgmr.msra.gmra.mrb[200].mxu1 %vm499_vm1, %v10891_v8  ;;  %v11270_v3 = vsel %vm499_vm1, %v10914_v28, 0 }
0x2ae3   :  { %14750 = vmatpush3.bf16.xpose.msra.mxu1 %v11176_v11  ;;  %14751 = vmatprep.mubr.msk.bf16.mxu1 %vm15993_vm0, %v15992_v1 }
0x2ae4   :  { %14761 = vmatprep.subr.bf16.mxu1 %v15992_v1 }
0x2ae5   :  { %v10899_v23 = vpop.permute.xlu1 %10898 }
0x2ae6   :  { %14758 = vmatmul.mubr.msk.bf16.vlgmr.msra.gmra.mrb[160].mxu0 %vm499_vm1, %v10897_v30 }
0x2ae7   :  { %14768 = vmatpush3.bf16.msra.mxu0 %v18590_v25  ;;  %14769 = vmatprep.mubr.msk.bf16.mxu0 %vm15993_vm0, %v15992_v1 }
0x2ae8   :  { %14779 = vmatprep.subr.bf16.mxu0 %v15992_v1 }
0x2ae9   :  { %v10917_v19 = vpop.permute.xlu1 %10916 }
0x2aea   :  { %14752 = vmatmul.mubr.msk.bf16.vlgmr.msra.gmra.mrb[204].mxu1 %vm499_vm1, %v10895_v24 }
0x2aeb   :  { %14762 = vmatpush3.bf16.xpose.msra.mxu1 %v11270_v3  ;;  %14763 = vmatprep.mubr.msk.bf16.mxu1 %vm15993_vm0, %v15992_v1 }
0x2aec   :  { %14773 = vmatprep.subr.bf16.mxu1 %v15992_v1 }
0x2af2   :  { %14764 = vmatmul.mubr.msk.bf16.vlgmr.msra.gmra.mrb[208].mxu1 %vm499_vm1, %v10899_v23 }
0x2af3   :  { %14774 = vmatpush3.bf16.msra.mxu1 %v10917_v19  ;;  %14775 = vmatprep.mubr.msk.bf16.mxu1 %vm15993_vm0, %v15992_v1 }
0x2af4   :  { %14785 = vmatprep.subr.bf16.mxu1 %v15992_v1 }
0x2b32   :  { %v10977_v6 = vpop.f32.mrb[188].mxu1 }
0x2b33   :  { %v18657_v46 = vadd.f32 %v18654_v17, %v10977_v6  ;;  %v14723_v38 = vpop.f32.mrb[189].mxu1 }
0x2b34   :  { %v10980_v51 = vpop.f32.mrb[190].mxu1 }
0x2b35   :  { %v18665_v54 = vadd.f32 %v18662_v2, %v10980_v51  ;;  %v14724_v21 = vpop.f32.mrb[191].mxu1  ;;  %v11313_v12 = vsel %vm499_vm1, %v18657_v46, -inf }
0x2b36   :  { %11314 = vmax.xlane.f32.xlu0 %v11313_v12 }
0x2b37   :  { %v11316_v50 = vsel %vm499_vm1, %v18665_v54, -inf }
0x2b38   :  { %11317 = vmax.xlane.f32.xlu1 %v11316_v50 }
0x2ba5   :  { %v11024_v16 = vpop.f32.mrb[192].mxu1 }
0x2ba6   :  { %v18672_v26 = vadd.f32 %v18654_v17, %v11024_v16  ;;  %v14729_v10 = vpop.f32.mrb[193].mxu1 }
0x2ba7   :  { %v11027_v56 = vpop.f32.mrb[194].mxu1 }
0x2ba8   :  { %v18675_v42 = vadd.f32 %v18662_v2, %v11027_v56  ;;  %v14730_v61 = vpop.f32.mrb[195].mxu1  ;;  %v11319_v59 = vsel %vm499_vm1, %v18672_v26, -inf }
0x2ba9   :  { %11320 = vmax.xlane.f32.xlu0 %v11319_v59 }
0x2baa   :  { %v11322_v63 = vsel %vm499_vm1, %v18675_v42, -inf }
0x2bad   :  { %11323 = vmax.xlane.f32.xlu0 %v11322_v63  ;;  %v11071_v14 = vpop.f32.mrb[196].mxu1 }
0x2bae   :  { %v14735_v13 = vpop.f32.mrb[197].mxu1  ;;  %v18685_v55 = vadd.f32 %v18654_v17, %v11071_v14 }
0x2baf   :  { %v11074_v33 = vpop.f32.mrb[198].mxu1 }
0x2bb0   :  { %v14736_v45 = vpop.f32.mrb[199].mxu1  ;;  %v18693_v8 = vadd.f32 %v18662_v2, %v11074_v33  ;;  %v11325_v48 = vsel %vm499_vm1, %v18685_v55, -inf }
0x2bb1   :  { %v11165_v15 = vpop.f32.mrb[156].mxu0 }
0x2bb2   :  { %v18682_v36 = vadd.f32 %v18654_v17, %v11165_v15  ;;  %v14747_v40 = vpop.f32.mrb[157].mxu0  ;;  %v11328_v11 = vsel %vm499_vm1, %v18693_v8, -inf }
0x2bb3   :  { %v11168_v49 = vpop.f32.mrb[158].mxu0 }
0x2bb4   :  { %v18688_v57 = vadd.f32 %v18662_v2, %v11168_v49  ;;  %v14748_v29 = vpop.f32.mrb[159].mxu0  ;;  %v11337_v18 = vsel %vm499_vm1, %v18682_v36, -inf }
0x2bb5   :  { %11338 = vmax.xlane.f32.xlu1 %v11337_v18  ;;  %v11118_v5 = vpop.f32.mrb[200].mxu1 }
0x2bb6   :  { %v14741_v31 = vpop.f32.mrb[201].mxu1  ;;  %v11340_v34 = vsel %vm499_vm1, %v18688_v57, -inf  ;;  %v18705_v28 = vadd.f32 %v18654_v17, %v11118_v5 }
0x2bb7   :  { %11341 = vmax.xlane.f32.xlu0 %v11340_v34  ;;  %v11121_v47 = vpop.f32.mrb[202].mxu1 }
0x2bb8   :  { %v14742_v52 = vpop.f32.mrb[203].mxu1  ;;  %v18713_v38 = vadd.f32 %v18662_v2, %v11121_v47  ;;  %v11331_v10 = vsel %vm499_vm1, %v18705_v28, -inf }
0x2bb9   :  { %v11259_v35 = vpop.f32.mrb[160].mxu0  ;;  %11326 = vmax.xlane.f32.xlu1 %v11325_v48 }
0x2bba   :  { %v18700_v58 = vadd.f32 %v18654_v17, %v11259_v35  ;;  %v14759_v24 = vpop.f32.mrb[161].mxu0  ;;  %v11334_v61 = vsel %vm499_vm1, %v18713_v38, -inf }
0x2bbb   :  { %v11262_v30 = vpop.f32.mrb[162].mxu0  ;;  %11329 = vmax.xlane.f32.xlu0 %v11328_v11 }
0x2bbc   :  { %v18708_v3 = vadd.f32 %v18662_v2, %v11262_v30  ;;  %v14760_v23 = vpop.f32.mrb[163].mxu0  ;;  %v11349_v19 = vsel %vm499_vm1, %v18700_v58, -inf }
0x2bbd   :  { %11350 = vmax.xlane.f32.xlu1 %v11349_v19  ;;  %v11212_v6 = vpop.f32.mrb[204].mxu1 }
0x2bbe   :  { %v14753_v51 = vpop.f32.mrb[205].mxu1  ;;  %v11352_v21 = vsel %vm499_vm1, %v18708_v3, -inf  ;;  %v18718_v50 = vadd.f32 %v18654_v17, %v11212_v6 }
0x2bbf   :  { %11353 = vmax.xlane.f32.xlu0 %v11352_v21  ;;  %v11215_v12 = vpop.f32.mrb[206].mxu1 }
0x2bc0   :  { %v14754_v16 = vpop.f32.mrb[207].mxu1  ;;  %v18723_v56 = vadd.f32 %v18662_v2, %v11215_v12  ;;  %v11343_v59 = vsel %vm499_vm1, %v18718_v50, -inf }
0x2bc1   :  { %11332 = vmax.xlane.f32.xlu1 %v11331_v10 }
0x2bc2   :  { %v11346_v33 = vsel %vm499_vm1, %v18723_v56, -inf }
0x2bc3   :  { %11335 = vmax.xlane.f32.xlu0 %v11334_v61 }
0x2bc5   :  { %11344 = vmax.xlane.f32.xlu1 %v11343_v59  ;;  %v11306_v63 = vpop.f32.mrb[208].mxu1 }
0x2bc6   :  { %v18730_v14 = vadd.f32 %v18654_v17, %v11306_v63  ;;  %v14765_v13 = vpop.f32.mrb[209].mxu1  ;;  %v11318_v17 = vpop.xlane.xlu1 %11317 }
0x2bc7   :  { %11347 = vmax.xlane.f32.xlu0 %v11346_v33  ;;  %v11309_v45 = vpop.f32.mrb[210].mxu1  ;;  %v11362_v18 = vsub.f32 %v18665_v54, %v11318_v17 }
0x2bc8   :  { %v18735_v15 = vadd.f32 %v18662_v2, %v11309_v45  ;;  %v14766_v40 = vpop.f32.mrb[211].mxu1  ;;  %v11355_v49 = vsel %vm499_vm1, %v18730_v14, -inf  ;;  %v11315_v2 = vpop.xlane.xlu0 %11314 }
0x2bc9   :  { %11356 = vmax.xlane.f32.xlu1 %v11355_v49  ;;  %v11361_v5 = vsub.f32 %v18657_v46, %v11315_v2  ;;  %v11379_v31 = vmul.f32 1.442695, %v11362_v18 }
0x2bca   :  { %v11358_v29 = vsel %vm499_vm1, %v18735_v15, -inf }
0x2bcb   :  { %11359 = vmax.xlane.f32.xlu0 %v11358_v29  ;;  %v11377_v34 = vmul.f32 1.442695, %v11361_v5  ;;  %15783 = vpow2.f32 %v11379_v31 }
0x2bcd   :  { %15785 = vpow2.f32 %v11377_v34 }
0x2bd5   :  { %v18749_v47 = vpop.eup %15783 }
0x2bd6   :  { %v11412_v48 = vsel %vm499_vm1, %v18749_v47, 0.0 }
0x2bd7   :  { %v18751_v52 = vpop.eup %15785 }
0x2bd8   :  { %v11409_v35 = vsel %vm499_vm1, %v18751_v52, 0.0 }
0x2bda   :  { %10922 = vrot.lane.b32.xlu1 %v18590_v25, %s15996_s25 }
0x2bde   :  { %10925 = vrot.lane.b32.xlu1 %v18590_v25, %s19218_s9 }
0x2be1   :  { %10919 = vrot.lane.b32.xlu0 %v18590_v25, %s15997_s21 }
0x2c00   :  { %11413 = vadd.xlane.f32.xlu0 %v11412_v48 }
0x2c02   :  { %11410 = vadd.xlane.f32.xlu1 %v11409_v35 }
0x2c36   :  { %v11321_v24 = vpop.xlane.xlu0 %11320 }
0x2c37   :  { %v11363_v54 = vsub.f32 %v18672_v26, %v11321_v24 }
0x2c39   :  { %v11381_v46 = vmul.f32 1.442695, %v11363_v54 }
0x2c3a   :  { %v11324_v11 = vpop.xlane.xlu0 %11323 }
0x2c3b   :  { %15787 = vpow2.f32 %v11381_v46  ;;  %v11364_v30 = vsub.f32 %v18675_v42, %v11324_v11 }
0x2c3d   :  { %v11383_v23 = vmul.f32 1.442695, %v11364_v30 }
0x2c3f   :  { %15789 = vpow2.f32 %v11383_v23 }
0x2c42   :  { %v11339_v19 = vpop.xlane.xlu1 %11338 }
0x2c43   :  { %v11369_v6 = vsub.f32 %v18682_v36, %v11339_v19 }
0x2c44   :  { %v11342_v51 = vpop.xlane.xlu0 %11341 }
0x2c45   :  { %v18760_v21 = vpop.eup %15787  ;;  %v11393_v12 = vmul.f32 1.442695, %v11369_v6  ;;  %v11370_v16 = vsub.f32 %v18688_v57, %v11342_v51 }
0x2c46   :  { %v11327_v10 = vpop.xlane.xlu1 %11326  ;;  %v11415_v26 = vsel %vm499_vm1, %v18760_v21, 0.0 }
0x2c47   :  { %15791 = vpow2.f32 %v11393_v12  ;;  %v11395_v61 = vmul.f32 1.442695, %v11370_v16  ;;  %v11365_v59 = vsub.f32 %v18685_v55, %v11327_v10  ;;  %11416 = vadd.xlane.f32.xlu1 %v11415_v26 }
0x2c48   :  { %v11330_v42 = vpop.xlane.xlu0 %11329 }
0x2c49   :  { %v18766_v63 = vpop.eup %15789  ;;  %15793 = vpow2.f32 %v11395_v61  ;;  %v11385_v36 = vmul.f32 1.442695, %v11365_v59  ;;  %v11366_v13 = vsub.f32 %v18693_v8, %v11330_v42 }
0x2c4a   :  { %v11351_v33 = vpop.xlane.xlu1 %11350  ;;  %v11418_v57 = vsel %vm499_vm1, %v18766_v63, 0.0 }
0x2c4b   :  { %15795 = vpow2.f32 %v11385_v36  ;;  %v11387_v45 = vmul.f32 1.442695, %v11366_v13  ;;  %v11373_v40 = vsub.f32 %v18700_v58, %v11351_v33  ;;  %11419 = vadd.xlane.f32.xlu0 %v11418_v57 }
0x2c4c   :  { %v11354_v49 = vpop.xlane.xlu0 %11353 }
0x2c4d   :  { %15797 = vpow2.f32 %v11387_v45  ;;  %v11401_v55 = vmul.f32 1.442695, %v11373_v40  ;;  %v11374_v29 = vsub.f32 %v18708_v3, %v11354_v49 }
0x2c4e   :  { %v11333_v17 = vpop.xlane.xlu1 %11332 }
0x2c4f   :  { %15799 = vpow2.f32 %v11401_v55  ;;  %v11403_v2 = vmul.f32 1.442695, %v11374_v29  ;;  %v11367_v18 = vsub.f32 %v18705_v28, %v11333_v17 }
0x2c50   :  { %v11336_v8 = vpop.xlane.xlu0 %11335 }
0x2c51   :  { %v18774_v5 = vpop.eup %15791  ;;  %15801 = vpow2.f32 %v11403_v2  ;;  %v11389_v31 = vmul.f32 1.442695, %v11367_v18  ;;  %v11368_v34 = vsub.f32 %v18713_v38, %v11336_v8 }
0x2c52   :  { %v11345_v48 = vpop.xlane.xlu1 %11344  ;;  %v11433_v58 = vsel %vm499_vm1, %v18774_v5, 0.0 }
0x2c53   :  { %v18779_v35 = vpop.eup %15793  ;;  %15803 = vpow2.f32 %v11389_v31  ;;  %v11391_v3 = vmul.f32 1.442695, %v11368_v34  ;;  %v11371_v24 = vsub.f32 %v18718_v50, %v11345_v48  ;;  %11434 = vadd.xlane.f32.xlu1 %v11433_v58 }
0x2c54   :  { %v11436_v28 = vsel %vm499_vm1, %v18779_v35, 0.0  ;;  %v11348_v33 = vpop.xlane.xlu0 %11347 }
0x2c55   :  { %v18784_v54 = vpop.eup %15795  ;;  %15805 = vpow2.f32 %v11391_v3  ;;  %v11397_v46 = vmul.f32 1.442695, %v11371_v24  ;;  %11437 = vadd.xlane.f32.xlu0 %v11436_v28  ;;  %v11372_v57 = vsub.f32 %v18723_v56, %v11348_v33 }
0x2c56   :  { %v11357_v38 = vpop.xlane.xlu1 %11356  ;;  %v11421_v11 = vsel %vm499_vm1, %v18784_v54, 0.0 }
0x2c57   :  { %v18788_v30 = vpop.eup %15797  ;;  %15807 = vpow2.f32 %v11397_v46  ;;  %v11375_v23 = vsub.f32 %v18730_v14, %v11357_v38  ;;  %11422 = vadd.xlane.f32.xlu1 %v11421_v11  ;;  %v11399_v40 = vmul.f32 1.442695, %v11372_v57 }
0x2c58   :  { %v11424_v50 = vsel %vm499_vm1, %v18788_v30, 0.0  ;;  %v11360_v45 = vpop.xlane.xlu0 %11359 }
0x2c59   :  { %v18793_v19 = vpop.eup %15799  ;;  %v11405_v6 = vmul.f32 1.442695, %v11375_v23  ;;  %11425 = vadd.xlane.f32.xlu0 %v11424_v50  ;;  %v11376_v49 = vsub.f32 %v18735_v15, %v11360_v45 }
0x2c5a   :  { %v11445_v51 = vsel %vm499_vm1, %v18793_v19, 0.0  ;;  %v10923_v55 = vpop.permute.xlu1 %10922 }
0x2c5b   :  { %v18797_v12 = vpop.eup %15801  ;;  %15809 = vpow2.f32 %v11405_v6  ;;  %11446 = vadd.xlane.f32.xlu1 %v11445_v51  ;;  %v11407_v29 = vmul.f32 1.442695, %v11376_v49 }
0x2c5c   :  { %v11448_v16 = vsel %vm499_vm1, %v18797_v12, 0.0  ;;  %15811 = vpow2.f32 %v11399_v40  ;;  %v10920_v17 = vpop.permute.xlu0 %10919 }
0x2c5d   :  { %v18801_v10 = vpop.eup %15803  ;;  %11449 = vadd.xlane.f32.xlu0 %v11448_v16  ;;  %15813 = vpow2.f32 %v11407_v29 }
0x2c5e   :  { %v11427_v14 = vsel %vm499_vm1, %v18801_v10, 0.0  ;;  %v10926_v2 = vpop.permute.xlu1 %10925 }
0x2c5f   :  { %v18805_v26 = vpop.eup %15805  ;;  %11428 = vadd.xlane.f32.xlu1 %v11427_v14 }
0x2c60   :  { %v11430_v61 = vsel %vm499_vm1, %v18805_v26, 0.0 }
0x2c61   :  { %v18809_v59 = vpop.eup %15807  ;;  %11431 = vadd.xlane.f32.xlu0 %v11430_v61 }
0x2c62   :  { %v11439_v42 = vsel %vm499_vm1, %v18809_v59, 0.0 }
0x2c63   :  { %11440 = vadd.xlane.f32.xlu1 %v11439_v42 }
0x2c65   :  { %v18813_v36 = vpop.eup %15809 }
0x2c66   :  { %v11451_v13 = vsel %vm499_vm1, %v18813_v36, 0.0  ;;  %v18823_v31 = vpop.eup %15811 }
0x2c67   :  { %11452 = vadd.xlane.f32.xlu1 %v11451_v13  ;;  %v11442_v34 = vsel %vm499_vm1, %v18823_v31, 0.0  ;;  %v18827_v56 = vpop.eup %15813 }
0x2c68   :  { %v11454_v15 = vsel %vm499_vm1, %v18827_v56, 0.0 }
0x2c77   :  { %10928 = vrot.lane.b32.xlu0 %v18590_v25, %s15998_s22 }
0x2c78   :  { %10931 = vrot.lane.b32.xlu1 %v18590_v25, %s15999_s23 }
0x2c8d   :  { %v11414_v18 = vpop.xlane.xlu0 %11413 }
0x2c8e   :  { %15815 = vrcp.f32 %v11414_v18 }
0x2c8f   :  { %v11411_v8 = vpop.xlane.xlu1 %11410 }
0x2c90   :  { %15817 = vrcp.f32 %v11411_v8 }
0x2c96   :  { %11443 = vadd.xlane.f32.xlu0 %v11442_v34 }
0x2c98   :  { %v15816_v48 = vpop.eup %15815 }
0x2c99   :  { %v11474_v3 = vmul.f32 %v15816_v48, %v18749_v47 }
0x2c9a   :  { %v15818_v58 = vpop.eup %15817  ;;  %11455 = vadd.xlane.f32.xlu0 %v11454_v15 }
0x2c9b   :  { %v11473_v24 = vmul.f32 %v15818_v58, %v18751_v52 }
0x2c9d   :  { %v11489_v28 = vpack.c.bf16 %v11474_v3, %v11473_v24 }
0x2c9f   :  { %14770 = vmatmul.mubr.msk.bf16.vlgmr.msra.gmra.mrb[164].mxu0 %vm499_vm1, %v11489_v28 }
0x2ca0   :  { %14780 = vmatpush3.bf16.msra.mxu0 %v10920_v17  ;;  %14781 = vmatprep.mubr.msk.bf16.mxu0 %vm15993_vm0, %v15992_v1 }
0x2ca1   :  { %14791 = vmatprep.subr.bf16.mxu0 %v15992_v1 }
0x2cb0   :  { %10934 = vrot.lane.b32.xlu0 %v18590_v25, %s16000_s27 }
0x2cd4   :  { %v11417_v46 = vpop.xlane.xlu1 %11416 }
0x2cd5   :  { %15819 = vrcp.f32 %v11417_v46 }
0x2cd8   :  { %v11420_v38 = vpop.xlane.xlu0 %11419 }
0x2cd9   :  { %15821 = vrcp.f32 %v11420_v38 }
0x2cdf   :  { %v15820_v47 = vpop.eup %15819 }
0x2ce0   :  { %v11435_v11 = vpop.xlane.xlu1 %11434  ;;  %v11475_v50 = vmul.f32 %v15820_v47, %v18760_v21 }
0x2ce2   :  { %v11438_v23 = vpop.xlane.xlu0 %11437 }
0x2ce3   :  { %v15822_v52 = vpop.eup %15821 }
0x2ce4   :  { %v11476_v6 = vmul.f32 %v15822_v52, %v18766_v63  ;;  %v11423_v51 = vpop.xlane.xlu1 %11422 }
0x2ce5   :  { %15823 = vrcp.f32 %v11423_v51 }
0x2ce6   :  { %v11426_v16 = vpop.xlane.xlu0 %11425  ;;  %v11490_v14 = vpack.c.bf16 %v11476_v6, %v11475_v50 }
0x2ce7   :  { %15825 = vrcp.f32 %v11426_v16 }
0x2ce8   :  { %v11447_v61 = vpop.xlane.xlu1 %11446  ;;  %14776 = vmatmul.mubr.msk.bf16.vlgmr.msra.gmra.mrb[212].mxu1 %vm499_vm1, %v11490_v14  ;;  %15827 = vrcp.f32 %v11438_v23 }
0x2ce9   :  { %14786 = vmatpush3.bf16.msra.mxu1 %v10923_v55  ;;  %14787 = vmatprep.mubr.msk.bf16.mxu1 %vm15993_vm0, %v15992_v1  ;;  %15829 = vrcp.f32 %v11435_v11 }
0x2cea   :  { %v11450_v25 = vpop.xlane.xlu0 %11449  ;;  %14797 = vmatprep.subr.bf16.mxu1 %v15992_v1 }
0x2cec   :  { %v11429_v21 = vpop.xlane.xlu1 %11428 }
0x2ced   :  { %15831 = vrcp.f32 %v11429_v21 }
0x2cee   :  { %v11432_v63 = vpop.xlane.xlu0 %11431 }
0x2cef   :  { %v15824_v42 = vpop.eup %15823  ;;  %15833 = vrcp.f32 %v11432_v63 }
0x2cf0   :  { %v11477_v33 = vmul.f32 %v15824_v42, %v18784_v54  ;;  %v11441_v45 = vpop.xlane.xlu1 %11440  ;;  %15835 = vrcp.f32 %v11450_v25 }
0x2cf1   :  { %v15826_v13 = vpop.eup %15825  ;;  %15837 = vrcp.f32 %v11447_v61 }
0x2cf2   :  { %v11478_v57 = vmul.f32 %v15826_v13, %v18788_v30  ;;  %v15828_v49 = vpop.eup %15827  ;;  %v10929_v3 = vpop.permute.xlu0 %10928  ;;  %15839 = vrcp.f32 %v11441_v45 }
0x2cf3   :  { %v15830_v55 = vpop.eup %15829  ;;  %v11482_v17 = vmul.f32 %v15828_v49, %v18779_v35 }
0x2cf4   :  { %v11491_v40 = vpack.c.bf16 %v11478_v57, %v11477_v33  ;;  %v11453_v18 = vpop.xlane.xlu1 %11452  ;;  %v11481_v30 = vmul.f32 %v15830_v55, %v18774_v5 }
0x2cf6   :  { %14782 = vmatmul.mubr.msk.bf16.vlgmr.msra.gmra.mrb[168].mxu0 %vm499_vm1, %v11491_v40  ;;  %v11493_v15 = vpack.c.bf16 %v11482_v17, %v11481_v30  ;;  %v15447_v40 = vld [vmem:[#allocation5 + $0x100] sm:$0xff]  }
0x2cf7   :  { %v15832_v29 = vpop.eup %15831  ;;  %14792 = vmatpush3.bf16.msra.mxu0 %v10926_v2  ;;  %14793 = vmatprep.mubr.msk.bf16.mxu0 %vm15993_vm0, %v15992_v1 }
0x2cf8   :  { %14803 = vmatprep.subr.bf16.mxu0 %v15992_v1  ;;  %v11479_v8 = vmul.f32 %v15832_v29, %v18801_v10  ;;  %v10932_v2 = vpop.permute.xlu1 %10931 }
0x2cf9   :  { %v15834_v54 = vpop.eup %15833 }
0x2cfa   :  { %v11480_v34 = vmul.f32 %v15834_v54, %v18805_v26  ;;  %v15836_v58 = vpop.eup %15835 }
0x2cfb   :  { %v15838_v35 = vpop.eup %15837  ;;  %v11486_v24 = vmul.f32 %v15836_v58, %v18797_v12 }
0x2cfc   :  { %v11492_v48 = vpack.c.bf16 %v11480_v34, %v11479_v8  ;;  %v11485_v5 = vmul.f32 %v15838_v35, %v18793_v19  ;;  %v15840_v28 = vpop.eup %15839 }
0x2cfd   :  { %v11483_v38 = vmul.f32 %v15840_v28, %v18809_v59 }
0x2cfe   :  { %14788 = vmatmul.mubr.msk.bf16.vlgmr.msra.gmra.mrb[216].mxu1 %vm499_vm1, %v11492_v48  ;;  %14794 = vmatmul.mubr.msk.bf16.vlgmr.msra.gmra.mrb[172].mxu0 %vm499_vm1, %v11493_v15  ;;  %v11495_v10 = vpack.c.bf16 %v11486_v24, %v11485_v5  ;;  %v15449_v48 = vld [vmem:[#allocation5 + $0x110] sm:$0xff]   ;;  %v15451_v5 = vld [vmem:[#allocation5 + $0x120] sm:$0xff]  }
0x2cff   :  { %14798 = vmatpush3.bf16.msra.mxu1 %v10929_v3  ;;  %14804 = vmatpush3.bf16.msra.mxu0 %v10932_v2  ;;  %v15450_v2 = vld [vmem:[#allocation5 + $0x118] sm:$0xff]  }
0x2d00   :  { %14805 = vmatprep.mubr.msk.bf16.mxu0 %vm15993_vm0, %v15992_v1  ;;  %14799 = vmatprep.mubr.msk.bf16.mxu1 %vm15993_vm0, %v15992_v1 }
0x2d01   :  { %14809 = vmatprep.subr.bf16.mxu1 %v15992_v1  ;;  %14815 = vmatprep.subr.bf16.mxu0 %v15992_v1 }
0x2d06   :  { %14806 = vmatmul.mubr.msk.bf16.vlgmr.msra.gmra.mrb[176].mxu0 %vm499_vm1, %v11495_v10  ;;  %v15452_v10 = vld [vmem:[#allocation5 + $0x128] sm:$0xff]  }
0x2d07   :  { %14831 = vmatprep.mubr.msk.bf16.mxu0 %vm15993_vm0, %v15992_v1  ;;  %14816 = vmatpush3.bf16.msra.mxu0 %v15447_v40 }
0x2d08   :  { %14817 = vmatprep.subr.bf16.mxu0 %v15992_v1 }
0x2d23   :  { %v11444_v12 = vpop.xlane.xlu0 %11443 }
0x2d24   :  { %15841 = vrcp.f32 %v11444_v12  ;;  %v15453_v12 = vld [vmem:[#allocation5 + $0x130] sm:$0xff]  }
0x2d27   :  { %v11456_v26 = vpop.xlane.xlu0 %11455 }
0x2d28   :  { %15843 = vrcp.f32 %v11456_v26 }
0x2d29   :  { %15845 = vrcp.f32 %v11453_v18  ;;  %v15448_v18 = vld [vmem:[#allocation5 + $0x108] sm:$0xff]  }
0x2d2a   :  { %14818 = vmatpush3.bf16.msra.mxu0 %v15448_v18 }
0x2d2b   :  { %v10935_v23 = vpop.permute.xlu0 %10934  ;;  %14819 = vmatprep.subr.bf16.mxu0 %v15992_v1 }
0x2d2e   :  { %v15842_v46 = vpop.eup %15841  ;;  %14820 = vmatpush3.bf16.msra.mxu0 %v15449_v48 }
0x2d2f   :  { %v11484_v11 = vmul.f32 %v15842_v46, %v18823_v31  ;;  %14821 = vmatprep.subr.bf16.mxu0 %v15992_v1  ;;  %v15454_v46 = vld [vmem:[#allocation5 + $0x138] sm:$0xff]  }
0x2d31   :  { %v11494_v47 = vpack.c.bf16 %v11484_v11, %v11483_v38 }
0x2d32   :  { %v15844_v19 = vpop.eup %15843  ;;  %14822 = vmatpush3.bf16.msra.mxu0 %v15450_v2 }
0x2d33   :  { %14800 = vmatmul.mubr.msk.bf16.vlgmr.msra.gmra.mrb[220].mxu1 %vm499_vm1, %v11494_v47  ;;  %v15846_v52 = vpop.eup %15845  ;;  %v11488_v50 = vmul.f32 %v15844_v19, %v18827_v56  ;;  %14823 = vmatprep.subr.bf16.mxu0 %v15992_v1 }
0x2d34   :  { %14810 = vmatpush3.bf16.msra.mxu1 %v10935_v23  ;;  %14811 = vmatprep.mubr.msk.bf16.mxu1 %vm15993_vm0, %v15992_v1  ;;  %v11487_v6 = vmul.f32 %v15846_v52, %v18813_v36 }
0x2d36   :  { %v11496_v51 = vpack.c.bf16 %v11488_v50, %v11487_v6  ;;  %14824 = vmatpush3.bf16.msra.mxu0 %v15451_v5 }
0x2d37   :  { %14825 = vmatprep.subr.bf16.mxu0 %v15992_v1 }
0x2d3a   :  { %14826 = vmatpush3.bf16.msra.mxu0 %v15452_v10 }
0x2d3b   :  { %14812 = vmatmul.mubr.msk.bf16.vlgmr.msra.gmra.mrb[224].mxu1 %vm499_vm1, %v11496_v51  ;;  %14827 = vmatprep.subr.bf16.mxu0 %v15992_v1 }
0x2d3c   :  { %12605 = vmatprep.mubr.bf16.mxu1 %v15991_v0 }
0x2d3e   :  { %14828 = vmatpush3.bf16.msra.mxu0 %v15453_v12  ;;  %v13725_v12 = vld [vmem:[%s19201_s6 + $0x4] ss:$0 sm:$0xff] }
0x2d3f   :  { %14829 = vmatprep.subr.bf16.mxu0 %v15992_v1 }
0x2d42   :  { %14830 = vmatpush3.bf16.msra.mxu0 %v15454_v46 }
0x2d72   :  { %v18877_v59 = vpop.f32.mrb[164].mxu0 }
0x2d73   :  { %v14771_v31 = vpop.f32.mrb[165].mxu0 }
0x2d74   :  { %v18879_v16 = vpop.f32.mrb[166].mxu0 }
0x2d75   :  { %v14772_v14 = vpop.f32.mrb[167].mxu0 }
0x2dbb   :  { %v11578_v61 = vpop.f32.mrb[212].mxu1 }
0x2dbc   :  { %v14777_v25 = vpop.f32.mrb[213].mxu1 }
0x2dbd   :  { %v11581_v21 = vpop.f32.mrb[214].mxu1 }
0x2dbe   :  { %v15060_v63 = vpack.i.bf16 %v11581_v21, %v11578_v61  ;;  %v14778_v42 = vpop.f32.mrb[215].mxu1 }
0x2dc0   :  { %15061 = vrot.lane.b32.xlu1 %v15060_v63, %s16000_s27 }
0x2dc9   :  { %v11622_v56 = vpop.f32.mrb[168].mxu0 }
0x2dca   :  { %v14783_v36 = vpop.f32.mrb[169].mxu0 }
0x2dcb   :  { %v11625_v13 = vpop.f32.mrb[170].mxu0 }
0x2dcc   :  { %v15065_v33 = vpack.i.bf16 %v11625_v13, %v11622_v56  ;;  %v14784_v57 = vpop.f32.mrb[171].mxu0 }
0x2dce   :  { %15066 = vrot.lane.b32.xlu0 %v15065_v33, %s15999_s23 }
0x2dd1   :  { %v11666_v0 = vpop.f32.mrb[216].mxu1  ;;  %v11710_v45 = vpop.f32.mrb[172].mxu0 }
0x2dd2   :  { %v14789_v49 = vpop.f32.mrb[217].mxu1  ;;  %v14795_v55 = vpop.f32.mrb[173].mxu0 }
0x2dd3   :  { %v11669_v29 = vpop.f32.mrb[218].mxu1  ;;  %v11713_v17 = vpop.f32.mrb[174].mxu0 }
0x2dd4   :  { %v15070_v54 = vpack.i.bf16 %v11669_v29, %v11666_v0  ;;  %v15075_v30 = vpack.i.bf16 %v11713_v17, %v11710_v45  ;;  %v14790_v8 = vpop.f32.mrb[219].mxu1  ;;  %v14796_v34 = vpop.f32.mrb[175].mxu0 }
0x2dd6   :  { %15076 = vrot.lane.b32.xlu0 %v15075_v30, %s19218_s9  ;;  %15071 = vrot.lane.b32.xlu1 %v15070_v54, %s15998_s22 }
0x2dd9   :  { %v11798_v15 = vpop.f32.mrb[176].mxu0 }
0x2dda   :  { %v14807_v58 = vpop.f32.mrb[177].mxu0 }
0x2ddb   :  { %v11801_v3 = vpop.f32.mrb[178].mxu0 }
0x2ddc   :  { %v15085_v35 = vpack.i.bf16 %v11801_v3, %v11798_v15  ;;  %v14808_v24 = vpop.f32.mrb[179].mxu0 }
0x2dde   :  { %15086 = vrot.lane.b32.xlu0 %v15085_v35, %s15997_s21 }
0x2e06   :  { %v11754_v26 = vpop.f32.mrb[220].mxu1 }
0x2e07   :  { %v14801_v28 = vpop.f32.mrb[221].mxu1 }
0x2e08   :  { %v11757_v38 = vpop.f32.mrb[222].mxu1 }
0x2e09   :  { %v15080_v11 = vpack.i.bf16 %v11757_v38, %v11754_v26  ;;  %v14802_v47 = vpop.f32.mrb[223].mxu1 }
0x2e0b   :  { %15081 = vrot.lane.b32.xlu1 %v15080_v11, %s15996_s25 }
0x2e0e   :  { %v11842_v19 = vpop.f32.mrb[224].mxu1 }
0x2e0f   :  { %v14813_v23 = vpop.f32.mrb[225].mxu1 }
0x2e10   :  { %v11845_v52 = vpop.f32.mrb[226].mxu1 }
0x2e11   :  { %v15090_v50 = vpack.i.bf16 %v11845_v52, %v11842_v19  ;;  %v14814_v6 = vpop.f32.mrb[227].mxu1 }
0x2e13   :  { %15091 = vrot.lane.b32.xlu1 %v15090_v50, %s15995_s5 }
0x2e32   :  { %v15062_v51 = vpop.permute.xlu1 %15061 }
0x2e33   :  { %v15064_v61 = vunpack.i.h.bf16 %v15062_v51  ;;  %v15063_v25 = vunpack.i.l.bf16 %v15062_v51 }
0x2e35   :  { %v11906_v33 = vsel %vm499_vm1, %v18879_v16, %v15064_v61  ;;  %v11905_v57 = vsel %vm499_vm1, %v18877_v59, %v15063_v25 }
0x2e40   :  { %v15067_v31 = vpop.permute.xlu0 %15066 }
0x2e41   :  { %v15069_v21 = vunpack.i.h.bf16 %v15067_v31  ;;  %v15068_v63 = vunpack.i.l.bf16 %v15067_v31 }
0x2e43   :  { %v11907_v0 = vsel %vm1470_vm2, %v11905_v57, %v15068_v63  ;;  %v11908_v45 = vsel %vm1470_vm2, %v11906_v33, %v15069_v21 }
0x2e48   :  { %v15072_v14 = vpop.permute.xlu1 %15071  ;;  %v15077_v42 = vpop.permute.xlu0 %15076 }
0x2e49   :  { %v15074_v56 = vunpack.i.h.bf16 %v15072_v14  ;;  %v15073_v36 = vunpack.i.l.bf16 %v15072_v14  ;;  %v15079_v40 = vunpack.i.h.bf16 %v15077_v42  ;;  %v15078_v49 = vunpack.i.l.bf16 %v15077_v42 }
0x2e4b   :  { %v11910_v55 = vsel %vm1473_vm3, %v11908_v45, %v15074_v56  ;;  %v11909_v29 = vsel %vm1473_vm3, %v11907_v0, %v15073_v36 }
0x2e4c   :  { %v11911_v30 = vsel %vm1476_vm4, %v11909_v29, %v15078_v49  ;;  %v11912_v16 = vsel %vm1476_vm4, %v11910_v55, %v15079_v40 }
0x2e50   :  { %v15087_v54 = vpop.permute.xlu0 %15086 }
0x2e51   :  { %v15089_v34 = vunpack.i.h.bf16 %v15087_v54  ;;  %v15088_v48 = vunpack.i.l.bf16 %v15087_v54 }
0x2e7d   :  { %v15082_v13 = vpop.permute.xlu1 %15081 }
0x2e7e   :  { %v15084_v17 = vunpack.i.h.bf16 %v15082_v13  ;;  %v15083_v18 = vunpack.i.l.bf16 %v15082_v13 }
0x2e80   :  { %v11914_v8 = vsel %vm1479_vm5, %v11912_v16, %v15084_v17  ;;  %v11913_v59 = vsel %vm1479_vm5, %v11911_v30, %v15083_v18 }
0x2e81   :  { %v11915_v2 = vsel %vm1482_vm6, %v11913_v59, %v15088_v48  ;;  %v11916_v35 = vsel %vm1482_vm6, %v11914_v8, %v15089_v34 }
0x2e85   :  { %v15092_v15 = vpop.permute.xlu1 %15091 }
0x2e86   :  { %v15094_v58 = vunpack.i.h.bf16 %v15092_v15  ;;  %v15093_v3 = vunpack.i.l.bf16 %v15092_v15 }
0x2e88   :  { %v11918_v24 = vsel %vm1485_vm7, %v11916_v35, %v15094_v58  ;;  %v11917_v5 = vsel %vm1485_vm7, %v11915_v2, %v15093_v3 }
0x2e89   :  { %v11919_v10 = vpack.c.bf16 %v11918_v24, %v11917_v5 }
0x2e8b   :  { %14832 = vmatmul.mubr.bf16.vlgmr.msra.gmra.mrb[180].mxu0 %v11919_v10 }
0x2f5e   :  { %v12027_v26 = vpop.f32.mrb[180].mxu0 }
0x2f5f   :  { %v12028_v28 = vadd.f32 %v13725_v12, %v12027_v26  ;;  %v14833_v46 = vpop.f32.mrb[181].mxu0 }
0x2f60   :  { %v12030_v38 = vpop.f32.mrb[182].mxu0 }
0x2f61   :  { %v12036_v11 = vcombine.high %v12028_v28, %v12028_v28  ;;  %v12043_v47 = vrot.slane %v12028_v28, %v16201_v37  ;;  %v12031_v19 = vadd.f32 %v13725_v12, %v12030_v38  ;;  %v14834_v23 = vpop.f32.mrb[183].mxu0 }
0x2f63   :  { %v12050_v52 = vrot.slane %v12036_v11, %v16201_v37  ;;  %v12051_v50 = vcombine.high %v12043_v47, %v12043_v47  ;;  %v12053_v6 = vcombine.high %v12031_v19, %v12031_v19  ;;  %v12060_v51 = vrot.slane %v12031_v19, %v16201_v37 }
0x2f64   :  { %v12078_v14 = vadd.f32 %v12043_v47, %v18552_v53 }
0x2f65   :  { %v12052_v31 = vcombine.high %v12050_v52, %v12050_v52  ;;  %v12079_v61 = vadd.f32 %v12051_v50, %v18554_v32  ;;  %v12067_v25 = vrot.slane %v12053_v6, %v16201_v37  ;;  %v12068_v21 = vcombine.high %v12060_v51, %v12060_v51 }
0x2f66   :  { %v12080_v63 = vadd.f32 %v12050_v52, %v18556_v39  ;;  %v12082_v13 = vadd.f32 %v12060_v51, %v18564_v7 }
0x2f67   :  { %v12081_v42 = vadd.f32 %v12052_v31, %v18558_v41  ;;  %v12098_v56 = vcombine.low %v12078_v14, %v12079_v61  ;;  %v12069_v36 = vcombine.high %v12067_v25, %v12067_v25  ;;  %v12083_v33 = vadd.f32 %v12068_v21, %v18566_v4  ;;  %v15457_v21 = vld [vmem:[#allocation7 + $0x204] ss:$8 sps:$4 sm:$0xff]  }
0x2f68   :  { %v12084_v57 = vadd.f32 %v12067_v25, %v18568_v44  ;;  %12573 = vmatprep.subr.bf16.mxu1 %v15457_v21 }
0x2f69   :  { %v12085_v0 = vadd.f32 %v12069_v36, %v18570_v27  ;;  %v12099_v53 = vcombine.low %v12080_v63, %v12081_v42  ;;  %v12115_v45 = vcombine.low %v12082_v13, %v12083_v33  ;;  %v12106_v32 = vrot.slane %v12098_v56, %v16201_v37  ;;  %v15458_v56 = vld [vmem:[#allocation7 + $0x210] ss:$8 sps:$4 sm:$0xff]   ;;  %v15463_v36 = vld [vmem:[#allocation7 + $0x224] ss:$8 sps:$4 sm:$0xff]  }
0x2f6b   :  { %v12113_v40 = vrot.slane %v12099_v53, %v16201_v37  ;;  %v12116_v49 = vcombine.low %v12084_v57, %v12085_v0  ;;  %v12123_v41 = vrot.slane %v12115_v45, %v16201_v37  ;;  %v15467_v53 = vld [vmem:[#allocation7 + $0x240] ss:$8 sps:$4 sm:$0xff]   ;;  %v15472_v45 = vld [vmem:[#allocation7 + $0x254] ss:$8 sps:$4 sm:$0xff]  }
0x2f6d   :  { %v12114_v39 = vcombine.low %v12106_v32, %v12113_v40  ;;  %v12130_v55 = vrot.slane %v12116_v49, %v16201_v37  ;;  %v15470_v32 = vld [vmem:[#allocation7 + $0x250] ss:$8 sps:$4 sm:$0xff]   ;;  %v15475_v40 = vld [vmem:[#allocation7 + $0x264] ss:$8 sps:$4 sm:$0xff]   ;;  %v15473_v49 = vld [vmem:[#allocation7 + $0x260] ss:$8 sps:$4 sm:$0xff]  }
0x2f6f   :  { %12134 = vadd.xlane.f32.xlu0 %v12114_v39  ;;  %v12131_v7 = vcombine.low %v12123_v41, %v12130_v55  ;;  %v15478_v39 = vld [vmem:[#allocation7 + $0x274] ss:$8 sps:$4 sm:$0xff]   ;;  %v15476_v41 = vld [vmem:[#allocation7 + $0x270] ss:$8 sps:$4 sm:$0xff]   ;;  %v15479_v55 = vld [vmem:[#allocation8 + $0x240] sm:$0xff]  }
0x2f70   :  { %14116 = vmatprep.subr.bf16.mxu0 %v15479_v55 }
0x2f71   :  { %12136 = vadd.xlane.f32.xlu1 %v12131_v7  ;;  %v15480_v7 = vld [vmem:[#allocation8 + $0x200] sm:$0xff]  }
0x2f72   :  { %14117 = vmatpush3.bf16.msra.mxu0 %v15480_v7 }
0x2ffc   :  { %v12135_v4 = vpop.xlane.xlu0 %12134 }
0x2ffd   :  { %v12138_v29 = vmul.f32 0.0078125, %v12135_v4  ;;  %v15481_v4 = vld [vmem:[#allocation8 + $0x248] sm:$0xff]  }
0x2ffe   :  { %v12137_v44 = vpop.xlane.xlu1 %12136  ;;  %14118 = vmatprep.subr.bf16.mxu0 %v15481_v4 }
0x2fff   :  { %v12148_v27 = vrot.slane %v12138_v29, %v16587_v20  ;;  %v12155_v17 = vrot.slane %v12138_v29, %v16590_v9  ;;  %v12162_v18 = vrot.slane %v12138_v29, %v16593_v22  ;;  %v12169_v54 = vrot.slane %v12138_v29, %v16596_v43  ;;  %v15482_v29 = vld [vmem:[#allocation8 + $0x208] sm:$0xff]  }
0x3000   :  { %v12139_v30 = vmul.f32 0.0078125, %v12137_v44  ;;  %v15483_v44 = vld [vmem:[#allocation8 + $0x250] sm:$0xff]   ;;  %14119 = vmatpush3.bf16.msra.mxu0 %v15482_v29 }
0x3001   :  { %v18934_v16 = vsub.f32 %v12078_v14, %v12148_v27  ;;  %v18936_v8 = vsub.f32 %v12079_v61, %v12155_v17  ;;  %v18938_v59 = vsub.f32 %v12080_v63, %v12162_v18  ;;  %v18940_v34 = vsub.f32 %v12081_v42, %v12169_v54  ;;  %v15455_v63 = vld [vmem:[#allocation7 + $0x200] ss:$8 sps:$4 sm:$0xff]   ;;  %v15460_v42 = vld [vmem:[#allocation7 + $0x214] ss:$8 sps:$4 sm:$0xff]   ;;  %14120 = vmatprep.subr.bf16.mxu0 %v15483_v44 }
0x3002   :  { %v12176_v48 = vrot.slane %v12139_v30, %v16587_v20  ;;  %v12183_v15 = vrot.slane %v12139_v30, %v16590_v9  ;;  %v12190_v58 = vrot.slane %v12139_v30, %v16593_v22  ;;  %v12197_v3 = vrot.slane %v12139_v30, %v16596_v43  ;;  %12574 = vmatpush1.bf16.msra.mxu1 %v15455_v63  ;;  %v15484_v27 = vld [vmem:[#allocation8 + $0x210] sm:$0xff]   ;;  %v15485_v17 = vld [vmem:[#allocation8 + $0x258] sm:$0xff]   ;;  %v15487_v54 = vld [vmem:[#allocation8 + $0x260] sm:$0xff]  }
0x3003   :  { %v12214_v2 = vmul.f32 %v18934_v16, %v18934_v16  ;;  %v12215_v35 = vmul.f32 %v18936_v8, %v18936_v8  ;;  %v12216_v24 = vmul.f32 %v18938_v59, %v18938_v59  ;;  %v12217_v5 = vmul.f32 %v18940_v34, %v18940_v34  ;;  %12575 = vmatprep.subr.bf16.mxu1 %v15460_v42  ;;  %v15486_v18 = vld [vmem:[#allocation8 + $0x218] sm:$0xff]   ;;  %v15488_v30 = vld [vmem:[#allocation8 + $0x220] sm:$0xff]  }
0x3004   :  { %v18954_v10 = vsub.f32 %v12082_v13, %v12176_v48  ;;  %v18956_v12 = vsub.f32 %v12083_v33, %v12183_v15  ;;  %v18958_v26 = vsub.f32 %v12084_v57, %v12190_v58  ;;  %v18960_v28 = vsub.f32 %v12085_v0, %v12197_v3  ;;  %v15461_v13 = vld [vmem:[#allocation7 + $0x220] ss:$8 sps:$4 sm:$0xff]   ;;  %v15466_v33 = vld [vmem:[#allocation7 + $0x234] ss:$8 sps:$4 sm:$0xff]   ;;  %v15464_v57 = vld [vmem:[#allocation7 + $0x230] ss:$8 sps:$4 sm:$0xff]   ;;  %14121 = vmatpush3.bf16.msra.mxu0 %v15484_v27 }
0x3005   :  { %v12230_v46 = vcombine.low %v12214_v2, %v12215_v35  ;;  %v12231_v38 = vcombine.low %v12216_v24, %v12217_v5  ;;  %v15469_v0 = vld [vmem:[#allocation7 + $0x244] ss:$8 sps:$4 sm:$0xff]   ;;  %14122 = vmatprep.subr.bf16.mxu0 %v15485_v17 }
0x3006   :  { %v12218_v11 = vmul.f32 %v18954_v10, %v18954_v10  ;;  %v12219_v47 = vmul.f32 %v18956_v12, %v18956_v12  ;;  %v12220_v19 = vmul.f32 %v18958_v26, %v18958_v26  ;;  %v12221_v23 = vmul.f32 %v18960_v28, %v18960_v28  ;;  %12576 = vmatpush1.bf16.msra.mxu1 %v15458_v56  ;;  %v15489_v48 = vld [vmem:[#allocation8 + $0x268] sm:$0xff]   ;;  %v13736_v24 = vld [vmem:[%s19202_s7 + $0x4] ss:$0 sm:$0xff] }
0x3007   :  { %v12238_v52 = vrot.slane %v12230_v46, %v16201_v37  ;;  %v12245_v50 = vrot.slane %v12231_v38, %v16201_v37  ;;  %12577 = vmatprep.subr.bf16.mxu1 %v15463_v36  ;;  %v13737_v46 = vld [vmem:[%s19203_s8 + $0x4] ss:$0 sm:$0xff]  ;;  %v12355_v38 = vcombine.high %v13736_v24, %v13736_v24 }
0x3008   :  { %v12247_v6 = vcombine.low %v12218_v11, %v12219_v47  ;;  %v12248_v51 = vcombine.low %v12220_v19, %v12221_v23  ;;  %14123 = vmatpush3.bf16.msra.mxu0 %v15486_v18  ;;  %v12389_v11 = vcombine.high %v13737_v46, %v13737_v46  ;;  %v12362_v47 = vrot.slane %v13736_v24, %v16201_v37 }
0x3009   :  { %v12246_v31 = vcombine.low %v12238_v52, %v12245_v50  ;;  %14124 = vmatprep.subr.bf16.mxu0 %v15487_v54  ;;  %v12369_v19 = vrot.slane %v12355_v38, %v16201_v37  ;;  %v12396_v52 = vrot.slane %v13737_v46, %v16201_v37  ;;  %v15490_v46 = vld [vmem:[#allocation8 + $0x228] sm:$0xff]   ;;  %v15491_v38 = vld [vmem:[#allocation8 + $0x270] sm:$0xff]  }
0x300a   :  { %v12255_v14 = vrot.slane %v12247_v6, %v16201_v37  ;;  %v12262_v61 = vrot.slane %v12248_v51, %v16201_v37  ;;  %12578 = vmatpush1.bf16.msra.mxu1 %v15461_v13  ;;  %v12403_v50 = vrot.slane %v12389_v11, %v16201_v37  ;;  %v15492_v11 = vld [vmem:[#allocation8 + $0x230] sm:$0xff]  }
0x300b   :  { %12266 = vadd.xlane.f32.xlu0 %v12246_v31  ;;  %12579 = vmatprep.subr.bf16.mxu1 %v15466_v33  ;;  %v12404_v13 = vcombine.high %v12396_v52, %v12396_v52 }
0x300c   :  { %v12263_v25 = vcombine.low %v12255_v14, %v12262_v61  ;;  %14125 = vmatpush3.bf16.msra.mxu0 %v15488_v30  ;;  %v12370_v61 = vcombine.high %v12362_v47, %v12362_v47  ;;  %v12405_v33 = vcombine.high %v12403_v50, %v12403_v50 }
0x300d   :  { %14126 = vmatprep.subr.bf16.mxu0 %v15489_v48 }
0x300e   :  { %12580 = vmatpush1.bf16.msra.mxu1 %v15464_v57 }
0x300f   :  { %12268 = vadd.xlane.f32.xlu0 %v12263_v25  ;;  %12581 = vmatprep.subr.bf16.mxu1 %v15469_v0  ;;  %v12371_v25 = vcombine.high %v12369_v19, %v12369_v19 }
0x3010   :  { %14127 = vmatpush3.bf16.msra.mxu0 %v15490_v46 }
0x3011   :  { %14128 = vmatprep.subr.bf16.mxu0 %v15491_v38 }
0x3012   :  { %12582 = vmatpush1.bf16.msra.mxu1 %v15467_v53 }
0x3013   :  { %12583 = vmatprep.subr.bf16.mxu1 %v15472_v45 }
0x3014   :  { %14129 = vmatpush3.bf16.msra.mxu0 %v15492_v11 }
0x3016   :  { %12584 = vmatpush1.bf16.msra.mxu1 %v15470_v32 }
0x3017   :  { %12585 = vmatprep.subr.bf16.mxu1 %v15475_v40 }
0x301a   :  { %12586 = vmatpush1.bf16.msra.mxu1 %v15473_v49 }
0x301b   :  { %12587 = vmatprep.subr.bf16.mxu1 %v15478_v39 }
0x301e   :  { %12588 = vmatpush1.bf16.msra.mxu1 %v15476_v41 }
0x3098   :  { %v12267_v15 = vpop.xlane.xlu0 %12266 }
0x3099   :  { %v12270_v58 = vmul.f32 0.0078125, %v12267_v15 }
0x309b   :  { %v12272_v3 = vadd.f32 1e-05, %v12270_v58 }
0x309c   :  { %v12269_v2 = vpop.xlane.xlu0 %12268 }
0x309d   :  { %15847 = vrsqrt.f32 %v12272_v3  ;;  %v12271_v35 = vmul.f32 0.0078125, %v12269_v2 }
0x309f   :  { %v12273_v5 = vadd.f32 1e-05, %v12271_v35 }
0x30a1   :  { %15849 = vrsqrt.f32 %v12273_v5 }
0x30a7   :  { %v15848_v23 = vpop.eup %15847 }
0x30a8   :  { %v12284_v6 = vrot.slane %v15848_v23, %v16587_v20  ;;  %v12291_v51 = vrot.slane %v15848_v23, %v16590_v9  ;;  %v12298_v31 = vrot.slane %v15848_v23, %v16593_v22  ;;  %v12305_v14 = vrot.slane %v15848_v23, %v16596_v43  ;;  %v13738_v23 = vld [vmem:[%s19205_s10 + $0x8] sm:$0x3] }
0x30aa   :  { %v12342_v21 = vmul.f32 %v12284_v6, %v18934_v16  ;;  %v12343_v63 = vmul.f32 %v12291_v51, %v18936_v8  ;;  %v12344_v42 = vmul.f32 %v12298_v31, %v18938_v59  ;;  %v12345_v56 = vmul.f32 %v12305_v14, %v18940_v34 }
0x30ab   :  { %v15850_v36 = vpop.eup %15849 }
0x30ac   :  { %v12312_v57 = vrot.slane %v15850_v36, %v16587_v20  ;;  %v12319_v0 = vrot.slane %v15850_v36, %v16590_v9  ;;  %v12326_v53 = vrot.slane %v15850_v36, %v16593_v22  ;;  %v12333_v45 = vrot.slane %v15850_v36, %v16596_v43 }
0x30ad   :  { %v12376_v32 = vmul.f32 %v12362_v47, %v12342_v21  ;;  %v12377_v40 = vmul.f32 %v12370_v61, %v12343_v63  ;;  %v12378_v16 = vmul.f32 %v12369_v19, %v12344_v42  ;;  %v12379_v49 = vmul.f32 %v12371_v25, %v12345_v56 }
0x30ae   :  { %v12346_v8 = vmul.f32 %v12312_v57, %v18954_v10  ;;  %v12347_v59 = vmul.f32 %v12319_v0, %v18956_v12  ;;  %v12348_v34 = vmul.f32 %v12326_v53, %v18958_v26  ;;  %v12349_v39 = vmul.f32 %v12333_v45, %v18960_v28 }
0x30af   :  { %v19000_v41 = vadd.f32 %v12396_v52, %v12376_v32  ;;  %v19002_v55 = vadd.f32 %v12404_v13, %v12377_v40  ;;  %v19004_v7 = vadd.f32 %v12403_v50, %v12378_v16  ;;  %v19006_v4 = vadd.f32 %v12405_v33, %v12379_v49 }
0x30b0   :  { %v12380_v29 = vmul.f32 %v12362_v47, %v12346_v8  ;;  %v12381_v44 = vmul.f32 %v12370_v61, %v12347_v59  ;;  %v12382_v27 = vmul.f32 %v12369_v19, %v12348_v34  ;;  %v12383_v17 = vmul.f32 %v12371_v25, %v12349_v39  ;;  %v15493_v47 = vld [vmem:[#allocation8 + $0x278] sm:$0xff]  }
0x30b1   :  { %v12426_v10 = vcombine.low %v19000_v41, %v19002_v55  ;;  %v12427_v12 = vcombine.low %v19004_v7, %v19006_v4  ;;  %v15494_v19 = vld [vmem:[#allocation8 + $0x238] sm:$0xff]   ;;  %14130 = vmatprep.subr.bf16.mxu0 %v15493_v47 }
0x30b2   :  { %v19012_v26 = vadd.f32 %v12396_v52, %v12380_v29  ;;  %v19014_v28 = vadd.f32 %v12404_v13, %v12381_v44  ;;  %v19016_v18 = vadd.f32 %v12403_v50, %v12382_v27  ;;  %v19018_v54 = vadd.f32 %v12405_v33, %v12383_v17  ;;  %14131 = vmatpush3.bf16.msra.mxu0 %v15494_v19 }
0x30b3   :  { %v12434_v30 = vrot.slane %v12426_v10, %v16201_v37  ;;  %v12441_v48 = vrot.slane %v12427_v12, %v16201_v37  ;;  %v12486_v52 = vrot.slane %v13738_v23, %v16229_v60  ;;  %v12490_v50 = vrot.slane %v13738_v23, %v16235_v62  ;;  %v13756_v60 = vld [vmem:[%s19207_s12 + $0x4] ss:$0 sm:$0xff] }
0x30b4   :  { %v12443_v15 = vcombine.low %v19012_v26, %v19014_v28  ;;  %v12444_v58 = vcombine.low %v19016_v18, %v19018_v54 }
0x30b5   :  { %v12442_v35 = vcombine.low %v12434_v30, %v12441_v48 }
0x30b6   :  { %v12451_v3 = vrot.slane %v12443_v15, %v16201_v37  ;;  %v12458_v2 = vrot.slane %v12444_v58, %v16201_v37 }
0x30b8   :  { %v12459_v24 = vcombine.low %v12451_v3, %v12458_v2 }
0x30ba   :  { %v12462_v5 = vpack.c.bf16 %v12459_v24, %v12442_v35 }
0x30bc   :  { %12606 = vmatmul.mubr.bf16.vlgmr.msra.gmra.mrb[228].mxu1 %v12462_v5 }
0x30bd   :  { %14867 = vmatprep.mubr.msk.f32.mxu1 %vm15993_vm0, %v15992_v1 }
0x318f   :  { %v12607_v6 = vpop.f32.mrb[228].mxu1 }
0x3190   :  { %v12608_v1 = vadd.f32 %v12607_v6, %v12486_v52  ;;  %v12609_v51 = vpop.f32.mrb[229].mxu1 }
0x3191   :  { %v12610_v31 = vadd.f32 %v12609_v51, %v12490_v50  ;;  %v12611_v14 = vpop.f32.mrb[230].mxu1 }
0x3192   :  { %v12612_v61 = vadd.f32 %v12611_v14, %v12486_v52  ;;  %v12613_v25 = vpop.f32.mrb[231].mxu1  ;;  %v12616_v63 = vmax.f32 %v12608_v1, 0.0 }
0x3193   :  { %v12614_v21 = vadd.f32 %v12613_v25, %v12490_v50  ;;  %v12617_v56 = vmax.f32 %v12610_v31, 0.0 }
0x3194   :  { %v12618_v42 = vmax.f32 %v12612_v61, 0.0 }
0x3195   :  { %v12619_v36 = vmax.f32 %v12614_v21, 0.0 }
0x3196   :  { %v12620_v13 = vpack.c.bf16 %v12618_v42, %v12616_v63 }
0x3197   :  { %v12621_v33 = vpack.c.bf16 %v12619_v36, %v12617_v56 }
0x3199   :  { %12791 = vmatprep.mubr.bf16.mxu0 %v12621_v33 }
0x319a   :  { %12792 = vmatmul.mubr.bf16.vlgmr.msra.gmra.mrb[184].mxu0 %v12620_v13 }
0x326d   :  { %v14132_v57 = vpop.f32.mrb[184].mxu0 }
0x326e   :  { %v14133_v62 = vpop.f32.mrb[185].mxu0 }
0x326f   :  { %v14134_v0 = vadd.f32 %v14133_v62, %v14132_v57  ;;  %v14135_v53 = vpop.f32.mrb[186].mxu0 }
0x3270   :  { %v14136_v45 = vpop.f32.mrb[187].mxu0 }
0x3271   :  { %v12794_v32 = vadd.f32 %v14134_v0, %v13756_v60  ;;  %v14137_v40 = vadd.f32 %v14136_v45, %v14135_v53 }
0x3273   :  { %v12802_v16 = vcombine.high %v12794_v32, %v12794_v32  ;;  %v12809_v49 = vrot.slane %v12794_v32, %v16201_v37  ;;  %v12797_v8 = vadd.f32 %v14137_v40, %v13756_v60 }
0x3275   :  { %v12816_v59 = vrot.slane %v12802_v16, %v16201_v37  ;;  %v12817_v34 = vcombine.high %v12809_v49, %v12809_v49  ;;  %v12819_v39 = vcombine.high %v12797_v8, %v12797_v8  ;;  %v12826_v29 = vrot.slane %v12797_v8, %v16201_v37 }
0x3276   :  { %v12844_v27 = vadd.f32 %v12809_v49, %v19000_v41 }
0x3277   :  { %v12818_v44 = vcombine.high %v12816_v59, %v12816_v59  ;;  %v12845_v17 = vadd.f32 %v12817_v34, %v19002_v55  ;;  %v12833_v10 = vrot.slane %v12819_v39, %v16201_v37  ;;  %v12834_v12 = vcombine.high %v12826_v29, %v12826_v29 }
0x3278   :  { %v12846_v30 = vadd.f32 %v12816_v59, %v19004_v7  ;;  %v12848_v3 = vadd.f32 %v12826_v29, %v19012_v26 }
0x3279   :  { %v12835_v48 = vcombine.high %v12833_v10, %v12833_v10  ;;  %v12847_v15 = vadd.f32 %v12818_v44, %v19006_v4  ;;  %v12864_v58 = vcombine.low %v12844_v27, %v12845_v17  ;;  %v12849_v2 = vadd.f32 %v12834_v12, %v19014_v28 }
0x327a   :  { %v12850_v35 = vadd.f32 %v12833_v10, %v19016_v18  ;;  %v13204_v10 = vld [vmem:[%s19210_s15 + $0x10] sm:$0xff]  ;;  %v16005_v12 = vmov 0.0|0.0  }
0x327b   :  { %v12865_v24 = vcombine.low %v12846_v30, %v12847_v15  ;;  %v12851_v41 = vadd.f32 %v12835_v48, %v19018_v54  ;;  %v12881_v5 = vcombine.low %v12848_v3, %v12849_v2  ;;  %v12872_v55 = vrot.slane %v12864_v58, %v16201_v37  ;;  %14870 = vmatprep.subr.bf16.mxu1 %v16005_v12  ;;  %v13205_v48 = vld [vmem:[%s19210_s15 + $0x18] sm:$0xff]  ;;  %v13206_v58 = vld [vmem:[%s19210_s15 + $0x20] sm:$0xff] }
0x327d   :  { %v12879_v46 = vrot.slane %v12865_v24, %v16201_v37  ;;  %v12882_v38 = vcombine.low %v12850_v35, %v12851_v41  ;;  %v12889_v11 = vrot.slane %v12881_v5, %v16201_v37  ;;  %v13209_v24 = vld [vmem:[%s19210_s15 + $0x38] sm:$0xff]  ;;  %v13210_v5 = vld [vmem:[%s19210_s15 + $0x40] sm:$0xff] }
0x327f   :  { %v12880_v7 = vcombine.low %v12872_v55, %v12879_v46  ;;  %v12896_v4 = vrot.slane %v12882_v38, %v16201_v37  ;;  %v13211_v55 = vld [vmem:[%s19210_s15 + $0x48] sm:$0xff]  ;;  %v13212_v38 = vld [vmem:[%s19210_s15 + $0x50] sm:$0xff] }
0x3280   :  { %v14883_v46 = vpack.c.bf16 %v13211_v55, %v13210_v5 }
0x3281   :  { %12900 = vadd.xlane.f32.xlu1 %v12880_v7  ;;  %v12897_v26 = vcombine.low %v12889_v11, %v12896_v4  ;;  %v13213_v7 = vld [vmem:[%s19210_s15 + $0x58] sm:$0xff]  ;;  %v13214_v4 = vld [vmem:[%s19210_s15 + $0x60] sm:$0xff] }
0x3282   :  { %v14886_v11 = vpack.c.bf16 %v13213_v7, %v13212_v38 }
0x3283   :  { %12902 = vadd.xlane.f32.xlu0 %v12897_v26  ;;  %v13215_v26 = vld [vmem:[%s19210_s15 + $0x68] sm:$0xff] }
0x330e   :  { %v12901_v28 = vpop.xlane.xlu1 %12900 }
0x330f   :  { %v12904_v47 = vmul.f32 0.0078125, %v12901_v28  ;;  %v14889_v28 = vpack.c.bf16 %v13215_v26, %v13214_v4 }
0x3310   :  { %v12903_v18 = vpop.xlane.xlu0 %12902 }
0x3311   :  { %v12914_v19 = vrot.slane %v12904_v47, %v16587_v20  ;;  %v12921_v54 = vrot.slane %v12904_v47, %v16590_v9  ;;  %v12928_v23 = vrot.slane %v12904_v47, %v16593_v22  ;;  %v12935_v52 = vrot.slane %v12904_v47, %v16596_v43  ;;  %v13216_v47 = vld [vmem:[%s19210_s15 + $0x70] sm:$0xff] }
0x3312   :  { %v12905_v50 = vmul.f32 0.0078125, %v12903_v18  ;;  %v13217_v18 = vld [vmem:[%s19210_s15 + $0x78] sm:$0xff] }
0x3313   :  { %v19058_v6 = vsub.f32 %v12844_v27, %v12914_v19  ;;  %v19060_v1 = vsub.f32 %v12845_v17, %v12921_v54  ;;  %v19062_v51 = vsub.f32 %v12846_v30, %v12928_v23  ;;  %v19064_v31 = vsub.f32 %v12847_v15, %v12935_v52  ;;  %v13202_v27 = vld [vmem:[%s19210_s15] sm:$0xff]  ;;  %v13203_v17 = vld [vmem:[%s19210_s15 + $0x8] sm:$0xff] }
0x3314   :  { %v12942_v14 = vrot.slane %v12905_v50, %v16587_v20  ;;  %v12949_v61 = vrot.slane %v12905_v50, %v16590_v9  ;;  %v12956_v25 = vrot.slane %v12905_v50, %v16593_v22  ;;  %v12963_v21 = vrot.slane %v12905_v50, %v16596_v43 }
0x3315   :  { %v12980_v63 = vmul.f32 %v19058_v6, %v19058_v6  ;;  %v12981_v42 = vmul.f32 %v19060_v1, %v19060_v1  ;;  %v12982_v56 = vmul.f32 %v19062_v51, %v19062_v51  ;;  %v12983_v36 = vmul.f32 %v19064_v31, %v19064_v31 }
0x3316   :  { %v19078_v13 = vsub.f32 %v12848_v3, %v12942_v14  ;;  %v19080_v33 = vsub.f32 %v12849_v2, %v12949_v61  ;;  %v19082_v57 = vsub.f32 %v12850_v35, %v12956_v25  ;;  %v19084_v60 = vsub.f32 %v12851_v41, %v12963_v21  ;;  %v13207_v3 = vld [vmem:[%s19210_s15 + $0x28] sm:$0xff]  ;;  %v13208_v35 = vld [vmem:[%s19210_s15 + $0x30] sm:$0xff]  ;;  %v13775_v25 = vld [vmem:[%s19208_s13 + $0x4] ss:$0 sm:$0xff]  ;;  %s16006_s15 = smov [#allocation10]  }
0x3317   :  { %v12996_v62 = vcombine.low %v12980_v63, %v12981_v42  ;;  %v12997_v0 = vcombine.low %v12982_v56, %v12983_v36  ;;  %v14871_v30 = vpack.c.bf16 %v13203_v17, %v13202_v27  ;;  %v14874_v15 = vpack.c.bf16 %v13205_v48, %v13204_v10  ;;  %v13776_v21 = vld [vmem:[%s19209_s14 + $0x4] ss:$0 sm:$0xff]  ;;  %s13303_s26 = sshll.u32 %s16006_s15, 4  ;;  %s13304_s26 = int_to_ptr.vmem [resolvable:$true] %s13303_s26 }
0x3318   :  { %v12984_v53 = vmul.f32 %v19078_v13, %v19078_v13  ;;  %v12985_v45 = vmul.f32 %v19080_v33, %v19080_v33  ;;  %v12986_v32 = vmul.f32 %v19082_v57, %v19082_v57  ;;  %v12987_v40 = vmul.f32 %v19084_v60, %v19084_v60  ;;  %s15951_s19 = scalar_lea.vmem %s13304_s26, 32  ;;  %p15956_p5 = scmp.lt.s32.totalorder %s13304_s26, %s13304_s26 }
0x3319   :  { %v13004_v16 = vrot.slane %v12996_v62, %v16201_v37  ;;  %v13011_v49 = vrot.slane %v12997_v0, %v16201_v37  ;;  %14872 = vmatpush3.bf16.msra.mxu1 %v14871_v30  ;;  %v14877_v2 = vpack.c.bf16 %v13207_v3, %v13206_v58  ;;  %v14880_v41 = vpack.c.bf16 %v13209_v24, %v13208_v35  ;;  %p15952_p4 = scmp.ne.s32.totalorder %s13304_s26, %s15951_s19  ;;  %p15957_p6 = scmp.lt.s32.totalorder %s15951_s19, %s15951_s19 }
0x331a   :  { %v13013_v8 = vcombine.low %v12984_v53, %v12985_v45  ;;  %v13014_v59 = vcombine.low %v12986_v32, %v12987_v40  ;;  %14873 = vmatprep.subr.bf16.mxu1 %v16005_v12  ;;  %v14892_v19 = vpack.c.bf16 %v13217_v18, %v13216_v47  ;;  %v13121_v63 = vcombine.high %v13775_v25, %v13775_v25 }
0x331b   :  { %v13012_v34 = vcombine.low %v13004_v16, %v13011_v49  ;;  %v13128_v42 = vrot.slane %v13775_v25, %v16201_v37  ;;  %v13155_v56 = vcombine.high %v13776_v21, %v13776_v21  ;;  %v13162_v62 = vrot.slane %v13776_v21, %v16201_v37  ;;  %p15958_p7 = por %p15957_p6, %p15956_p5 }
0x331c   :  { %v13021_v39 = vrot.slane %v13013_v8, %v16201_v37  ;;  %v13028_v29 = vrot.slane %v13014_v59, %v16201_v37  ;;  %v13135_v36 = vrot.slane %v13121_v63, %v16201_v37 }
0x331d   :  { %13032 = vadd.xlane.f32.xlu1 %v13012_v34  ;;  %14875 = vmatpush3.bf16.msra.mxu1 %v14874_v15  ;;  %v13136_v53 = vcombine.high %v13128_v42, %v13128_v42  ;;  %v13169_v45 = vrot.slane %v13155_v56, %v16201_v37  ;;  %v13170_v59 = vcombine.high %v13162_v62, %v13162_v62  ;;  %p15959_p8 = pnand %p15958_p7, %p15952_p4 }
0x331e   :  { %v13029_v44 = vcombine.low %v13021_v39, %v13028_v29  ;;  %14876 = vmatprep.subr.bf16.mxu1 %v16005_v12  ;;  %v13137_v8 = vcombine.high %v13135_v36, %v13135_v36 }
0x3320   :  { %13034 = vadd.xlane.f32.xlu0 %v13029_v44 }
0x3321   :  { %14878 = vmatpush3.bf16.msra.mxu1 %v14877_v2 }
0x3322   :  { %14879 = vmatprep.subr.bf16.mxu1 %v16005_v12 }
0x3325   :  { %14881 = vmatpush3.bf16.msra.mxu1 %v14880_v41 }
0x3326   :  { %14882 = vmatprep.subr.bf16.mxu1 %v16005_v12 }
0x3329   :  { %14884 = vmatpush3.bf16.msra.mxu1 %v14883_v46 }
0x332a   :  { %14885 = vmatprep.subr.bf16.mxu1 %v16005_v12 }
0x332d   :  { %14887 = vmatpush3.bf16.msra.mxu1 %v14886_v11 }
0x332e   :  { %14888 = vmatprep.subr.bf16.mxu1 %v16005_v12 }
0x3331   :  { %14890 = vmatpush3.bf16.msra.mxu1 %v14889_v28 }
0x3332   :  { %14891 = vmatprep.subr.bf16.mxu1 %v16005_v12  ;;  %v13171_v12 = vcombine.high %v13169_v45, %v13169_v45 }
0x3335   :  { %14893 = vmatpush3.bf16.msra.mxu1 %v14892_v19 }
0x33aa   :  { %v13033_v54 = vpop.xlane.xlu1 %13032 }
0x33ab   :  { %v13036_v23 = vmul.f32 0.0078125, %v13033_v54 }
0x33ad   :  { %v13038_v52 = vadd.f32 1e-05, %v13036_v23  ;;  %v13035_v50 = vpop.xlane.xlu0 %13034 }
0x33ae   :  { %v13037_v14 = vmul.f32 0.0078125, %v13035_v50 }
0x33af   :  { %15851 = vrsqrt.f32 %v13038_v52 }
0x33b0   :  { %v13039_v61 = vadd.f32 1e-05, %v13037_v14  ;;  %v13777_v14 = vld [vmem:[%s19211_s16] ss:$0 sm:$0xff] }
0x33b2   :  { %15853 = vrsqrt.f32 %v13039_v61 }
0x33b9   :  { %v15852_v0 = vpop.eup %15851 }
0x33ba   :  { %v13050_v32 = vrot.slane %v15852_v0, %v16587_v20  ;;  %v13057_v40 = vrot.slane %v15852_v0, %v16590_v9  ;;  %v13064_v16 = vrot.slane %v15852_v0, %v16593_v22  ;;  %v13071_v49 = vrot.slane %v15852_v0, %v16596_v43 }
0x33bc   :  { %v15854_v34 = vpop.eup %15853  ;;  %v13108_v39 = vmul.f32 %v13050_v32, %v19058_v6  ;;  %v13109_v29 = vmul.f32 %v13057_v40, %v19060_v1  ;;  %v13110_v44 = vmul.f32 %v13064_v16, %v19062_v51  ;;  %v13111_v27 = vmul.f32 %v13071_v49, %v19064_v31 }
0x33bd   :  { %v13078_v37 = vrot.slane %v15854_v34, %v16587_v20  ;;  %v13085_v17 = vrot.slane %v15854_v34, %v16590_v9  ;;  %v13092_v10 = vrot.slane %v15854_v34, %v16593_v22  ;;  %v13099_v58 = vrot.slane %v15854_v34, %v16596_v43 }
0x33be   :  { %v13142_v30 = vmul.f32 %v13128_v42, %v13108_v39  ;;  %v13143_v48 = vmul.f32 %v13136_v53, %v13109_v29  ;;  %v13144_v15 = vmul.f32 %v13135_v36, %v13110_v44  ;;  %v13145_v51 = vmul.f32 %v13137_v8, %v13111_v27 }
0x33bf   :  { %v13112_v6 = vmul.f32 %v13078_v37, %v19078_v13  ;;  %v13113_v1 = vmul.f32 %v13085_v17, %v19080_v33  ;;  %v13114_v20 = vmul.f32 %v13092_v10, %v19082_v57  ;;  %v13115_v24 = vmul.f32 %v13099_v58, %v19084_v60 }
0x33c0   :  { %v13176_v3 = vadd.f32 %v13162_v62, %v13142_v30  ;;  %v13177_v31 = vadd.f32 %v13170_v59, %v13143_v48  ;;  %v13178_v9 = vadd.f32 %v13169_v45, %v13144_v15  ;;  %v13179_v5 = vadd.f32 %v13171_v12, %v13145_v51 }
0x33c1   :  { %v13146_v2 = vmul.f32 %v13128_v42, %v13112_v6  ;;  %v13147_v41 = vmul.f32 %v13136_v53, %v13113_v1  ;;  %v13148_v55 = vmul.f32 %v13135_v36, %v13114_v20  ;;  %v13149_v38 = vmul.f32 %v13137_v8, %v13115_v24 }
0x33c2   :  { %v13185_v22 = vsel %vm13184_vm8, %v13176_v3, 0.0  ;;  %v13186_v35 = vsel %vm13184_vm8, %v13177_v31, 0.0  ;;  %v13188_v33 = vsel %vm13184_vm8, %v13178_v9, 0.0  ;;  %v13190_v57 = vsel %vm13184_vm8, %v13179_v5, 0.0 }
0x33c3   :  { %v13187_v43 = vadd.f32 %v13186_v35, %v13185_v22  ;;  %v13180_v13 = vadd.f32 %v13162_v62, %v13146_v2  ;;  %v13181_v7 = vadd.f32 %v13170_v59, %v13147_v41  ;;  %v13182_v4 = vadd.f32 %v13169_v45, %v13148_v55 }
0x33c4   :  { %v13183_v47 = vadd.f32 %v13171_v12, %v13149_v38 }
0x33c5   :  { %v13189_v46 = vadd.f32 %v13188_v33, %v13187_v43  ;;  %v13192_v26 = vsel %vm13184_vm8, %v13180_v13, 0.0  ;;  %v13194_v60 = vsel %vm13184_vm8, %v13181_v7, 0.0  ;;  %v13196_v19 = vsel %vm13184_vm8, %v13182_v4, 0.0 }
0x33c6   :  { %v13198_v23 = vsel %vm13184_vm8, %v13183_v47, 0.0 }
0x33c7   :  { %v13191_v11 = vadd.f32 %v13190_v57, %v13189_v46 }
0x33c9   :  { %v13193_v28 = vadd.f32 %v13192_v26, %v13191_v11 }
0x33cb   :  { %v13195_v18 = vadd.f32 %v13194_v60, %v13193_v28 }
0x33cd   :  { %v13197_v54 = vadd.f32 %v13196_v19, %v13195_v18 }
0x33cf   :  { %v13199_v52 = vadd.f32 %v13198_v23, %v13197_v54 }
0x33d1   :  { %v13201_v50 = vmul.f32 0.125, %v13199_v52 }
0x33d3   :  { %14868 = vmatmul.mubr.f32.vlgmr.msra.gmra.mrb[232].mxu1 %v13201_v50 }
0x34a6   :  { %v13291_v61 = vpop.f32.mrb[232].mxu1 }
0x34a7   :  { %v13292_v25 = vadd.f32 %v13777_v14, %v13291_v61  ;;  %v14869_v21 = vpop.f32.mrb[233].mxu1 }
0x34a9   :  { %13296 = vst.msk [vmem:[#allocation10] sm:$0x3] %vm13295_vm9, %v13292_v25 }
0x34aa   :  { %15962 = shalt.err (!%p15959_p8)
}
0x34ab   :  { %s15963_s20 = scalar_lea.hbm %s19212_s17, 32 }
0x34ac   :  { %p15964_p9 = scmp.ne.s32.totalorder %s19212_s17, %s15963_s20  ;;  %p15967_p10 = scmp.lt.u32.totalorder %s15963_s20, %s19212_s17 }
0x34ae   :  { %p15969_p11 = pnand %p15967_p10, %p15964_p9 }
0x34b0   :  { %15972 = shalt.err (!%p15969_p11)
}
0x34b1   :  { %13306 = dma.vmem_to_hbm [thread:$0]  %s13304_s26, 32, %s19212_s17, [#allocation4]  }
0x34b2   :  { %15979 = dma.done.wait [#allocation4], 32  }
0x34b3   :  { %15980 = vsyncadd [#allocation4], 4294967264 }
0x34b4   :  { %13310 = vsyncpa [#allocation3], 1 }
0x34b5   :  { %13311 = vsyncpa [#allocation6], 1 }
0x34b6   :  { %13312 = vsyncpa [#allocation9], 1 }
0x34b7   :  { %13313 = vsyncpa [#allocation4], 1 }

</bundles_post_ra>
